<compile_context>
chip_gen: v6e
topology: v6e:2x2x1
jax: 0.10.0
libtpu: 0.0.40
codegen_flags: <defaults>
</compile_context>

<pallas_src>
import jax
import jax.numpy as jnp
from jax.experimental import pallas as pl
from jax.experimental.pallas import tpu as pltpu

C1_PAD = 128   # conv1 out channels padded 32 -> 128 (lane-dense)
C2_PAD = 128   # conv2 out channels padded 64 -> 128 (lane-dense)
FC_OUT_PAD = 128  # fc2 out padded 10 -> 128 (lane-dense)


# ----------------------------- Pallas kernels ------------------------------ #

def _conv_relu_pool_kernel(p_ref, w_ref, b_ref, o_ref):
    """Fused 3x3 'same' conv + bias + ReLU + 2x2/2 maxpool.

    p_ref: (4, M, K) im2col patches, axis 0 = pool quadrant (dh*2+dw),
           rows ordered (ho, wo); w_ref: (K, C); b_ref: (1, C); o_ref: (M, C).
    Uses maxpool(relu(conv+b)) == relu(max_q(conv_q) + b) (bias const, relu monotone).
    """
    w = w_ref[...]
    acc = jnp.dot(p_ref[0], w, preferred_element_type=jnp.float32)
    for q in range(1, 4):
        acc = jnp.maximum(
            acc, jnp.dot(p_ref[q], w, preferred_element_type=jnp.float32))
    o_ref[...] = jnp.maximum(acc + b_ref[...], 0.0).astype(o_ref.dtype)


def _fc_head_kernel(x_ref, w1_ref, b1_ref, w2_ref, b2_ref, o_ref):
    """Fused fc1 + bias + ReLU + fc2 + bias; fc1 activation stays in registers/VMEM."""
    h = jnp.dot(x_ref[...], w1_ref[...], preferred_element_type=jnp.float32)
    h = jnp.maximum(h + b1_ref[...], 0.0)
    o = jnp.dot(h, w2_ref[...], preferred_element_type=jnp.float32) + b2_ref[...]
    o_ref[...] = o.astype(o_ref.dtype)


# ------------------------------- wrappers ----------------------------------- #

def conv_relu_pool(patches, w_mat, bias):
    """patches: (N, 4, M, K); w_mat: (K, C); bias: (1, C) -> (N, M, C)."""
    n, _, m, k = patches.shape
    c = w_mat.shape[1]
    flops = 2 * n * 4 * m * k * c
    bytes_accessed = 4 * (patches.size + w_mat.size + bias.size + n * m * c)
    return pl.pallas_call(
        _conv_relu_pool_kernel,
        out_shape=jax.ShapeDtypeStruct((n, m, c), jnp.float32),
        grid=(n,),
        in_specs=[
            pl.BlockSpec((None, 4, m, k), lambda i: (i, 0, 0, 0)),
            pl.BlockSpec((k, c), lambda i: (0, 0)),
            pl.BlockSpec((1, c), lambda i: (0, 0)),
        ],
        out_specs=pl.BlockSpec((None, m, c), lambda i: (i, 0, 0)),
        compiler_params=pltpu.CompilerParams(
            dimension_semantics=("parallel",)),
        cost_estimate=pl.CostEstimate(flops=flops, transcendentals=0,
                                      bytes_accessed=bytes_accessed),
    )(patches, w_mat, bias)


def fc_head(x, w1, b1, w2, b2):
    """x:[M,K] -> relu(x@w1+b1) @ w2 + b2, single pallas_call."""
    m, k = x.shape
    h = w1.shape[1]
    nout = w2.shape[1]
    flops = 2 * m * k * h + 2 * m * h * nout
    bytes_accessed = 4 * (x.size + w1.size + b1.size + w2.size + b2.size + m * nout)
    return pl.pallas_call(
        _fc_head_kernel,
        out_shape=jax.ShapeDtypeStruct((m, nout), jnp.float32),
        grid=(1,),
        in_specs=[
            pl.BlockSpec((m, k), lambda i: (0, 0)),
            pl.BlockSpec((k, h), lambda i: (0, 0)),
            pl.BlockSpec((1, h), lambda i: (0, 0)),
            pl.BlockSpec((h, nout), lambda i: (0, 0)),
            pl.BlockSpec((1, nout), lambda i: (0, 0)),
        ],
        out_specs=pl.BlockSpec((m, nout), lambda i: (0, 0)),
        cost_estimate=pl.CostEstimate(flops=flops, transcendentals=0,
                                      bytes_accessed=bytes_accessed),
    )(x, w1, b1, w2, b2)


# --------------------------------- glue ------------------------------------ #

def quadrant_patches_3x3(x_nhwc):
    """3x3 'same' im2col, regrouped by 2x2-pool quadrant.

    x: (N, H, W, C) -> (N, 4, (H//2)*(W//2), 9*C).
    Quadrant q = dh*2 + dw holds the patch for conv output (2*ho+dh, 2*wo+dw);
    patch columns ordered (kh, kw, cin) to match the weight matrix layout.
    """
    n, hdim, wdim, c = x_nhwc.shape
    ho, wo = hdim // 2, wdim // 2
    xp = jnp.pad(x_nhwc, ((0, 0), (1, 1), (1, 1), (0, 0)))
    cols = [xp[:, ki:ki + hdim, kj:kj + wdim, :]
            for ki in range(3) for kj in range(3)]
    patches = jnp.concatenate(cols, axis=-1)               # (N, H, W, 9C)
    patches = patches.reshape(n, ho, 2, wo, 2, 9 * c)
    patches = jnp.transpose(patches, (0, 2, 4, 1, 3, 5))   # (N, dh, dw, Ho, Wo, 9C)
    return patches.reshape(n, 4, ho * wo, 9 * c)


def prepare_params(params):
    """One-time weight prep: transposes, lane padding, fc1 column permutation."""
    # conv1: (32,1,3,3) -> (kh,kw,cin,cout) -> (9, 32) -> pad cout to 128.
    w1 = jnp.transpose(params["w1"], (2, 3, 1, 0)).reshape(9 * 1, 32)
    w1 = jnp.pad(w1, ((0, 0), (0, C1_PAD - 32)))
    b1 = jnp.pad(params["b1"], (0, C1_PAD - 32)).reshape(1, C1_PAD)

    # conv2: (64,32,3,3) -> (kh,kw,cin,cout); pad cin 32->128 (conv1 out is
    # channel-padded) and cout 64->128 -> (9*128, 128).
    w2 = jnp.transpose(params["w2"], (2, 3, 1, 0))          # (3,3,32,64)
    w2 = jnp.pad(w2, ((0, 0), (0, 0), (0, C1_PAD - 32), (0, C2_PAD - 64)))
    w2 = w2.reshape(9 * C1_PAD, C2_PAD)
    b2 = jnp.pad(params["b2"], (0, C2_PAD - 64)).reshape(1, C2_PAD)

    # fc1: torch weight (128, 64*7*7) with columns in NCHW-flatten order (c,h,w).
    # Re-order + pad once so the kernel consumes the NHWC(channel-padded) flatten
    # (h, w, c_pad) directly -> no runtime transpose of the activation.
    wfc1 = params["wfc1"].reshape(128, 64, 7, 7)            # (out, c, h, w)
    wfc1 = jnp.transpose(wfc1, (2, 3, 1, 0))                # (h, w, c, out)
    wfc1 = jnp.pad(wfc1, ((0, 0), (0, 0), (0, C2_PAD - 64), (0, 0)))
    wfc1 = wfc1.reshape(7 * 7 * C2_PAD, 128)
    bfc1 = params["bfc1"].reshape(1, 128)

    # fc2: (10, 128) -> (128, 10) -> pad out 10 -> 128 (lane-dense output).
    wfc2 = jnp.pad(params["wfc2"].T, ((0, 0), (0, FC_OUT_PAD - 10)))
    bfc2 = jnp.pad(params["bfc2"], (0, FC_OUT_PAD - 10)).reshape(1, FC_OUT_PAD)

    return dict(w1=w1, b1=b1, w2=w2, b2=b2,
                wfc1=wfc1, bfc1=bfc1, wfc2=wfc2, bfc2=bfc2)


@jax.jit
def simple_cnn_forward(x_nchw, pp):
    n = x_nchw.shape[0]
    x = jnp.transpose(x_nchw, (0, 2, 3, 1))                 # NCHW -> NHWC (N,28,28,1)
    p1 = quadrant_patches_3x3(x)                            # (N,4,196,9)
    y1 = conv_relu_pool(p1, pp["w1"], pp["b1"])             # (N,196,128)  14x14 pooled
    y1 = y1.reshape(n, 14, 14, C1_PAD)
    p2 = quadrant_patches_3x3(y1)                           # (N,4,49,1152)
    y2 = conv_relu_pool(p2, pp["w2"], pp["b2"])             # (N,49,128)   7x7 pooled
    x_flat = y2.reshape(n, 7 * 7 * C2_PAD)                  # (h,w,c_pad) flatten
    logits = fc_head(x_flat, pp["wfc1"], pp["bfc1"], pp["wfc2"], pp["bfc2"])
    return logits[:, :10]


# ------------------------------ reference ---------------------------------- #

def reference_forward(x_nchw, params):
    def conv(x, w, b):
        y = jax.lax.conv_general_dilated(
            x, w, (1, 1), ((1, 1), (1, 1)),
            dimension_numbers=("NCHW", "OIHW", "NCHW"))
        return jax.nn.relu(y + b[None, :, None, None])

    def pool(x):
        return jax.lax.reduce_window(x, -jnp.inf, jax.lax.max,
                                     (1, 1, 2, 2), (1, 1, 2, 2), "VALID")

    x = pool(conv(x_nchw, params["w1"], params["b1"]))
    x = pool(conv(x, params["w2"], params["b2"]))
    x = x.reshape(x.shape[0], -1)
    x = jax.nn.relu(x @ params["wfc1"].T + params["bfc1"])
    return x @ params["wfc2"].T + params["bfc2"]


# --------------------------------- main ------------------------------------ #

if __name__ == "__main__":
    key = jax.random.PRNGKey(0)
    ks = jax.random.split(key, 9)
    params = {
        "w1":   0.10 * jax.random.normal(ks[0], (32, 1, 3, 3), jnp.float32),
        "b1":   0.10 * jax.random.normal(ks[1], (32,), jnp.float32),
        "w2":   0.05 * jax.random.normal(ks[2], (64, 32, 3, 3), jnp.float32),
        "b2":   0.10 * jax.random.normal(ks[3], (64,), jnp.float32),
        "wfc1": 0.02 * jax.random.normal(ks[4], (128, 64 * 7 * 7), jnp.float32),
        "bfc1": 0.10 * jax.random.normal(ks[5], (128,), jnp.float32),
        "wfc2": 0.05 * jax.random.normal(ks[6], (10, 128), jnp.float32),
        "bfc2": 0.10 * jax.random.normal(ks[7], (10,), jnp.float32),
    }
    # MNIST-like input implied by the module: 1 channel, 28x28 (two 2x pools -> 7x7)
    x = jax.random.normal(ks[8], (2, 1, 28, 28), jnp.float32)

    pp = prepare_params(params)                 # one-time weight layout prep
    out = jax.block_until_ready(simple_cnn_forward(x, pp))
    ref = reference_forward(x, params)

    assert out.shape == (2, 10), out.shape
    assert jnp.allclose(out, ref, rtol=1e-3, atol=1e-3), \
        float(jnp.max(jnp.abs(out - ref)))
    print("KERNEL_OK")
</pallas_src>

<mosaic_0001>
module attributes {stable_mosaic.version = 11 : i64} {
  func.func @_conv_relu_pool_kernel(%arg0: i32, %arg1: memref<1x4x196x9xf32, #tpu.memory_space<vmem>>, %arg2: memref<9x128xf32, #tpu.memory_space<vmem>>, %arg3: memref<1x128xf32, #tpu.memory_space<vmem>>, %arg4: memref<1x196x128xf32, #tpu.memory_space<vmem>>) attributes {dimension_semantics = [#tpu.dimension_semantics<parallel>], iteration_bounds = array<i64: 2>, scalar_prefetch = 0 : i64, scratch_operands = 0 : i64, tpu.core_type = #tpu.core_type<tc>, window_params = [{transform_indices = @transform_0, window_bounds = array<i64: 1, 4, 196, 9>}, {pipeline_mode = #tpu.pipeline_mode<synchronous>, transform_indices = @transform_1, window_bounds = array<i64: 9, 128>}, {pipeline_mode = #tpu.pipeline_mode<synchronous>, transform_indices = @transform_2, window_bounds = array<i64: 1, 128>}, {transform_indices = @transform_3, window_bounds = array<i64: 1, 196, 128>}]} {
    %c0 = arith.constant 0 : index
    %c0_0 = arith.constant 0 : index
    %0 = vector.load %arg2[%c0, %c0_0] : memref<9x128xf32, #tpu.memory_space<vmem>>, vector<9x128xf32>
    %c0_1 = arith.constant 0 : index
    %c0_2 = arith.constant 0 : index
    %c0_3 = arith.constant 0 : index
    %c0_4 = arith.constant 0 : index
    %1 = vector.load %arg1[%c0_1, %c0_2, %c0_3, %c0_4] : memref<1x4x196x9xf32, #tpu.memory_space<vmem>>, vector<1x1x196x9xf32>
    %2 = vector.shape_cast %1 : vector<1x1x196x9xf32> to vector<196x9xf32>
    %cst = arith.constant dense<0.000000e+00> : vector<196x128xf32>
    %3 = tpu.matmul %2, %0, %cst {dimension_numbers = #tpu.dot_dimension_numbers<[1], [0], [0], [1], [0, 0, 1, 1], [], []>} : vector<196x9xf32>, vector<9x128xf32>, vector<196x128xf32> -> vector<196x128xf32>
    %c0_5 = arith.constant 0 : index
    %c1 = arith.constant 1 : index
    %c0_6 = arith.constant 0 : index
    %c0_7 = arith.constant 0 : index
    %4 = vector.load %arg1[%c0_5, %c1, %c0_6, %c0_7] : memref<1x4x196x9xf32, #tpu.memory_space<vmem>>, vector<1x1x196x9xf32>
    %5 = vector.shape_cast %4 : vector<1x1x196x9xf32> to vector<196x9xf32>
    %cst_8 = arith.constant dense<0.000000e+00> : vector<196x128xf32>
    %6 = tpu.matmul %5, %0, %cst_8 {dimension_numbers = #tpu.dot_dimension_numbers<[1], [0], [0], [1], [0, 0, 1, 1], [], []>} : vector<196x9xf32>, vector<9x128xf32>, vector<196x128xf32> -> vector<196x128xf32>
    %7 = arith.maximumf %3, %6 : vector<196x128xf32>
    %c0_9 = arith.constant 0 : index
    %c2 = arith.constant 2 : index
    %c0_10 = arith.constant 0 : index
    %c0_11 = arith.constant 0 : index
    %8 = vector.load %arg1[%c0_9, %c2, %c0_10, %c0_11] : memref<1x4x196x9xf32, #tpu.memory_space<vmem>>, vector<1x1x196x9xf32>
    %9 = vector.shape_cast %8 : vector<1x1x196x9xf32> to vector<196x9xf32>
    %cst_12 = arith.constant dense<0.000000e+00> : vector<196x128xf32>
    %10 = tpu.matmul %9, %0, %cst_12 {dimension_numbers = #tpu.dot_dimension_numbers<[1], [0], [0], [1], [0, 0, 1, 1], [], []>} : vector<196x9xf32>, vector<9x128xf32>, vector<196x128xf32> -> vector<196x128xf32>
    %11 = arith.maximumf %7, %10 : vector<196x128xf32>
    %c0_13 = arith.constant 0 : index
    %c3 = arith.constant 3 : index
    %c0_14 = arith.constant 0 : index
    %c0_15 = arith.constant 0 : index
    %12 = vector.load %arg1[%c0_13, %c3, %c0_14, %c0_15] : memref<1x4x196x9xf32, #tpu.memory_space<vmem>>, vector<1x1x196x9xf32>
    %13 = vector.shape_cast %12 : vector<1x1x196x9xf32> to vector<196x9xf32>
    %cst_16 = arith.constant dense<0.000000e+00> : vector<196x128xf32>
    %14 = tpu.matmul %13, %0, %cst_16 {dimension_numbers = #tpu.dot_dimension_numbers<[1], [0], [0], [1], [0, 0, 1, 1], [], []>} : vector<196x9xf32>, vector<9x128xf32>, vector<196x128xf32> -> vector<196x128xf32>
    %15 = arith.maximumf %11, %14 : vector<196x128xf32>
    %c0_17 = arith.constant 0 : index
    %c0_18 = arith.constant 0 : index
    %16 = vector.load %arg3[%c0_17, %c0_18] : memref<1x128xf32, #tpu.memory_space<vmem>>, vector<1x128xf32>
    %17 = vector.broadcast %16 : vector<1x128xf32> to vector<196x128xf32>
    %18 = arith.addf %15, %17 : vector<196x128xf32>
    %cst_19 = arith.constant 0.000000e+00 : f32
    %19 = vector.broadcast %cst_19 : f32 to vector<196x128xf32>
    %20 = arith.maximumf %18, %19 : vector<196x128xf32>
    %c0_20 = arith.constant 0 : index
    %c0_21 = arith.constant 0 : index
    %c0_22 = arith.constant 0 : index
    %21 = vector.load %arg4[%c0_20, %c0_21, %c0_22] : memref<1x196x128xf32, #tpu.memory_space<vmem>>, vector<1x196x128xf32>
    %22 = vector.shape_cast %21 : vector<1x196x128xf32> to vector<196x128xf32>
    %23 = vector.shape_cast %20 : vector<196x128xf32> to vector<1x196x128xf32>
    tpu.vector_store %arg4[%c0_20, %c0_21, %c0_22], %23 {strides = array<i32>} : memref<1x196x128xf32, #tpu.memory_space<vmem>>, vector<1x196x128xf32>,
    return
  }
  func.func @transform_0(%arg0: i32) -> (i32, i32, i32, i32) {
    %c0_i32 = arith.constant 0 : i32
    %c0_i32_0 = arith.constant 0 : i32
    %c0_i32_1 = arith.constant 0 : i32
    %c0_i32_2 = arith.constant 0 : i32
    return %arg0, %c0_i32, %c0_i32_0, %c0_i32_1 : i32, i32, i32, i32
  }
  func.func @transform_1(%arg0: i32) -> (i32, i32) {
    %c0_i32 = arith.constant 0 : i32
    %c0_i32_0 = arith.constant 0 : i32
    %c0_i32_1 = arith.constant 0 : i32
    return %c0_i32, %c0_i32_0 : i32, i32
  }
  func.func @transform_2(%arg0: i32) -> (i32, i32) {
    %c0_i32 = arith.constant 0 : i32
    %c0_i32_0 = arith.constant 0 : i32
    %c0_i32_1 = arith.constant 0 : i32
    return %c0_i32, %c0_i32_0 : i32, i32
  }
  func.func @transform_3(%arg0: i32) -> (i32, i32, i32) {
    %c0_i32 = arith.constant 0 : i32
    %c0_i32_0 = arith.constant 0 : i32
    %c0_i32_1 = arith.constant 0 : i32
    return %arg0, %c0_i32, %c0_i32_0 : i32, i32, i32
  }
}

module attributes {stable_mosaic.version = 11 : i64} {
  func.func @_conv_relu_pool_kernel(%arg0: i32, %arg1: memref<1x4x49x1152xf32, #tpu.memory_space<vmem>>, %arg2: memref<1152x128xf32, #tpu.memory_space<vmem>>, %arg3: memref<1x128xf32, #tpu.memory_space<vmem>>, %arg4: memref<1x49x128xf32, #tpu.memory_space<vmem>>) attributes {dimension_semantics = [#tpu.dimension_semantics<parallel>], iteration_bounds = array<i64: 2>, scalar_prefetch = 0 : i64, scratch_operands = 0 : i64, tpu.core_type = #tpu.core_type<tc>, window_params = [{transform_indices = @transform_0, window_bounds = array<i64: 1, 4, 49, 1152>}, {pipeline_mode = #tpu.pipeline_mode<synchronous>, transform_indices = @transform_1, window_bounds = array<i64: 1152, 128>}, {pipeline_mode = #tpu.pipeline_mode<synchronous>, transform_indices = @transform_2, window_bounds = array<i64: 1, 128>}, {transform_indices = @transform_3, window_bounds = array<i64: 1, 49, 128>}]} {
    %c0 = arith.constant 0 : index
    %c0_0 = arith.constant 0 : index
    %0 = vector.load %arg2[%c0, %c0_0] : memref<1152x128xf32, #tpu.memory_space<vmem>>, vector<1152x128xf32>
    %c0_1 = arith.constant 0 : index
    %c0_2 = arith.constant 0 : index
    %c0_3 = arith.constant 0 : index
    %c0_4 = arith.constant 0 : index
    %1 = vector.load %arg1[%c0_1, %c0_2, %c0_3, %c0_4] : memref<1x4x49x1152xf32, #tpu.memory_space<vmem>>, vector<1x1x49x1152xf32>
    %2 = vector.shape_cast %1 : vector<1x1x49x1152xf32> to vector<49x1152xf32>
    %cst = arith.constant dense<0.000000e+00> : vector<49x128xf32>
    %3 = tpu.matmul %2, %0, %cst {dimension_numbers = #tpu.dot_dimension_numbers<[1], [0], [0], [1], [0, 0, 1, 1], [], []>} : vector<49x1152xf32>, vector<1152x128xf32>, vector<49x128xf32> -> vector<49x128xf32>
    %c0_5 = arith.constant 0 : index
    %c1 = arith.constant 1 : index
    %c0_6 = arith.constant 0 : index
    %c0_7 = arith.constant 0 : index
    %4 = vector.load %arg1[%c0_5, %c1, %c0_6, %c0_7] : memref<1x4x49x1152xf32, #tpu.memory_space<vmem>>, vector<1x1x49x1152xf32>
    %5 = vector.shape_cast %4 : vector<1x1x49x1152xf32> to vector<49x1152xf32>
    %cst_8 = arith.constant dense<0.000000e+00> : vector<49x128xf32>
    %6 = tpu.matmul %5, %0, %cst_8 {dimension_numbers = #tpu.dot_dimension_numbers<[1], [0], [0], [1], [0, 0, 1, 1], [], []>} : vector<49x1152xf32>, vector<1152x128xf32>, vector<49x128xf32> -> vector<49x128xf32>
    %7 = arith.maximumf %3, %6 : vector<49x128xf32>
    %c0_9 = arith.constant 0 : index
    %c2 = arith.constant 2 : index
    %c0_10 = arith.constant 0 : index
    %c0_11 = arith.constant 0 : index
    %8 = vector.load %arg1[%c0_9, %c2, %c0_10, %c0_11] : memref<1x4x49x1152xf32, #tpu.memory_space<vmem>>, vector<1x1x49x1152xf32>
    %9 = vector.shape_cast %8 : vector<1x1x49x1152xf32> to vector<49x1152xf32>
    %cst_12 = arith.constant dense<0.000000e+00> : vector<49x128xf32>
    %10 = tpu.matmul %9, %0, %cst_12 {dimension_numbers = #tpu.dot_dimension_numbers<[1], [0], [0], [1], [0, 0, 1, 1], [], []>} : vector<49x1152xf32>, vector<1152x128xf32>, vector<49x128xf32> -> vector<49x128xf32>
    %11 = arith.maximumf %7, %10 : vector<49x128xf32>
    %c0_13 = arith.constant 0 : index
    %c3 = arith.constant 3 : index
    %c0_14 = arith.constant 0 : index
    %c0_15 = arith.constant 0 : index
    %12 = vector.load %arg1[%c0_13, %c3, %c0_14, %c0_15] : memref<1x4x49x1152xf32, #tpu.memory_space<vmem>>, vector<1x1x49x1152xf32>
    %13 = vector.shape_cast %12 : vector<1x1x49x1152xf32> to vector<49x1152xf32>
    %cst_16 = arith.constant dense<0.000000e+00> : vector<49x128xf32>
    %14 = tpu.matmul %13, %0, %cst_16 {dimension_numbers = #tpu.dot_dimension_numbers<[1], [0], [0], [1], [0, 0, 1, 1], [], []>} : vector<49x1152xf32>, vector<1152x128xf32>, vector<49x128xf32> -> vector<49x128xf32>
    %15 = arith.maximumf %11, %14 : vector<49x128xf32>
    %c0_17 = arith.constant 0 : index
    %c0_18 = arith.constant 0 : index
    %16 = vector.load %arg3[%c0_17, %c0_18] : memref<1x128xf32, #tpu.memory_space<vmem>>, vector<1x128xf32>
    %17 = vector.broadcast %16 : vector<1x128xf32> to vector<49x128xf32>
    %18 = arith.addf %15, %17 : vector<49x128xf32>
    %cst_19 = arith.constant 0.000000e+00 : f32
    %19 = vector.broadcast %cst_19 : f32 to vector<49x128xf32>
    %20 = arith.maximumf %18, %19 : vector<49x128xf32>
    %c0_20 = arith.constant 0 : index
    %c0_21 = arith.constant 0 : index
    %c0_22 = arith.constant 0 : index
    %21 = vector.load %arg4[%c0_20, %c0_21, %c0_22] : memref<1x49x128xf32, #tpu.memory_space<vmem>>, vector<1x49x128xf32>
    %22 = vector.shape_cast %21 : vector<1x49x128xf32> to vector<49x128xf32>
    %23 = vector.shape_cast %20 : vector<49x128xf32> to vector<1x49x128xf32>
    tpu.vector_store %arg4[%c0_20, %c0_21, %c0_22], %23 {strides = array<i32>} : memref<1x49x128xf32, #tpu.memory_space<vmem>>, vector<1x49x128xf32>,
    return
  }
  func.func @transform_0(%arg0: i32) -> (i32, i32, i32, i32) {
    %c0_i32 = arith.constant 0 : i32
    %c0_i32_0 = arith.constant 0 : i32
    %c0_i32_1 = arith.constant 0 : i32
    %c0_i32_2 = arith.constant 0 : i32
    return %arg0, %c0_i32, %c0_i32_0, %c0_i32_1 : i32, i32, i32, i32
  }
  func.func @transform_1(%arg0: i32) -> (i32, i32) {
    %c0_i32 = arith.constant 0 : i32
    %c0_i32_0 = arith.constant 0 : i32
    %c0_i32_1 = arith.constant 0 : i32
    return %c0_i32, %c0_i32_0 : i32, i32
  }
  func.func @transform_2(%arg0: i32) -> (i32, i32) {
    %c0_i32 = arith.constant 0 : i32
    %c0_i32_0 = arith.constant 0 : i32
    %c0_i32_1 = arith.constant 0 : i32
    return %c0_i32, %c0_i32_0 : i32, i32
  }
  func.func @transform_3(%arg0: i32) -> (i32, i32, i32) {
    %c0_i32 = arith.constant 0 : i32
    %c0_i32_0 = arith.constant 0 : i32
    %c0_i32_1 = arith.constant 0 : i32
    return %arg0, %c0_i32, %c0_i32_0 : i32, i32, i32
  }
}

module attributes {stable_mosaic.version = 11 : i64} {
  func.func @_fc_head_kernel(%arg0: i32, %arg1: memref<2x6272xf32, #tpu.memory_space<vmem>>, %arg2: memref<6272x128xf32, #tpu.memory_space<vmem>>, %arg3: memref<1x128xf32, #tpu.memory_space<vmem>>, %arg4: memref<128x128xf32, #tpu.memory_space<vmem>>, %arg5: memref<1x128xf32, #tpu.memory_space<vmem>>, %arg6: memref<2x128xf32, #tpu.memory_space<vmem>>) attributes {dimension_semantics = [#tpu.dimension_semantics<arbitrary>], iteration_bounds = array<i64: 1>, scalar_prefetch = 0 : i64, scratch_operands = 0 : i64, tpu.core_type = #tpu.core_type<tc>, window_params = [{pipeline_mode = #tpu.pipeline_mode<synchronous>, transform_indices = @transform_0, window_bounds = array<i64: 2, 6272>}, {pipeline_mode = #tpu.pipeline_mode<synchronous>, transform_indices = @transform_1, window_bounds = array<i64: 6272, 128>}, {pipeline_mode = #tpu.pipeline_mode<synchronous>, transform_indices = @transform_2, window_bounds = array<i64: 1, 128>}, {pipeline_mode = #tpu.pipeline_mode<synchronous>, transform_indices = @transform_3, window_bounds = array<i64: 128, 128>}, {pipeline_mode = #tpu.pipeline_mode<synchronous>, transform_indices = @transform_4, window_bounds = array<i64: 1, 128>}, {pipeline_mode = #tpu.pipeline_mode<synchronous>, transform_indices = @transform_5, window_bounds = array<i64: 2, 128>}]} {
    %c0 = arith.constant 0 : index
    %c0_0 = arith.constant 0 : index
    %0 = vector.load %arg1[%c0, %c0_0] : memref<2x6272xf32, #tpu.memory_space<vmem>>, vector<2x6272xf32>
    %c0_1 = arith.constant 0 : index
    %c0_2 = arith.constant 0 : index
    %1 = vector.load %arg2[%c0_1, %c0_2] : memref<6272x128xf32, #tpu.memory_space<vmem>>, vector<6272x128xf32>
    %cst = arith.constant dense<0.000000e+00> : vector<2x128xf32>
    %2 = tpu.matmul %0, %1, %cst {dimension_numbers = #tpu.dot_dimension_numbers<[1], [0], [0], [1], [0, 0, 1, 1], [], []>} : vector<2x6272xf32>, vector<6272x128xf32>, vector<2x128xf32> -> vector<2x128xf32>
    %c0_3 = arith.constant 0 : index
    %c0_4 = arith.constant 0 : index
    %3 = vector.load %arg3[%c0_3, %c0_4] : memref<1x128xf32, #tpu.memory_space<vmem>>, vector<1x128xf32>
    %4 = vector.broadcast %3 : vector<1x128xf32> to vector<2x128xf32>
    %5 = arith.addf %2, %4 : vector<2x128xf32>
    %cst_5 = arith.constant 0.000000e+00 : f32
    %6 = vector.broadcast %cst_5 : f32 to vector<2x128xf32>
    %7 = arith.maximumf %5, %6 : vector<2x128xf32>
    %c0_6 = arith.constant 0 : index
    %c0_7 = arith.constant 0 : index
    %8 = vector.load %arg4[%c0_6, %c0_7] : memref<128x128xf32, #tpu.memory_space<vmem>>, vector<128x128xf32>
    %cst_8 = arith.constant dense<0.000000e+00> : vector<2x128xf32>
    %9 = tpu.matmul %7, %8, %cst_8 {dimension_numbers = #tpu.dot_dimension_numbers<[1], [0], [0], [1], [0, 0, 1, 1], [], []>} : vector<2x128xf32>, vector<128x128xf32>, vector<2x128xf32> -> vector<2x128xf32>
    %c0_9 = arith.constant 0 : index
    %c0_10 = arith.constant 0 : index
    %10 = vector.load %arg5[%c0_9, %c0_10] : memref<1x128xf32, #tpu.memory_space<vmem>>, vector<1x128xf32>
    %11 = vector.broadcast %10 : vector<1x128xf32> to vector<2x128xf32>
    %12 = arith.addf %9, %11 : vector<2x128xf32>
    %c0_11 = arith.constant 0 : index
    %c0_12 = arith.constant 0 : index
    %13 = vector.load %arg6[%c0_11, %c0_12] : memref<2x128xf32, #tpu.memory_space<vmem>>, vector<2x128xf32>
    tpu.vector_store %arg6[%c0_11, %c0_12], %12 {strides = array<i32>} : memref<2x128xf32, #tpu.memory_space<vmem>>, vector<2x128xf32>,
    return
  }
  func.func @transform_0(%arg0: i32) -> (i32, i32) {
    %c0_i32 = arith.constant 0 : i32
    %c0_i32_0 = arith.constant 0 : i32
    %c0_i32_1 = arith.constant 0 : i32
    return %c0_i32, %c0_i32_0 : i32, i32
  }
  func.func @transform_1(%arg0: i32) -> (i32, i32) {
    %c0_i32 = arith.constant 0 : i32
    %c0_i32_0 = arith.constant 0 : i32
    %c0_i32_1 = arith.constant 0 : i32
    return %c0_i32, %c0_i32_0 : i32, i32
  }
  func.func @transform_2(%arg0: i32) -> (i32, i32) {
    %c0_i32 = arith.constant 0 : i32
    %c0_i32_0 = arith.constant 0 : i32
    %c0_i32_1 = arith.constant 0 : i32
    return %c0_i32, %c0_i32_0 : i32, i32
  }
  func.func @transform_3(%arg0: i32) -> (i32, i32) {
    %c0_i32 = arith.constant 0 : i32
    %c0_i32_0 = arith.constant 0 : i32
    %c0_i32_1 = arith.constant 0 : i32
    return %c0_i32, %c0_i32_0 : i32, i32
  }
  func.func @transform_4(%arg0: i32) -> (i32, i32) {
    %c0_i32 = arith.constant 0 : i32
    %c0_i32_0 = arith.constant 0 : i32
    %c0_i32_1 = arith.constant 0 : i32
    return %c0_i32, %c0_i32_0 : i32, i32
  }
  func.func @transform_5(%arg0: i32) -> (i32, i32) {
    %c0_i32 = arith.constant 0 : i32
    %c0_i32_0 = arith.constant 0 : i32
    %c0_i32_1 = arith.constant 0 : i32
    return %c0_i32, %c0_i32_0 : i32, i32
  }
}

</mosaic_0001>

<bundles_post_ra>
// kernel: simple_cnn_forward.3
= control target key start
LH: loop header
LB: loop body
LE: loop exit
PB: predicated region body
PF: predicated region fallthrough
CT: control target
= control target key end

     0   :  { %s2208_s12 = smov 0   ;;  %s2931_s0 = inlined_call_operand.vmem [shape: f32[2,4,196,9], index: 0, kind: input, shape index: {}]   ;;  %s2932_s1 = inlined_call_operand.vmem [shape: f32[9,128], index: 1, kind: input, shape index: {}]   ;;  %s2933_s2 = inlined_call_operand.vmem [shape: f32[1,128], index: 2, kind: input, shape index: {}]   ;;  %s2934_s3 = inlined_call_operand.vmem [shape: f32[2,196,128], index: 3, kind: output, shape index: {}]  }
   0x1 LB: > { %s1553_s13 = sadd.s32 4294967295, %s2184_s12   ;;  %p1557_p0 = scmp.ge.s32.totalorder %s2184_s12, 1  ;;  %s2184_s12 = sphi %s2208_s12, %s13_s12  }
   0x2   : > { %p137_p1 = scmp.lt.s32.totalorder %s2184_s12, 3 }
   0x4   : > { %p138_p2 = pnand %p1557_p0, %p137_p1 }
   0x6   : > { %141 = sbr.rel (%p138_p2) target bundleno = 416 (0x1a0), region = 32 }
   0xb   : > { %v172_v0 = vld [vmem:[%s2932_s1 + $0x8] sm:$0x1]  ;;  %vm274_vm0 = vcmask 1040384   ;;  %v2186_v1 = vmov 0.0   ;;  %v171_v2 = vld [vmem:[%s2932_s1] sm:$0xff]  ;;  %p161_p3 = scmp.lt.s32.totalorder %s1553_s13, 1 }
   0xc   : > { %1850 = vmatprep.subr.mxu0 %v2186_v1  ;;  %1929 = vmatprep.subr.mxu1 %v2186_v1  ;;  %vm2187_vm1 = vmmov 0   ;;  %vm198_vm2 = vcmask 72704  }
   0xd   : > { %1851 = vmatpush3.msk.msra.mxu0 %vm274_vm0, %v172_v0  ;;  %1930 = vmatpush3.msk.msra.mxu1 %vm274_vm0, %v172_v0  ;;  %s2962_s13 = smov (!%p161_p3, %s1553_s13), 1 }
   0xe   : > { %1852 = vmatprep.subr.mxu0 %v2186_v1  ;;  %1931 = vmatprep.subr.mxu1 %v2186_v1  ;;  %s2166_s18 = smul.u32 800, %s2962_s13 }
   0xf   : > { %1853 = vmatpush3.msra.mxu0 %v171_v2  ;;  %1854 = vmatprep.mubr.msk.f32.mxu0 %vm2187_vm1, %v2186_v1  ;;  %s2167_s22 = smul.u32 200, %s2962_s13 }
  0x10   : > { %1932 = vmatpush3.msra.mxu1 %v171_v2  ;;  %1933 = vmatprep.mubr.msk.f32.mxu1 %vm2187_vm1, %v2186_v1  ;;  %s2240_s21 = scalar_lea.vmem %s2931_s0, %s2166_s18 }
  0x11   : > { %2008 = vmatprep.subr.mxu0 %v2186_v1  ;;  %2087 = vmatprep.subr.mxu1 %v2186_v1  ;;  %v173_v3 = vld [vmem:[%s2240_s21] sm:$0xff]  ;;  %v1586_v4 = vld [vmem:[%s2240_s21 + $0xc8] sm:$0xff]  ;;  %v1587_v6 = vld [vmem:[%s2240_s21 + $0xd0] sm:$0xff]  ;;  %s2808_s27 = scalar_lea.vmem %s2934_s3, %s2167_s22 }
  0x12   : > { %1855 = vmatmul.mubr.msk.f32.vlgmr.msra.gmra.mxu0 %vm198_vm2, %v173_v3  ;;  %1934 = vmatmul.mubr.msk.f32.vlgmr.msra.gmra.mxu1 %vm198_vm2, %v1586_v4  ;;  %v174_v5 = vld [vmem:[%s2240_s21 + $0x8] sm:$0xff]  ;;  %v175_v7 = vld [vmem:[%s2240_s21 + $0x10] sm:$0xff]  ;;  %v1588_v8 = vld [vmem:[%s2240_s21 + $0xd8] sm:$0xff] }
  0x13   : > { %2009 = vmatpush3.msk.msra.mxu0 %vm274_vm0, %v172_v0  ;;  %2088 = vmatpush3.msk.msra.mxu1 %vm274_vm0, %v172_v0  ;;  %v176_v9 = vld [vmem:[%s2240_s21 + $0x18] sm:$0xff]  ;;  %v1589_v10 = vld [vmem:[%s2240_s21 + $0xe0] sm:$0xff]  ;;  %v1590_v12 = vld [vmem:[%s2240_s21 + $0xe8] sm:$0xff] }
  0x14   : > { %1857 = vmatprep.mubr.msk.f32.mxu0 %vm2187_vm1, %v2186_v1  ;;  %1936 = vmatprep.mubr.msk.f32.mxu1 %vm2187_vm1, %v2186_v1  ;;  %v177_v11 = vld [vmem:[%s2240_s21 + $0x20] sm:$0xff]  ;;  %v178_v13 = vld [vmem:[%s2240_s21 + $0x28] sm:$0xff]  ;;  %v1591_v14 = vld [vmem:[%s2240_s21 + $0xf0] sm:$0xff] }
  0x15   : > { %2010 = vmatprep.subr.mxu0 %v2186_v1  ;;  %2089 = vmatprep.subr.mxu1 %v2186_v1  ;;  %v179_v15 = vld [vmem:[%s2240_s21 + $0x30] sm:$0xff]  ;;  %v1592_v16 = vld [vmem:[%s2240_s21 + $0xf8] sm:$0xff]  ;;  %v1593_v18 = vld [vmem:[%s2240_s21 + $0x100] sm:$0xff] }
  0x16   : > { %1858 = vmatmul.mubr.msk.f32.gmra.mxu0 %vm198_vm2, %v174_v5  ;;  %1937 = vmatmul.mubr.msk.f32.gmra.mxu1 %vm198_vm2, %v1587_v6  ;;  %v180_v17 = vld [vmem:[%s2240_s21 + $0x38] sm:$0xff]  ;;  %v181_v19 = vld [vmem:[%s2240_s21 + $0x40] sm:$0xff]  ;;  %v1594_v20 = vld [vmem:[%s2240_s21 + $0x108] sm:$0xff] }
  0x17   : > { %1860 = vmatprep.mubr.msk.f32.mxu0 %vm2187_vm1, %v2186_v1  ;;  %1939 = vmatprep.mubr.msk.f32.mxu1 %vm2187_vm1, %v2186_v1  ;;  %v182_v21 = vld [vmem:[%s2240_s21 + $0x48] sm:$0xff]  ;;  %v1595_v22 = vld [vmem:[%s2240_s21 + $0x110] sm:$0xff]  ;;  %v1596_v24 = vld [vmem:[%s2240_s21 + $0x118] sm:$0xff] }
  0x18   : > { %2011 = vmatpush3.msra.mxu0 %v171_v2  ;;  %2090 = vmatpush3.msra.mxu1 %v171_v2  ;;  %v183_v23 = vld [vmem:[%s2240_s21 + $0x50] sm:$0xff]  ;;  %v184_v25 = vld [vmem:[%s2240_s21 + $0x58] sm:$0xff]  ;;  %v1597_v26 = vld [vmem:[%s2240_s21 + $0x120] sm:$0xff] }
  0x19   : > { %v185_v27 = vld [vmem:[%s2240_s21 + $0x60] sm:$0xff]  ;;  %v1598_v28 = vld [vmem:[%s2240_s21 + $0x128] sm:$0xff]  ;;  %v1599_v30 = vld [vmem:[%s2240_s21 + $0x130] sm:$0xff] }
  0x1a   : > { %1861 = vmatmul.mubr.msk.f32.gmra.mxu0 %vm198_vm2, %v175_v7  ;;  %1940 = vmatmul.mubr.msk.f32.gmra.mxu1 %vm198_vm2, %v1588_v8  ;;  %v186_v29 = vld [vmem:[%s2240_s21 + $0x68] sm:$0xff]  ;;  %v187_v31 = vld [vmem:[%s2240_s21 + $0x70] sm:$0xff]  ;;  %v1600_v32 = vld [vmem:[%s2240_s21 + $0x138] sm:$0xff] }
  0x1b   : > { %1863 = vmatprep.mubr.msk.f32.mxu0 %vm2187_vm1, %v2186_v1  ;;  %1942 = vmatprep.mubr.msk.f32.mxu1 %vm2187_vm1, %v2186_v1  ;;  %v188_v33 = vld [vmem:[%s2240_s21 + $0x78] sm:$0xff]  ;;  %v1601_v34 = vld [vmem:[%s2240_s21 + $0x140] sm:$0xff]  ;;  %v1602_v36 = vld [vmem:[%s2240_s21 + $0x148] sm:$0xff] }
  0x1c   : > { %v189_v35 = vld [vmem:[%s2240_s21 + $0x80] sm:$0xff]  ;;  %v190_v37 = vld [vmem:[%s2240_s21 + $0x88] sm:$0xff]  ;;  %v1603_v38 = vld [vmem:[%s2240_s21 + $0x150] sm:$0xff] }
  0x1d   : > { %v191_v39 = vld [vmem:[%s2240_s21 + $0x90] sm:$0xff]  ;;  %v1604_v40 = vld [vmem:[%s2240_s21 + $0x158] sm:$0xff]  ;;  %v1605_v42 = vld [vmem:[%s2240_s21 + $0x160] sm:$0xff] }
  0x1e   : > { %1864 = vmatmul.mubr.msk.f32.gmra.mxu0 %vm198_vm2, %v176_v9  ;;  %1943 = vmatmul.mubr.msk.f32.gmra.mxu1 %vm198_vm2, %v1589_v10  ;;  %v192_v41 = vld [vmem:[%s2240_s21 + $0x98] sm:$0xff]  ;;  %v193_v43 = vld [vmem:[%s2240_s21 + $0xa0] sm:$0xff]  ;;  %v1606_v44 = vld [vmem:[%s2240_s21 + $0x168] sm:$0xff] }
  0x1f   : > { %1866 = vmatprep.mubr.msk.f32.mxu0 %vm2187_vm1, %v2186_v1  ;;  %1945 = vmatprep.mubr.msk.f32.mxu1 %vm2187_vm1, %v2186_v1  ;;  %v194_v45 = vld [vmem:[%s2240_s21 + $0xa8] sm:$0xff]  ;;  %v1607_v46 = vld [vmem:[%s2240_s21 + $0x170] sm:$0xff]  ;;  %v1608_v48 = vld [vmem:[%s2240_s21 + $0x178] sm:$0xff] }
  0x20   : > { %v195_v47 = vld [vmem:[%s2240_s21 + $0xb0] sm:$0xff]  ;;  %v196_v49 = vld [vmem:[%s2240_s21 + $0xb8] sm:$0xff]  ;;  %v1609_v50 = vld [vmem:[%s2240_s21 + $0x180] sm:$0xff] }
  0x21   : > { %v197_v51 = vld [vmem:[%s2240_s21 + $0xc0] sm:$0xf]  ;;  %v1610_v52 = vld [vmem:[%s2240_s21 + $0x188] sm:$0xf]  ;;  %v1637_v53 = vld [vmem:[%s2240_s21 + $0x190] sm:$0xff] }
  0x22   : > { %1867 = vmatmul.mubr.msk.f32.gmra.mxu0 %vm198_vm2, %v177_v11  ;;  %1946 = vmatmul.mubr.msk.f32.gmra.mxu1 %vm198_vm2, %v1590_v12  ;;  %v1688_v54 = vld [vmem:[%s2240_s21 + $0x258] sm:$0xff]  ;;  %v1689_v56 = vld [vmem:[%s2240_s21 + $0x260] sm:$0xff]  ;;  %v1690_v58 = vld [vmem:[%s2240_s21 + $0x268] sm:$0xff] }
  0x23   : > { %1869 = vmatprep.mubr.msk.f32.mxu0 %vm2187_vm1, %v2186_v1  ;;  %1948 = vmatprep.mubr.msk.f32.mxu1 %vm2187_vm1, %v2186_v1  ;;  %v1638_v55 = vld [vmem:[%s2240_s21 + $0x198] sm:$0xff]  ;;  %v1639_v57 = vld [vmem:[%s2240_s21 + $0x1a0] sm:$0xff]  ;;  %v1640_v59 = vld [vmem:[%s2240_s21 + $0x1a8] sm:$0xff] }
  0x24   : > { %v1691_v60 = vld [vmem:[%s2240_s21 + $0x270] sm:$0xff]  ;;  %v1692_v62 = vld [vmem:[%s2240_s21 + $0x278] sm:$0xff]  ;;  %v1693_v0 = vld [vmem:[%s2240_s21 + $0x280] sm:$0xff] }
  0x25   : > { %v1641_v61 = vld [vmem:[%s2240_s21 + $0x1b0] sm:$0xff]  ;;  %v1642_v63 = vld [vmem:[%s2240_s21 + $0x1b8] sm:$0xff]  ;;  %v1643_v2 = vld [vmem:[%s2240_s21 + $0x1c0] sm:$0xff] }
  0x26   : > { %1870 = vmatmul.mubr.msk.f32.gmra.mxu0 %vm198_vm2, %v178_v13  ;;  %1949 = vmatmul.mubr.msk.f32.gmra.mxu1 %vm198_vm2, %v1591_v14  ;;  %v1694_v3 = vld [vmem:[%s2240_s21 + $0x288] sm:$0xff]  ;;  %v1695_v5 = vld [vmem:[%s2240_s21 + $0x290] sm:$0xff]  ;;  %v1696_v7 = vld [vmem:[%s2240_s21 + $0x298] sm:$0xff] }
  0x27   : > { %1872 = vmatprep.mubr.msk.f32.mxu0 %vm2187_vm1, %v2186_v1  ;;  %1951 = vmatprep.mubr.msk.f32.mxu1 %vm2187_vm1, %v2186_v1  ;;  %v1644_v4 = vld [vmem:[%s2240_s21 + $0x1c8] sm:$0xff]  ;;  %v1645_v6 = vld [vmem:[%s2240_s21 + $0x1d0] sm:$0xff]  ;;  %v1646_v8 = vld [vmem:[%s2240_s21 + $0x1d8] sm:$0xff] }
  0x28   : > { %v1697_v9 = vld [vmem:[%s2240_s21 + $0x2a0] sm:$0xff]  ;;  %v1698_v11 = vld [vmem:[%s2240_s21 + $0x2a8] sm:$0xff]  ;;  %v1699_v13 = vld [vmem:[%s2240_s21 + $0x2b0] sm:$0xff] }
  0x29   : > { %v1647_v10 = vld [vmem:[%s2240_s21 + $0x1e0] sm:$0xff]  ;;  %v1648_v12 = vld [vmem:[%s2240_s21 + $0x1e8] sm:$0xff]  ;;  %v1649_v14 = vld [vmem:[%s2240_s21 + $0x1f0] sm:$0xff] }
  0x2a   : > { %1873 = vmatmul.mubr.msk.f32.gmra.mxu0 %vm198_vm2, %v179_v15  ;;  %1952 = vmatmul.mubr.msk.f32.gmra.mxu1 %vm198_vm2, %v1592_v16  ;;  %v1700_v15 = vld [vmem:[%s2240_s21 + $0x2b8] sm:$0xff] }
  0x2b   : > { %1875 = vmatprep.mubr.msk.f32.mxu0 %vm2187_vm1, %v2186_v1  ;;  %1954 = vmatprep.mubr.msk.f32.mxu1 %vm2187_vm1, %v2186_v1  ;;  %v1650_v16 = vld [vmem:[%s2240_s21 + $0x1f8] sm:$0xff] }
  0x2e   : > { %1876 = vmatmul.mubr.msk.f32.gmra.mxu0 %vm198_vm2, %v180_v17  ;;  %1955 = vmatmul.mubr.msk.f32.gmra.mxu1 %vm198_vm2, %v1593_v18  ;;  %v1701_v17 = vld [vmem:[%s2240_s21 + $0x2c0] sm:$0xff] }
  0x2f   : > { %1878 = vmatprep.mubr.msk.f32.mxu0 %vm2187_vm1, %v2186_v1  ;;  %1957 = vmatprep.mubr.msk.f32.mxu1 %vm2187_vm1, %v2186_v1  ;;  %v1651_v18 = vld [vmem:[%s2240_s21 + $0x200] sm:$0xff] }
  0x32   : > { %1879 = vmatmul.mubr.msk.f32.gmra.mxu0 %vm198_vm2, %v181_v19  ;;  %1958 = vmatmul.mubr.msk.f32.gmra.mxu1 %vm198_vm2, %v1594_v20  ;;  %v1702_v19 = vld [vmem:[%s2240_s21 + $0x2c8] sm:$0xff] }
  0x33   : > { %1881 = vmatprep.mubr.msk.f32.mxu0 %vm2187_vm1, %v2186_v1  ;;  %1960 = vmatprep.mubr.msk.f32.mxu1 %vm2187_vm1, %v2186_v1  ;;  %v1652_v20 = vld [vmem:[%s2240_s21 + $0x208] sm:$0xff] }
  0x36   : > { %1882 = vmatmul.mubr.msk.f32.gmra.mxu0 %vm198_vm2, %v182_v21  ;;  %1961 = vmatmul.mubr.msk.f32.gmra.mxu1 %vm198_vm2, %v1595_v22  ;;  %v1703_v21 = vld [vmem:[%s2240_s21 + $0x2d0] sm:$0xff] }
  0x37   : > { %1884 = vmatprep.mubr.msk.f32.mxu0 %vm2187_vm1, %v2186_v1  ;;  %1963 = vmatprep.mubr.msk.f32.mxu1 %vm2187_vm1, %v2186_v1  ;;  %v1653_v22 = vld [vmem:[%s2240_s21 + $0x210] sm:$0xff] }
  0x3a   : > { %1885 = vmatmul.mubr.msk.f32.gmra.mxu0 %vm198_vm2, %v183_v23  ;;  %1964 = vmatmul.mubr.msk.f32.gmra.mxu1 %vm198_vm2, %v1596_v24  ;;  %v1704_v23 = vld [vmem:[%s2240_s21 + $0x2d8] sm:$0xff] }
  0x3b   : > { %1887 = vmatprep.mubr.msk.f32.mxu0 %vm2187_vm1, %v2186_v1  ;;  %1966 = vmatprep.mubr.msk.f32.mxu1 %vm2187_vm1, %v2186_v1  ;;  %v1654_v24 = vld [vmem:[%s2240_s21 + $0x218] sm:$0xff] }
  0x3e   : > { %1888 = vmatmul.mubr.msk.f32.gmra.mxu0 %vm198_vm2, %v184_v25  ;;  %1967 = vmatmul.mubr.msk.f32.gmra.mxu1 %vm198_vm2, %v1597_v26  ;;  %v1705_v25 = vld [vmem:[%s2240_s21 + $0x2e0] sm:$0xff] }
  0x3f   : > { %1890 = vmatprep.mubr.msk.f32.mxu0 %vm2187_vm1, %v2186_v1  ;;  %1969 = vmatprep.mubr.msk.f32.mxu1 %vm2187_vm1, %v2186_v1  ;;  %v1655_v26 = vld [vmem:[%s2240_s21 + $0x220] sm:$0xff] }
  0x42   : > { %1891 = vmatmul.mubr.msk.f32.gmra.mxu0 %vm198_vm2, %v185_v27  ;;  %1970 = vmatmul.mubr.msk.f32.gmra.mxu1 %vm198_vm2, %v1598_v28  ;;  %v1706_v27 = vld [vmem:[%s2240_s21 + $0x2e8] sm:$0xff] }
  0x43   : > { %1893 = vmatprep.mubr.msk.f32.mxu0 %vm2187_vm1, %v2186_v1  ;;  %1972 = vmatprep.mubr.msk.f32.mxu1 %vm2187_vm1, %v2186_v1  ;;  %v1656_v28 = vld [vmem:[%s2240_s21 + $0x228] sm:$0xff] }
  0x46   : > { %1894 = vmatmul.mubr.msk.f32.gmra.mxu0 %vm198_vm2, %v186_v29  ;;  %1973 = vmatmul.mubr.msk.f32.gmra.mxu1 %vm198_vm2, %v1599_v30  ;;  %v1707_v29 = vld [vmem:[%s2240_s21 + $0x2f0] sm:$0xff] }
  0x47   : > { %1896 = vmatprep.mubr.msk.f32.mxu0 %vm2187_vm1, %v2186_v1  ;;  %1975 = vmatprep.mubr.msk.f32.mxu1 %vm2187_vm1, %v2186_v1  ;;  %v1657_v30 = vld [vmem:[%s2240_s21 + $0x230] sm:$0xff] }
  0x4a   : > { %1897 = vmatmul.mubr.msk.f32.gmra.mxu0 %vm198_vm2, %v187_v31  ;;  %1976 = vmatmul.mubr.msk.f32.gmra.mxu1 %vm198_vm2, %v1600_v32  ;;  %v1708_v31 = vld [vmem:[%s2240_s21 + $0x2f8] sm:$0xff] }
  0x4b   : > { %1899 = vmatprep.mubr.msk.f32.mxu0 %vm2187_vm1, %v2186_v1  ;;  %1978 = vmatprep.mubr.msk.f32.mxu1 %vm2187_vm1, %v2186_v1  ;;  %v1658_v32 = vld [vmem:[%s2240_s21 + $0x238] sm:$0xff] }
  0x4e   : > { %1900 = vmatmul.mubr.msk.f32.gmra.mxu0 %vm198_vm2, %v188_v33  ;;  %1979 = vmatmul.mubr.msk.f32.gmra.mxu1 %vm198_vm2, %v1601_v34  ;;  %v1709_v33 = vld [vmem:[%s2240_s21 + $0x300] sm:$0xff] }
  0x4f   : > { %1902 = vmatprep.mubr.msk.f32.mxu0 %vm2187_vm1, %v2186_v1  ;;  %1981 = vmatprep.mubr.msk.f32.mxu1 %vm2187_vm1, %v2186_v1  ;;  %v1659_v34 = vld [vmem:[%s2240_s21 + $0x240] sm:$0xff] }
  0x52   : > { %1903 = vmatmul.mubr.msk.f32.gmra.mxu0 %vm198_vm2, %v189_v35  ;;  %1982 = vmatmul.mubr.msk.f32.gmra.mxu1 %vm198_vm2, %v1602_v36  ;;  %v1710_v35 = vld [vmem:[%s2240_s21 + $0x308] sm:$0xff] }
  0x53   : > { %1905 = vmatprep.mubr.msk.f32.mxu0 %vm2187_vm1, %v2186_v1  ;;  %1984 = vmatprep.mubr.msk.f32.mxu1 %vm2187_vm1, %v2186_v1  ;;  %v1660_v36 = vld [vmem:[%s2240_s21 + $0x248] sm:$0xff] }
  0x56   : > { %1906 = vmatmul.mubr.msk.f32.gmra.mxu0 %vm198_vm2, %v190_v37  ;;  %1985 = vmatmul.mubr.msk.f32.gmra.mxu1 %vm198_vm2, %v1603_v38  ;;  %v1711_v37 = vld [vmem:[%s2240_s21 + $0x310] sm:$0xff] }
  0x57   : > { %1908 = vmatprep.mubr.msk.f32.mxu0 %vm2187_vm1, %v2186_v1  ;;  %1987 = vmatprep.mubr.msk.f32.mxu1 %vm2187_vm1, %v2186_v1 }
  0x5a   : > { %1909 = vmatmul.mubr.msk.f32.gmra.mxu0 %vm198_vm2, %v191_v39  ;;  %1988 = vmatmul.mubr.msk.f32.gmra.mxu1 %vm198_vm2, %v1604_v40 }
  0x5b   : > { %1911 = vmatprep.mubr.msk.f32.mxu0 %vm2187_vm1, %v2186_v1  ;;  %1990 = vmatprep.mubr.msk.f32.mxu1 %vm2187_vm1, %v2186_v1 }
  0x5e   : > { %1912 = vmatmul.mubr.msk.f32.gmra.mxu0 %vm198_vm2, %v192_v41  ;;  %1991 = vmatmul.mubr.msk.f32.gmra.mxu1 %vm198_vm2, %v1605_v42  ;;  %v1661_v41 = vld [vmem:[%s2240_s21 + $0x250] sm:$0xf]  ;;  %v1712_v42 = vld [vmem:[%s2240_s21 + $0x318] sm:$0xf] }
  0x5f   : > { %1914 = vmatprep.mubr.msk.f32.mxu0 %vm2187_vm1, %v2186_v1  ;;  %1993 = vmatprep.mubr.msk.f32.mxu1 %vm2187_vm1, %v2186_v1 }
  0x62   : > { %1915 = vmatmul.mubr.msk.f32.gmra.mxu0 %vm198_vm2, %v193_v43  ;;  %1994 = vmatmul.mubr.msk.f32.gmra.mxu1 %vm198_vm2, %v1606_v44 }
  0x63   : > { %1917 = vmatprep.mubr.msk.f32.mxu0 %vm2187_vm1, %v2186_v1  ;;  %1996 = vmatprep.mubr.msk.f32.mxu1 %vm2187_vm1, %v2186_v1 }
  0x66   : > { %1918 = vmatmul.mubr.msk.f32.gmra.mxu0 %vm198_vm2, %v194_v45  ;;  %1997 = vmatmul.mubr.msk.f32.gmra.mxu1 %vm198_vm2, %v1607_v46 }
  0x67   : > { %1920 = vmatprep.mubr.msk.f32.mxu0 %vm2187_vm1, %v2186_v1  ;;  %1999 = vmatprep.mubr.msk.f32.mxu1 %vm2187_vm1, %v2186_v1 }
  0x6a   : > { %1921 = vmatmul.mubr.msk.f32.gmra.mxu0 %vm198_vm2, %v195_v47  ;;  %2000 = vmatmul.mubr.msk.f32.gmra.mxu1 %vm198_vm2, %v1608_v48 }
  0x6b   : > { %1923 = vmatprep.mubr.msk.f32.mxu0 %vm2187_vm1, %v2186_v1  ;;  %2002 = vmatprep.mubr.msk.f32.mxu1 %vm2187_vm1, %v2186_v1 }
  0x6e   : > { %1924 = vmatmul.mubr.msk.f32.gmra.mxu0 %vm198_vm2, %v196_v49  ;;  %2003 = vmatmul.mubr.msk.f32.gmra.mxu1 %vm198_vm2, %v1609_v50 }
  0x6f   : > { %1926 = vmatprep.mubr.msk.f32.mxu0 %vm2187_vm1, %v2186_v1  ;;  %2005 = vmatprep.mubr.msk.f32.mxu1 %vm2187_vm1, %v2186_v1 }
  0x72   : > { %1927 = vmatmul.mubr.msk.f32.gmra.mxu0 %vm198_vm2, %v197_v51  ;;  %2006 = vmatmul.mubr.msk.f32.gmra.mxu1 %vm198_vm2, %v1610_v52 }
  0x73   : > { %2012 = vmatprep.mubr.msk.f32.mxu0 %vm2187_vm1, %v2186_v1  ;;  %2091 = vmatprep.mubr.msk.f32.mxu1 %vm2187_vm1, %v2186_v1 }
  0x76   : > { %2013 = vmatmul.mubr.msk.f32.vlgmr.msra.gmra.mxu0 %vm198_vm2, %v1637_v53  ;;  %2092 = vmatmul.mubr.msk.f32.vlgmr.msra.gmra.mxu1 %vm198_vm2, %v1688_v54 }
  0x77   : > { %2015 = vmatprep.mubr.msk.f32.mxu0 %vm2187_vm1, %v2186_v1  ;;  %2094 = vmatprep.mubr.msk.f32.mxu1 %vm2187_vm1, %v2186_v1 }
  0x7a   : > { %2016 = vmatmul.mubr.msk.f32.gmra.mxu0 %vm198_vm2, %v1638_v55  ;;  %2095 = vmatmul.mubr.msk.f32.gmra.mxu1 %vm198_vm2, %v1689_v56 }
  0x7b   : > { %2018 = vmatprep.mubr.msk.f32.mxu0 %vm2187_vm1, %v2186_v1  ;;  %2097 = vmatprep.mubr.msk.f32.mxu1 %vm2187_vm1, %v2186_v1 }
  0x7e   : > { %2019 = vmatmul.mubr.msk.f32.gmra.mxu0 %vm198_vm2, %v1639_v57  ;;  %2098 = vmatmul.mubr.msk.f32.gmra.mxu1 %vm198_vm2, %v1690_v58 }
  0x7f   : > { %2021 = vmatprep.mubr.msk.f32.mxu0 %vm2187_vm1, %v2186_v1  ;;  %2100 = vmatprep.mubr.msk.f32.mxu1 %vm2187_vm1, %v2186_v1 }
  0x82   : > { %2022 = vmatmul.mubr.msk.f32.gmra.mxu0 %vm198_vm2, %v1640_v59  ;;  %2101 = vmatmul.mubr.msk.f32.gmra.mxu1 %vm198_vm2, %v1691_v60 }
  0x83   : > { %2024 = vmatprep.mubr.msk.f32.mxu0 %vm2187_vm1, %v2186_v1  ;;  %2103 = vmatprep.mubr.msk.f32.mxu1 %vm2187_vm1, %v2186_v1 }
  0x86   : > { %2025 = vmatmul.mubr.msk.f32.gmra.mxu0 %vm198_vm2, %v1641_v61  ;;  %2104 = vmatmul.mubr.msk.f32.gmra.mxu1 %vm198_vm2, %v1692_v62 }
  0x87   : > { %2027 = vmatprep.mubr.msk.f32.mxu0 %vm2187_vm1, %v2186_v1  ;;  %2106 = vmatprep.mubr.msk.f32.mxu1 %vm2187_vm1, %v2186_v1 }
  0x8a   : > { %2028 = vmatmul.mubr.msk.f32.gmra.mxu0 %vm198_vm2, %v1642_v63  ;;  %2107 = vmatmul.mubr.msk.f32.gmra.mxu1 %vm198_vm2, %v1693_v0 }
  0x8b   : > { %2030 = vmatprep.mubr.msk.f32.mxu0 %vm2187_vm1, %v2186_v1  ;;  %2109 = vmatprep.mubr.msk.f32.mxu1 %vm2187_vm1, %v2186_v1 }
  0x8e   : > { %2031 = vmatmul.mubr.msk.f32.gmra.mxu0 %vm198_vm2, %v1643_v2  ;;  %2110 = vmatmul.mubr.msk.f32.gmra.mxu1 %vm198_vm2, %v1694_v3 }
  0x8f   : > { %2033 = vmatprep.mubr.msk.f32.mxu0 %vm2187_vm1, %v2186_v1  ;;  %2112 = vmatprep.mubr.msk.f32.mxu1 %vm2187_vm1, %v2186_v1 }
  0x92   : > { %2034 = vmatmul.mubr.msk.f32.gmra.mxu0 %vm198_vm2, %v1644_v4  ;;  %2113 = vmatmul.mubr.msk.f32.gmra.mxu1 %vm198_vm2, %v1695_v5 }
  0x93   : > { %2036 = vmatprep.mubr.msk.f32.mxu0 %vm2187_vm1, %v2186_v1  ;;  %2115 = vmatprep.mubr.msk.f32.mxu1 %vm2187_vm1, %v2186_v1 }
  0x96   : > { %2037 = vmatmul.mubr.msk.f32.gmra.mxu0 %vm198_vm2, %v1645_v6  ;;  %2116 = vmatmul.mubr.msk.f32.gmra.mxu1 %vm198_vm2, %v1696_v7 }
  0x97   : > { %2039 = vmatprep.mubr.msk.f32.mxu0 %vm2187_vm1, %v2186_v1  ;;  %2118 = vmatprep.mubr.msk.f32.mxu1 %vm2187_vm1, %v2186_v1 }
  0x9a   : > { %2040 = vmatmul.mubr.msk.f32.gmra.mxu0 %vm198_vm2, %v1646_v8  ;;  %2119 = vmatmul.mubr.msk.f32.gmra.mxu1 %vm198_vm2, %v1697_v9 }
  0x9b   : > { %2042 = vmatprep.mubr.msk.f32.mxu0 %vm2187_vm1, %v2186_v1  ;;  %2121 = vmatprep.mubr.msk.f32.mxu1 %vm2187_vm1, %v2186_v1 }
  0x9e   : > { %2043 = vmatmul.mubr.msk.f32.gmra.mxu0 %vm198_vm2, %v1647_v10  ;;  %2122 = vmatmul.mubr.msk.f32.gmra.mxu1 %vm198_vm2, %v1698_v11 }
  0x9f   : > { %2045 = vmatprep.mubr.msk.f32.mxu0 %vm2187_vm1, %v2186_v1  ;;  %2124 = vmatprep.mubr.msk.f32.mxu1 %vm2187_vm1, %v2186_v1 }
  0xa2   : > { %2046 = vmatmul.mubr.msk.f32.gmra.mxu0 %vm198_vm2, %v1648_v12  ;;  %2125 = vmatmul.mubr.msk.f32.gmra.mxu1 %vm198_vm2, %v1699_v13 }
  0xa3   : > { %2048 = vmatprep.mubr.msk.f32.mxu0 %vm2187_vm1, %v2186_v1  ;;  %2127 = vmatprep.mubr.msk.f32.mxu1 %vm2187_vm1, %v2186_v1 }
  0xa6   : > { %2049 = vmatmul.mubr.msk.f32.gmra.mxu0 %vm198_vm2, %v1649_v14  ;;  %2128 = vmatmul.mubr.msk.f32.gmra.mxu1 %vm198_vm2, %v1700_v15 }
  0xa7   : > { %2051 = vmatprep.mubr.msk.f32.mxu0 %vm2187_vm1, %v2186_v1  ;;  %2130 = vmatprep.mubr.msk.f32.mxu1 %vm2187_vm1, %v2186_v1 }
  0xaa   : > { %2052 = vmatmul.mubr.msk.f32.gmra.mxu0 %vm198_vm2, %v1650_v16  ;;  %2131 = vmatmul.mubr.msk.f32.gmra.mxu1 %vm198_vm2, %v1701_v17 }
  0xab   : > { %2054 = vmatprep.mubr.msk.f32.mxu0 %vm2187_vm1, %v2186_v1  ;;  %2133 = vmatprep.mubr.msk.f32.mxu1 %vm2187_vm1, %v2186_v1 }
  0xae   : > { %2055 = vmatmul.mubr.msk.f32.gmra.mxu0 %vm198_vm2, %v1651_v18  ;;  %2134 = vmatmul.mubr.msk.f32.gmra.mxu1 %vm198_vm2, %v1702_v19 }
  0xaf   : > { %2057 = vmatprep.mubr.msk.f32.mxu0 %vm2187_vm1, %v2186_v1  ;;  %2136 = vmatprep.mubr.msk.f32.mxu1 %vm2187_vm1, %v2186_v1 }
  0xb2   : > { %2058 = vmatmul.mubr.msk.f32.gmra.mxu0 %vm198_vm2, %v1652_v20  ;;  %2137 = vmatmul.mubr.msk.f32.gmra.mxu1 %vm198_vm2, %v1703_v21 }
  0xb3   : > { %2060 = vmatprep.mubr.msk.f32.mxu0 %vm2187_vm1, %v2186_v1  ;;  %2139 = vmatprep.mubr.msk.f32.mxu1 %vm2187_vm1, %v2186_v1 }
  0xb6   : > { %2061 = vmatmul.mubr.msk.f32.gmra.mxu0 %vm198_vm2, %v1653_v22  ;;  %2140 = vmatmul.mubr.msk.f32.gmra.mxu1 %vm198_vm2, %v1704_v23 }
  0xb7   : > { %2063 = vmatprep.mubr.msk.f32.mxu0 %vm2187_vm1, %v2186_v1  ;;  %2142 = vmatprep.mubr.msk.f32.mxu1 %vm2187_vm1, %v2186_v1 }
  0xba   : > { %2064 = vmatmul.mubr.msk.f32.gmra.mxu0 %vm198_vm2, %v1654_v24  ;;  %2143 = vmatmul.mubr.msk.f32.gmra.mxu1 %vm198_vm2, %v1705_v25 }
  0xbb   : > { %2066 = vmatprep.mubr.msk.f32.mxu0 %vm2187_vm1, %v2186_v1  ;;  %2145 = vmatprep.mubr.msk.f32.mxu1 %vm2187_vm1, %v2186_v1 }
  0xbe   : > { %2067 = vmatmul.mubr.msk.f32.gmra.mxu0 %vm198_vm2, %v1655_v26  ;;  %2146 = vmatmul.mubr.msk.f32.gmra.mxu1 %vm198_vm2, %v1706_v27 }
  0xbf   : > { %2069 = vmatprep.mubr.msk.f32.mxu0 %vm2187_vm1, %v2186_v1  ;;  %2148 = vmatprep.mubr.msk.f32.mxu1 %vm2187_vm1, %v2186_v1 }
  0xc2   : > { %2070 = vmatmul.mubr.msk.f32.gmra.mxu0 %vm198_vm2, %v1656_v28  ;;  %2149 = vmatmul.mubr.msk.f32.gmra.mxu1 %vm198_vm2, %v1707_v29 }
  0xc3   : > { %2072 = vmatprep.mubr.msk.f32.mxu0 %vm2187_vm1, %v2186_v1  ;;  %2151 = vmatprep.mubr.msk.f32.mxu1 %vm2187_vm1, %v2186_v1 }
  0xc6   : > { %2073 = vmatmul.mubr.msk.f32.gmra.mxu0 %vm198_vm2, %v1657_v30  ;;  %2152 = vmatmul.mubr.msk.f32.gmra.mxu1 %vm198_vm2, %v1708_v31 }
  0xc7   : > { %2075 = vmatprep.mubr.msk.f32.mxu0 %vm2187_vm1, %v2186_v1  ;;  %2154 = vmatprep.mubr.msk.f32.mxu1 %vm2187_vm1, %v2186_v1 }
  0xca   : > { %2076 = vmatmul.mubr.msk.f32.gmra.mxu0 %vm198_vm2, %v1658_v32  ;;  %2155 = vmatmul.mubr.msk.f32.gmra.mxu1 %vm198_vm2, %v1709_v33 }
  0xcb   : > { %2078 = vmatprep.mubr.msk.f32.mxu0 %vm2187_vm1, %v2186_v1  ;;  %2157 = vmatprep.mubr.msk.f32.mxu1 %vm2187_vm1, %v2186_v1 }
  0xce   : > { %2079 = vmatmul.mubr.msk.f32.gmra.mxu0 %vm198_vm2, %v1659_v34  ;;  %2158 = vmatmul.mubr.msk.f32.gmra.mxu1 %vm198_vm2, %v1710_v35 }
  0xcf   : > { %2081 = vmatprep.mubr.msk.f32.mxu0 %vm2187_vm1, %v2186_v1  ;;  %2160 = vmatprep.mubr.msk.f32.mxu1 %vm2187_vm1, %v2186_v1 }
  0xd2   : > { %v2632_v38 = vpop.f32.mrf.mxu0  ;;  %v2634_v39 = vpop.f32.mrf.mxu1  ;;  %2082 = vmatmul.mubr.msk.f32.gmra.mxu0 %vm198_vm2, %v1660_v36  ;;  %2161 = vmatmul.mubr.msk.f32.gmra.mxu1 %vm198_vm2, %v1711_v37 }
  0xd3   : > { %v759_v40 = vmax.f32 %v2632_v38, %v2634_v39  ;;  %2084 = vmatprep.mubr.msk.f32.mxu0 %vm2187_vm1, %v2186_v1  ;;  %2163 = vmatprep.mubr.msk.f32.mxu1 %vm2187_vm1, %v2186_v1 }
  0xd4   : > { %v1856_v43 = vpop.f32.mrf.mxu0  ;;  %v1935_v44 = vpop.f32.mrf.mxu1 }
  0xd6   : > { %v2646_v45 = vpop.f32.mrf.mxu0  ;;  %v2648_v46 = vpop.f32.mrf.mxu1  ;;  %2085 = vmatmul.mubr.msk.f32.gmra.mxu0 %vm198_vm2, %v1661_v41  ;;  %2164 = vmatmul.mubr.msk.f32.gmra.mxu1 %vm198_vm2, %v1712_v42 }
  0xd7   : > { %v760_v47 = vmax.f32 %v2646_v45, %v2648_v46 }
  0xd8   : > { %v1859_v48 = vpop.f32.mrf.mxu0  ;;  %v1938_v49 = vpop.f32.mrf.mxu1 }
  0xda   : > { %v2654_v50 = vpop.f32.mrf.mxu0  ;;  %v2656_v1 = vpop.f32.mrf.mxu1 }
  0xdb   : > { %v2937_v45 = vmax.f32 %v2654_v50, %v2656_v1 }
  0xdc   : > { %v1862_v52 = vpop.f32.mrf.mxu0  ;;  %v1941_v53 = vpop.f32.mrf.mxu1 }
  0xde   : > { %v2660_v54 = vpop.f32.mrf.mxu0  ;;  %v2662_v55 = vpop.f32.mrf.mxu1 }
  0xe0   : > { %v1865_v57 = vpop.f32.mrf.mxu0  ;;  %v1944_v58 = vpop.f32.mrf.mxu1 }
  0xe2   : > { %v2666_v59 = vpop.f32.mrf.mxu0  ;;  %v2668_v60 = vpop.f32.mrf.mxu1 }
  0xe4   : > { %v1868_v62 = vpop.f32.mrf.mxu0  ;;  %v1947_v63 = vpop.f32.mrf.mxu1 }
  0xe6   : > { %v2672_v0 = vpop.f32.mrf.mxu0  ;;  %v2674_v2 = vpop.f32.mrf.mxu1 }
  0xe8   : > { %v1871_v4 = vpop.f32.mrf.mxu0  ;;  %v1950_v5 = vpop.f32.mrf.mxu1 }
  0xea   : > { %v2678_v6 = vpop.f32.mrf.mxu0  ;;  %v2680_v7 = vpop.f32.mrf.mxu1 }
  0xec   : > { %v1874_v9 = vpop.f32.mrf.mxu0  ;;  %v1953_v10 = vpop.f32.mrf.mxu1 }
  0xee   : > { %v2684_v11 = vpop.f32.mrf.mxu0  ;;  %v2686_v12 = vpop.f32.mrf.mxu1 }
  0xf0   : > { %v1877_v14 = vpop.f32.mrf.mxu0  ;;  %v1956_v15 = vpop.f32.mrf.mxu1 }
  0xf2   : > { %v2690_v16 = vpop.f32.mrf.mxu0  ;;  %v2692_v17 = vpop.f32.mrf.mxu1 }
  0xf4   : > { %v1880_v19 = vpop.f32.mrf.mxu0  ;;  %v1959_v20 = vpop.f32.mrf.mxu1 }
  0xf6   : > { %v2696_v21 = vpop.f32.mrf.mxu0  ;;  %v2698_v22 = vpop.f32.mrf.mxu1 }
  0xf8   : > { %v1883_v24 = vpop.f32.mrf.mxu0  ;;  %v1962_v25 = vpop.f32.mrf.mxu1 }
  0xfa   : > { %v2702_v26 = vpop.f32.mrf.mxu0  ;;  %v2704_v27 = vpop.f32.mrf.mxu1 }
  0xfc   : > { %v1886_v29 = vpop.f32.mrf.mxu0  ;;  %v1965_v30 = vpop.f32.mrf.mxu1 }
  0xfe   : > { %v2708_v31 = vpop.f32.mrf.mxu0  ;;  %v2710_v32 = vpop.f32.mrf.mxu1 }
 0x100   : > { %v1889_v34 = vpop.f32.mrf.mxu0  ;;  %v1968_v35 = vpop.f32.mrf.mxu1 }
 0x102   : > { %v2714_v36 = vpop.f32.mrf.mxu0  ;;  %v2716_v37 = vpop.f32.mrf.mxu1 }
 0x104   : > { %v1892_v42 = vpop.f32.mrf.mxu0  ;;  %v1971_v43 = vpop.f32.mrf.mxu1 }
 0x106   : > { %v2720_v44 = vpop.f32.mrf.mxu0  ;;  %v2722_v48 = vpop.f32.mrf.mxu1 }
 0x108   : > { %v1895_v52 = vpop.f32.mrf.mxu0  ;;  %v1974_v53 = vpop.f32.mrf.mxu1 }
 0x10a   : > { %v2726_v57 = vpop.f32.mrf.mxu0  ;;  %v2728_v58 = vpop.f32.mrf.mxu1 }
 0x10c   : > { %v1898_v63 = vpop.f32.mrf.mxu0  ;;  %v1977_v4 = vpop.f32.mrf.mxu1 }
 0x10e   : > { %v2732_v5 = vpop.f32.mrf.mxu0  ;;  %v2734_v9 = vpop.f32.mrf.mxu1 }
 0x110   : > { %v1901_v14 = vpop.f32.mrf.mxu0  ;;  %v1980_v15 = vpop.f32.mrf.mxu1 }
 0x112   : > { %v2738_v19 = vpop.f32.mrf.mxu0  ;;  %v2740_v20 = vpop.f32.mrf.mxu1 }
 0x114   : > { %v1904_v25 = vpop.f32.mrf.mxu0  ;;  %v1983_v29 = vpop.f32.mrf.mxu1 }
 0x116   : > { %v2744_v30 = vpop.f32.mrf.mxu0  ;;  %v2746_v34 = vpop.f32.mrf.mxu1 }
 0x118   : > { %v1907_v42 = vpop.f32.mrf.mxu0  ;;  %v1986_v43 = vpop.f32.mrf.mxu1 }
 0x11a   : > { %v2750_v52 = vpop.f32.mrf.mxu0  ;;  %v2752_v53 = vpop.f32.mrf.mxu1 }
 0x11c   : > { %v1910_v4 = vpop.f32.mrf.mxu0  ;;  %v1989_v14 = vpop.f32.mrf.mxu1 }
 0x11e   : > { %v2756_v15 = vpop.f32.mrf.mxu0  ;;  %v2758_v25 = vpop.f32.mrf.mxu1 }
 0x120   : > { %v1913_v24 = vpop.f32.mrf.mxu0  ;;  %v1992_v35 = vpop.f32.mrf.mxu1 }
 0x122   : > { %v2762_v42 = vpop.f32.mrf.mxu0  ;;  %v2764_v43 = vpop.f32.mrf.mxu1 }
 0x124   : > { %v1916_v62 = vpop.f32.mrf.mxu0  ;;  %v1995_v63 = vpop.f32.mrf.mxu1 }
 0x126   : > { %v2768_v4 = vpop.f32.mrf.mxu0  ;;  %v2770_v14 = vpop.f32.mrf.mxu1 }
 0x128   : > { %v1919_v41 = vpop.f32.mrf.mxu0  ;;  %v1998_v29 = vpop.f32.mrf.mxu1 }
 0x12a   : > { %v2774_v24 = vpop.f32.mrf.mxu0  ;;  %v2776_v35 = vpop.f32.mrf.mxu1 }
 0x12c   : > { %v1922_v10 = vpop.f32.mrf.mxu0  ;;  %v2001_v62 = vpop.f32.mrf.mxu1 }
 0x12e   : > { %v2780_v63 = vpop.f32.mrf.mxu0  ;;  %v2782_v28 = vpop.f32.mrf.mxu1 }
 0x130   : > { %v1925_v49 = vpop.f32.mrf.mxu0  ;;  %v2004_v41 = vpop.f32.mrf.mxu1 }
 0x131   : > { %v2799_v49 = vld [vmem:[%s2933_s2] ss:$0 sm:$0xff] }
 0x132   : > { %v2786_v29 = vpop.f32.mrf.mxu0  ;;  %v2788_v18 = vpop.f32.mrf.mxu1 }
 0x133   : > { %2936 = vst [vmem:[#allocation2_spill] sm:$0xff] %v2788_v18 }
 0x134   : > { %v1928_v33 = vpop.f32.mrf.mxu0  ;;  %v2007_v8 = vpop.f32.mrf.mxu1 }
 0x136   : > { %v951_v10 = vpop.f32.mrf.mxu0  ;;  %v1267_v62 = vpop.f32.mrf.mxu1 }
 0x137   : > { %v1075_v3 = vmax.f32 %v759_v40, %v951_v10 }
 0x138   : > { %v2014_v41 = vpop.f32.mrf.mxu0  ;;  %v2093_v23 = vpop.f32.mrf.mxu1 }
 0x139   : > { %v1391_v61 = vmax.f32 %v1075_v3, %v1267_v62 }
 0x13a   : > { %v956_v56 = vpop.f32.mrf.mxu0  ;;  %v1272_v51 = vpop.f32.mrf.mxu1 }
 0x13b   : > { %v1423_v33 = vadd.f32 %v2799_v49, %v1391_v61  ;;  %v1076_v8 = vmax.f32 %v760_v47, %v956_v56 }
 0x13c   : > { %v2017_v38 = vpop.f32.mrf.mxu0  ;;  %v2096_v39 = vpop.f32.mrf.mxu1 }
 0x13d   : > { %v1448_v40 = vmax.f32 %v1423_v33, 0.0  ;;  %v1392_v23 = vmax.f32 %v1076_v8, %v1272_v51  ;;  %v2938_v51 = vmax.f32 %v2660_v54, %v2662_v55 }
 0x13e   : > { %v961_v3 = vpop.f32.mrf.mxu0  ;;  %v1277_v10 = vpop.f32.mrf.mxu1 }
 0x13f   : > { %1473 = vst [vmem:[%s2808_s27] sm:$0xff] %v1448_v40  ;;  %v1424_v61 = vadd.f32 %v2799_v49, %v1392_v23  ;;  %v1077_v46 = vmax.f32 %v2937_v45, %v961_v3 }
 0x140   : > { %v2020_v47 = vpop.f32.mrf.mxu0  ;;  %v2099_v56 = vpop.f32.mrf.mxu1 }
 0x141   : > { %v1449_v62 = vmax.f32 %v1424_v61, 0.0  ;;  %v1393_v41 = vmax.f32 %v1077_v46, %v1277_v10  ;;  %v2939_v10 = vmax.f32 %v2666_v59, %v2668_v60 }
 0x142   : > { %v966_v13 = vpop.f32.mrf.mxu0  ;;  %v1282_v18 = vpop.f32.mrf.mxu1 }
 0x143   : > { %1474 = vst [vmem:[%s2808_s27 + $0x8] sm:$0xff] %v1449_v62  ;;  %v1425_v33 = vadd.f32 %v2799_v49, %v1393_v41  ;;  %v1078_v8 = vmax.f32 %v2938_v51, %v966_v13 }
 0x144   : > { %v2023_v38 = vpop.f32.mrf.mxu0  ;;  %v2102_v39 = vpop.f32.mrf.mxu1 }
 0x145   : > { %v1450_v40 = vmax.f32 %v1425_v33, 0.0  ;;  %v1394_v50 = vmax.f32 %v1078_v8, %v1282_v18  ;;  %v2940_v18 = vmax.f32 %v2672_v0, %v2674_v2  ;;  %v2941_v39 = vmax.f32 %v2678_v6, %v2680_v7 }
 0x146   : > { %v971_v1 = vpop.f32.mrf.mxu0  ;;  %v1287_v23 = vpop.f32.mrf.mxu1 }
 0x147   : > { %1475 = vst [vmem:[%s2808_s27 + $0x10] sm:$0xff] %v1450_v40  ;;  %v1426_v3 = vadd.f32 %v2799_v49, %v1394_v50  ;;  %v1079_v61 = vmax.f32 %v2939_v10, %v971_v1 }
 0x148   : > { %v2026_v45 = vpop.f32.mrf.mxu0  ;;  %v2105_v46 = vpop.f32.mrf.mxu1 }
 0x149   : > { %v1451_v47 = vmax.f32 %v1426_v3, 0.0  ;;  %v1395_v54 = vmax.f32 %v1079_v61, %v1287_v23  ;;  %v2942_v61 = vmax.f32 %v2684_v11, %v2686_v12 }
 0x14a   : > { %v976_v55 = vpop.f32.mrf.mxu0  ;;  %v1292_v13 = vpop.f32.mrf.mxu1 }
 0x14b   : > { %1476 = vst [vmem:[%s2808_s27 + $0x18] sm:$0xff] %v1451_v47  ;;  %v1427_v56 = vadd.f32 %v2799_v49, %v1395_v54  ;;  %v1080_v62 = vmax.f32 %v2940_v18, %v976_v55 }
 0x14c   : > { %v2029_v41 = vpop.f32.mrf.mxu0  ;;  %v2108_v33 = vpop.f32.mrf.mxu1 }
 0x14d   : > { %v1452_v51 = vmax.f32 %v1427_v56, 0.0  ;;  %v1396_v59 = vmax.f32 %v1080_v62, %v1292_v13  ;;  %v2943_v56 = vmax.f32 %v2690_v16, %v2692_v17 }
 0x14e   : > { %v981_v60 = vpop.f32.mrf.mxu0  ;;  %v1297_v8 = vpop.f32.mrf.mxu1 }
 0x14f   : > { %1477 = vst [vmem:[%s2808_s27 + $0x20] sm:$0xff] %v1452_v51  ;;  %v1428_v38 = vadd.f32 %v2799_v49, %v1396_v59  ;;  %v1081_v40 = vmax.f32 %v2941_v39, %v981_v60  ;;  %v2944_v60 = vmax.f32 %v2696_v21, %v2698_v22 }
 0x150   : > { %v2032_v50 = vpop.f32.mrf.mxu0  ;;  %v2111_v1 = vpop.f32.mrf.mxu1 }
 0x151   : > { %v1453_v23 = vmax.f32 %v1428_v38, 0.0  ;;  %v1397_v0 = vmax.f32 %v1081_v40, %v1297_v8 }
 0x152   : > { %v986_v2 = vpop.f32.mrf.mxu0  ;;  %v1302_v3 = vpop.f32.mrf.mxu1 }
 0x153   : > { %1478 = vst [vmem:[%s2808_s27 + $0x28] sm:$0xff] %v1453_v23  ;;  %v1429_v10 = vadd.f32 %v2799_v49, %v1397_v0  ;;  %v1082_v45 = vmax.f32 %v2942_v61, %v986_v2  ;;  %v2945_v23 = vmax.f32 %v2702_v26, %v2704_v27 }
 0x154   : > { %v2035_v46 = vpop.f32.mrf.mxu0  ;;  %v2114_v47 = vpop.f32.mrf.mxu1 }
 0x155   : > { %v1454_v54 = vmax.f32 %v1429_v10, 0.0  ;;  %v1398_v6 = vmax.f32 %v1082_v45, %v1302_v3  ;;  %v2946_v46 = vmax.f32 %v2708_v31, %v2710_v32 }
 0x156   : > { %v991_v7 = vpop.f32.mrf.mxu0  ;;  %v1307_v55 = vpop.f32.mrf.mxu1 }
 0x157   : > { %1479 = vst [vmem:[%s2808_s27 + $0x30] sm:$0xff] %v1454_v54  ;;  %v1430_v13 = vadd.f32 %v2799_v49, %v1398_v6  ;;  %v1083_v18 = vmax.f32 %v2943_v56, %v991_v7  ;;  %v2947_v56 = vmax.f32 %v2714_v36, %v2716_v37 }
 0x158   : > { %v2038_v62 = vpop.f32.mrf.mxu0  ;;  %v2117_v41 = vpop.f32.mrf.mxu1 }
 0x159   : > { %v1455_v33 = vmax.f32 %v1430_v13, 0.0  ;;  %v1399_v11 = vmax.f32 %v1083_v18, %v1307_v55 }
 0x15a   : > { %v996_v12 = vpop.f32.mrf.mxu0  ;;  %v1312_v51 = vpop.f32.mrf.mxu1 }
 0x15b   : > { %1480 = vst [vmem:[%s2808_s27 + $0x38] sm:$0xff] %v1455_v33  ;;  %v1431_v59 = vadd.f32 %v2799_v49, %v1399_v11  ;;  %v1084_v8 = vmax.f32 %v2944_v60, %v996_v12 }
 0x15c   : > { %v2041_v38 = vpop.f32.mrf.mxu0  ;;  %v2120_v39 = vpop.f32.mrf.mxu1 }
 0x15d   : > { %v1456_v40 = vmax.f32 %v1431_v59, 0.0  ;;  %v1400_v16 = vmax.f32 %v1084_v8, %v1312_v51  ;;  %v2948_v51 = vmax.f32 %v2720_v44, %v2722_v48 }
 0x15e   : > { %v1001_v17 = vpop.f32.mrf.mxu0  ;;  %v1317_v50 = vpop.f32.mrf.mxu1 }
 0x15f   : > { %1481 = vst [vmem:[%s2808_s27 + $0x40] sm:$0xff] %v1456_v40  ;;  %v1432_v1 = vadd.f32 %v2799_v49, %v1400_v16  ;;  %v1085_v0 = vmax.f32 %v2945_v23, %v1001_v17  ;;  %v2949_v16 = vmax.f32 %v2726_v57, %v2728_v58 }
 0x160   : > { %v2044_v2 = vpop.f32.mrf.mxu0  ;;  %v2123_v3 = vpop.f32.mrf.mxu1 }
 0x161   : > { %v1457_v10 = vmax.f32 %v1432_v1, 0.0  ;;  %v1401_v21 = vmax.f32 %v1085_v0, %v1317_v50  ;;  %v2950_v3 = vmax.f32 %v2732_v5, %v2734_v9 }
 0x162   : > { %v1006_v22 = vpop.f32.mrf.mxu0  ;;  %v1322_v61 = vpop.f32.mrf.mxu1 }
 0x163   : > { %1482 = vst [vmem:[%s2808_s27 + $0x48] sm:$0xff] %v1457_v10  ;;  %v1433_v45 = vadd.f32 %v2799_v49, %v1401_v21  ;;  %v1086_v47 = vmax.f32 %v2946_v46, %v1006_v22 }
 0x164   : > { %v2047_v54 = vpop.f32.mrf.mxu0  ;;  %v2126_v6 = vpop.f32.mrf.mxu1 }
 0x165   : > { %v1458_v7 = vmax.f32 %v1433_v45, 0.0  ;;  %v1402_v26 = vmax.f32 %v1086_v47, %v1322_v61  ;;  %v2951_v47 = vmax.f32 %v2738_v19, %v2740_v20 }
 0x166   : > { %v1011_v27 = vpop.f32.mrf.mxu0  ;;  %v1327_v55 = vpop.f32.mrf.mxu1 }
 0x167   : > { %1483 = vst [vmem:[%s2808_s27 + $0x50] sm:$0xff] %v1458_v7  ;;  %v1434_v13 = vadd.f32 %v2799_v49, %v1402_v26  ;;  %v1087_v18 = vmax.f32 %v2947_v56, %v1011_v27 }
 0x168   : > { %v2050_v62 = vpop.f32.mrf.mxu0  ;;  %v2129_v41 = vpop.f32.mrf.mxu1 }
 0x169   : > { %v1459_v33 = vmax.f32 %v1434_v13, 0.0  ;;  %v1403_v31 = vmax.f32 %v1087_v18, %v1327_v55  ;;  %v2952_v13 = vmax.f32 %v2744_v30, %v2746_v34 }
 0x16a   : > { %v1016_v32 = vpop.f32.mrf.mxu0  ;;  %v1332_v11 = vpop.f32.mrf.mxu1 }
 0x16b   : > { %1484 = vst [vmem:[%s2808_s27 + $0x58] sm:$0xff] %v1459_v33  ;;  %v1435_v12 = vadd.f32 %v2799_v49, %v1403_v31  ;;  %v1088_v59 = vmax.f32 %v2948_v51, %v1016_v32  ;;  %v2953_v32 = vmax.f32 %v2750_v52, %v2752_v53 }
 0x16c   : > { %v2053_v60 = vpop.f32.mrf.mxu0  ;;  %v2132_v8 = vpop.f32.mrf.mxu1 }
 0x16d   : > { %v1460_v38 = vmax.f32 %v1435_v12, 0.0  ;;  %v1404_v36 = vmax.f32 %v1088_v59, %v1332_v11 }
 0x16e   : > { %v1021_v37 = vpop.f32.mrf.mxu0  ;;  %v1337_v39 = vpop.f32.mrf.mxu1 }
 0x16f   : > { %1485 = vst [vmem:[%s2808_s27 + $0x60] sm:$0xff] %v1460_v38  ;;  %v1436_v40 = vadd.f32 %v2799_v49, %v1404_v36  ;;  %v1089_v17 = vmax.f32 %v2949_v16, %v1021_v37  ;;  %v2954_v38 = vmax.f32 %v2756_v15, %v2758_v25 }
 0x170   : > { %v2056_v50 = vpop.f32.mrf.mxu0  ;;  %v2135_v1 = vpop.f32.mrf.mxu1 }
 0x171   : > { %v1461_v23 = vmax.f32 %v1436_v40, 0.0  ;;  %v1405_v44 = vmax.f32 %v1089_v17, %v1337_v39  ;;  %v2955_v50 = vmax.f32 %v2762_v42, %v2764_v43 }
 0x172   : > { %v1026_v48 = vpop.f32.mrf.mxu0  ;;  %v1342_v0 = vpop.f32.mrf.mxu1 }
 0x173   : > { %1486 = vst [vmem:[%s2808_s27 + $0x68] sm:$0xff] %v1461_v23  ;;  %v1437_v2 = vadd.f32 %v2799_v49, %v1405_v44  ;;  %v1090_v10 = vmax.f32 %v2950_v3, %v1026_v48  ;;  %v2956_v3 = vmax.f32 %v2768_v4, %v2770_v14 }
 0x174   : > { %v2059_v21 = vpop.f32.mrf.mxu0  ;;  %v2138_v22 = vpop.f32.mrf.mxu1 }
 0x175   : > { %v1462_v61 = vmax.f32 %v1437_v2, 0.0  ;;  %v1406_v57 = vmax.f32 %v1090_v10, %v1342_v0 }
 0x176   : > { %v1031_v58 = vpop.f32.mrf.mxu0  ;;  %v1347_v45 = vpop.f32.mrf.mxu1 }
 0x177   : > { %1487 = vst [vmem:[%s2808_s27 + $0x70] sm:$0xff] %v1462_v61  ;;  %v1438_v46 = vadd.f32 %v2799_v49, %v1406_v57  ;;  %v1091_v54 = vmax.f32 %v2951_v47, %v1031_v58 }
 0x178   : > { %v2062_v6 = vpop.f32.mrf.mxu0  ;;  %v2141_v7 = vpop.f32.mrf.mxu1 }
 0x179   : > { %v1463_v26 = vmax.f32 %v1438_v46, 0.0  ;;  %v1407_v5 = vmax.f32 %v1091_v54, %v1347_v45  ;;  %v2957_v45 = vmax.f32 %v2774_v24, %v2776_v35 }
 0x17a   : > { %v1036_v9 = vpop.f32.mrf.mxu0  ;;  %v1352_v27 = vpop.f32.mrf.mxu1 }
 0x17b   : > { %1488 = vst [vmem:[%s2808_s27 + $0x78] sm:$0xff] %v1463_v26  ;;  %v1439_v55 = vadd.f32 %v2799_v49, %v1407_v5  ;;  %v1092_v56 = vmax.f32 %v2952_v13, %v1036_v9  ;;  %v2958_v5 = vmax.f32 %v2780_v63, %v2782_v28 }
 0x17c   : > { %v2065_v18 = vpop.f32.mrf.mxu0  ;;  %v2144_v62 = vpop.f32.mrf.mxu1 }
 0x17d   : > { %v1464_v41 = vmax.f32 %v1439_v55, 0.0  ;;  %v1408_v19 = vmax.f32 %v1092_v56, %v1352_v27  ;;  %v2959_v62 = vld [vmem:[#allocation2_spill] sm:$0xff] }
 0x17e   : > { %v1041_v20 = vpop.f32.mrf.mxu0  ;;  %v1357_v33 = vpop.f32.mrf.mxu1 }
 0x17f   : > { %1489 = vst [vmem:[%s2808_s27 + $0x80] sm:$0xff] %v1464_v41  ;;  %v1440_v31 = vadd.f32 %v2799_v49, %v1408_v19  ;;  %v1093_v11 = vmax.f32 %v2953_v32, %v1041_v20  ;;  %v2960_v41 = vmax.f32 %v2786_v29, %v2959_v62 }
 0x180   : > { %v2068_v12 = vpop.f32.mrf.mxu0  ;;  %v2147_v51 = vpop.f32.mrf.mxu1 }
 0x181   : > { %v1465_v59 = vmax.f32 %v1440_v31, 0.0  ;;  %v1409_v30 = vmax.f32 %v1093_v11, %v1357_v33 }
 0x182   : > { %v1046_v34 = vpop.f32.mrf.mxu0  ;;  %v1362_v60 = vpop.f32.mrf.mxu1 }
 0x183   : > { %1490 = vst [vmem:[%s2808_s27 + $0x88] sm:$0xff] %v1465_v59  ;;  %v1441_v8 = vadd.f32 %v2799_v49, %v1409_v30  ;;  %v1094_v36 = vmax.f32 %v2954_v38, %v1046_v34 }
 0x184   : > { %v2071_v37 = vpop.f32.mrf.mxu0  ;;  %v2150_v39 = vpop.f32.mrf.mxu1 }
 0x185   : > { %v1466_v40 = vmax.f32 %v1441_v8, 0.0  ;;  %v1410_v52 = vmax.f32 %v1094_v36, %v1362_v60 }
 0x186   : > { %v1051_v53 = vpop.f32.mrf.mxu0  ;;  %v1367_v16 = vpop.f32.mrf.mxu1 }
 0x187   : > { %1491 = vst [vmem:[%s2808_s27 + $0x90] sm:$0xff] %v1466_v40  ;;  %v1442_v17 = vadd.f32 %v2799_v49, %v1410_v52  ;;  %v1095_v1 = vmax.f32 %v2955_v50, %v1051_v53 }
 0x188   : > { %v2074_v23 = vpop.f32.mrf.mxu0  ;;  %v2153_v44 = vpop.f32.mrf.mxu1 }
 0x189   : > { %v1467_v48 = vmax.f32 %v1442_v17, 0.0  ;;  %v1411_v15 = vmax.f32 %v1095_v1, %v1367_v16 }
 0x18a   : > { %v1056_v25 = vpop.f32.mrf.mxu0  ;;  %v1372_v0 = vpop.f32.mrf.mxu1 }
 0x18b   : > { %1492 = vst [vmem:[%s2808_s27 + $0x98] sm:$0xff] %v1467_v48  ;;  %v1443_v2 = vadd.f32 %v2799_v49, %v1411_v15  ;;  %v1096_v10 = vmax.f32 %v2956_v3, %v1056_v25 }
 0x18c   : > { %v2077_v21 = vpop.f32.mrf.mxu0  ;;  %v2156_v22 = vpop.f32.mrf.mxu1 }
 0x18d   : > { %v1468_v61 = vmax.f32 %v1443_v2, 0.0  ;;  %v1412_v42 = vmax.f32 %v1096_v10, %v1372_v0 }
 0x18e   : > { %v1061_v43 = vpop.f32.mrf.mxu0  ;;  %v1377_v57 = vpop.f32.mrf.mxu1 }
 0x18f   : > { %1493 = vst [vmem:[%s2808_s27 + $0xa0] sm:$0xff] %v1468_v61  ;;  %v1444_v58 = vadd.f32 %v2799_v49, %v1412_v42  ;;  %v1097_v46 = vmax.f32 %v2957_v45, %v1061_v43 }
 0x190   : > { %v2080_v47 = vpop.f32.mrf.mxu0  ;;  %v2159_v54 = vpop.f32.mrf.mxu1 }
 0x191   : > { %v1469_v6 = vmax.f32 %v1444_v58, 0.0  ;;  %v1413_v4 = vmax.f32 %v1097_v46, %v1377_v57 }
 0x192   : > { %v1066_v14 = vpop.f32.mrf.mxu0  ;;  %v1382_v7 = vpop.f32.mrf.mxu1 }
 0x193   : > { %1494 = vst [vmem:[%s2808_s27 + $0xa8] sm:$0xff] %v1469_v6  ;;  %v1445_v26 = vadd.f32 %v2799_v49, %v1413_v4  ;;  %v1098_v9 = vmax.f32 %v2958_v5, %v1066_v14 }
 0x194   : > { %v2083_v27 = vpop.f32.mrf.mxu0  ;;  %v2162_v55 = vpop.f32.mrf.mxu1 }
 0x195   : > { %v1470_v24 = vmax.f32 %v1445_v26, 0.0  ;;  %v1414_v35 = vmax.f32 %v1098_v9, %v1382_v7 }
 0x196   : > { %v1071_v13 = vpop.f32.mrf.mxu0  ;;  %v1387_v56 = vpop.f32.mrf.mxu1 }
 0x197   : > { %1495 = vst [vmem:[%s2808_s27 + $0xb0] sm:$0xff] %v1470_v24  ;;  %v1446_v18 = vadd.f32 %v2799_v49, %v1414_v35  ;;  %v1099_v19 = vmax.f32 %v2960_v41, %v1071_v13 }
 0x198   : > { %v2086_v20 = vpop.f32.mrf.mxu0  ;;  %v2165_v33 = vpop.f32.mrf.mxu1 }
 0x199   : > { %v1471_v31 = vmax.f32 %v1446_v18, 0.0  ;;  %v1415_v32 = vmax.f32 %v1099_v19, %v1387_v56 }
 0x19b   : > { %1496 = vst [vmem:[%s2808_s27 + $0xb8] sm:$0xff] %v1471_v31  ;;  %v1447_v28 = vadd.f32 %v2799_v49, %v1415_v32 }
 0x19d   : > { %v1472_v63 = vmax.f32 %v1447_v28, 0.0 }
 0x19f   : > { %1497 = vst [vmem:[%s2808_s27 + $0xc0] sm:$0xf] %v1472_v63 }
 0x1a0 PF: > { %s13_s12 = sadd.s32 1, %s2184_s12  }
 0x1a1   : > { %p10_p4 = scmp.ge.s32.totalorder %s13_s12, 4  }
 0x1a3   :  { %12 = sbr.rel (!%p10_p4) target bundleno = 1 (0x1), region = 65 }

// kernel: simple_cnn_forward.4
= control target key start
LH: loop header
LB: loop body
LE: loop exit
PB: predicated region body
PF: predicated region fallthrough
CT: control target
= control target key end

     0   :  { %s4211_s12 = smov 0   ;;  %s6869_s0 = inlined_call_operand.vmem [shape: f32[2,4,49,1152], index: 0, kind: input, shape index: {}]   ;;  %s6870_s1 = inlined_call_operand.vmem [shape: f32[1152,128], index: 1, kind: input, shape index: {}]   ;;  %s6871_s2 = inlined_call_operand.vmem [shape: f32[1,128], index: 2, kind: input, shape index: {}]   ;;  %s6872_s3 = inlined_call_operand.vmem [shape: f32[2,49,128], index: 3, kind: output, shape index: {}]  }
   0x1 LB: > { %s2674_s13 = sadd.s32 4294967295, %s4187_s12   ;;  %p2678_p0 = scmp.ge.s32.totalorder %s4187_s12, 1  ;;  %s4187_s12 = sphi %s4211_s12, %s13_s12  }
   0x2   : > { %p137_p1 = scmp.lt.s32.totalorder %s4187_s12, 3 }
   0x4   : > { %p138_p2 = pnand %p2678_p0, %p137_p1 }
   0x6   : > { %141 = sbr.rel (%p138_p2) target bundleno = 690 (0x2b2), region = 32 }
   0xb   : > { %v4222_v0 = vld [vmem:[%s6870_s1 + $0xf8] sm:$0xff]  ;;  %v4244_v4 = vld [vmem:[%s6870_s1 + $0xf0] sm:$0xff]  ;;  %v4266_v8 = vld [vmem:[%s6870_s1 + $0xe8] sm:$0xff]  ;;  %p4419_p3 = scmp.lt.s32.totalorder %s2674_s13, 1  ;;  %vm4190_vm0 = vmmov 0  }
   0xc   : > { %v4227_v1 = vld [vmem:[%s6870_s1 + $0x1f8] sm:$0xff]  ;;  %2873 = vmatprep.subr.mxu0 %v4222_v0  ;;  %v4249_v5 = vld [vmem:[%s6870_s1 + $0x1f0] sm:$0xff]  ;;  %v4273_v9 = vld [vmem:[%s6870_s1 + $0x1e8] sm:$0xff] }
   0xd   : > { %v4232_v2 = vld [vmem:[%s6870_s1 + $0x78] sm:$0xff]  ;;  %2926 = vmatprep.subr.mxu1 %v4227_v1  ;;  %v4256_v6 = vld [vmem:[%s6870_s1 + $0x70] sm:$0xff]  ;;  %v4278_v10 = vld [vmem:[%s6870_s1 + $0x68] sm:$0xff]  ;;  %s7340_s13 = smov (!%p4419_p3, %s2674_s13), 1 }
   0xe   : > { %v4239_v3 = vld [vmem:[%s6870_s1 + $0x178] sm:$0xff]  ;;  %2874 = vmatpush3.msra.mxu0 %v4232_v2  ;;  %v4261_v7 = vld [vmem:[%s6870_s1 + $0x170] sm:$0xff]  ;;  %v4283_v11 = vld [vmem:[%s6870_s1 + $0x168] sm:$0xff]  ;;  %s4025_s15 = smul.u32 2016, %s7340_s13 }
   0xf   : > { %2927 = vmatpush3.msra.mxu1 %v4239_v3  ;;  %2875 = vmatprep.subr.mxu0 %v4244_v4  ;;  %v4290_v12 = vld [vmem:[%s6870_s1 + $0xe0] sm:$0xff]  ;;  %v4314_v16 = vld [vmem:[%s6870_s1 + $0xd8] sm:$0xff]  ;;  %v4338_v20 = vld [vmem:[%s6870_s1 + $0xd0] sm:$0xff] }
  0x10   : > { %2928 = vmatprep.subr.mxu1 %v4249_v5  ;;  %2876 = vmatpush3.msra.mxu0 %v4256_v6  ;;  %v4295_v13 = vld [vmem:[%s6870_s1 + $0x1e0] sm:$0xff]  ;;  %v4319_v17 = vld [vmem:[%s6870_s1 + $0x1d8] sm:$0xff]  ;;  %v4343_v21 = vld [vmem:[%s6870_s1 + $0x1d0] sm:$0xff]  ;;  %s4577_s7 = scalar_lea.vmem %s6869_s0, %s4025_s15 }
  0x11   : > { %2929 = vmatpush3.msra.mxu1 %v4261_v7  ;;  %2877 = vmatprep.subr.mxu0 %v4266_v8  ;;  %v4302_v14 = vld [vmem:[%s6870_s1 + $0x60] sm:$0xff]  ;;  %v4326_v18 = vld [vmem:[%s6870_s1 + $0x58] sm:$0xff]  ;;  %v4350_v22 = vld [vmem:[%s6870_s1 + $0x50] sm:$0xff] }
  0x12   : > { %2930 = vmatprep.subr.mxu1 %v4273_v9  ;;  %v4307_v15 = vld [vmem:[%s6870_s1 + $0x160] sm:$0xff]  ;;  %2878 = vmatpush3.msra.mxu0 %v4278_v10  ;;  %v4331_v19 = vld [vmem:[%s6870_s1 + $0x158] sm:$0xff]  ;;  %v4355_v23 = vld [vmem:[%s6870_s1 + $0x150] sm:$0xff] }
  0x13   : > { %2931 = vmatpush3.msra.mxu1 %v4283_v11  ;;  %2879 = vmatprep.subr.mxu0 %v4290_v12  ;;  %7029 = vst [vmem:[#allocation2_spill] sm:$0xff] %v4355_v23  ;;  %v4362_v24 = vld [vmem:[%s6870_s1 + $0xc8] sm:$0xff]  ;;  %v4386_v28 = vld [vmem:[%s6870_s1 + $0xc0] sm:$0xff]  ;;  %v4410_v32 = vld [vmem:[%s6870_s1 + $0xb8] sm:$0xff] }
  0x14   : > { %2932 = vmatprep.subr.mxu1 %v4295_v13  ;;  %2880 = vmatpush3.msra.mxu0 %v4302_v14  ;;  %v4367_v25 = vld [vmem:[%s6870_s1 + $0x1c8] sm:$0xff]  ;;  %v4391_v29 = vld [vmem:[%s6870_s1 + $0x1c0] sm:$0xff]  ;;  %v4415_v33 = vld [vmem:[%s6870_s1 + $0x1b8] sm:$0xff] }
  0x15   : > { %2933 = vmatpush3.msra.mxu1 %v4307_v15  ;;  %2881 = vmatprep.subr.mxu0 %v4314_v16  ;;  %7030 = vst [vmem:[#allocation3_spill] sm:$0xff] %v4367_v25  ;;  %v4374_v26 = vld [vmem:[%s6870_s1 + $0x48] sm:$0xff]  ;;  %7032 = vst [vmem:[#allocation5_spill] sm:$0xff] %v4391_v29  ;;  %v4398_v30 = vld [vmem:[%s6870_s1 + $0x40] sm:$0xff] }
  0x16   : > { %2934 = vmatprep.subr.mxu1 %v4319_v17  ;;  %2882 = vmatpush3.msra.mxu0 %v4326_v18  ;;  %v4379_v27 = vld [vmem:[%s6870_s1 + $0x148] sm:$0xff]  ;;  %v4403_v31 = vld [vmem:[%s6870_s1 + $0x140] sm:$0xff]  ;;  %7034 = vst [vmem:[#allocation7_spill] sm:$0xff] %v4415_v33  ;;  %v4428_v34 = vld [vmem:[%s6870_s1 + $0x38] sm:$0xff] }
  0x17   : > { %2935 = vmatpush3.msra.mxu1 %v4331_v19  ;;  %2883 = vmatprep.subr.mxu0 %v4338_v20  ;;  %7031 = vst [vmem:[#allocation4_spill] sm:$0xff] %v4379_v27  ;;  %7033 = vst [vmem:[#allocation6_spill] sm:$0xff] %v4403_v31  ;;  %v4433_v35 = vld [vmem:[%s6870_s1 + $0x138] sm:$0xff]  ;;  %v4440_v36 = vld [vmem:[%s6870_s1 + $0xb0] sm:$0xff] }
  0x18   : > { %2936 = vmatprep.subr.mxu1 %v4343_v21  ;;  %2884 = vmatpush3.msra.mxu0 %v4350_v22  ;;  %7036 = vst [vmem:[#allocation8_spill] sm:$0xff] %v4433_v35  ;;  %v4445_v37 = vld [vmem:[%s6870_s1 + $0x1b0] sm:$0xff]  ;;  %v4464_v40 = vld [vmem:[%s6870_s1 + $0xa8] sm:$0xff]  ;;  %v4494_v44 = vld [vmem:[%s6870_s1 + $0xa0] sm:$0xff] }
  0x19   : > { %2937 = vmatpush3.msra.mxu1 %v4355_v23  ;;  %2885 = vmatprep.subr.mxu0 %v4362_v24  ;;  %7037 = vst [vmem:[#allocation9_spill] sm:$0xff] %v4445_v37  ;;  %v4452_v38 = vld [vmem:[%s6870_s1 + $0x30] sm:$0xff]  ;;  %v4469_v41 = vld [vmem:[%s6870_s1 + $0x1a8] sm:$0xff]  ;;  %v4499_v45 = vld [vmem:[%s6870_s1 + $0x1a0] sm:$0xff] }
  0x1a   : > { %2938 = vmatprep.subr.mxu1 %v4367_v25  ;;  %2886 = vmatpush3.msra.mxu0 %v4374_v26  ;;  %v4457_v39 = vld [vmem:[%s6870_s1 + $0x130] sm:$0xff]  ;;  %7039 = vst [vmem:[#allocation11_spill] sm:$0xff] %v4469_v41  ;;  %v4482_v42 = vld [vmem:[%s6870_s1 + $0x28] sm:$0xff]  ;;  %7041 = vst [vmem:[#allocation13_spill] sm:$0xff] %v4499_v45 }
  0x1b   : > { %2939 = vmatpush3.msra.mxu1 %v4379_v27  ;;  %2887 = vmatprep.subr.mxu0 %v4386_v28  ;;  %7038 = vst [vmem:[#allocation10_spill] sm:$0xff] %v4457_v39  ;;  %v4487_v43 = vld [vmem:[%s6870_s1 + $0x128] sm:$0xff]  ;;  %v4506_v46 = vld [vmem:[%s6870_s1 + $0x20] sm:$0xff]  ;;  %v4518_v48 = vld [vmem:[%s6870_s1 + $0x98] sm:$0xff] }
  0x1c   : > { %2940 = vmatprep.subr.mxu1 %v4391_v29  ;;  %2888 = vmatpush3.msra.mxu0 %v4398_v30  ;;  %7040 = vst [vmem:[#allocation12_spill] sm:$0xff] %v4487_v43  ;;  %v4511_v47 = vld [vmem:[%s6870_s1 + $0x120] sm:$0xff]  ;;  %v4523_v49 = vld [vmem:[%s6870_s1 + $0x198] sm:$0xff]  ;;  %v4543_v52 = vld [vmem:[%s6870_s1 + $0x90] sm:$0xff] }
  0x1d   : > { %2941 = vmatpush3.msra.mxu1 %v4403_v31  ;;  %2889 = vmatprep.subr.mxu0 %v4410_v32  ;;  %7042 = vst [vmem:[#allocation14_spill] sm:$0xff] %v4511_v47  ;;  %7043 = vst [vmem:[#allocation15_spill] sm:$0xff] %v4523_v49  ;;  %v4531_v50 = vld [vmem:[%s6870_s1 + $0x18] sm:$0xff]  ;;  %v4548_v53 = vld [vmem:[%s6870_s1 + $0x190] sm:$0xff] }
  0x1e   : > { %2942 = vmatprep.subr.mxu1 %v4415_v33  ;;  %2890 = vmatpush3.msra.mxu0 %v4428_v34  ;;  %v4536_v51 = vld [vmem:[%s6870_s1 + $0x118] sm:$0xff]  ;;  %7045 = vst [vmem:[#allocation17_spill] sm:$0xff] %v4548_v53  ;;  %v4555_v54 = vld [vmem:[%s6870_s1 + $0x10] sm:$0xff]  ;;  %v4567_v56 = vld [vmem:[%s6870_s1 + $0x88] sm:$0xff] }
  0x1f   : > { %2943 = vmatpush3.msra.mxu1 %v4433_v35  ;;  %2891 = vmatprep.subr.mxu0 %v4440_v36  ;;  %7044 = vst [vmem:[#allocation16_spill] sm:$0xff] %v4536_v51  ;;  %v4560_v55 = vld [vmem:[%s6870_s1 + $0x110] sm:$0xff]  ;;  %v4572_v57 = vld [vmem:[%s6870_s1 + $0x188] sm:$0xff]  ;;  %v4596_v60 = vld [vmem:[%s6870_s1 + $0x80] sm:$0xff] }
  0x20   : > { %2944 = vmatprep.subr.mxu1 %v4445_v37  ;;  %2892 = vmatpush3.msra.mxu0 %v4452_v38  ;;  %7046 = vst [vmem:[#allocation18_spill] sm:$0xff] %v4560_v55  ;;  %7047 = vst [vmem:[#allocation19_spill] sm:$0xff] %v4572_v57  ;;  %v4584_v58 = vld [vmem:[%s6870_s1 + $0x8] sm:$0xff]  ;;  %v4601_v61 = vld [vmem:[%s6870_s1 + $0x180] sm:$0xff] }
  0x21   : > { %2945 = vmatpush3.msra.mxu1 %v4457_v39  ;;  %2893 = vmatprep.subr.mxu0 %v4464_v40  ;;  %v4589_v59 = vld [vmem:[%s6870_s1 + $0x108] sm:$0xff]  ;;  %7049 = vst [vmem:[#allocation21_spill] sm:$0xff] %v4601_v61  ;;  %v4608_v62 = vld [vmem:[%s6870_s1] sm:$0xff]  ;;  %v326_v37 = vld [vmem:[%s4577_s7 + $0x58] sm:$0xff] }
  0x22   : > { %2946 = vmatprep.subr.mxu1 %v4469_v41  ;;  %2894 = vmatpush3.msra.mxu0 %v4482_v42  ;;  %7048 = vst [vmem:[#allocation20_spill] sm:$0xff] %v4589_v59  ;;  %v316_v63 = vld [vmem:[%s4577_s7 + $0x8] sm:$0xff]  ;;  %v327_v41 = vld [vmem:[%s4577_s7 + $0x60] sm:$0xff]  ;;  %v334_v33 = vld [vmem:[%s4577_s7 + $0x98] sm:$0xff] }
  0x23   : > { %2947 = vmatpush3.msra.mxu1 %v4487_v43  ;;  %2895 = vmatprep.subr.mxu0 %v4494_v44  ;;  %v325_v43 = vld [vmem:[%s4577_s7 + $0x50] sm:$0xff]  ;;  %v4705_v39 = vld [vmem:[%s6870_s1 + $0x3e0] sm:$0xff]  ;;  %v336_v31 = vld [vmem:[%s4577_s7 + $0xa8] sm:$0xff] }
  0x24   : > { %2948 = vmatprep.subr.mxu1 %v4499_v45  ;;  %2896 = vmatpush3.msra.mxu0 %v4506_v46  ;;  %v4689_v45 = vld [vmem:[%s6870_s1 + $0x368] sm:$0xff]  ;;  %7057 = vst [vmem:[#allocation29_spill] sm:$0xff] %v4705_v39  ;;  %v4719_v35 = vld [vmem:[%s6870_s1 + $0x360] sm:$0xff]  ;;  %v4771_v27 = vld [vmem:[%s6870_s1 + $0x350] sm:$0xff] }
  0x25   : > { %2949 = vmatpush3.msra.mxu1 %v4511_v47  ;;  %2897 = vmatprep.subr.mxu0 %v4518_v48  ;;  %v4648_v47 = vld [vmem:[%s6870_s1 + $0x2f0] sm:$0xff]  ;;  %7056 = vst [vmem:[#allocation28_spill] sm:$0xff] %v4689_v45  ;;  %7058 = vst [vmem:[#allocation30_spill] sm:$0xff] %v4719_v35  ;;  %v335_v29 = vld [vmem:[%s4577_s7 + $0xa0] sm:$0xff] }
  0x26   : > { %2950 = vmatprep.subr.mxu1 %v4523_v49  ;;  %2898 = vmatpush3.msra.mxu0 %v4531_v50  ;;  %v4627_v49 = vld [vmem:[%s6870_s1 + $0x2f8] sm:$0xff]  ;;  %7063 = vst [vmem:[#allocation35_spill] sm:$0xff] %v4771_v27  ;;  %v343_v25 = vld [vmem:[%s4577_s7 + $0xe0] sm:$0xff]  ;;  %v345_v23 = vld [vmem:[%s4577_s7 + $0xf0] sm:$0xff] }
  0x27   : > { %2951 = vmatpush3.msra.mxu1 %v4536_v51  ;;  %2899 = vmatprep.subr.mxu0 %v4543_v52  ;;  %v317_v51 = vld [vmem:[%s4577_s7 + $0x10] sm:$0xff] }
  0x28   : > { %2952 = vmatprep.subr.mxu1 %v4548_v53  ;;  %2900 = vmatpush3.msra.mxu0 %v4555_v54  ;;  %v318_v53 = vld [vmem:[%s4577_s7 + $0x18] sm:$0xff] }
  0x29   : > { %2953 = vmatpush3.msra.mxu1 %v4560_v55  ;;  %2901 = vmatprep.subr.mxu0 %v4567_v56  ;;  %v4616_v55 = vld [vmem:[%s6870_s1 + $0x100] sm:$0xff] }
  0x2a   : > { %2954 = vmatprep.subr.mxu1 %v4572_v57  ;;  %2902 = vmatpush3.msra.mxu0 %v4584_v58  ;;  %7050 = vst [vmem:[#allocation22_spill] sm:$0xff] %v4616_v55  ;;  %v315_v57 = vld [vmem:[%s4577_s7] sm:$0xff] }
  0x2b   : > { %2955 = vmatpush3.msra.mxu1 %v4589_v59  ;;  %2903 = vmatprep.subr.mxu0 %v4596_v60  ;;  %v4632_v59 = vld [vmem:[%s6870_s1 + $0x3f8] sm:$0xff] }
  0x2c   : > { %2956 = vmatprep.subr.mxu1 %v4601_v61  ;;  %2904 = vmatpush3.msra.mxu0 %v4608_v62  ;;  %7051 = vst [vmem:[#allocation23_spill] sm:$0xff] %v4632_v59  ;;  %v4638_v61 = vld [vmem:[%s6870_s1 + $0x278] sm:$0xff] }
  0x2d   : > { %442 = vmatprep.mubr.f32.mxu0 %v316_v63  ;;  %2957 = vmatpush3.msra.mxu1 %v4616_v55  ;;  %v4643_v63 = vld [vmem:[%s6870_s1 + $0x378] sm:$0xff]  ;;  %v4672_v55 = vld [vmem:[%s6870_s1 + $0x2e8] sm:$0xff] }
  0x2e   : > { %542 = vmatprep.mubr.f32.mxu1 %v318_v53  ;;  %7052 = vst [vmem:[#allocation24_spill] sm:$0xff] %v4643_v63  ;;  %443 = vmatmul.mubr.f32.vlgmr.msra.gmra.mxu0 %v315_v57  ;;  %v4653_v53 = vld [vmem:[%s6870_s1 + $0x3f0] sm:$0xff] }
  0x2f   : > { %543 = vmatmul.mubr.f32.vlgmr.msra.gmra.mxu1 %v317_v51  ;;  %7053 = vst [vmem:[#allocation25_spill] sm:$0xff] %v4653_v53  ;;  %2979 = vmatprep.subr.mxu0 %v4627_v49  ;;  %v4660_v51 = vld [vmem:[%s6870_s1 + $0x270] sm:$0xff] }
  0x30   : > { %3032 = vmatprep.subr.mxu1 %v4632_v59  ;;  %v4665_v57 = vld [vmem:[%s6870_s1 + $0x370] sm:$0xff]  ;;  %2980 = vmatpush3.msra.mxu0 %v4638_v61  ;;  %v4677_v59 = vld [vmem:[%s6870_s1 + $0x3e8] sm:$0xff] }
  0x31   : > { %7054 = vst [vmem:[#allocation26_spill] sm:$0xff] %v4665_v57  ;;  %3033 = vmatpush3.msra.mxu1 %v4643_v63  ;;  %7055 = vst [vmem:[#allocation27_spill] sm:$0xff] %v4677_v59  ;;  %2981 = vmatprep.subr.mxu0 %v4648_v47  ;;  %v4684_v63 = vld [vmem:[%s6870_s1 + $0x268] sm:$0xff] }
  0x32   : > { %3034 = vmatprep.subr.mxu1 %v4653_v53  ;;  %2982 = vmatpush3.msra.mxu0 %v4660_v51  ;;  %v4700_v53 = vld [vmem:[%s6870_s1 + $0x2e0] sm:$0xff] }
  0x33   : > { %3035 = vmatpush3.msra.mxu1 %v4665_v57  ;;  %2983 = vmatprep.subr.mxu0 %v4672_v55  ;;  %v324_v57 = vld [vmem:[%s4577_s7 + $0x48] sm:$0xff] }
  0x34   : > { %3036 = vmatprep.subr.mxu1 %v4677_v59  ;;  %2984 = vmatpush3.msra.mxu0 %v4684_v63  ;;  %v4714_v59 = vld [vmem:[%s6870_s1 + $0x260] sm:$0xff] }
  0x35   : > { %3037 = vmatpush3.msra.mxu1 %v4689_v45  ;;  %447 = vmatprep.mubr.f32.mxu0 %v325_v43  ;;  %v4726_v45 = vld [vmem:[%s6870_s1 + $0x2d8] sm:$0xff] }
  0x36   : > { %547 = vmatprep.mubr.f32.mxu1 %v327_v41  ;;  %2985 = vmatprep.subr.mxu0 %v4700_v53  ;;  %v4731_v41 = vld [vmem:[%s6870_s1 + $0x3d8] sm:$0xff] }
  0x37   : > { %3038 = vmatprep.subr.mxu1 %v4705_v39  ;;  %7059 = vst [vmem:[#allocation31_spill] sm:$0xff] %v4731_v41  ;;  %448 = vmatmul.mubr.f32.gmra.mxu0 %v324_v57  ;;  %v4736_v43 = vld [vmem:[%s6870_s1 + $0x258] sm:$0xff]  ;;  %v4757_v57 = vld [vmem:[%s6870_s1 + $0x3d0] sm:$0xff] }
  0x38   : > { %548 = vmatmul.mubr.f32.gmra.mxu1 %v326_v37  ;;  %v4741_v39 = vld [vmem:[%s6870_s1 + $0x358] sm:$0xff]  ;;  %2986 = vmatpush3.msra.mxu0 %v4714_v59  ;;  %v4752_v37 = vld [vmem:[%s6870_s1 + $0x2d0] sm:$0xff]  ;;  %7061 = vst [vmem:[#allocation33_spill] sm:$0xff] %v4757_v57 }
  0x39   : > { %7060 = vst [vmem:[#allocation32_spill] sm:$0xff] %v4741_v39  ;;  %3039 = vmatpush3.msra.mxu1 %v4719_v35  ;;  %2987 = vmatprep.subr.mxu0 %v4726_v45  ;;  %v333_v35 = vld [vmem:[%s4577_s7 + $0x90] sm:$0xff] }
  0x3a   : > { %3040 = vmatprep.subr.mxu1 %v4731_v41  ;;  %2988 = vmatpush3.msra.mxu0 %v4736_v43  ;;  %v4766_v41 = vld [vmem:[%s6870_s1 + $0x250] sm:$0xff] }
  0x3b   : > { %3041 = vmatpush3.msra.mxu1 %v4741_v39  ;;  %452 = vmatprep.mubr.f32.mxu0 %v334_v33  ;;  %7062 = vst [vmem:[#allocation34_spill] sm:$0xff] %v4766_v41  ;;  %v4778_v39 = vld [vmem:[%s6870_s1 + $0x2c8] sm:$0xff] }
  0x3c   : > { %552 = vmatprep.mubr.f32.mxu1 %v336_v31  ;;  %2989 = vmatprep.subr.mxu0 %v4752_v37  ;;  %7064 = vst [vmem:[#allocation36_spill] sm:$0xff] %v4778_v39  ;;  %v4783_v31 = vld [vmem:[%s6870_s1 + $0x3c8] sm:$0xff] }
  0x3d   : > { %3042 = vmatprep.subr.mxu1 %v4757_v57  ;;  %7065 = vst [vmem:[#allocation37_spill] sm:$0xff] %v4783_v31  ;;  %453 = vmatmul.mubr.f32.gmra.mxu0 %v333_v35  ;;  %v4788_v33 = vld [vmem:[%s6870_s1 + $0x248] sm:$0xff]  ;;  %v4809_v35 = vld [vmem:[%s6870_s1 + $0x3c0] sm:$0xff] }
  0x3e   : > { %553 = vmatmul.mubr.f32.gmra.mxu1 %v335_v29  ;;  %7066 = vst [vmem:[#allocation38_spill] sm:$0xff] %v4788_v33  ;;  %v4793_v57 = vld [vmem:[%s6870_s1 + $0x348] sm:$0xff]  ;;  %2990 = vmatpush3.msra.mxu0 %v4766_v41  ;;  %v4804_v29 = vld [vmem:[%s6870_s1 + $0x2c0] sm:$0xff]  ;;  %7069 = vst [vmem:[#allocation41_spill] sm:$0xff] %v4809_v35 }
  0x3f   : > { %7067 = vst [vmem:[#allocation39_spill] sm:$0xff] %v4793_v57  ;;  %3043 = vmatpush3.msra.mxu1 %v4771_v27  ;;  %2991 = vmatprep.subr.mxu0 %v4778_v39  ;;  %7068 = vst [vmem:[#allocation40_spill] sm:$0xff] %v4804_v29  ;;  %v342_v27 = vld [vmem:[%s4577_s7 + $0xd8] sm:$0xff]  ;;  %v344_v41 = vld [vmem:[%s4577_s7 + $0xe8] sm:$0xff] }
  0x40   : > { %3044 = vmatprep.subr.mxu1 %v4783_v31  ;;  %2992 = vmatpush3.msra.mxu0 %v4788_v33  ;;  %v4818_v31 = vld [vmem:[%s6870_s1 + $0x240] sm:$0xff]  ;;  %v354_v33 = vld [vmem:[%s4577_s7 + $0x138] sm:$0xff] }
  0x41   : > { %3045 = vmatpush3.msra.mxu1 %v4793_v57  ;;  %457 = vmatprep.mubr.f32.mxu0 %v343_v25  ;;  %7070 = vst [vmem:[#allocation42_spill] sm:$0xff] %v4818_v31  ;;  %v4823_v39 = vld [vmem:[%s6870_s1 + $0x340] sm:$0xff]  ;;  %v4830_v57 = vld [vmem:[%s6870_s1 + $0x2b8] sm:$0xff] }
  0x42   : > { %557 = vmatprep.mubr.f32.mxu1 %v345_v23  ;;  %7071 = vst [vmem:[#allocation43_spill] sm:$0xff] %v4823_v39  ;;  %2993 = vmatprep.subr.mxu0 %v4804_v29  ;;  %7072 = vst [vmem:[#allocation44_spill] sm:$0xff] %v4830_v57  ;;  %v4835_v23 = vld [vmem:[%s6870_s1 + $0x3b8] sm:$0xff]  ;;  %v352_v29 = vld [vmem:[%s4577_s7 + $0x128] sm:$0xff] }
  0x43   : > { %3046 = vmatprep.subr.mxu1 %v4809_v35  ;;  %7073 = vst [vmem:[#allocation45_spill] sm:$0xff] %v4835_v23  ;;  %458 = vmatmul.mubr.f32.gmra.mxu0 %v342_v27  ;;  %v4840_v25 = vld [vmem:[%s6870_s1 + $0x238] sm:$0xff]  ;;  %v4856_v27 = vld [vmem:[%s6870_s1 + $0x2b0] sm:$0xff] }
  0x44   : > { %558 = vmatmul.mubr.f32.gmra.mxu1 %v344_v41  ;;  %7074 = vst [vmem:[#allocation46_spill] sm:$0xff] %v4840_v25  ;;  %v4845_v35 = vld [vmem:[%s6870_s1 + $0x338] sm:$0xff]  ;;  %2994 = vmatpush3.msra.mxu0 %v4818_v31  ;;  %7076 = vst [vmem:[#allocation48_spill] sm:$0xff] %v4856_v27  ;;  %v4861_v41 = vld [vmem:[%s6870_s1 + $0x3b0] sm:$0xff] }
  0x45   : > { %7075 = vst [vmem:[#allocation47_spill] sm:$0xff] %v4845_v35  ;;  %3047 = vmatpush3.msra.mxu1 %v4823_v39  ;;  %2995 = vmatprep.subr.mxu0 %v4830_v57  ;;  %7077 = vst [vmem:[#allocation49_spill] sm:$0xff] %v4861_v41  ;;  %v351_v39 = vld [vmem:[%s4577_s7 + $0x120] sm:$0xff]  ;;  %v353_v31 = vld [vmem:[%s4577_s7 + $0x130] sm:$0xff] }
  0x46   : > { %3048 = vmatprep.subr.mxu1 %v4835_v23  ;;  %2996 = vmatpush3.msra.mxu0 %v4840_v25  ;;  %v4870_v23 = vld [vmem:[%s6870_s1 + $0x230] sm:$0xff]  ;;  %v363_v25 = vld [vmem:[%s4577_s7 + $0x180] sm:$0xff] }
  0x47   : > { %3049 = vmatpush3.msra.mxu1 %v4845_v35  ;;  %462 = vmatprep.mubr.f32.mxu0 %v352_v29  ;;  %7078 = vst [vmem:[#allocation50_spill] sm:$0xff] %v4870_v23  ;;  %v4875_v57 = vld [vmem:[%s6870_s1 + $0x330] sm:$0xff]  ;;  %v4882_v35 = vld [vmem:[%s6870_s1 + $0x2a8] sm:$0xff] }
  0x48   : > { %562 = vmatprep.mubr.f32.mxu1 %v354_v33  ;;  %7079 = vst [vmem:[#allocation51_spill] sm:$0xff] %v4875_v57  ;;  %2997 = vmatprep.subr.mxu0 %v4856_v27  ;;  %7080 = vst [vmem:[#allocation52_spill] sm:$0xff] %v4882_v35  ;;  %v4887_v33 = vld [vmem:[%s6870_s1 + $0x3a8] sm:$0xff]  ;;  %v361_v27 = vld [vmem:[%s4577_s7 + $0x170] sm:$0xff] }
  0x49   : > { %3050 = vmatprep.subr.mxu1 %v4861_v41  ;;  %7081 = vst [vmem:[#allocation53_spill] sm:$0xff] %v4887_v33  ;;  %463 = vmatmul.mubr.f32.gmra.mxu0 %v351_v39  ;;  %v4892_v29 = vld [vmem:[%s6870_s1 + $0x228] sm:$0xff]  ;;  %v4908_v39 = vld [vmem:[%s6870_s1 + $0x2a0] sm:$0xff] }
  0x4a   : > { %563 = vmatmul.mubr.f32.gmra.mxu1 %v353_v31  ;;  %7082 = vst [vmem:[#allocation54_spill] sm:$0xff] %v4892_v29  ;;  %v4897_v41 = vld [vmem:[%s6870_s1 + $0x328] sm:$0xff]  ;;  %2998 = vmatpush3.msra.mxu0 %v4870_v23  ;;  %7084 = vst [vmem:[#allocation56_spill] sm:$0xff] %v4908_v39  ;;  %v4913_v31 = vld [vmem:[%s6870_s1 + $0x3a0] sm:$0xff] }
  0x4b   : > { %7083 = vst [vmem:[#allocation55_spill] sm:$0xff] %v4897_v41  ;;  %3051 = vmatpush3.msra.mxu1 %v4875_v57  ;;  %2999 = vmatprep.subr.mxu0 %v4882_v35  ;;  %7085 = vst [vmem:[#allocation57_spill] sm:$0xff] %v4913_v31  ;;  %v360_v57 = vld [vmem:[%s4577_s7 + $0x168] sm:$0xff]  ;;  %v362_v23 = vld [vmem:[%s4577_s7 + $0x178] sm:$0xff] }
  0x4c   : > { %3052 = vmatprep.subr.mxu1 %v4887_v33  ;;  %3000 = vmatpush3.msra.mxu0 %v4892_v29  ;;  %v4922_v33 = vld [vmem:[%s6870_s1 + $0x220] sm:$0xff]  ;;  %v372_v29 = vld [vmem:[%s4577_s7 + $0x1c8] sm:$0x1] }
  0x4d   : > { %3053 = vmatpush3.msra.mxu1 %v4897_v41  ;;  %467 = vmatprep.mubr.f32.mxu0 %v361_v27  ;;  %7086 = vst [vmem:[#allocation58_spill] sm:$0xff] %v4922_v33  ;;  %v4927_v35 = vld [vmem:[%s6870_s1 + $0x320] sm:$0xff]  ;;  %v4934_v41 = vld [vmem:[%s6870_s1 + $0x298] sm:$0xff] }
  0x4e   : > { %567 = vmatprep.mubr.f32.mxu1 %v363_v25  ;;  %7087 = vst [vmem:[#allocation59_spill] sm:$0xff] %v4927_v35  ;;  %3001 = vmatprep.subr.mxu0 %v4908_v39  ;;  %7088 = vst [vmem:[#allocation60_spill] sm:$0xff] %v4934_v41  ;;  %v4939_v25 = vld [vmem:[%s6870_s1 + $0x398] sm:$0xff] }
  0x4f   : > { %3054 = vmatprep.subr.mxu1 %v4913_v31  ;;  %7089 = vst [vmem:[#allocation61_spill] sm:$0xff] %v4939_v25  ;;  %468 = vmatmul.mubr.f32.gmra.mxu0 %v360_v57  ;;  %v4944_v27 = vld [vmem:[%s6870_s1 + $0x218] sm:$0xff]  ;;  %v4960_v57 = vld [vmem:[%s6870_s1 + $0x290] sm:$0xff] }
  0x50   : > { %568 = vmatmul.mubr.f32.gmra.mxu1 %v362_v23  ;;  %7090 = vst [vmem:[#allocation62_spill] sm:$0xff] %v4944_v27  ;;  %v4949_v31 = vld [vmem:[%s6870_s1 + $0x318] sm:$0xff]  ;;  %3002 = vmatpush3.msra.mxu0 %v4922_v33  ;;  %7092 = vst [vmem:[#allocation64_spill] sm:$0xff] %v4960_v57  ;;  %v4965_v23 = vld [vmem:[%s6870_s1 + $0x390] sm:$0xff] }
  0x51   : > { %7091 = vst [vmem:[#allocation63_spill] sm:$0xff] %v4949_v31  ;;  %3055 = vmatpush3.msra.mxu1 %v4927_v35  ;;  %v370_v39 = vld [vmem:[%s4577_s7 + $0x1b8] sm:$0x1]  ;;  %3003 = vmatprep.subr.mxu0 %v4934_v41  ;;  %7093 = vst [vmem:[#allocation65_spill] sm:$0xff] %v4965_v23  ;;  %v369_v35 = vld [vmem:[%s4577_s7 + $0x1b0] sm:$0x1] }
  0x52   : > { %3056 = vmatprep.subr.mxu1 %v4939_v25  ;;  %3004 = vmatpush3.msra.mxu0 %v4944_v27  ;;  %v371_v33 = vld [vmem:[%s4577_s7 + $0x1c0] sm:$0x1]  ;;  %v4974_v25 = vld [vmem:[%s6870_s1 + $0x210] sm:$0xff] }
  0x53   : > { %3057 = vmatpush3.msra.mxu1 %v4949_v31  ;;  %472 = vmatprep.mubr.f32.mxu0 %v370_v39  ;;  %7094 = vst [vmem:[#allocation66_spill] sm:$0xff] %v4974_v25  ;;  %v4979_v41 = vld [vmem:[%s6870_s1 + $0x310] sm:$0xff]  ;;  %v4986_v39 = vld [vmem:[%s6870_s1 + $0x288] sm:$0xff]  ;;  %v319_v27 = vld [vmem:[%s4577_s7 + $0x20] sm:$0xff] }
  0x54   : > { %572 = vmatprep.mubr.f32.mxu1 %v372_v29  ;;  %7095 = vst [vmem:[#allocation67_spill] sm:$0xff] %v4979_v41  ;;  %3005 = vmatprep.subr.mxu0 %v4960_v57  ;;  %7096 = vst [vmem:[#allocation68_spill] sm:$0xff] %v4986_v39  ;;  %v4991_v29 = vld [vmem:[%s6870_s1 + $0x388] sm:$0xff]  ;;  %v5028_v57 = vld [vmem:[%s6870_s1 + $0x300] sm:$0xff] }
  0x55   : > { %3058 = vmatprep.subr.mxu1 %v4965_v23  ;;  %7097 = vst [vmem:[#allocation69_spill] sm:$0xff] %v4991_v29  ;;  %473 = vmatmul.mubr.f32.gmra.mxu0 %v369_v35  ;;  %v4996_v31 = vld [vmem:[%s6870_s1 + $0x208] sm:$0xff]  ;;  %v5008_v35 = vld [vmem:[%s6870_s1 + $0x280] sm:$0xff] }
  0x56   : > { %573 = vmatmul.mubr.f32.gmra.mxu1 %v371_v33  ;;  %7098 = vst [vmem:[#allocation70_spill] sm:$0xff] %v4996_v31  ;;  %v5001_v23 = vld [vmem:[%s6870_s1 + $0x308] sm:$0xff]  ;;  %3006 = vmatpush3.msra.mxu0 %v4974_v25  ;;  %v5013_v33 = vld [vmem:[%s6870_s1 + $0x380] sm:$0xff] }
  0x57   : > { %7099 = vst [vmem:[#allocation71_spill] sm:$0xff] %v5001_v23  ;;  %3059 = vmatpush3.msra.mxu1 %v4979_v41  ;;  %7100 = vst [vmem:[#allocation72_spill] sm:$0xff] %v5013_v33  ;;  %3007 = vmatprep.subr.mxu0 %v4986_v39  ;;  %v5020_v25 = vld [vmem:[%s6870_s1 + $0x200] sm:$0xff]  ;;  %v320_v41 = vld [vmem:[%s4577_s7 + $0x28] sm:$0xff] }
  0x58   : > { %3060 = vmatprep.subr.mxu1 %v4991_v29  ;;  %3008 = vmatpush3.msra.mxu0 %v4996_v31  ;;  %v322_v29 = vld [vmem:[%s4577_s7 + $0x38] sm:$0xff]  ;;  %v321_v39 = vld [vmem:[%s4577_s7 + $0x30] sm:$0xff]  ;;  %v6944_v31 = vmov 0.0  }
  0x59   : > { %3061 = vmatpush3.msra.mxu1 %v5001_v23  ;;  %3009 = vmatprep.subr.mxu0 %v5008_v35  ;;  %v5040_v23 = vld [vmem:[%s6870_s1 + $0x478] sm:$0xff] }
  0x5a   : > { %3062 = vmatprep.subr.mxu1 %v5013_v33  ;;  %3010 = vmatpush3.msra.mxu0 %v5020_v25  ;;  %v329_v33 = vld [vmem:[%s4577_s7 + $0x70] sm:$0xff] }
  0x5b   : > { %642 = vmatprep.mubr.f32.mxu0 %v320_v41  ;;  %3063 = vmatpush3.msra.mxu1 %v5028_v57  ;;  %v5048_v41 = vld [vmem:[%s6870_s1 + $0x470] sm:$0xff] }
  0x5c   : > { %643 = vmatmul.mubr.f32.vlgmr.msra.gmra.mxu0 %v319_v27  ;;  %742 = vmatprep.mubr.f32.mxu1 %v322_v29  ;;  %v328_v27 = vld [vmem:[%s4577_s7 + $0x68] sm:$0xff]  ;;  %v5071_v29 = vld [vmem:[%s6870_s1 + $0x460] sm:$0xff] }
  0x5d   : > { %3813 = vmatprep.subr.mxu0 %v6944_v31  ;;  %3108 = vmatprep.subr.mxu1 %v4222_v0  ;;  %v331_v0 = vld [vmem:[%s4577_s7 + $0x80] sm:$0xff] }
  0x5e   : > { %743 = vmatmul.mubr.f32.vlgmr.msra.gmra.mxu1 %v321_v39  ;;  %3814 = vmatpush3.msra.mxu0 %v5040_v23  ;;  %v5060_v39 = vld [vmem:[%s6870_s1 + $0x468] sm:$0xff] }
  0x5f   : > { %3109 = vmatpush3.msra.mxu1 %v4232_v2  ;;  %3815 = vmatprep.subr.mxu0 %v6944_v31  ;;  %v330_v2 = vld [vmem:[%s4577_s7 + $0x78] sm:$0xff] }
  0x60   : > { %3110 = vmatprep.subr.mxu1 %v4244_v4  ;;  %647 = vmatprep.mubr.f32.mxu0 %v329_v33  ;;  %v338_v4 = vld [vmem:[%s4577_s7 + $0xb8] sm:$0xff] }
  0x61   : > { %3816 = vmatpush3.msra.mxu0 %v5048_v41  ;;  %3111 = vmatpush3.msra.mxu1 %v4256_v6  ;;  %v337_v6 = vld [vmem:[%s4577_s7 + $0xb0] sm:$0xff]  ;;  %v5082_v33 = vld [vmem:[%s6870_s1 + $0x458] sm:$0xff] }
  0x62   : > { %648 = vmatmul.mubr.f32.gmra.mxu0 %v328_v27  ;;  %3817 = vmatprep.subr.mxu0 %v6944_v31  ;;  %v5093_v27 = vld [vmem:[%s6870_s1 + $0x450] sm:$0xff] }
  0x63   : > { %3112 = vmatprep.subr.mxu1 %v4266_v8  ;;  %747 = vmatprep.mubr.f32.mxu1 %v331_v0  ;;  %v340_v8 = vld [vmem:[%s4577_s7 + $0xc8] sm:$0xff] }
  0x64   : > { %3818 = vmatpush3.msra.mxu0 %v5060_v39  ;;  %3113 = vmatpush3.msra.mxu1 %v4278_v10  ;;  %v339_v10 = vld [vmem:[%s4577_s7 + $0xc0] sm:$0xff]  ;;  %v5104_v0 = vld [vmem:[%s6870_s1 + $0x448] sm:$0xff] }
  0x65   : > { %3819 = vmatprep.subr.mxu0 %v6944_v31  ;;  %748 = vmatmul.mubr.f32.gmra.mxu1 %v330_v2  ;;  %v5115_v2 = vld [vmem:[%s6870_s1 + $0x440] sm:$0xff] }
  0x66   : > { %3114 = vmatprep.subr.mxu1 %v4290_v12  ;;  %652 = vmatprep.mubr.f32.mxu0 %v338_v4  ;;  %v347_v12 = vld [vmem:[%s4577_s7 + $0x100] sm:$0xff]  ;;  %v5126_v4 = vld [vmem:[%s6870_s1 + $0x438] sm:$0xff] }
  0x67   : > { %3820 = vmatpush3.msra.mxu0 %v5071_v29  ;;  %3115 = vmatpush3.msra.mxu1 %v4302_v14  ;;  %v346_v14 = vld [vmem:[%s4577_s7 + $0xf8] sm:$0xff] }
  0x68   : > { %653 = vmatmul.mubr.f32.gmra.mxu0 %v337_v6  ;;  %3821 = vmatprep.subr.mxu0 %v6944_v31  ;;  %v5137_v6 = vld [vmem:[%s6870_s1 + $0x430] sm:$0xff] }
  0x69   : > { %3116 = vmatprep.subr.mxu1 %v4314_v16  ;;  %752 = vmatprep.mubr.f32.mxu1 %v340_v8  ;;  %v349_v16 = vld [vmem:[%s4577_s7 + $0x110] sm:$0xff]  ;;  %v5148_v8 = vld [vmem:[%s6870_s1 + $0x428] sm:$0xff] }
  0x6a   : > { %3822 = vmatpush3.msra.mxu0 %v5082_v33  ;;  %3117 = vmatpush3.msra.mxu1 %v4326_v18  ;;  %v348_v18 = vld [vmem:[%s4577_s7 + $0x108] sm:$0xff] }
  0x6b   : > { %3823 = vmatprep.subr.mxu0 %v6944_v31  ;;  %753 = vmatmul.mubr.f32.gmra.mxu1 %v339_v10  ;;  %v5159_v10 = vld [vmem:[%s6870_s1 + $0x420] sm:$0xff] }
  0x6c   : > { %3118 = vmatprep.subr.mxu1 %v4338_v20  ;;  %657 = vmatprep.mubr.f32.mxu0 %v347_v12  ;;  %v356_v20 = vld [vmem:[%s4577_s7 + $0x148] sm:$0xff]  ;;  %v5170_v12 = vld [vmem:[%s6870_s1 + $0x418] sm:$0xff] }
  0x6d   : > { %3824 = vmatpush3.msra.mxu0 %v5093_v27  ;;  %3119 = vmatpush3.msra.mxu1 %v4350_v22  ;;  %v355_v22 = vld [vmem:[%s4577_s7 + $0x140] sm:$0xff] }
  0x6e   : > { %658 = vmatmul.mubr.f32.gmra.mxu0 %v346_v14  ;;  %3825 = vmatprep.subr.mxu0 %v6944_v31  ;;  %v7116_v14 = vld [vmem:[#allocation48_spill] sm:$0xff] }
  0x6f   : > { %3120 = vmatprep.subr.mxu1 %v4362_v24  ;;  %757 = vmatprep.mubr.f32.mxu1 %v349_v16  ;;  %v358_v24 = vld [vmem:[%s4577_s7 + $0x158] sm:$0xff]  ;;  %v2718_v16 = vld [vmem:[%s4577_s7 + $0x320] sm:$0xff] }
  0x70   : > { %3826 = vmatpush3.msra.mxu0 %v5104_v0  ;;  %3121 = vmatpush3.msra.mxu1 %v4374_v26  ;;  %v357_v26 = vld [vmem:[%s4577_s7 + $0x150] sm:$0xff] }
  0x71   : > { %3827 = vmatprep.subr.mxu0 %v6944_v31  ;;  %758 = vmatmul.mubr.f32.gmra.mxu1 %v348_v18  ;;  %v7117_v18 = vld [vmem:[#allocation10_spill] sm:$0xff] }
  0x72   : > { %3122 = vmatprep.subr.mxu1 %v4386_v28  ;;  %662 = vmatprep.mubr.f32.mxu0 %v356_v20  ;;  %v365_v28 = vld [vmem:[%s4577_s7 + $0x190] sm:$0xff]  ;;  %v2717_v20 = vld [vmem:[%s4577_s7 + $0x318] sm:$0xff] }
  0x73   : > { %3828 = vmatpush3.msra.mxu0 %v5115_v2  ;;  %3123 = vmatpush3.msra.mxu1 %v4398_v30  ;;  %v364_v30 = vld [vmem:[%s4577_s7 + $0x188] sm:$0xff] }
  0x74   : > { %663 = vmatmul.mubr.f32.gmra.mxu0 %v355_v22  ;;  %3829 = vmatprep.subr.mxu0 %v6944_v31  ;;  %v7118_v22 = vld [vmem:[#allocation50_spill] sm:$0xff] }
  0x75   : > { %3124 = vmatprep.subr.mxu1 %v4410_v32  ;;  %762 = vmatprep.mubr.f32.mxu1 %v358_v24  ;;  %v367_v32 = vld [vmem:[%s4577_s7 + $0x1a0] sm:$0xff]  ;;  %v7119_v24 = vld [vmem:[#allocation11_spill] sm:$0xff] }
  0x76   : > { %3830 = vmatpush3.msra.mxu0 %v5126_v4  ;;  %3125 = vmatpush3.msra.mxu1 %v4428_v34  ;;  %v366_v34 = vld [vmem:[%s4577_s7 + $0x198] sm:$0xff] }
  0x77   : > { %3831 = vmatprep.subr.mxu0 %v6944_v31  ;;  %763 = vmatmul.mubr.f32.gmra.mxu1 %v357_v26  ;;  %v7120_v26 = vld [vmem:[#allocation52_spill] sm:$0xff] }
  0x78   : > { %3126 = vmatprep.subr.mxu1 %v4440_v36  ;;  %667 = vmatprep.mubr.f32.mxu0 %v365_v28  ;;  %v374_v36 = vld [vmem:[%s4577_s7 + $0x1d8] sm:$0x1]  ;;  %v7121_v28 = vld [vmem:[#allocation12_spill] sm:$0xff] }
  0x79   : > { %3832 = vmatpush3.msra.mxu0 %v5137_v6  ;;  %3127 = vmatpush3.msra.mxu1 %v4452_v38  ;;  %v373_v38 = vld [vmem:[%s4577_s7 + $0x1d0] sm:$0x1] }
  0x7a   : > { %668 = vmatmul.mubr.f32.gmra.mxu0 %v364_v30  ;;  %3833 = vmatprep.subr.mxu0 %v6944_v31  ;;  %v7122_v30 = vld [vmem:[#allocation54_spill] sm:$0xff] }
  0x7b   : > { %3128 = vmatprep.subr.mxu1 %v4464_v40  ;;  %767 = vmatprep.mubr.f32.mxu1 %v367_v32  ;;  %v376_v40 = vld [vmem:[%s4577_s7 + $0x1e8] sm:$0x1]  ;;  %v377_v32 = vld [vmem:[%s4577_s7 + $0x1f0] sm:$0x1] }
  0x7c   : > { %3834 = vmatpush3.msra.mxu0 %v5148_v8  ;;  %3129 = vmatpush3.msra.mxu1 %v4482_v42  ;;  %v375_v42 = vld [vmem:[%s4577_s7 + $0x1e0] sm:$0x1] }
  0x7d   : > { %3835 = vmatprep.subr.mxu0 %v6944_v31  ;;  %768 = vmatmul.mubr.f32.gmra.mxu1 %v366_v34  ;;  %v7123_v34 = vld [vmem:[#allocation13_spill] sm:$0xff] }
  0x7e   : > { %3130 = vmatprep.subr.mxu1 %v4494_v44  ;;  %672 = vmatprep.mubr.f32.mxu0 %v374_v36  ;;  %v5180_v44 = vld [vmem:[%s6870_s1 + $0x410] sm:$0xff] }
  0x7f   : > { %3836 = vmatpush3.msra.mxu0 %v5159_v10  ;;  %3131 = vmatpush3.msra.mxu1 %v4506_v46  ;;  %v5188_v46 = vld [vmem:[%s6870_s1 + $0x408] sm:$0xff]  ;;  %v7124_v36 = vld [vmem:[#allocation56_spill] sm:$0xff] }
  0x80   : > { %673 = vmatmul.mubr.f32.gmra.mxu0 %v373_v38  ;;  %3837 = vmatprep.subr.mxu0 %v6944_v31  ;;  %v2727_v38 = vld [vmem:[%s4577_s7 + $0x368] sm:$0xff] }
  0x81   : > { %3132 = vmatprep.subr.mxu1 %v4518_v48  ;;  %772 = vmatprep.mubr.f32.mxu1 %v376_v40  ;;  %v5197_v48 = vld [vmem:[%s6870_s1 + $0x400] sm:$0xff] }
  0x82   : > { %3838 = vmatpush3.msra.mxu0 %v5170_v12  ;;  %3133 = vmatpush3.msra.mxu1 %v4531_v50  ;;  %v323_v50 = vld [vmem:[%s4577_s7 + $0x40] sm:$0xff] }
  0x83   : > { %3839 = vmatprep.subr.mxu0 %v6944_v31  ;;  %773 = vmatmul.mubr.f32.gmra.mxu1 %v375_v42  ;;  %v7125_v40 = vld [vmem:[#allocation14_spill] sm:$0xff] }
  0x84   : > { %3134 = vmatprep.subr.mxu1 %v4543_v52  ;;  %3840 = vmatpush3.msra.mxu0 %v5180_v44  ;;  %v2682_v52 = vld [vmem:[%s4577_s7 + $0x200] sm:$0xff] }
  0x85   : > { %3135 = vmatpush3.msra.mxu1 %v4555_v54  ;;  %3841 = vmatprep.subr.mxu0 %v6944_v31  ;;  %v2681_v54 = vld [vmem:[%s4577_s7 + $0x1f8] sm:$0xff]  ;;  %v2726_v42 = vld [vmem:[%s4577_s7 + $0x360] sm:$0xff] }
  0x86   : > { %3136 = vmatprep.subr.mxu1 %v4567_v56  ;;  %3842 = vmatpush3.msra.mxu0 %v5188_v46  ;;  %v332_v56 = vld [vmem:[%s4577_s7 + $0x88] sm:$0xff] }
  0x87   : > { %3137 = vmatpush3.msra.mxu1 %v4584_v58  ;;  %3843 = vmatprep.subr.mxu0 %v6944_v31  ;;  %v2709_v58 = vld [vmem:[%s4577_s7 + $0x2d8] sm:$0xff] }
  0x88   : > { %3138 = vmatprep.subr.mxu1 %v4596_v60  ;;  %3844 = vmatpush3.msra.mxu0 %v5197_v48  ;;  %v2708_v60 = vld [vmem:[%s4577_s7 + $0x2d0] sm:$0xff] }
  0x89   : > { %3845 = vmatprep.mubr.msk.f32.mxu0 %vm4190_vm0, %v6944_v31  ;;  %3139 = vmatpush3.msra.mxu1 %v4608_v62  ;;  %v7111_v62 = vld [vmem:[#allocation7_spill] sm:$0xff] }
  0x8a   : > { %3846 = vmatmul.mubr.f32.vlgmr.msra.gmra.mxu0 %v323_v50  ;;  %1006 = vmatprep.mubr.f32.mxu1 %v2682_v52  ;;  %v7126_v50 = vld [vmem:[#allocation58_spill] sm:$0xff]  ;;  %v7127_v52 = vld [vmem:[#allocation15_spill] sm:$0xff] }
  0x8b   : > { %3161 = vmatprep.subr.mxu0 %v4227_v1  ;;  %3214 = vmatprep.subr.mxu1 %v4627_v49  ;;  %v341_v1 = vld [vmem:[%s4577_s7 + $0xd0] sm:$0xff]  ;;  %v7107_v49 = vld [vmem:[#allocation5_spill] sm:$0xff] }
  0x8c   : > { %1007 = vmatmul.mubr.f32.vlgmr.msra.gmra.mxu1 %v2681_v54  ;;  %3162 = vmatpush3.msra.mxu0 %v4239_v3  ;;  %v2691_v3 = vld [vmem:[%s4577_s7 + $0x248] sm:$0xff]  ;;  %v7128_v54 = vld [vmem:[#allocation60_spill] sm:$0xff] }
  0x8d   : > { %3215 = vmatpush3.msra.mxu1 %v4638_v61  ;;  %3163 = vmatprep.subr.mxu0 %v4249_v5  ;;  %v2690_v5 = vld [vmem:[%s4577_s7 + $0x240] sm:$0xff] }
  0x8e   : > { %3216 = vmatprep.subr.mxu1 %v4648_v47  ;;  %3848 = vmatprep.mubr.msk.f32.mxu0 %vm4190_vm0, %v6944_v31  ;;  %v359_v47 = vld [vmem:[%s4577_s7 + $0x160] sm:$0xff] }
  0x8f   : > { %3164 = vmatpush3.msra.mxu0 %v4261_v7  ;;  %3217 = vmatpush3.msra.mxu1 %v4660_v51  ;;  %v350_v7 = vld [vmem:[%s4577_s7 + $0x118] sm:$0xff]  ;;  %v7110_v61 = vld [vmem:[#allocation42_spill] sm:$0xff] }
  0x90   : > { %3849 = vmatmul.mubr.f32.gmra.mxu0 %v332_v56  ;;  %3165 = vmatprep.subr.mxu0 %v4273_v9  ;;  %v2700_v9 = vld [vmem:[%s4577_s7 + $0x290] sm:$0xff]  ;;  %v7114_v51 = vld [vmem:[#allocation46_spill] sm:$0xff] }
  0x91   : > { %3218 = vmatprep.subr.mxu1 %v4672_v55  ;;  %3166 = vmatpush3.msra.mxu0 %v4283_v11  ;;  %v7101_v11 = vld [vmem:[#allocation2_spill] sm:$0xff]  ;;  %v7108_v55 = vld [vmem:[#allocation40_spill] sm:$0xff] }
  0x92   : > { %3219 = vmatpush3.msra.mxu1 %v4684_v63  ;;  %3167 = vmatprep.subr.mxu0 %v4295_v13  ;;  %v2699_v13 = vld [vmem:[%s4577_s7 + $0x288] sm:$0xff]  ;;  %v7112_v63 = vld [vmem:[#allocation44_spill] sm:$0xff] }
  0x93   : > { %3220 = vmatprep.subr.mxu1 %v4700_v53  ;;  %3851 = vmatprep.mubr.msk.f32.mxu0 %vm4190_vm0, %v6944_v31  ;;  %v7113_v53 = vld [vmem:[#allocation8_spill] sm:$0xff] }
  0x94   : > { %3168 = vmatpush3.msra.mxu0 %v4307_v15  ;;  %3221 = vmatpush3.msra.mxu1 %v4714_v59  ;;  %v7102_v15 = vld [vmem:[#allocation34_spill] sm:$0xff]  ;;  %v7129_v56 = vld [vmem:[#allocation16_spill] sm:$0xff] }
  0x95   : > { %3852 = vmatmul.mubr.f32.gmra.mxu0 %v341_v1  ;;  %1011 = vmatprep.mubr.f32.mxu1 %v2691_v3  ;;  %v7109_v59 = vld [vmem:[#allocation6_spill] sm:$0xff]  ;;  %v2736_v3 = vld [vmem:[%s4577_s7 + $0x3b0] sm:$0x1] }
  0x96   : > { %3169 = vmatprep.subr.mxu0 %v4319_v17  ;;  %3222 = vmatprep.subr.mxu1 %v4726_v45  ;;  %v7103_v17 = vld [vmem:[#allocation3_spill] sm:$0xff]  ;;  %v7106_v45 = vld [vmem:[#allocation38_spill] sm:$0xff] }
  0x97   : > { %1012 = vmatmul.mubr.f32.gmra.mxu1 %v2690_v5  ;;  %3170 = vmatpush3.msra.mxu0 %v4331_v19  ;;  %v7104_v19 = vld [vmem:[#allocation36_spill] sm:$0xff]  ;;  %v7130_v1 = vld [vmem:[#allocation62_spill] sm:$0xff]  ;;  %v7131_v5 = vld [vmem:[#allocation17_spill] sm:$0xff] }
  0x98   : > { %3223 = vmatpush3.msra.mxu1 %v4736_v43  ;;  %3171 = vmatprep.subr.mxu0 %v4343_v21  ;;  %v7105_v21 = vld [vmem:[#allocation4_spill] sm:$0xff]  ;;  %v368_v43 = vld [vmem:[%s4577_s7 + $0x1a8] sm:$0xff] }
  0x99   : > { %3224 = vmatprep.subr.mxu1 %v4752_v37  ;;  %3854 = vmatprep.mubr.msk.f32.mxu0 %vm4190_vm0, %v6944_v31  ;;  %v7115_v37 = vld [vmem:[#allocation9_spill] sm:$0xff] }
  0x9a   : > { %3172 = vmatpush3.msra.mxu0 %v7101_v11  ;;  %3225 = vmatpush3.msra.mxu1 %v7102_v15  ;;  %v7133_v11 = vld [vmem:[#allocation18_spill] sm:$0xff]  ;;  %v7135_v15 = vld [vmem:[#allocation19_spill] sm:$0xff] }
  0x9b   : > { %3855 = vmatmul.mubr.f32.gmra.mxu0 %v350_v7  ;;  %1016 = vmatprep.mubr.f32.mxu1 %v2700_v9  ;;  %v7132_v7 = vld [vmem:[#allocation64_spill] sm:$0xff]  ;;  %v2735_v9 = vld [vmem:[%s4577_s7 + $0x3a8] sm:$0x1] }
  0x9c   : > { %3173 = vmatprep.subr.mxu0 %v7103_v17  ;;  %3226 = vmatprep.subr.mxu1 %v7104_v19  ;;  %v7136_v17 = vld [vmem:[#allocation68_spill] sm:$0xff] }
  0x9d   : > { %1017 = vmatmul.mubr.f32.gmra.mxu1 %v2699_v13  ;;  %3174 = vmatpush3.msra.mxu0 %v7105_v21  ;;  %v7134_v13 = vld [vmem:[#allocation66_spill] sm:$0xff]  ;;  %v2684_v19 = vld [vmem:[%s4577_s7 + $0x210] sm:$0xff] }
  0x9e   : > { %3227 = vmatpush3.msra.mxu1 %v7106_v45  ;;  %3175 = vmatprep.subr.mxu0 %v7107_v49  ;;  %v7137_v21 = vld [vmem:[#allocation20_spill] sm:$0xff]  ;;  %v7138_v45 = vld [vmem:[#allocation70_spill] sm:$0xff]  ;;  %v7139_v49 = vld [vmem:[#allocation21_spill] sm:$0xff] }
  0x9f   : > { %3228 = vmatprep.subr.mxu1 %v7108_v55  ;;  %3857 = vmatprep.mubr.msk.f32.mxu0 %vm4190_vm0, %v6944_v31  ;;  %v2686_v55 = vld [vmem:[%s4577_s7 + $0x220] sm:$0xff] }
  0xa0   : > { %3176 = vmatpush3.msra.mxu0 %v7109_v59  ;;  %3229 = vmatpush3.msra.mxu1 %v7110_v61  ;;  %v2685_v59 = vld [vmem:[%s4577_s7 + $0x218] sm:$0xff] }
  0xa1   : > { %3858 = vmatmul.mubr.f32.gmra.mxu0 %v359_v47  ;;  %1021 = vmatprep.mubr.f32.mxu1 %v2709_v58  ;;  %v2683_v47 = vld [vmem:[%s4577_s7 + $0x208] sm:$0xff]  ;;  %v7140_v58 = vld [vmem:[#allocation22_spill] sm:$0xff]  ;;  %v2693_v61 = vld [vmem:[%s4577_s7 + $0x258] sm:$0xff] }
  0xa2   : > { %3177 = vmatprep.subr.mxu0 %v7111_v62  ;;  %3230 = vmatprep.subr.mxu1 %v7112_v63  ;;  %v7142_v62 = vld [vmem:[#allocation24_spill] sm:$0xff]  ;;  %v7143_v63 = vld [vmem:[#allocation25_spill] sm:$0xff] }
  0xa3   : > { %1022 = vmatmul.mubr.f32.gmra.mxu1 %v2708_v60  ;;  %3178 = vmatpush3.msra.mxu0 %v7113_v53  ;;  %v7141_v60 = vld [vmem:[#allocation23_spill] sm:$0xff] }
  0xa4   : > { %3231 = vmatpush3.msra.mxu1 %v7114_v51  ;;  %3179 = vmatprep.subr.mxu0 %v7115_v37  ;;  %v2695_v53 = vld [vmem:[%s4577_s7 + $0x268] sm:$0xff]  ;;  %v2702_v37 = vld [vmem:[%s4577_s7 + $0x2a0] sm:$0xff] }
  0xa5   : > { %3232 = vmatprep.subr.mxu1 %v7116_v14  ;;  %3860 = vmatprep.mubr.msk.f32.mxu0 %vm4190_vm0, %v6944_v31  ;;  %v7145_v51 = vld [vmem:[#allocation27_spill] sm:$0xff]  ;;  %v7147_v14 = vld [vmem:[#allocation29_spill] sm:$0xff] }
  0xa6   : > { %3180 = vmatpush3.msra.mxu0 %v7117_v18  ;;  %3233 = vmatpush3.msra.mxu1 %v7118_v22  ;;  %v2704_v18 = vld [vmem:[%s4577_s7 + $0x2b0] sm:$0xff] }
  0xa7   : > { %3861 = vmatmul.mubr.f32.gmra.mxu0 %v368_v43  ;;  %1026 = vmatprep.mubr.f32.mxu1 %v2718_v16  ;;  %v2694_v43 = vld [vmem:[%s4577_s7 + $0x260] sm:$0xff]  ;;  %v2701_v16 = vld [vmem:[%s4577_s7 + $0x298] sm:$0xff]  ;;  %v7150_v22 = vld [vmem:[#allocation32_spill] sm:$0xff] }
  0xa8   : > { %3181 = vmatprep.subr.mxu0 %v7119_v24  ;;  %3234 = vmatprep.subr.mxu1 %v7120_v26  ;;  %v2711_v24 = vld [vmem:[%s4577_s7 + $0x2e8] sm:$0xff]  ;;  %v7151_v26 = vld [vmem:[#allocation33_spill] sm:$0xff] }
  0xa9   : > { %1027 = vmatmul.mubr.f32.gmra.mxu1 %v2717_v20  ;;  %3182 = vmatpush3.msra.mxu0 %v7121_v28  ;;  %v7149_v20 = vld [vmem:[#allocation31_spill] sm:$0xff]  ;;  %v2710_v28 = vld [vmem:[%s4577_s7 + $0x2e0] sm:$0xff] }
  0xaa   : > { %3235 = vmatpush3.msra.mxu1 %v7122_v30  ;;  %3183 = vmatprep.subr.mxu0 %v7123_v34  ;;  %v2713_v30 = vld [vmem:[%s4577_s7 + $0x2f8] sm:$0xff]  ;;  %v7154_v34 = vld [vmem:[#allocation39_spill] sm:$0xff] }
  0xab   : > { %3236 = vmatprep.subr.mxu1 %v7124_v36  ;;  %3863 = vmatprep.mubr.msk.f32.mxu0 %vm4190_vm0, %v6944_v31  ;;  %v2720_v36 = vld [vmem:[%s4577_s7 + $0x330] sm:$0xff] }
  0xac   : > { %3184 = vmatpush3.msra.mxu0 %v7125_v40  ;;  %3237 = vmatpush3.msra.mxu1 %v7126_v50  ;;  %v2719_v40 = vld [vmem:[%s4577_s7 + $0x328] sm:$0xff]  ;;  %v7157_v50 = vld [vmem:[#allocation45_spill] sm:$0xff] }
  0xad   : > { %3864 = vmatmul.mubr.f32.gmra.mxu0 %v377_v32  ;;  %1031 = vmatprep.mubr.f32.mxu1 %v2727_v38  ;;  %v7153_v32 = vld [vmem:[#allocation37_spill] sm:$0xff] }
  0xae   : > { %3185 = vmatprep.subr.mxu0 %v7127_v52  ;;  %3238 = vmatprep.subr.mxu1 %v7128_v54  ;;  %v7155_v38 = vld [vmem:[#allocation41_spill] sm:$0xff]  ;;  %v7158_v52 = vld [vmem:[#allocation47_spill] sm:$0xff] }
  0xaf   : > { %1032 = vmatmul.mubr.f32.gmra.mxu1 %v2726_v42  ;;  %3186 = vmatpush3.msra.mxu0 %v7129_v56  ;;  %v2722_v42 = vld [vmem:[%s4577_s7 + $0x340] sm:$0xff]  ;;  %v2729_v54 = vld [vmem:[%s4577_s7 + $0x378] sm:$0xff] }
  0xb0   : > { %3239 = vmatpush3.msra.mxu1 %v7130_v1  ;;  %3187 = vmatprep.subr.mxu0 %v7131_v5  ;;  %v7159_v56 = vld [vmem:[#allocation49_spill] sm:$0xff]  ;;  %v2728_v1 = vld [vmem:[%s4577_s7 + $0x370] sm:$0xff] }
  0xb1   : > { %3240 = vmatprep.subr.mxu1 %v7132_v7  ;;  %3188 = vmatpush3.msra.mxu0 %v7133_v11  ;;  %v7161_v5 = vld [vmem:[#allocation53_spill] sm:$0xff]  ;;  %v7162_v7 = vld [vmem:[#allocation55_spill] sm:$0xff] }
  0xb2   : > { %3241 = vmatpush3.msra.mxu1 %v7134_v13  ;;  %1036 = vmatprep.mubr.f32.mxu1 %v2736_v3  ;;  %v2731_v3 = vld [vmem:[%s4577_s7 + $0x388] sm:$0xff]  ;;  %v7163_v11 = vld [vmem:[#allocation57_spill] sm:$0xff] }
  0xb3   : > { %3189 = vmatprep.subr.mxu0 %v7135_v15  ;;  %3242 = vmatprep.subr.mxu1 %v7136_v17  ;;  %v2737_v13 = vld [vmem:[%s4577_s7 + $0x3b8] sm:$0x1]  ;;  %v2740_v15 = vld [vmem:[%s4577_s7 + $0x3d0] sm:$0x1] }
  0xb4   : > { %1037 = vmatmul.mubr.f32.gmra.mxu1 %v2735_v9  ;;  %3190 = vmatpush3.msra.mxu0 %v7137_v21  ;;  %v2738_v9 = vld [vmem:[%s4577_s7 + $0x3c0] sm:$0x1]  ;;  %v7165_v17 = vld [vmem:[#allocation61_spill] sm:$0xff] }
  0xb5   : > { %3243 = vmatpush3.msra.mxu1 %v7138_v45  ;;  %3191 = vmatprep.subr.mxu0 %v7139_v49  ;;  %v7167_v21 = vld [vmem:[#allocation65_spill] sm:$0xff]  ;;  %v7168_v45 = vld [vmem:[#allocation67_spill] sm:$0xff] }
  0xb6   : > { %3244 = vmatprep.subr.mxu1 %v5008_v35  ;;  %3192 = vmatpush3.msra.mxu0 %v7140_v58  ;;  %v2692_v35 = vld [vmem:[%s4577_s7 + $0x250] sm:$0xff]  ;;  %v7170_v49 = vld [vmem:[#allocation71_spill] sm:$0xff]  ;;  %v5417_v58 = vld [vmem:[%s6870_s1 + $0x78] sm:$0xff] }
  0xb7   : > { %1106 = vmatprep.mubr.f32.mxu0 %v2684_v19  ;;  %3245 = vmatpush3.msra.mxu1 %v5020_v25  ;;  %v7144_v25 = vld [vmem:[#allocation26_spill] sm:$0xff]  ;;  %v7166_v19 = vld [vmem:[#allocation63_spill] sm:$0xff] }
  0xb8   : > { %1107 = vmatmul.mubr.f32.vlgmr.msra.gmra.mxu0 %v2683_v47  ;;  %1206 = vmatprep.mubr.f32.mxu1 %v2686_v55  ;;  %v2688_v47 = vld [vmem:[%s4577_s7 + $0x230] sm:$0xff] }
  0xb9   : > { %3267 = vmatprep.subr.mxu0 %v7141_v60  ;;  %3866 = vmatprep.subr.mxu1 %v6944_v31  ;;  %v7171_v55 = vld [vmem:[#allocation72_spill] sm:$0xff] }
  0xba   : > { %1207 = vmatmul.mubr.f32.vlgmr.msra.gmra.mxu1 %v2685_v59  ;;  %3268 = vmatpush3.msra.mxu0 %v7142_v62  ;;  %v5423_v59 = vld [vmem:[%s6870_s1 + $0x178] sm:$0xff]  ;;  %v2696_v60 = vld [vmem:[%s4577_s7 + $0x270] sm:$0xff] }
  0xbb   : > { %3867 = vmatpush3.msra.mxu1 %v5040_v23  ;;  %3269 = vmatprep.subr.mxu0 %v7143_v63  ;;  %v7146_v23 = vld [vmem:[#allocation28_spill] sm:$0xff] }
  0xbc   : > { %3868 = vmatprep.subr.mxu1 %v6944_v31  ;;  %1111 = vmatprep.mubr.f32.mxu0 %v2693_v61  ;;  %v5430_v61 = vld [vmem:[%s6870_s1 + $0xf0] sm:$0xff] }
  0xbd   : > { %3270 = vmatpush3.msra.mxu0 %v7144_v25  ;;  %3869 = vmatpush3.msra.mxu1 %v5048_v41  ;;  %v7148_v41 = vld [vmem:[#allocation30_spill] sm:$0xff]  ;;  %v5436_v62 = vld [vmem:[%s6870_s1 + $0x1f0] sm:$0xff]  ;;  %v5454_v25 = vld [vmem:[%s6870_s1 + $0xe8] sm:$0xff] }
  0xbe   : > { %1112 = vmatmul.mubr.f32.gmra.mxu0 %v2692_v35  ;;  %3271 = vmatprep.subr.mxu0 %v7145_v51  ;;  %v5442_v35 = vld [vmem:[%s6870_s1 + $0x70] sm:$0xff]  ;;  %v2706_v51 = vld [vmem:[%s4577_s7 + $0x2c0] sm:$0xff] }
  0xbf   : > { %3870 = vmatprep.subr.mxu1 %v6944_v31  ;;  %1211 = vmatprep.mubr.f32.mxu1 %v2695_v53  ;;  %v5448_v63 = vld [vmem:[%s6870_s1 + $0x170] sm:$0xff]  ;;  %v5460_v53 = vld [vmem:[%s6870_s1 + $0x1e8] sm:$0xff] }
  0xc0   : > { %3272 = vmatpush3.msra.mxu0 %v7146_v23  ;;  %3871 = vmatpush3.msra.mxu1 %v5060_v39  ;;  %v2703_v39 = vld [vmem:[%s4577_s7 + $0x2a8] sm:$0xff] }
  0xc1   : > { %3273 = vmatprep.subr.mxu0 %v7147_v14  ;;  %1212 = vmatmul.mubr.f32.gmra.mxu1 %v2694_v43  ;;  %v5467_v43 = vld [vmem:[%s6870_s1 + $0x68] sm:$0xff]  ;;  %v5485_v14 = vld [vmem:[%s6870_s1 + $0x1e0] sm:$0xff] }
  0xc2   : > { %3872 = vmatprep.subr.mxu1 %v6944_v31  ;;  %1116 = vmatprep.mubr.f32.mxu0 %v2702_v37  ;;  %v5473_v23 = vld [vmem:[%s6870_s1 + $0x168] sm:$0xff]  ;;  %v5479_v37 = vld [vmem:[%s6870_s1 + $0xe0] sm:$0xff] }
  0xc3   : > { %3274 = vmatpush3.msra.mxu0 %v7148_v41  ;;  %3873 = vmatpush3.msra.mxu1 %v5071_v29  ;;  %v7152_v29 = vld [vmem:[#allocation35_spill] sm:$0xff]  ;;  %v2698_v41 = vld [vmem:[%s4577_s7 + $0x280] sm:$0xff] }
  0xc4   : > { %1117 = vmatmul.mubr.f32.gmra.mxu0 %v2701_v16  ;;  %3275 = vmatprep.subr.mxu0 %v7149_v20  ;;  %v2705_v16 = vld [vmem:[%s4577_s7 + $0x2b8] sm:$0xff] }
  0xc5   : > { %3874 = vmatprep.subr.mxu1 %v6944_v31  ;;  %1216 = vmatprep.mubr.f32.mxu1 %v2704_v18 }
  0xc6   : > { %3276 = vmatpush3.msra.mxu0 %v7150_v22  ;;  %3875 = vmatpush3.msra.mxu1 %v5082_v33  ;;  %v2712_v33 = vld [vmem:[%s4577_s7 + $0x2f0] sm:$0xff]  ;;  %v5501_v22 = vld [vmem:[%s6870_s1 + $0x160] sm:$0xff] }
  0xc7   : > { %3277 = vmatprep.subr.mxu0 %v7151_v26  ;;  %1217 = vmatmul.mubr.f32.gmra.mxu1 %v2703_v39  ;;  %v5495_v39 = vld [vmem:[%s6870_s1 + $0x60] sm:$0xff]  ;;  %7172 = vst [vmem:[#allocation2_spill] sm:$0xff] %v5501_v22 }
  0xc8   : > { %3876 = vmatprep.subr.mxu1 %v6944_v31  ;;  %1121 = vmatprep.mubr.f32.mxu0 %v2711_v24 }
  0xc9   : > { %3278 = vmatpush3.msra.mxu0 %v7152_v29  ;;  %3877 = vmatpush3.msra.mxu1 %v5093_v27  ;;  %v7156_v27 = vld [vmem:[#allocation43_spill] sm:$0xff] }
  0xca   : > { %1122 = vmatmul.mubr.f32.gmra.mxu0 %v2710_v28  ;;  %3279 = vmatprep.subr.mxu0 %v7153_v32  ;;  %v5513_v32 = vld [vmem:[%s6870_s1 + $0x1d8] sm:$0xff] }
  0xcb   : > { %3878 = vmatprep.subr.mxu1 %v6944_v31  ;;  %1221 = vmatprep.mubr.f32.mxu1 %v2713_v30  ;;  %v5507_v30 = vld [vmem:[%s6870_s1 + $0xd8] sm:$0xff]  ;;  %7173 = vst [vmem:[#allocation34_spill] sm:$0xff] %v5513_v32 }
  0xcc   : > { %3280 = vmatpush3.msra.mxu0 %v7154_v34  ;;  %3879 = vmatpush3.msra.mxu1 %v5104_v0  ;;  %v2721_v0 = vld [vmem:[%s4577_s7 + $0x338] sm:$0xff] }
  0xcd   : > { %3281 = vmatprep.subr.mxu0 %v7155_v38  ;;  %1222 = vmatmul.mubr.f32.gmra.mxu1 %v2712_v33  ;;  %v2715_v33 = vld [vmem:[%s4577_s7 + $0x308] sm:$0xff]  ;;  %v5520_v34 = vld [vmem:[%s6870_s1 + $0x58] sm:$0xff] }
  0xce   : > { %3880 = vmatprep.subr.mxu1 %v6944_v31  ;;  %1126 = vmatprep.mubr.f32.mxu0 %v2720_v36  ;;  %v5526_v36 = vld [vmem:[%s6870_s1 + $0x158] sm:$0xff] }
  0xcf   : > { %3282 = vmatpush3.msra.mxu0 %v7156_v27  ;;  %3881 = vmatpush3.msra.mxu1 %v5115_v2  ;;  %v7160_v2 = vld [vmem:[#allocation51_spill] sm:$0xff]  ;;  %7174 = vst [vmem:[#allocation3_spill] sm:$0xff] %v5526_v36  ;;  %v5540_v27 = vld [vmem:[%s6870_s1 + $0x1d0] sm:$0xff] }
  0xd0   : > { %1127 = vmatmul.mubr.f32.gmra.mxu0 %v2719_v40  ;;  %3283 = vmatprep.subr.mxu0 %v7157_v50  ;;  %v5534_v40 = vld [vmem:[%s6870_s1 + $0xd0] sm:$0xff]  ;;  %7175 = vst [vmem:[#allocation36_spill] sm:$0xff] %v5540_v27  ;;  %v2707_v50 = vld [vmem:[%s4577_s7 + $0x2c8] sm:$0xff] }
  0xd1   : > { %3882 = vmatprep.subr.mxu1 %v6944_v31  ;;  %1226 = vmatprep.mubr.f32.mxu1 %v2722_v42  ;;  %v2714_v42 = vld [vmem:[%s4577_s7 + $0x300] sm:$0xff] }
  0xd2   : > { %3284 = vmatpush3.msra.mxu0 %v7158_v52  ;;  %3883 = vmatpush3.msra.mxu1 %v5126_v4  ;;  %v2730_v4 = vld [vmem:[%s4577_s7 + $0x380] sm:$0xff]  ;;  %v5556_v52 = vld [vmem:[%s6870_s1 + $0x150] sm:$0xff] }
  0xd3   : > { %3285 = vmatprep.subr.mxu0 %v7159_v56  ;;  %1227 = vmatmul.mubr.f32.gmra.mxu1 %v2721_v0  ;;  %v5550_v0 = vld [vmem:[%s6870_s1 + $0x50] sm:$0xff]  ;;  %7176 = vst [vmem:[#allocation4_spill] sm:$0xff] %v5556_v52 }
  0xd4   : > { %3884 = vmatprep.subr.mxu1 %v6944_v31  ;;  %1131 = vmatprep.mubr.f32.mxu0 %v2729_v54 }
  0xd5   : > { %3286 = vmatpush3.msra.mxu0 %v7160_v2  ;;  %3885 = vmatpush3.msra.mxu1 %v5137_v6  ;;  %v7164_v6 = vld [vmem:[#allocation59_spill] sm:$0xff] }
  0xd6   : > { %1132 = vmatmul.mubr.f32.gmra.mxu0 %v2728_v1  ;;  %3287 = vmatprep.subr.mxu0 %v7161_v5  ;;  %v5562_v1 = vld [vmem:[%s6870_s1 + $0xc8] sm:$0xff] }
  0xd7   : > { %3886 = vmatprep.subr.mxu1 %v6944_v31  ;;  %1231 = vmatprep.mubr.f32.mxu1 %v2731_v3  ;;  %v5568_v2 = vld [vmem:[%s6870_s1 + $0x1c8] sm:$0xff]  ;;  %v2724_v3 = vld [vmem:[%s4577_s7 + $0x350] sm:$0xff] }
  0xd8   : > { %3288 = vmatpush3.msra.mxu0 %v7162_v7  ;;  %3887 = vmatpush3.msra.mxu1 %v5148_v8  ;;  %v2739_v8 = vld [vmem:[%s4577_s7 + $0x3c8] sm:$0x1]  ;;  %7177 = vst [vmem:[#allocation38_spill] sm:$0xff] %v5568_v2 }
  0xd9   : > { %3289 = vmatprep.subr.mxu0 %v7163_v11  ;;  %1232 = vmatmul.mubr.f32.gmra.mxu1 %v2730_v4  ;;  %v5575_v5 = vld [vmem:[%s6870_s1 + $0x48] sm:$0xff]  ;;  %v5587_v11 = vld [vmem:[%s6870_s1 + $0xc0] sm:$0xff] }
  0xda   : > { %3888 = vmatprep.subr.mxu1 %v6944_v31  ;;  %1136 = vmatprep.mubr.f32.mxu0 %v2738_v9  ;;  %v5581_v4 = vld [vmem:[%s6870_s1 + $0x148] sm:$0xff] }
  0xdb   : > { %3290 = vmatpush3.msra.mxu0 %v7164_v6  ;;  %3889 = vmatpush3.msra.mxu1 %v5159_v10  ;;  %v7169_v10 = vld [vmem:[#allocation69_spill] sm:$0xff]  ;;  %7178 = vst [vmem:[#allocation5_spill] sm:$0xff] %v5581_v4  ;;  %v2723_v6 = vld [vmem:[%s4577_s7 + $0x348] sm:$0xff] }
  0xdc   : > { %1137 = vmatmul.mubr.f32.gmra.mxu0 %v2737_v13  ;;  %3291 = vmatprep.subr.mxu0 %v7165_v17  ;;  %v5593_v13 = vld [vmem:[%s6870_s1 + $0x1c0] sm:$0xff] }
  0xdd   : > { %3890 = vmatprep.subr.mxu1 %v6944_v31  ;;  %1236 = vmatprep.mubr.f32.mxu1 %v2740_v15  ;;  %7179 = vst [vmem:[#allocation40_spill] sm:$0xff] %v5593_v13  ;;  %v2716_v15 = vld [vmem:[%s4577_s7 + $0x310] sm:$0xff] }
  0xde   : > { %3292 = vmatpush3.msra.mxu0 %v7166_v19  ;;  %3891 = vmatpush3.msra.mxu1 %v5170_v12  ;;  %v2687_v12 = vld [vmem:[%s4577_s7 + $0x228] sm:$0xff]  ;;  %v5603_v19 = vld [vmem:[%s6870_s1 + $0x40] sm:$0xff] }
  0xdf   : > { %3293 = vmatprep.subr.mxu0 %v7167_v21  ;;  %1237 = vmatmul.mubr.f32.gmra.mxu1 %v2739_v8  ;;  %v5609_v21 = vld [vmem:[%s6870_s1 + $0x140] sm:$0xff] }
  0xe0   : > { %3892 = vmatprep.subr.mxu1 %v6944_v31  ;;  %3294 = vmatpush3.msra.mxu0 %v7168_v45  ;;  %7180 = vst [vmem:[#allocation6_spill] sm:$0xff] %v5609_v21 }
  0xe1   : > { %3893 = vmatpush3.msra.mxu1 %v5180_v44  ;;  %3295 = vmatprep.subr.mxu0 %v7169_v10  ;;  %v2689_v44 = vld [vmem:[%s4577_s7 + $0x238] sm:$0xff] }
  0xe2   : > { %3894 = vmatprep.subr.mxu1 %v6944_v31  ;;  %3296 = vmatpush3.msra.mxu0 %v7170_v49  ;;  %v5617_v49 = vld [vmem:[%s6870_s1 + $0xb8] sm:$0xff] }
  0xe3   : > { %3895 = vmatpush3.msra.mxu1 %v5188_v46  ;;  %3297 = vmatprep.subr.mxu0 %v7171_v55  ;;  %v5404_v46 = vld [vmem:[%s6870_s1 + $0xf8] sm:$0xff] }
  0xe4   : > { %3896 = vmatprep.subr.mxu1 %v6944_v31  ;;  %3298 = vmatpush3.msra.mxu0 %v5028_v57  ;;  %v5410_v57 = vld [vmem:[%s6870_s1 + $0x1f8] sm:$0xff] }
  0xe5   : > { %1306 = vmatprep.mubr.f32.mxu0 %v2688_v47  ;;  %3897 = vmatpush3.msra.mxu1 %v5197_v48  ;;  %v2697_v48 = vld [vmem:[%s4577_s7 + $0x278] sm:$0xff] }
  0xe6   : > { %1307 = vmatmul.mubr.f32.vlgmr.msra.gmra.mxu0 %v2687_v12  ;;  %3898 = vmatprep.mubr.msk.f32.mxu1 %vm4190_vm0, %v6944_v31  ;;  %v5623_v12 = vld [vmem:[%s6870_s1 + $0x1b8] sm:$0xff] }
  0xe7   : > { %3343 = vmatprep.subr.mxu0 %v5404_v46  ;;  %3396 = vmatprep.subr.mxu1 %v5410_v57  ;;  %7181 = vst [vmem:[#allocation42_spill] sm:$0xff] %v5623_v12  ;;  %v2733_v55 = vld [vmem:[%s4577_s7 + $0x398] sm:$0xff] }
  0xe8   : > { %3899 = vmatmul.mubr.f32.vlgmr.msra.gmra.mxu1 %v2689_v44  ;;  %3344 = vmatpush3.msra.mxu0 %v5417_v58  ;;  %v5630_v44 = vld [vmem:[%s6870_s1 + $0x38] sm:$0xff] }
  0xe9   : > { %3397 = vmatpush3.msra.mxu1 %v5423_v59  ;;  %3345 = vmatprep.subr.mxu0 %v5430_v61 }
  0xea   : > { %3398 = vmatprep.subr.mxu1 %v5436_v62  ;;  %1311 = vmatprep.mubr.f32.mxu0 %v2697_v48  ;;  %v5636_v48 = vld [vmem:[%s6870_s1 + $0x138] sm:$0xff] }
  0xeb   : > { %3346 = vmatpush3.msra.mxu0 %v5442_v35  ;;  %3399 = vmatpush3.msra.mxu1 %v5448_v63  ;;  %7182 = vst [vmem:[#allocation7_spill] sm:$0xff] %v5636_v48 }
  0xec   : > { %1312 = vmatmul.mubr.f32.gmra.mxu0 %v2696_v60  ;;  %3347 = vmatprep.subr.mxu0 %v5454_v25 }
  0xed   : > { %3400 = vmatprep.subr.mxu1 %v5460_v53  ;;  %3348 = vmatpush3.msra.mxu0 %v5467_v43 }
  0xee   : > { %3401 = vmatpush3.msra.mxu1 %v5473_v23  ;;  %3349 = vmatprep.subr.mxu0 %v5479_v37  ;;  %v2905_v18 = vpop.f32.mrf.mxu0 }
  0xef   : > { %3402 = vmatprep.subr.mxu1 %v5485_v14  ;;  %v2958_v20 = vpop.f32.mrf.mxu1  ;;  %1316 = vmatprep.mubr.f32.mxu0 %v2706_v51 }
  0xf0   : > { %3901 = vmatprep.mubr.msk.f32.mxu1 %vm4190_vm0, %v6944_v31  ;;  %3350 = vmatpush3.msra.mxu0 %v5495_v39  ;;  %v2906_v24 = vpop.f32.mrf.mxu0 }
  0xf1   : > { %3403 = vmatpush3.msra.mxu1 %v5501_v22  ;;  %v2959_v26 = vpop.f32.mrf.mxu1  ;;  %1317 = vmatmul.mubr.f32.gmra.mxu0 %v2705_v16  ;;  %v2907_v28 = vadd.f32 %v2906_v24, %v2905_v18  ;;  %v5642_v16 = vld [vmem:[%s6870_s1 + $0xb0] sm:$0xff] }
  0xf2   : > { %3902 = vmatmul.mubr.f32.gmra.mxu1 %v2698_v41  ;;  %v2960_v29 = vadd.f32 %v2959_v26, %v2958_v20  ;;  %3351 = vmatprep.subr.mxu0 %v5507_v30  ;;  %v5648_v41 = vld [vmem:[%s6870_s1 + $0x1b0] sm:$0xff]  ;;  %v2725_v20 = vld [vmem:[%s4577_s7 + $0x358] sm:$0xff] }
  0xf3   : > { %3404 = vmatprep.subr.mxu1 %v5513_v32  ;;  %3352 = vmatpush3.msra.mxu0 %v5520_v34  ;;  %7183 = vst [vmem:[#allocation44_spill] sm:$0xff] %v5648_v41  ;;  %v2732_v18 = vld [vmem:[%s4577_s7 + $0x390] sm:$0xff]  ;;  %v5892_v32 = vld [vmem:[%s6870_s1 + $0x268] sm:$0xff] }
  0xf4   : > { %3405 = vmatpush3.msra.mxu1 %v5526_v36  ;;  %v5529_v38 = vadd.f32 %v2960_v29, %v2907_v28  ;;  %3353 = vmatprep.subr.mxu0 %v5534_v40  ;;  %v5658_v28 = vld [vmem:[%s6870_s1 + $0x30] sm:$0xff]  ;;  %v2755_v36 = vld [vmem:[%s4577_s7 + $0x448] sm:$0xff]  ;;  %7202 = vst [vmem:[#allocation62_spill] sm:$0xff] %v5892_v32 }
  0xf5   : > { %3406 = vmatprep.subr.mxu1 %v5540_v27  ;;  %1321 = vmatprep.mubr.f32.mxu0 %v2715_v33  ;;  %v5664_v29 = vld [vmem:[%s6870_s1 + $0x130] sm:$0xff]  ;;  %v2753_v27 = vld [vmem:[%s4577_s7 + $0x438] sm:$0xff] }
  0xf6   : > { %3904 = vmatprep.mubr.msk.f32.mxu1 %vm4190_vm0, %v6944_v31  ;;  %3354 = vmatpush3.msra.mxu0 %v5550_v0  ;;  %7184 = vst [vmem:[#allocation8_spill] sm:$0xff] %v5664_v29 }
  0xf7   : > { %3407 = vmatpush3.msra.mxu1 %v5556_v52  ;;  %1322 = vmatmul.mubr.f32.gmra.mxu0 %v2714_v42  ;;  %v2908_v54 = vpop.f32.mrf.mxu0 }
  0xf8   : > { %3905 = vmatmul.mubr.f32.gmra.mxu1 %v2707_v50  ;;  %v2961_v56 = vpop.f32.mrf.mxu1  ;;  %3355 = vmatprep.subr.mxu0 %v5562_v1 }
  0xf9   : > { %3408 = vmatprep.subr.mxu1 %v5568_v2  ;;  %3356 = vmatpush3.msra.mxu0 %v5575_v5  ;;  %v2909_v7 = vpop.f32.mrf.mxu0 }
  0xfa   : > { %3409 = vmatpush3.msra.mxu1 %v5581_v4  ;;  %v2962_v9 = vpop.f32.mrf.mxu1  ;;  %3357 = vmatprep.subr.mxu0 %v5587_v11  ;;  %v2910_v17 = vadd.f32 %v2909_v7, %v2908_v54  ;;  %v5672_v54 = vld [vmem:[%s6870_s1 + $0xa8] sm:$0xff]  ;;  %v5878_v4 = vld [vmem:[%s6870_s1 + $0x370] sm:$0xff] }
  0xfb   : > { %3410 = vmatprep.subr.mxu1 %v5593_v13  ;;  %v2963_v8 = vadd.f32 %v2962_v9, %v2961_v56  ;;  %1326 = vmatprep.mubr.f32.mxu0 %v2724_v3  ;;  %v5678_v56 = vld [vmem:[%s6870_s1 + $0x1a8] sm:$0xff]  ;;  %v2742_v3 = vld [vmem:[%s4577_s7 + $0x3e0] sm:$0x1]  ;;  %7201 = vst [vmem:[#allocation16_spill] sm:$0xff] %v5878_v4 }
  0xfc   : > { %3907 = vmatprep.mubr.msk.f32.mxu1 %vm4190_vm0, %v6944_v31  ;;  %3358 = vmatpush3.msra.mxu0 %v5603_v19  ;;  %7185 = vst [vmem:[#allocation46_spill] sm:$0xff] %v5678_v56  ;;  %v5685_v7 = vld [vmem:[%s6870_s1 + $0x28] sm:$0xff]  ;;  %v5826_v13 = vld [vmem:[%s6870_s1 + $0x100] sm:$0xff] }
  0xfd   : > { %3411 = vmatpush3.msra.mxu1 %v5609_v21  ;;  %v5612_v45 = vadd.f32 %v2963_v8, %v2910_v17  ;;  %1327 = vmatmul.mubr.f32.gmra.mxu0 %v2723_v6  ;;  %v2911_v10 = vpop.f32.mrf.mxu0  ;;  %v5691_v9 = vld [vmem:[%s6870_s1 + $0x128] sm:$0xff]  ;;  %v5697_v17 = vld [vmem:[%s6870_s1 + $0xa0] sm:$0xff]  ;;  %7197 = vst [vmem:[#allocation14_spill] sm:$0xff] %v5826_v13 }
  0xfe   : > { %3908 = vmatmul.mubr.f32.gmra.mxu1 %v2716_v15  ;;  %v2964_v47 = vpop.f32.mrf.mxu1  ;;  %3359 = vmatprep.subr.mxu0 %v5617_v49  ;;  %7186 = vst [vmem:[#allocation9_spill] sm:$0xff] %v5691_v9  ;;  %v5703_v8 = vld [vmem:[%s6870_s1 + $0x1a0] sm:$0xff] }
  0xff   : > { %3412 = vmatprep.subr.mxu1 %v5623_v12  ;;  %3360 = vmatpush3.msra.mxu0 %v5630_v44  ;;  %v2912_v60 = vpop.f32.mrf.mxu0  ;;  %7187 = vst [vmem:[#allocation48_spill] sm:$0xff] %v5703_v8 }
 0x100   : > { %3413 = vmatpush3.msra.mxu1 %v5636_v48  ;;  %v2965_v51 = vpop.f32.mrf.mxu1  ;;  %3361 = vmatprep.subr.mxu0 %v5642_v16  ;;  %v2913_v24 = vadd.f32 %v2912_v60, %v2911_v10  ;;  %v2741_v10 = vld [vmem:[%s4577_s7 + $0x3d8] sm:$0x1] }
 0x101   : > { %3414 = vmatprep.subr.mxu1 %v5648_v41  ;;  %v2966_v26 = vadd.f32 %v2965_v51, %v2964_v47  ;;  %1331 = vmatprep.mubr.f32.mxu0 %v2733_v55  ;;  %v2734_v47 = vld [vmem:[%s4577_s7 + $0x3a0] sm:$0xff] }
 0x102   : > { %3910 = vmatprep.mubr.msk.f32.mxu1 %vm4190_vm0, %v6944_v31  ;;  %3362 = vmatpush3.msra.mxu0 %v5658_v28  ;;  %v5713_v51 = vld [vmem:[%s6870_s1 + $0x20] sm:$0xff] }
 0x103   : > { %3415 = vmatpush3.msra.mxu1 %v5664_v29  ;;  %v5667_v33 = vadd.f32 %v2966_v26, %v2913_v24  ;;  %1332 = vmatmul.mubr.f32.gmra.mxu0 %v2732_v18  ;;  %v2914_v42 = vpop.f32.mrf.mxu0  ;;  %v5719_v18 = vld [vmem:[%s6870_s1 + $0x120] sm:$0xff] }
 0x104   : > { %3911 = vmatmul.mubr.f32.gmra.mxu1 %v2725_v20  ;;  %v2967_v50 = vpop.f32.mrf.mxu1  ;;  %3363 = vmatprep.subr.mxu0 %v5672_v54  ;;  %7188 = vst [vmem:[#allocation10_spill] sm:$0xff] %v5719_v18  ;;  %v2746_v29 = vld [vmem:[%s4577_s7 + $0x400] sm:$0xff] }
 0x105   : > { %3416 = vmatprep.subr.mxu1 %v5678_v56  ;;  %3364 = vmatpush3.msra.mxu0 %v5685_v7  ;;  %v2915_v6 = vpop.f32.mrf.mxu0  ;;  %v2744_v56 = vld [vmem:[%s4577_s7 + $0x3f0] sm:$0xff] }
 0x106   : > { %3417 = vmatpush3.msra.mxu1 %v5691_v9  ;;  %v2968_v15 = vpop.f32.mrf.mxu1  ;;  %3365 = vmatprep.subr.mxu0 %v5697_v17  ;;  %v2916_v55 = vadd.f32 %v2915_v6, %v2914_v42  ;;  %v5727_v42 = vld [vmem:[%s6870_s1 + $0x98] sm:$0xff]  ;;  %v5793_v9 = vld [vmem:[%s6870_s1 + $0x8] sm:$0xff] }
 0x107   : > { %3418 = vmatprep.subr.mxu1 %v5703_v8  ;;  %v2969_v60 = vadd.f32 %v2968_v15, %v2967_v50  ;;  %1336 = vmatprep.mubr.f32.mxu0 %v2742_v3  ;;  %v5733_v50 = vld [vmem:[%s6870_s1 + $0x198] sm:$0xff]  ;;  %v5772_v8 = vld [vmem:[%s6870_s1 + $0x110] sm:$0xff] }
 0x108   : > { %3913 = vmatprep.mubr.msk.f32.mxu1 %vm4190_vm0, %v6944_v31  ;;  %3366 = vmatpush3.msra.mxu0 %v5713_v51  ;;  %7189 = vst [vmem:[#allocation50_spill] sm:$0xff] %v5733_v50  ;;  %v5739_v3 = vld [vmem:[%s6870_s1 + $0x18] sm:$0xff]  ;;  %7193 = vst [vmem:[#allocation12_spill] sm:$0xff] %v5772_v8 }
 0x109   : > { %3419 = vmatpush3.msra.mxu1 %v5719_v18  ;;  %v5722_v20 = vadd.f32 %v2969_v60, %v2916_v55  ;;  %1337 = vmatmul.mubr.f32.gmra.mxu0 %v2741_v10  ;;  %v2917_v24 = vpop.f32.mrf.mxu0  ;;  %v5745_v6 = vld [vmem:[%s6870_s1 + $0x118] sm:$0xff]  ;;  %v5757_v55 = vld [vmem:[%s6870_s1 + $0x190] sm:$0xff]  ;;  %v2743_v60 = vld [vmem:[%s4577_s7 + $0x3e8] sm:$0x1] }
 0x10a   : > { %3914 = vmatmul.mubr.f32.gmra.mxu1 %v2734_v47  ;;  %v2970_v26 = vpop.f32.mrf.mxu1  ;;  %3367 = vmatprep.subr.mxu0 %v5727_v42  ;;  %7190 = vst [vmem:[#allocation11_spill] sm:$0xff] %v5745_v6  ;;  %v5751_v47 = vld [vmem:[%s6870_s1 + $0x90] sm:$0xff]  ;;  %7191 = vst [vmem:[#allocation52_spill] sm:$0xff] %v5757_v55 }
 0x10b   : > { %3420 = vmatprep.subr.mxu1 %v5733_v50  ;;  %3368 = vmatpush3.msra.mxu0 %v5739_v3  ;;  %v2918_v15 = vpop.f32.mrf.mxu0  ;;  %v7192_v50 = vmov 0.0   ;;  %v5766_v18 = vld [vmem:[%s6870_s1 + $0x10] sm:$0xff] }
 0x10c   : > { %3421 = vmatpush3.msra.mxu1 %v5745_v6  ;;  %v2971_v10 = vpop.f32.mrf.mxu1  ;;  %3369 = vmatprep.subr.mxu0 %v5751_v47  ;;  %v2919_v31 = vadd.f32 %v2918_v15, %v2917_v24  ;;  %v5778_v24 = vld [vmem:[%s6870_s1 + $0x88] sm:$0xff] }
 0x10d   : > { %3422 = vmatprep.subr.mxu1 %v5757_v55  ;;  %v2972_v6 = vadd.f32 %v2971_v10, %v2970_v26  ;;  %3916 = vmatprep.mubr.msk.f32.mxu1 %vm4190_vm0, %v7192_v50  ;;  %v5786_v15 = vld [vmem:[%s6870_s1 + $0x188] sm:$0xff]  ;;  %v2745_v10 = vld [vmem:[%s4577_s7 + $0x3f8] sm:$0xff] }
 0x10e   : > { %3370 = vmatpush3.msra.mxu0 %v5766_v18  ;;  %3423 = vmatpush3.msra.mxu1 %v5772_v8  ;;  %7194 = vst [vmem:[#allocation54_spill] sm:$0xff] %v5786_v15 }
 0x10f   : > { %3371 = vmatprep.subr.mxu0 %v5778_v24  ;;  %v5781_v26 = vadd.f32 %v2972_v6, %v2919_v31  ;;  %3917 = vmatmul.mubr.f32.gmra.mxu1 %v2743_v60  ;;  %v2920_v8 = vpop.f32.mrf.mxu0  ;;  %v5799_v31 = vld [vmem:[%s6870_s1 + $0x108] sm:$0xff]  ;;  %v5806_v60 = vld [vmem:[%s6870_s1 + $0x80] sm:$0xff] }
 0x110   : > { %3424 = vmatprep.subr.mxu1 %v5786_v15  ;;  %v2973_v55 = vpop.f32.mrf.mxu1  ;;  %3372 = vmatpush3.msra.mxu0 %v5793_v9  ;;  %7195 = vst [vmem:[#allocation13_spill] sm:$0xff] %v5799_v31  ;;  %v2747_v6 = vld [vmem:[%s4577_s7 + $0x408] sm:$0xff]  ;;  %v5812_v15 = vld [vmem:[%s6870_s1 + $0x180] sm:$0xff] }
 0x111   : > { %3425 = vmatpush3.msra.mxu1 %v5799_v31  ;;  %3373 = vmatprep.subr.mxu0 %v5806_v60  ;;  %7196 = vst [vmem:[#allocation56_spill] sm:$0xff] %v5812_v15  ;;  %v2921_v41 = vpop.f32.mrf.mxu0  ;;  %v5820_v31 = vld [vmem:[%s6870_s1] sm:$0xff] }
 0x112   : > { %3426 = vmatprep.subr.mxu1 %v5812_v15  ;;  %v2974_v48 = vpop.f32.mrf.mxu1  ;;  %3374 = vmatpush3.msra.mxu0 %v5820_v31  ;;  %v2922_v12 = vadd.f32 %v2921_v41, %v2920_v8  ;;  %v5859_v8 = vld [vmem:[%s6870_s1 + $0x2f0] sm:$0xff] }
 0x113   : > { %1577 = vmatprep.mubr.f32.mxu0 %v2745_v10  ;;  %v2975_v21 = vadd.f32 %v2974_v48, %v2973_v55  ;;  %3427 = vmatpush3.msra.mxu1 %v5826_v13  ;;  %v5834_v10 = vld [vmem:[%s6870_s1 + $0x2f8] sm:$0xff]  ;;  %v5865_v55 = vld [vmem:[%s6870_s1 + $0x3f0] sm:$0xff] }
 0x114   : > { %1677 = vmatprep.mubr.f32.mxu1 %v2747_v6  ;;  %1578 = vmatmul.mubr.f32.vlgmr.msra.gmra.mxu0 %v2744_v56  ;;  %v5840_v48 = vld [vmem:[%s6870_s1 + $0x3f8] sm:$0xff]  ;;  %7200 = vst [vmem:[#allocation60_spill] sm:$0xff] %v5865_v55  ;;  %v2756_v6 = vld [vmem:[%s4577_s7 + $0x450] sm:$0xff] }
 0x115   : > { %1678 = vmatmul.mubr.f32.vlgmr.msra.gmra.mxu1 %v2746_v29  ;;  %v5829_v15 = vadd.f32 %v2975_v21, %v2922_v12  ;;  %3449 = vmatprep.subr.mxu0 %v5834_v10  ;;  %7198 = vst [vmem:[#allocation58_spill] sm:$0xff] %v5840_v48  ;;  %v2923_v41 = vpop.f32.mrf.mxu0  ;;  %v5846_v21 = vld [vmem:[%s6870_s1 + $0x278] sm:$0xff]  ;;  %v2754_v29 = vld [vmem:[%s4577_s7 + $0x440] sm:$0xff]  ;;  %v5872_v13 = vld [vmem:[%s6870_s1 + $0x270] sm:$0xff] }
 0x116   : > { %3502 = vmatprep.subr.mxu1 %v5840_v48  ;;  %v2976_v56 = vpop.f32.mrf.mxu1  ;;  %3450 = vmatpush3.msra.mxu0 %v5846_v21  ;;  %v5852_v12 = vld [vmem:[%s6870_s1 + $0x378] sm:$0xff] }
 0x117   : > { %7199 = vst [vmem:[#allocation15_spill] sm:$0xff] %v5852_v12  ;;  %3503 = vmatpush3.msra.mxu1 %v5852_v12  ;;  %3451 = vmatprep.subr.mxu0 %v5859_v8  ;;  %v2924_v48 = vpop.f32.mrf.mxu0 }
 0x118   : > { %3504 = vmatprep.subr.mxu1 %v5865_v55  ;;  %v2977_v12 = vpop.f32.mrf.mxu1  ;;  %3452 = vmatpush3.msra.mxu0 %v5872_v13  ;;  %v2925_v2 = vadd.f32 %v2924_v48, %v2923_v41  ;;  %v5884_v55 = vld [vmem:[%s6870_s1 + $0x2e8] sm:$0xff]  ;;  %v5900_v41 = vld [vmem:[%s6870_s1 + $0x2e0] sm:$0xff] }
 0x119   : > { %3505 = vmatpush3.msra.mxu1 %v5878_v4  ;;  %v2978_v52 = vadd.f32 %v2977_v12, %v2976_v56  ;;  %3453 = vmatprep.subr.mxu0 %v5884_v55  ;;  %7203 = vst [vmem:[#allocation17_spill] sm:$0xff] %v5900_v41  ;;  %v5906_v56 = vld [vmem:[%s6870_s1 + $0x3e8] sm:$0xff]  ;;  %v5932_v4 = vld [vmem:[%s6870_s1 + $0x3e0] sm:$0xff] }
 0x11a   : > { %1582 = vmatprep.mubr.f32.mxu0 %v2754_v29  ;;  %3454 = vmatpush3.msra.mxu0 %v5892_v32  ;;  %7204 = vst [vmem:[#allocation64_spill] sm:$0xff] %v5906_v56  ;;  %v2763_v29 = vld [vmem:[%s4577_s7 + $0x488] sm:$0xff]  ;;  %7208 = vst [vmem:[#allocation68_spill] sm:$0xff] %v5932_v4  ;;  %v2764_v32 = vld [vmem:[%s4577_s7 + $0x490] sm:$0xff] }
 0x11b   : > { %1682 = vmatprep.mubr.f32.mxu1 %v2756_v6  ;;  %v5895_v48 = vadd.f32 %v2978_v52, %v2925_v2  ;;  %3455 = vmatprep.subr.mxu0 %v5900_v41  ;;  %v5912_v52 = vld [vmem:[%s6870_s1 + $0x260] sm:$0xff]  ;;  %v5918_v2 = vld [vmem:[%s6870_s1 + $0x368] sm:$0xff]  ;;  %v2765_v6 = vld [vmem:[%s4577_s7 + $0x498] sm:$0xff] }
 0x11c   : > { %3506 = vmatprep.subr.mxu1 %v5906_v56  ;;  %v3011_v12 = vpop.f32.mrf.mxu0  ;;  %1583 = vmatmul.mubr.f32.gmra.mxu0 %v2753_v27  ;;  %7205 = vst [vmem:[#allocation18_spill] sm:$0xff] %v5912_v52  ;;  %7206 = vst [vmem:[#allocation66_spill] sm:$0xff] %v5918_v2  ;;  %v5926_v56 = vld [vmem:[%s6870_s1 + $0x2d8] sm:$0xff]  ;;  %v5944_v41 = vld [vmem:[%s6870_s1 + $0x360] sm:$0xff] }
 0x11d   : > { %1683 = vmatmul.mubr.f32.gmra.mxu1 %v2755_v36  ;;  %3456 = vmatpush3.msra.mxu0 %v5912_v52  ;;  %7207 = vst [vmem:[#allocation19_spill] sm:$0xff] %v5926_v56  ;;  %7210 = vst [vmem:[#allocation70_spill] sm:$0xff] %v5944_v41 }
 0x11e   : > { %3507 = vmatpush3.msra.mxu1 %v5918_v2  ;;  %v3012_v27 = vpop.f32.mrf.mxu0  ;;  %v3064_v36 = vpop.f32.mrf.mxu1  ;;  %3457 = vmatprep.subr.mxu0 %v5926_v56  ;;  %v5938_v2 = vld [vmem:[%s6870_s1 + $0x258] sm:$0xff]  ;;  %v2762_v56 = vld [vmem:[%s4577_s7 + $0x480] sm:$0xff] }
 0x11f   : > { %3508 = vmatprep.subr.mxu1 %v5932_v4  ;;  %v3013_v52 = vadd.f32 %v3012_v27, %v3011_v12  ;;  %7209 = vst [vmem:[#allocation20_spill] sm:$0xff] %v5938_v2  ;;  %3458 = vmatpush3.msra.mxu0 %v5938_v2  ;;  %v5953_v4 = vld [vmem:[%s6870_s1 + $0x2d0] sm:$0xff]  ;;  %v2782_v2 = vld [vmem:[%s4577_s7 + $0x520] sm:$0xff] }
 0x120   : > { %3509 = vmatpush3.msra.mxu1 %v5944_v41  ;;  %v3065_v22 = vpop.f32.mrf.mxu1  ;;  %1587 = vmatprep.mubr.f32.mxu0 %v2763_v29  ;;  %7211 = vst [vmem:[#allocation21_spill] sm:$0xff] %v5953_v4  ;;  %v5959_v41 = vld [vmem:[%s6870_s1 + $0x3d8] sm:$0xff] }
 0x121   : > { %1687 = vmatprep.mubr.f32.mxu1 %v2765_v6  ;;  %v645_v12 = vadd.f32 %v3013_v52, %v5529_v38  ;;  %v3066_v27 = vadd.f32 %v3065_v22, %v3064_v36  ;;  %3459 = vmatprep.subr.mxu0 %v5953_v4  ;;  %7212 = vst [vmem:[#allocation22_spill] sm:$0xff] %v5959_v41  ;;  %v5967_v22 = vld [vmem:[%s6870_s1 + $0x250] sm:$0xff]  ;;  %v5973_v38 = vld [vmem:[%s6870_s1 + $0x358] sm:$0xff]  ;;  %v5981_v36 = vld [vmem:[%s6870_s1 + $0x2c8] sm:$0xff] }
 0x122   : > { %3510 = vmatprep.subr.mxu1 %v5959_v41  ;;  %v3014_v29 = vpop.f32.mrf.mxu0  ;;  %1588 = vmatmul.mubr.f32.gmra.mxu0 %v2762_v56  ;;  %7213 = vst [vmem:[#allocation23_spill] sm:$0xff] %v5967_v22  ;;  %7214 = vst [vmem:[#allocation24_spill] sm:$0xff] %v5973_v38  ;;  %v2772_v56 = vld [vmem:[%s4577_s7 + $0x4d0] sm:$0xff] }
 0x123   : > { %1688 = vmatmul.mubr.f32.gmra.mxu1 %v2764_v32  ;;  %v5962_v6 = vadd.f32 %v3066_v27, %v645_v12  ;;  %3460 = vmatpush3.msra.mxu0 %v5967_v22  ;;  %v2774_v32 = vld [vmem:[%s4577_s7 + $0x4e0] sm:$0xff]  ;;  %7215 = vst [vmem:[#allocation25_spill] sm:$0xff] %v5981_v36  ;;  %v5987_v12 = vld [vmem:[%s6870_s1 + $0x3d0] sm:$0xff]  ;;  %v2773_v22 = vld [vmem:[%s4577_s7 + $0x4d8] sm:$0xff] }
 0x124   : > { %3511 = vmatpush3.msra.mxu1 %v5973_v38  ;;  %v3015_v52 = vpop.f32.mrf.mxu0  ;;  %3461 = vmatprep.subr.mxu0 %v5981_v36  ;;  %7216 = vst [vmem:[#allocation26_spill] sm:$0xff] %v5987_v12  ;;  %v5993_v38 = vld [vmem:[%s6870_s1 + $0x248] sm:$0xff]  ;;  %v5999_v41 = vld [vmem:[%s6870_s1 + $0x350] sm:$0xff] }
 0x125   : > { %3512 = vmatprep.subr.mxu1 %v5987_v12  ;;  %v3016_v27 = vadd.f32 %v3015_v52, %v3014_v29  ;;  %7217 = vst [vmem:[#allocation27_spill] sm:$0xff] %v5993_v38  ;;  %3462 = vmatpush3.msra.mxu0 %v5993_v38  ;;  %7218 = vst [vmem:[#allocation28_spill] sm:$0xff] %v5999_v41  ;;  %v2771_v36 = vld [vmem:[%s4577_s7 + $0x4c8] sm:$0xff]  ;;  %v3067_v4 = vpop.f32.mrf.mxu1  ;;  %v6008_v52 = vld [vmem:[%s6870_s1 + $0x2c0] sm:$0xff] }
 0x126   : > { %3513 = vmatpush3.msra.mxu1 %v5999_v41  ;;  %1592 = vmatprep.mubr.f32.mxu0 %v2772_v56  ;;  %7219 = vst [vmem:[#allocation29_spill] sm:$0xff] %v6008_v52  ;;  %v6014_v41 = vld [vmem:[%s6870_s1 + $0x3c8] sm:$0xff]  ;;  %v2780_v38 = vld [vmem:[%s4577_s7 + $0x510] sm:$0xff] }
 0x127   : > { %1692 = vmatprep.mubr.f32.mxu1 %v2774_v32  ;;  %v650_v29 = vadd.f32 %v3016_v27, %v5612_v45  ;;  %3463 = vmatprep.subr.mxu0 %v6008_v52  ;;  %7220 = vst [vmem:[#allocation30_spill] sm:$0xff] %v6014_v41  ;;  %v3068_v12 = vpop.f32.mrf.mxu1  ;;  %v6020_v45 = vld [vmem:[%s6870_s1 + $0x240] sm:$0xff]  ;;  %v6026_v27 = vld [vmem:[%s6870_s1 + $0x348] sm:$0xff] }
 0x128   : > { %3514 = vmatprep.subr.mxu1 %v6014_v41  ;;  %v3017_v56 = vpop.f32.mrf.mxu0  ;;  %1593 = vmatmul.mubr.f32.gmra.mxu0 %v2771_v36  ;;  %v3069_v32 = vadd.f32 %v3068_v12, %v3067_v4  ;;  %7221 = vst [vmem:[#allocation31_spill] sm:$0xff] %v6020_v45  ;;  %7222 = vst [vmem:[#allocation32_spill] sm:$0xff] %v6026_v27  ;;  %v2781_v41 = vld [vmem:[%s4577_s7 + $0x518] sm:$0xff]  ;;  %v2783_v36 = vld [vmem:[%s4577_s7 + $0x528] sm:$0xff] }
 0x129   : > { %1693 = vmatmul.mubr.f32.gmra.mxu1 %v2773_v22  ;;  %3464 = vmatpush3.msra.mxu0 %v6020_v45  ;;  %v6034_v4 = vld [vmem:[%s6870_s1 + $0x2b8] sm:$0xff]  ;;  %v6040_v12 = vld [vmem:[%s6870_s1 + $0x3c0] sm:$0xff] }
 0x12a   : > { %3515 = vmatpush3.msra.mxu1 %v6026_v27  ;;  %v3018_v22 = vpop.f32.mrf.mxu0  ;;  %7223 = vst [vmem:[#allocation33_spill] sm:$0xff] %v6034_v4  ;;  %3465 = vmatprep.subr.mxu0 %v6034_v4  ;;  %7224 = vst [vmem:[#allocation35_spill] sm:$0xff] %v6040_v12  ;;  %v6043_v52 = vadd.f32 %v3069_v32, %v650_v29  ;;  %v6048_v27 = vld [vmem:[%s6870_s1 + $0x238] sm:$0xff]  ;;  %v6054_v4 = vld [vmem:[%s6870_s1 + $0x340] sm:$0xff] }
 0x12b   : > { %3516 = vmatprep.subr.mxu1 %v6040_v12  ;;  %v3019_v45 = vadd.f32 %v3018_v22, %v3017_v56  ;;  %7225 = vst [vmem:[#allocation37_spill] sm:$0xff] %v6048_v27  ;;  %3466 = vmatpush3.msra.mxu0 %v6048_v27  ;;  %7226 = vst [vmem:[#allocation39_spill] sm:$0xff] %v6054_v4  ;;  %v3070_v12 = vpop.f32.mrf.mxu1  ;;  %v6063_v56 = vld [vmem:[%s6870_s1 + $0x2b0] sm:$0xff]  ;;  %v6069_v32 = vld [vmem:[%s6870_s1 + $0x3b8] sm:$0xff] }
 0x12c   : > { %3517 = vmatpush3.msra.mxu1 %v6054_v4  ;;  %1597 = vmatprep.mubr.f32.mxu0 %v2781_v41  ;;  %7227 = vst [vmem:[#allocation41_spill] sm:$0xff] %v6063_v56  ;;  %7228 = vst [vmem:[#allocation43_spill] sm:$0xff] %v6069_v32  ;;  %v2791_v27 = vld [vmem:[%s4577_s7 + $0x568] sm:$0xff] }
 0x12d   : > { %1697 = vmatprep.mubr.f32.mxu1 %v2783_v36  ;;  %v655_v29 = vadd.f32 %v3019_v45, %v5667_v33  ;;  %3467 = vmatprep.subr.mxu0 %v6063_v56  ;;  %v3071_v22 = vpop.f32.mrf.mxu1  ;;  %v6075_v33 = vld [vmem:[%s6870_s1 + $0x230] sm:$0xff]  ;;  %v6081_v45 = vld [vmem:[%s6870_s1 + $0x338] sm:$0xff] }
 0x12e   : > { %3518 = vmatprep.subr.mxu1 %v6069_v32  ;;  %v3020_v41 = vpop.f32.mrf.mxu0  ;;  %1598 = vmatmul.mubr.f32.gmra.mxu0 %v2780_v38  ;;  %v3072_v36 = vadd.f32 %v3071_v22, %v3070_v12  ;;  %7229 = vst [vmem:[#allocation45_spill] sm:$0xff] %v6075_v33  ;;  %7230 = vst [vmem:[#allocation47_spill] sm:$0xff] %v6081_v45  ;;  %v2790_v32 = vld [vmem:[%s4577_s7 + $0x560] sm:$0xff]  ;;  %v2792_v38 = vld [vmem:[%s4577_s7 + $0x570] sm:$0xff] }
 0x12f   : > { %1698 = vmatmul.mubr.f32.gmra.mxu1 %v2782_v2  ;;  %3468 = vmatpush3.msra.mxu0 %v6075_v33  ;;  %v6089_v12 = vld [vmem:[%s6870_s1 + $0x2a8] sm:$0xff]  ;;  %v6095_v22 = vld [vmem:[%s6870_s1 + $0x3b0] sm:$0xff]  ;;  %v2789_v56 = vld [vmem:[%s4577_s7 + $0x558] sm:$0xff] }
 0x130   : > { %3519 = vmatpush3.msra.mxu1 %v6081_v45  ;;  %v3021_v2 = vpop.f32.mrf.mxu0  ;;  %7231 = vst [vmem:[#allocation49_spill] sm:$0xff] %v6089_v12  ;;  %3469 = vmatprep.subr.mxu0 %v6089_v12  ;;  %7232 = vst [vmem:[#allocation51_spill] sm:$0xff] %v6095_v22  ;;  %v6098_v33 = vadd.f32 %v3072_v36, %v655_v29  ;;  %v6103_v45 = vld [vmem:[%s6870_s1 + $0x228] sm:$0xff]  ;;  %v6109_v12 = vld [vmem:[%s6870_s1 + $0x330] sm:$0xff] }
 0x131   : > { %3520 = vmatprep.subr.mxu1 %v6095_v22  ;;  %v3022_v4 = vadd.f32 %v3021_v2, %v3020_v41  ;;  %7233 = vst [vmem:[#allocation53_spill] sm:$0xff] %v6103_v45  ;;  %3470 = vmatpush3.msra.mxu0 %v6103_v45  ;;  %7234 = vst [vmem:[#allocation55_spill] sm:$0xff] %v6109_v12  ;;  %v3073_v22 = vpop.f32.mrf.mxu1  ;;  %v6118_v41 = vld [vmem:[%s6870_s1 + $0x2a0] sm:$0xff]  ;;  %v6124_v36 = vld [vmem:[%s6870_s1 + $0x3a8] sm:$0xff] }
 0x132   : > { %3521 = vmatpush3.msra.mxu1 %v6109_v12  ;;  %1602 = vmatprep.mubr.f32.mxu0 %v2790_v32  ;;  %7235 = vst [vmem:[#allocation57_spill] sm:$0xff] %v6118_v41  ;;  %7236 = vst [vmem:[#allocation59_spill] sm:$0xff] %v6124_v36  ;;  %v2800_v45 = vld [vmem:[%s4577_s7 + $0x5b0] sm:$0x1] }
 0x133   : > { %1702 = vmatprep.mubr.f32.mxu1 %v2792_v38  ;;  %v660_v29 = vadd.f32 %v3022_v4, %v5722_v20  ;;  %3471 = vmatprep.subr.mxu0 %v6118_v41  ;;  %v3074_v2 = vpop.f32.mrf.mxu1  ;;  %v6130_v20 = vld [vmem:[%s6870_s1 + $0x220] sm:$0xff]  ;;  %v6136_v4 = vld [vmem:[%s6870_s1 + $0x328] sm:$0xff] }
 0x134   : > { %3522 = vmatprep.subr.mxu1 %v6124_v36  ;;  %v3023_v32 = vpop.f32.mrf.mxu0  ;;  %1603 = vmatmul.mubr.f32.gmra.mxu0 %v2789_v56  ;;  %v3075_v38 = vadd.f32 %v3074_v2, %v3073_v22  ;;  %7237 = vst [vmem:[#allocation61_spill] sm:$0xff] %v6130_v20  ;;  %7238 = vst [vmem:[#allocation63_spill] sm:$0xff] %v6136_v4  ;;  %v2799_v36 = vld [vmem:[%s4577_s7 + $0x5a8] sm:$0x1]  ;;  %v2801_v56 = vld [vmem:[%s4577_s7 + $0x5b8] sm:$0x1] }
 0x135   : > { %1703 = vmatmul.mubr.f32.gmra.mxu1 %v2791_v27  ;;  %3472 = vmatpush3.msra.mxu0 %v6130_v20  ;;  %v6144_v22 = vld [vmem:[%s6870_s1 + $0x298] sm:$0xff]  ;;  %v6150_v2 = vld [vmem:[%s6870_s1 + $0x3a0] sm:$0xff] }
 0x136   : > { %3523 = vmatpush3.msra.mxu1 %v6136_v4  ;;  %v3024_v27 = vpop.f32.mrf.mxu0  ;;  %7239 = vst [vmem:[#allocation65_spill] sm:$0xff] %v6144_v22  ;;  %3473 = vmatprep.subr.mxu0 %v6144_v22  ;;  %7240 = vst [vmem:[#allocation67_spill] sm:$0xff] %v6150_v2  ;;  %v6153_v20 = vadd.f32 %v3075_v38, %v660_v29  ;;  %v6158_v4 = vld [vmem:[%s6870_s1 + $0x218] sm:$0xff]  ;;  %v6164_v22 = vld [vmem:[%s6870_s1 + $0x320] sm:$0xff] }
 0x137   : > { %3524 = vmatprep.subr.mxu1 %v6150_v2  ;;  %v3025_v12 = vadd.f32 %v3024_v27, %v3023_v32  ;;  %7241 = vst [vmem:[#allocation69_spill] sm:$0xff] %v6158_v4  ;;  %3474 = vmatpush3.msra.mxu0 %v6158_v4  ;;  %7242 = vst [vmem:[#allocation71_spill] sm:$0xff] %v6164_v22  ;;  %v2798_v41 = vld [vmem:[%s4577_s7 + $0x5a0] sm:$0x1]  ;;  %v3076_v2 = vpop.f32.mrf.mxu1  ;;  %v6173_v32 = vld [vmem:[%s6870_s1 + $0x290] sm:$0xff] }
 0x138   : > { %3525 = vmatpush3.msra.mxu1 %v6164_v22  ;;  %1607 = vmatprep.mubr.f32.mxu0 %v2799_v36  ;;  %7243 = vst [vmem:[#allocation72_spill] sm:$0xff] %v6173_v32  ;;  %v6179_v38 = vld [vmem:[%s6870_s1 + $0x398] sm:$0xff] }
 0x139   : > { %1707 = vmatprep.mubr.f32.mxu1 %v2801_v56  ;;  %v665_v29 = vadd.f32 %v3025_v12, %v5781_v26  ;;  %3475 = vmatprep.subr.mxu0 %v6173_v32  ;;  %7244 = vst [vmem:[#allocation73_spill] sm:$0xff] %v6179_v38  ;;  %v3077_v36 = vpop.f32.mrf.mxu1  ;;  %v6185_v12 = vld [vmem:[%s6870_s1 + $0x210] sm:$0xff]  ;;  %v6191_v56 = vld [vmem:[%s6870_s1 + $0x318] sm:$0xff]  ;;  %v6245_v32 = vld [vmem:[%s6870_s1 + $0x308] sm:$0xff] }
 0x13a   : > { %3526 = vmatprep.subr.mxu1 %v6179_v38  ;;  %v3026_v27 = vpop.f32.mrf.mxu0  ;;  %1608 = vmatmul.mubr.f32.gmra.mxu0 %v2798_v41  ;;  %v3078_v26 = vadd.f32 %v3077_v36, %v3076_v2  ;;  %7245 = vst [vmem:[#allocation74_spill] sm:$0xff] %v6185_v12  ;;  %7246 = vst [vmem:[#allocation75_spill] sm:$0xff] %v6191_v56  ;;  %v6203_v41 = vld [vmem:[%s6870_s1 + $0x390] sm:$0xff]  ;;  %v2749_v2 = vld [vmem:[%s4577_s7 + $0x418] sm:$0xff] }
 0x13b   : > { %1708 = vmatmul.mubr.f32.gmra.mxu1 %v2800_v45  ;;  %3476 = vmatpush3.msra.mxu0 %v6185_v12  ;;  %v6197_v45 = vld [vmem:[%s6870_s1 + $0x288] sm:$0xff]  ;;  %7248 = vst [vmem:[#allocation77_spill] sm:$0xff] %v6203_v41  ;;  %7254 = vst [vmem:[#allocation83_spill] sm:$0xff] %v6245_v32 }
 0x13c   : > { %3527 = vmatpush3.msra.mxu1 %v6191_v56  ;;  %v3027_v38 = vpop.f32.mrf.mxu0  ;;  %7247 = vst [vmem:[#allocation76_spill] sm:$0xff] %v6197_v45  ;;  %3477 = vmatprep.subr.mxu0 %v6197_v45  ;;  %v6207_v22 = vadd.f32 %v3078_v26, %v665_v29  ;;  %v6212_v56 = vld [vmem:[%s6870_s1 + $0x208] sm:$0xff]  ;;  %v6218_v45 = vld [vmem:[%s6870_s1 + $0x310] sm:$0xff]  ;;  %v6225_v29 = vld [vmem:[%s6870_s1 + $0x280] sm:$0xff] }
 0x13d   : > { %3528 = vmatprep.subr.mxu1 %v6203_v41  ;;  %v3028_v36 = vadd.f32 %v3027_v38, %v3026_v27  ;;  %7249 = vst [vmem:[#allocation78_spill] sm:$0xff] %v6212_v56  ;;  %3478 = vmatpush3.msra.mxu0 %v6212_v56  ;;  %7250 = vst [vmem:[#allocation79_spill] sm:$0xff] %v6218_v45  ;;  %v2748_v41 = vld [vmem:[%s4577_s7 + $0x410] sm:$0xff]  ;;  %v3079_v38 = vpop.f32.mrf.mxu1  ;;  %v6231_v27 = vld [vmem:[%s6870_s1 + $0x388] sm:$0xff] }
 0x13e   : > { %3529 = vmatpush3.msra.mxu1 %v6218_v45  ;;  %7251 = vst [vmem:[#allocation80_spill] sm:$0xff] %v6225_v29  ;;  %3479 = vmatprep.subr.mxu0 %v6225_v29  ;;  %7252 = vst [vmem:[#allocation81_spill] sm:$0xff] %v6231_v27  ;;  %v6238_v45 = vld [vmem:[%s6870_s1 + $0x200] sm:$0xff]  ;;  %v2751_v56 = vld [vmem:[%s4577_s7 + $0x428] sm:$0xff] }
 0x13f   : > { %3530 = vmatprep.subr.mxu1 %v6231_v27  ;;  %v670_v26 = vadd.f32 %v3028_v36, %v5829_v15  ;;  %7253 = vst [vmem:[#allocation82_spill] sm:$0xff] %v6238_v45  ;;  %3480 = vmatpush3.msra.mxu0 %v6238_v45  ;;  %v3080_v12 = vpop.f32.mrf.mxu1  ;;  %v2750_v15 = vld [vmem:[%s4577_s7 + $0x420] sm:$0xff] }
 0x140   : > { %1777 = vmatprep.mubr.f32.mxu0 %v2749_v2  ;;  %v3029_v29 = vpop.f32.mrf.mxu0  ;;  %3531 = vmatpush3.msra.mxu1 %v6245_v32  ;;  %v3081_v36 = vadd.f32 %v3080_v12, %v3079_v38  ;;  %v6252_v27 = vld [vmem:[%s6870_s1 + $0x380] sm:$0xff]  ;;  %v2757_v32 = vld [vmem:[%s4577_s7 + $0x458] sm:$0xff] }
 0x141   : > { %1778 = vmatmul.mubr.f32.vlgmr.msra.gmra.mxu0 %v2748_v41  ;;  %7255 = vst [vmem:[#allocation84_spill] sm:$0xff] %v6252_v27  ;;  %3532 = vmatprep.subr.mxu1 %v6252_v27  ;;  %v6259_v45 = vld [vmem:[%s6870_s1 + $0x300] sm:$0xff]  ;;  %v6268_v27 = vld [vmem:[%s6870_s1 + $0x478] sm:$0xff] }
 0x142   : > { %3919 = vmatprep.subr.mxu0 %v7192_v50  ;;  %v3030_v2 = vpop.f32.mrf.mxu0  ;;  %3533 = vmatpush3.msra.mxu1 %v6259_v45  ;;  %v2758_v12 = vld [vmem:[%s4577_s7 + $0x460] sm:$0xff]  ;;  %v6263_v38 = vadd.f32 %v3081_v36, %v670_v26  ;;  %v2760_v26 = vld [vmem:[%s4577_s7 + $0x470] sm:$0xff] }
 0x143   : > { %1877 = vmatprep.mubr.f32.mxu1 %v2751_v56  ;;  %v3031_v41 = vadd.f32 %v3030_v2, %v3029_v29  ;;  %3920 = vmatpush3.msra.mxu0 %v6268_v27  ;;  %v3082_v4 = vpop.f32.mrf.mxu1  ;;  %v6278_v29 = vld [vmem:[%s6870_s1 + $0x470] sm:$0xff]  ;;  %v2767_v2 = vld [vmem:[%s4577_s7 + $0x4a8] sm:$0xff] }
 0x144   : > { %1878 = vmatmul.mubr.f32.vlgmr.msra.gmra.mxu1 %v2750_v15  ;;  %3921 = vmatprep.subr.mxu0 %v7192_v50 }
 0x145   : > { %3578 = vmatprep.subr.mxu1 %v5404_v46  ;;  %v675_v56 = vadd.f32 %v3031_v41, %v5895_v48  ;;  %1782 = vmatprep.mubr.f32.mxu0 %v2758_v12  ;;  %v3083_v15 = vpop.f32.mrf.mxu1  ;;  %v2759_v46 = vld [vmem:[%s4577_s7 + $0x468] sm:$0xff] }
 0x146   : > { %3922 = vmatpush3.msra.mxu0 %v6278_v29  ;;  %3579 = vmatpush3.msra.mxu1 %v5417_v58  ;;  %v3084_v36 = vadd.f32 %v3083_v15, %v3082_v4  ;;  %v6289_v48 = vld [vmem:[%s6870_s1 + $0x468] sm:$0xff]  ;;  %v2766_v58 = vld [vmem:[%s4577_s7 + $0x4a0] sm:$0xff]  ;;  %v2776_v15 = vld [vmem:[%s4577_s7 + $0x4f0] sm:$0xff] }
 0x147   : > { %1783 = vmatmul.mubr.f32.gmra.mxu0 %v2757_v32  ;;  %3923 = vmatprep.subr.mxu0 %v7192_v50  ;;  %v6305_v32 = vld [vmem:[%s6870_s1 + $0x460] sm:$0xff] }
 0x148   : > { %3580 = vmatprep.subr.mxu1 %v5430_v61  ;;  %1882 = vmatprep.mubr.f32.mxu1 %v2760_v26  ;;  %v6293_v12 = vadd.f32 %v3084_v36, %v675_v56  ;;  %v6316_v26 = vld [vmem:[%s6870_s1 + $0x458] sm:$0xff] }
 0x149   : > { %3924 = vmatpush3.msra.mxu0 %v6289_v48  ;;  %3581 = vmatpush3.msra.mxu1 %v5442_v35  ;;  %v2769_v35 = vld [vmem:[%s4577_s7 + $0x4b8] sm:$0xff] }
 0x14a   : > { %3925 = vmatprep.subr.mxu0 %v7192_v50  ;;  %v844_v61 = vpop.f32.mrf.mxu0  ;;  %1883 = vmatmul.mubr.f32.gmra.mxu1 %v2759_v46 }
 0x14b   : > { %3582 = vmatprep.subr.mxu1 %v5454_v25  ;;  %v6300_v4 = vadd.f32 %v844_v61, %v5962_v6  ;;  %1787 = vmatprep.mubr.f32.mxu0 %v2767_v2  ;;  %v2768_v25 = vld [vmem:[%s4577_s7 + $0x4b0] sm:$0xff]  ;;  %v2785_v61 = vld [vmem:[%s4577_s7 + $0x538] sm:$0xff] }
 0x14c   : > { %3926 = vmatpush3.msra.mxu0 %v6305_v32  ;;  %v3847_v41 = vpop.f32.mrf.mxu0  ;;  %v3140_v56 = vpop.f32.mrf.mxu1  ;;  %3583 = vmatpush3.msra.mxu1 %v5467_v43  ;;  %v2775_v43 = vld [vmem:[%s4577_s7 + $0x4e8] sm:$0xff]  ;;  %v6332_v2 = vld [vmem:[%s6870_s1 + $0x450] sm:$0xff] }
 0x14d   : > { %1788 = vmatmul.mubr.f32.gmra.mxu0 %v2766_v58  ;;  %3927 = vmatprep.subr.mxu0 %v7192_v50 }
 0x14e   : > { %3584 = vmatprep.subr.mxu1 %v5479_v37  ;;  %v3141_v6 = vpop.f32.mrf.mxu1  ;;  %1887 = vmatprep.mubr.f32.mxu1 %v2769_v35 }
 0x14f   : > { %3928 = vmatpush3.msra.mxu0 %v6316_v26  ;;  %v6320_v36 = vadd.f32 %v3141_v6, %v3140_v56  ;;  %3585 = vmatpush3.msra.mxu1 %v5495_v39  ;;  %v2778_v39 = vld [vmem:[%s4577_s7 + $0x500] sm:$0xff] }
 0x150   : > { %3929 = vmatprep.subr.mxu0 %v7192_v50  ;;  %v849_v37 = vpop.f32.mrf.mxu0  ;;  %1888 = vmatmul.mubr.f32.gmra.mxu1 %v2768_v25  ;;  %v6357_v25 = vld [vmem:[%s6870_s1 + $0x440] sm:$0xff] }
 0x151   : > { %3586 = vmatprep.subr.mxu1 %v5507_v30  ;;  %v6327_v46 = vadd.f32 %v849_v37, %v6043_v52  ;;  %1792 = vmatprep.mubr.f32.mxu0 %v2776_v15  ;;  %v2777_v30 = vld [vmem:[%s4577_s7 + $0x4f8] sm:$0xff]  ;;  %v6343_v52 = vld [vmem:[%s6870_s1 + $0x448] sm:$0xff] }
 0x152   : > { %3930 = vmatpush3.msra.mxu0 %v6332_v2  ;;  %v3850_v58 = vpop.f32.mrf.mxu0  ;;  %3587 = vmatpush3.msra.mxu1 %v5520_v34  ;;  %v2784_v34 = vld [vmem:[%s4577_s7 + $0x530] sm:$0xff]  ;;  %v6370_v15 = vld [vmem:[%s6870_s1 + $0x438] sm:$0xff] }
 0x153   : > { %1793 = vmatmul.mubr.f32.gmra.mxu0 %v2775_v43  ;;  %3931 = vmatprep.subr.mxu0 %v7192_v50  ;;  %v2794_v43 = vld [vmem:[%s4577_s7 + $0x580] sm:$0xff] }
 0x154   : > { %3588 = vmatprep.subr.mxu1 %v5534_v40  ;;  %1892 = vmatprep.mubr.f32.mxu1 %v2778_v39 }
 0x155   : > { %3932 = vmatpush3.msra.mxu0 %v6343_v52  ;;  %v854_v35 = vpop.f32.mrf.mxu0  ;;  %3589 = vmatpush3.msra.mxu1 %v5550_v0  ;;  %v2787_v0 = vld [vmem:[%s4577_s7 + $0x548] sm:$0xff] }
 0x156   : > { %3933 = vmatprep.subr.mxu0 %v7192_v50  ;;  %v6351_v40 = vadd.f32 %v854_v35, %v6098_v33  ;;  %1893 = vmatmul.mubr.f32.gmra.mxu1 %v2777_v30  ;;  %v6384_v30 = vld [vmem:[%s6870_s1 + $0x430] sm:$0xff]  ;;  %v6397_v35 = vld [vmem:[%s6870_s1 + $0x428] sm:$0xff] }
 0x157   : > { %3590 = vmatprep.subr.mxu1 %v5562_v1  ;;  %v3853_v41 = vpop.f32.mrf.mxu0  ;;  %v3143_v56 = vpop.f32.mrf.mxu1  ;;  %1797 = vmatprep.mubr.f32.mxu0 %v2785_v61  ;;  %v2786_v1 = vld [vmem:[%s4577_s7 + $0x540] sm:$0xff] }
 0x158   : > { %3934 = vmatpush3.msra.mxu0 %v6357_v25  ;;  %3591 = vmatpush3.msra.mxu1 %v5575_v5 }
 0x159   : > { %1798 = vmatmul.mubr.f32.gmra.mxu0 %v2784_v34  ;;  %v3144_v33 = vpop.f32.mrf.mxu1  ;;  %3935 = vmatprep.subr.mxu0 %v7192_v50  ;;  %v2803_v34 = vld [vmem:[%s4577_s7 + $0x5c8] sm:$0x1] }
 0x15a   : > { %3592 = vmatprep.subr.mxu1 %v5587_v11  ;;  %v6365_v6 = vadd.f32 %v3144_v33, %v3143_v56  ;;  %1897 = vmatprep.mubr.f32.mxu1 %v2787_v0  ;;  %v2793_v11 = vld [vmem:[%s4577_s7 + $0x578] sm:$0xff]  ;;  %v6411_v33 = vld [vmem:[%s6870_s1 + $0x420] sm:$0xff] }
 0x15b   : > { %3936 = vmatpush3.msra.mxu0 %v6370_v15  ;;  %v859_v5 = vpop.f32.mrf.mxu0  ;;  %3593 = vmatpush3.msra.mxu1 %v5603_v19  ;;  %v2796_v19 = vld [vmem:[%s4577_s7 + $0x590] sm:$0xff] }
 0x15c   : > { %3937 = vmatprep.subr.mxu0 %v7192_v50  ;;  %v6378_v37 = vadd.f32 %v859_v5, %v6153_v20  ;;  %1898 = vmatmul.mubr.f32.gmra.mxu1 %v2786_v1 }
 0x15d   : > { %3594 = vmatprep.subr.mxu1 %v5617_v49  ;;  %v3856_v39 = vpop.f32.mrf.mxu0  ;;  %v3146_v58 = vpop.f32.mrf.mxu1  ;;  %1802 = vmatprep.mubr.f32.mxu0 %v2794_v43  ;;  %v2795_v49 = vld [vmem:[%s4577_s7 + $0x588] sm:$0xff]  ;;  %v6424_v43 = vld [vmem:[%s6870_s1 + $0x418] sm:$0xff] }
 0x15e   : > { %3938 = vmatpush3.msra.mxu0 %v6384_v30  ;;  %3595 = vmatpush3.msra.mxu1 %v5630_v44  ;;  %v6436_v39 = vld [vmem:[%s6870_s1 + $0x410] sm:$0xff] }
 0x15f   : > { %1803 = vmatmul.mubr.f32.gmra.mxu0 %v2793_v11  ;;  %v3147_v20 = vpop.f32.mrf.mxu1  ;;  %3939 = vmatprep.subr.mxu0 %v7192_v50 }
 0x160   : > { %3596 = vmatprep.subr.mxu1 %v5642_v16  ;;  %v6392_v61 = vadd.f32 %v3147_v20, %v3146_v58  ;;  %1902 = vmatprep.mubr.f32.mxu1 %v2796_v19  ;;  %v2802_v16 = vld [vmem:[%s4577_s7 + $0x5c0] sm:$0x1]  ;;  %v2808_v19 = vld [vmem:[%s4577_s7 + $0x5f0] sm:$0xff] }
 0x161   : > { %3940 = vmatpush3.msra.mxu0 %v6397_v35  ;;  %v864_v44 = vpop.f32.mrf.mxu0  ;;  %3597 = vmatpush3.msra.mxu1 %v5658_v28  ;;  %v2805_v28 = vld [vmem:[%s4577_s7 + $0x5d8] sm:$0x1] }
 0x162   : > { %3941 = vmatprep.subr.mxu0 %v7192_v50  ;;  %v6405_v41 = vadd.f32 %v864_v44, %v6207_v22  ;;  %1903 = vmatmul.mubr.f32.gmra.mxu1 %v2795_v49  ;;  %v2807_v49 = vld [vmem:[%s4577_s7 + $0x5e8] sm:$0xff] }
 0x163   : > { %3598 = vmatprep.subr.mxu1 %v5672_v54  ;;  %v3859_v56 = vpop.f32.mrf.mxu0  ;;  %v3149_v0 = vpop.f32.mrf.mxu1  ;;  %1807 = vmatprep.mubr.f32.mxu0 %v2803_v34  ;;  %v2804_v54 = vld [vmem:[%s4577_s7 + $0x5d0] sm:$0x1]  ;;  %v7260_v44 = vld [vmem:[#allocation3_spill] sm:$0xff] }
 0x164   : > { %3942 = vmatpush3.msra.mxu0 %v6411_v33  ;;  %3599 = vmatpush3.msra.mxu1 %v5685_v7  ;;  %v7261_v56 = vld [vmem:[#allocation18_spill] sm:$0xff] }
 0x165   : > { %1808 = vmatmul.mubr.f32.gmra.mxu0 %v2802_v16  ;;  %v3150_v1 = vpop.f32.mrf.mxu1  ;;  %3943 = vmatprep.subr.mxu0 %v7192_v50 }
 0x166   : > { %3600 = vmatprep.subr.mxu1 %v5697_v17  ;;  %v6419_v22 = vadd.f32 %v3150_v1, %v3149_v0  ;;  %1907 = vmatprep.mubr.f32.mxu1 %v2805_v28  ;;  %v7262_v0 = vld [vmem:[#allocation36_spill] sm:$0xff]  ;;  %v2779_v28 = vld [vmem:[%s4577_s7 + $0x508] sm:$0xff] }
 0x167   : > { %3944 = vmatpush3.msra.mxu0 %v6424_v43  ;;  %v869_v5 = vpop.f32.mrf.mxu0  ;;  %3601 = vmatpush3.msra.mxu1 %v5713_v51 }
 0x168   : > { %3945 = vmatprep.subr.mxu0 %v7192_v50  ;;  %v6430_v7 = vadd.f32 %v869_v5, %v6263_v38  ;;  %1908 = vmatmul.mubr.f32.gmra.mxu1 %v2804_v54  ;;  %v2752_v38 = vld [vmem:[%s4577_s7 + $0x430] sm:$0xff]  ;;  %v7263_v5 = vld [vmem:[#allocation19_spill] sm:$0xff] }
 0x169   : > { %3602 = vmatprep.subr.mxu1 %v5727_v42  ;;  %v3862_v17 = vpop.f32.mrf.mxu0  ;;  %v3152_v11 = vpop.f32.mrf.mxu1  ;;  %3946 = vmatpush3.msra.mxu0 %v6436_v39  ;;  %v6445_v42 = vld [vmem:[%s6870_s1 + $0x408] sm:$0xff] }
 0x16a   : > { %3603 = vmatpush3.msra.mxu1 %v5739_v3  ;;  %3947 = vmatprep.subr.mxu0 %v7192_v50 }
 0x16b   : > { %3604 = vmatprep.subr.mxu1 %v5751_v47  ;;  %v3153_v51 = vpop.f32.mrf.mxu1  ;;  %3948 = vmatpush3.msra.mxu0 %v6445_v42  ;;  %v6457_v47 = vld [vmem:[%s6870_s1 + $0x400] sm:$0xff] }
 0x16c   : > { %3605 = vmatpush3.msra.mxu1 %v5766_v18  ;;  %v6450_v58 = vadd.f32 %v3153_v51, %v3152_v11  ;;  %3949 = vmatprep.subr.mxu0 %v7192_v50  ;;  %v7264_v11 = vld [vmem:[#allocation4_spill] sm:$0xff]  ;;  %v2826_v51 = vld [vmem:[%s4577_s7 + $0x680] sm:$0xff] }
 0x16d   : > { %3606 = vmatprep.subr.mxu1 %v5778_v24  ;;  %v874_v3 = vpop.f32.mrf.mxu0  ;;  %3950 = vmatpush3.msra.mxu0 %v6457_v47 }
 0x16e   : > { %3951 = vmatprep.mubr.msk.f32.mxu0 %vm4190_vm0, %v7192_v50  ;;  %v6463_v18 = vadd.f32 %v874_v3, %v6293_v12  ;;  %3607 = vmatpush3.msra.mxu1 %v5793_v9  ;;  %v2761_v12 = vld [vmem:[%s4577_s7 + $0x478] sm:$0xff]  ;;  %v7265_v3 = vld [vmem:[#allocation20_spill] sm:$0xff] }
 0x16f   : > { %3952 = vmatmul.mubr.f32.vlgmr.msra.gmra.mxu0 %v2752_v38  ;;  %v3155_v24 = vpop.f32.mrf.mxu1  ;;  %v3865_v20 = vpop.f32.mrf.mxu0  ;;  %3608 = vmatprep.subr.mxu1 %v5806_v60  ;;  %v2817_v60 = vld [vmem:[%s4577_s7 + $0x638] sm:$0xff] }
 0x170   : > { %3631 = vmatprep.subr.mxu0 %v5410_v57  ;;  %3609 = vmatpush3.msra.mxu1 %v5820_v31  ;;  %v2825_v20 = vld [vmem:[%s4577_s7 + $0x678] sm:$0xff] }
 0x171   : > { %3632 = vmatpush3.msra.mxu0 %v5423_v59  ;;  %v3156_v34 = vpop.f32.mrf.mxu1  ;;  %2148 = vmatprep.mubr.f32.mxu1 %v2808_v19 }
 0x172   : > { %3633 = vmatprep.subr.mxu0 %v5436_v62  ;;  %v6474_v9 = vadd.f32 %v3156_v34, %v3155_v24  ;;  %3684 = vmatprep.subr.mxu1 %v5834_v10  ;;  %v2770_v62 = vld [vmem:[%s4577_s7 + $0x4c0] sm:$0xff]  ;;  %v7268_v34 = vld [vmem:[#allocation5_spill] sm:$0xff] }
 0x173   : > { %3954 = vmatprep.mubr.msk.f32.mxu0 %vm4190_vm0, %v7192_v50  ;;  %2149 = vmatmul.mubr.f32.vlgmr.msra.gmra.mxu1 %v2807_v49  ;;  %v7257_v10 = vld [vmem:[#allocation62_spill] sm:$0xff] }
 0x174   : > { %3634 = vmatpush3.msra.mxu0 %v5448_v63  ;;  %v3158_v57 = vpop.f32.mrf.mxu1  ;;  %3685 = vmatpush3.msra.mxu1 %v5846_v21  ;;  %v7258_v21 = vld [vmem:[#allocation34_spill] sm:$0xff] }
 0x175   : > { %3955 = vmatmul.mubr.f32.gmra.mxu0 %v2761_v12  ;;  %3635 = vmatprep.subr.mxu0 %v5460_v53  ;;  %v7256_v53 = vld [vmem:[#allocation2_spill] sm:$0xff] }
 0x176   : > { %3686 = vmatprep.subr.mxu1 %v5859_v8  ;;  %v3159_v59 = vpop.f32.mrf.mxu1  ;;  %3636 = vmatpush3.msra.mxu0 %v5473_v23  ;;  %v7259_v8 = vld [vmem:[#allocation17_spill] sm:$0xff]  ;;  %v7266_v24 = vld [vmem:[#allocation38_spill] sm:$0xff] }
 0x177   : > { %3687 = vmatpush3.msra.mxu1 %v5872_v13  ;;  %v6486_v31 = vadd.f32 %v3159_v59, %v3158_v57  ;;  %3637 = vmatprep.subr.mxu0 %v5485_v14  ;;  %v2816_v14 = vld [vmem:[%s4577_s7 + $0x630] sm:$0xff]  ;;  %v7269_v57 = vld [vmem:[#allocation23_spill] sm:$0xff] }
 0x178   : > { %3688 = vmatprep.subr.mxu1 %v5884_v55  ;;  %v3193_v63 = vpop.f32.mrf.mxu0  ;;  %3957 = vmatprep.mubr.msk.f32.mxu0 %vm4190_vm0, %v7192_v50  ;;  %v7270_v59 = vld [vmem:[#allocation40_spill] sm:$0xff] }
 0x179   : > { %3638 = vmatpush3.msra.mxu0 %v7256_v53  ;;  %3689 = vmatpush3.msra.mxu1 %v7257_v10  ;;  %v7271_v53 = vld [vmem:[#allocation25_spill] sm:$0xff] }
 0x17a   : > { %3958 = vmatmul.mubr.f32.gmra.mxu0 %v2770_v62  ;;  %v3194_v23 = vpop.f32.mrf.mxu0  ;;  %v3246_v13 = vpop.f32.mrf.mxu1  ;;  %3639 = vmatprep.subr.mxu0 %v7258_v21  ;;  %v2788_v62 = vld [vmem:[%s4577_s7 + $0x550] sm:$0xff] }
 0x17b   : > { %3690 = vmatprep.subr.mxu1 %v7259_v8  ;;  %v3195_v55 = vadd.f32 %v3194_v23, %v3193_v63  ;;  %2153 = vmatprep.mubr.f32.mxu1 %v2817_v60  ;;  %v7272_v23 = vld [vmem:[#allocation6_spill] sm:$0xff]  ;;  %v7273_v8 = vld [vmem:[#allocation27_spill] sm:$0xff] }
 0x17c   : > { %3640 = vmatpush3.msra.mxu0 %v7260_v44  ;;  %v3247_v16 = vpop.f32.mrf.mxu1  ;;  %3691 = vmatpush3.msra.mxu1 %v7261_v56  ;;  %v2834_v44 = vld [vmem:[%s4577_s7 + $0x6c0] sm:$0xff] }
 0x17d   : > { %3641 = vmatprep.subr.mxu0 %v7262_v0  ;;  %v1109_v1 = vadd.f32 %v3195_v55, %v6320_v36  ;;  %v3248_v54 = vadd.f32 %v3247_v16, %v3246_v13  ;;  %2154 = vmatmul.mubr.f32.gmra.mxu1 %v2816_v14  ;;  %v7267_v36 = vld [vmem:[#allocation21_spill] sm:$0xff]  ;;  %v2835_v13 = vld [vmem:[%s4577_s7 + $0x6c8] sm:$0xff]  ;;  %v7274_v55 = vld [vmem:[#allocation42_spill] sm:$0xff] }
 0x17e   : > { %3692 = vmatprep.subr.mxu1 %v7263_v5  ;;  %v3196_v17 = vpop.f32.mrf.mxu0  ;;  %3960 = vmatprep.mubr.msk.f32.mxu0 %vm4190_vm0, %v7192_v50  ;;  %v7276_v0 = vld [vmem:[#allocation7_spill] sm:$0xff]  ;;  %v2797_v5 = vld [vmem:[%s4577_s7 + $0x598] sm:$0xff] }
 0x17f   : > { %3642 = vmatpush3.msra.mxu0 %v7264_v11  ;;  %v6508_v38 = vadd.f32 %v3248_v54, %v1109_v1  ;;  %3693 = vmatpush3.msra.mxu1 %v7265_v3  ;;  %v7277_v1 = vld [vmem:[#allocation31_spill] sm:$0xff]  ;;  %v7278_v54 = vld [vmem:[#allocation44_spill] sm:$0xff]  ;;  %v7279_v11 = vld [vmem:[#allocation33_spill] sm:$0xff] }
 0x180   : > { %3961 = vmatmul.mubr.f32.gmra.mxu0 %v2779_v28  ;;  %v3197_v19 = vpop.f32.mrf.mxu0  ;;  %3643 = vmatprep.subr.mxu0 %v7266_v24  ;;  %v2844_v24 = vld [vmem:[%s4577_s7 + $0x710] sm:$0xff] }
 0x181   : > { %3694 = vmatprep.subr.mxu1 %v7267_v36  ;;  %v3198_v49 = vadd.f32 %v3197_v19, %v3196_v17  ;;  %2158 = vmatprep.mubr.f32.mxu1 %v2826_v51  ;;  %v3249_v12 = vpop.f32.mrf.mxu1  ;;  %v7280_v19 = vld [vmem:[#allocation8_spill] sm:$0xff] }
 0x182   : > { %3644 = vmatpush3.msra.mxu0 %v7268_v34  ;;  %3695 = vmatpush3.msra.mxu1 %v7269_v57  ;;  %v7282_v34 = vld [vmem:[#allocation46_spill] sm:$0xff] }
 0x183   : > { %3645 = vmatprep.subr.mxu0 %v7270_v59  ;;  %v1114_v63 = vadd.f32 %v3198_v49, %v6365_v6  ;;  %2159 = vmatmul.mubr.f32.gmra.mxu1 %v2825_v20  ;;  %v3250_v10 = vpop.f32.mrf.mxu1  ;;  %v7275_v6 = vld [vmem:[#allocation29_spill] sm:$0xff] }
 0x184   : > { %3696 = vmatprep.subr.mxu1 %v7271_v53  ;;  %v3199_v60 = vpop.f32.mrf.mxu0  ;;  %3963 = vmatprep.mubr.msk.f32.mxu0 %vm4190_vm0, %v7192_v50  ;;  %v3251_v21 = vadd.f32 %v3250_v10, %v3249_v12  ;;  %v7281_v20 = vld [vmem:[#allocation37_spill] sm:$0xff]  ;;  %v2843_v12 = vld [vmem:[%s4577_s7 + $0x708] sm:$0xff]  ;;  %v2806_v10 = vld [vmem:[%s4577_s7 + $0x5e0] sm:$0x1] }
 0x185   : > { %3646 = vmatpush3.msra.mxu0 %v7272_v23  ;;  %3697 = vmatpush3.msra.mxu1 %v7273_v8  ;;  %v7285_v53 = vld [vmem:[#allocation45_spill] sm:$0xff] }
 0x186   : > { %3964 = vmatmul.mubr.f32.gmra.mxu0 %v2788_v62  ;;  %v3200_v14 = vpop.f32.mrf.mxu0  ;;  %3647 = vmatprep.subr.mxu0 %v7274_v55  ;;  %v6528_v16 = vadd.f32 %v3251_v21, %v1114_v63  ;;  %v7284_v62 = vld [vmem:[#allocation9_spill] sm:$0xff] }
 0x187   : > { %3698 = vmatprep.subr.mxu1 %v7275_v6  ;;  %v3201_v56 = vadd.f32 %v3200_v14, %v3199_v60  ;;  %2163 = vmatprep.mubr.f32.mxu1 %v2835_v13  ;;  %v3252_v28 = vpop.f32.mrf.mxu1  ;;  %v7286_v60 = vld [vmem:[#allocation48_spill] sm:$0xff]  ;;  %v7287_v13 = vld [vmem:[#allocation49_spill] sm:$0xff]  ;;  %v7288_v14 = vld [vmem:[#allocation10_spill] sm:$0xff] }
 0x188   : > { %3648 = vmatpush3.msra.mxu0 %v7276_v0  ;;  %3699 = vmatpush3.msra.mxu1 %v7277_v1  ;;  %v2853_v55 = vld [vmem:[%s4577_s7 + $0x758] sm:$0xff]  ;;  %v7290_v0 = vld [vmem:[#allocation50_spill] sm:$0xff] }
 0x189   : > { %3649 = vmatprep.subr.mxu0 %v7278_v54  ;;  %v1119_v17 = vadd.f32 %v3201_v56, %v6392_v61  ;;  %2164 = vmatmul.mubr.f32.gmra.mxu1 %v2834_v44  ;;  %v3253_v3 = vpop.f32.mrf.mxu1  ;;  %v7283_v61 = vld [vmem:[#allocation41_spill] sm:$0xff] }
 0x18a   : > { %3700 = vmatprep.subr.mxu1 %v7279_v11  ;;  %v3202_v51 = vpop.f32.mrf.mxu0  ;;  %3966 = vmatprep.mubr.msk.f32.mxu0 %vm4190_vm0, %v7192_v50  ;;  %v3254_v36 = vadd.f32 %v3253_v3, %v3252_v28  ;;  %v7289_v44 = vld [vmem:[#allocation53_spill] sm:$0xff]  ;;  %v2852_v28 = vld [vmem:[%s4577_s7 + $0x750] sm:$0xff] }
 0x18b   : > { %3650 = vmatpush3.msra.mxu0 %v7280_v19  ;;  %3701 = vmatpush3.msra.mxu1 %v7281_v20  ;;  %v7293_v11 = vld [vmem:[#allocation61_spill] sm:$0xff] }
 0x18c   : > { %3967 = vmatmul.mubr.f32.gmra.mxu0 %v2797_v5  ;;  %v3203_v49 = vpop.f32.mrf.mxu0  ;;  %3651 = vmatprep.subr.mxu0 %v7282_v34  ;;  %v6544_v57 = vadd.f32 %v3254_v36, %v1119_v17  ;;  %v7292_v5 = vld [vmem:[#allocation11_spill] sm:$0xff]  ;;  %v7295_v19 = vld [vmem:[#allocation65_spill] sm:$0xff] }
 0x18d   : > { %3702 = vmatprep.subr.mxu1 %v7283_v61  ;;  %v3204_v59 = vadd.f32 %v3203_v49, %v3202_v51  ;;  %2168 = vmatprep.mubr.f32.mxu1 %v2844_v24  ;;  %v3255_v63 = vpop.f32.mrf.mxu1  ;;  %v7294_v51 = vld [vmem:[#allocation52_spill] sm:$0xff]  ;;  %v2862_v24 = vld [vmem:[%s4577_s7 + $0x7a0] sm:$0x1]  ;;  %v7297_v34 = vld [vmem:[#allocation69_spill] sm:$0xff] }
 0x18e   : > { %3652 = vmatpush3.msra.mxu0 %v7284_v62  ;;  %3703 = vmatpush3.msra.mxu1 %v7285_v53  ;;  %v7296_v49 = vld [vmem:[#allocation12_spill] sm:$0xff]  ;;  %v2861_v62 = vld [vmem:[%s4577_s7 + $0x798] sm:$0x1]  ;;  %v2810_v53 = vld [vmem:[%s4577_s7 + $0x600] sm:$0xff] }
 0x18f   : > { %3653 = vmatprep.subr.mxu0 %v7286_v60  ;;  %v1124_v23 = vadd.f32 %v3204_v59, %v6419_v22  ;;  %2169 = vmatmul.mubr.f32.gmra.mxu1 %v2843_v12  ;;  %v3256_v8 = vpop.f32.mrf.mxu1  ;;  %v7291_v22 = vld [vmem:[#allocation57_spill] sm:$0xff]  ;;  %v7298_v12 = vld [vmem:[#allocation54_spill] sm:$0xff]  ;;  %v7299_v59 = vld [vmem:[#allocation72_spill] sm:$0xff] }
 0x190   : > { %3704 = vmatprep.subr.mxu1 %v7287_v13  ;;  %v3205_v21 = vpop.f32.mrf.mxu0  ;;  %3969 = vmatprep.mubr.msk.f32.mxu0 %vm4190_vm0, %v7192_v50  ;;  %v3257_v6 = vadd.f32 %v3256_v8, %v3255_v63  ;;  %v7302_v13 = vld [vmem:[#allocation56_spill] sm:$0xff] }
 0x191   : > { %3654 = vmatpush3.msra.mxu0 %v7288_v14  ;;  %3705 = vmatpush3.msra.mxu1 %v7289_v44  ;;  %v7303_v14 = vld [vmem:[#allocation76_spill] sm:$0xff] }
 0x192   : > { %3970 = vmatmul.mubr.f32.gmra.mxu0 %v2806_v10  ;;  %v3206_v56 = vpop.f32.mrf.mxu0  ;;  %3655 = vmatprep.subr.mxu0 %v7290_v0  ;;  %v6560_v1 = vadd.f32 %v3257_v6, %v1124_v23  ;;  %v7301_v23 = vld [vmem:[#allocation74_spill] sm:$0xff]  ;;  %v2812_v44 = vld [vmem:[%s4577_s7 + $0x610] sm:$0xff] }
 0x193   : > { %3706 = vmatprep.subr.mxu1 %v7291_v22  ;;  %v3207_v54 = vadd.f32 %v3206_v56, %v3205_v21  ;;  %2173 = vmatprep.mubr.f32.mxu1 %v2853_v55  ;;  %v3258_v17 = vpop.f32.mrf.mxu1  ;;  %v2809_v21 = vld [vmem:[%s4577_s7 + $0x5f8] sm:$0xff]  ;;  %v7304_v6 = vld [vmem:[#allocation14_spill] sm:$0xff] }
 0x194   : > { %3656 = vmatpush3.msra.mxu0 %v7292_v5  ;;  %3707 = vmatpush3.msra.mxu1 %v7293_v11  ;;  %v7305_v22 = vld [vmem:[#allocation78_spill] sm:$0xff]  ;;  %v7306_v5 = vld [vmem:[#allocation80_spill] sm:$0xff]  ;;  %v2819_v11 = vld [vmem:[%s4577_s7 + $0x648] sm:$0xff] }
 0x195   : > { %3657 = vmatprep.subr.mxu0 %v7294_v51  ;;  %v1129_v3 = vadd.f32 %v3207_v54, %v6450_v58  ;;  %2174 = vmatmul.mubr.f32.gmra.mxu1 %v2852_v28  ;;  %v3259_v20 = vpop.f32.mrf.mxu1  ;;  %v7300_v58 = vld [vmem:[#allocation13_spill] sm:$0xff]  ;;  %v2811_v28 = vld [vmem:[%s4577_s7 + $0x608] sm:$0xff] }
 0x196   : > { %3708 = vmatprep.subr.mxu1 %v7295_v19  ;;  %v3208_v36 = vpop.f32.mrf.mxu0  ;;  %3658 = vmatpush3.msra.mxu0 %v7296_v49  ;;  %v3260_v61 = vadd.f32 %v3259_v20, %v3258_v17  ;;  %v7307_v17 = vld [vmem:[#allocation58_spill] sm:$0xff]  ;;  %v7310_v49 = vld [vmem:[#allocation60_spill] sm:$0xff] }
 0x197   : > { %3709 = vmatpush3.msra.mxu1 %v7297_v34  ;;  %3659 = vmatprep.subr.mxu0 %v7298_v12  ;;  %v2821_v34 = vld [vmem:[%s4577_s7 + $0x658] sm:$0xff]  ;;  %v7311_v12 = vld [vmem:[#allocation16_spill] sm:$0xff] }
 0x198   : > { %3710 = vmatprep.subr.mxu1 %v7299_v59  ;;  %v3209_v63 = vpop.f32.mrf.mxu0  ;;  %2178 = vmatprep.mubr.f32.mxu1 %v2862_v24  ;;  %v6575_v60 = vadd.f32 %v3260_v61, %v1129_v3  ;;  %v7309_v24 = vld [vmem:[#allocation15_spill] sm:$0xff] }
 0x199   : > { %3660 = vmatpush3.msra.mxu0 %v7300_v58  ;;  %v3210_v10 = vadd.f32 %v3209_v63, %v3208_v36  ;;  %3711 = vmatpush3.msra.mxu1 %v7301_v23  ;;  %v3261_v8 = vpop.f32.mrf.mxu1  ;;  %v2818_v36 = vld [vmem:[%s4577_s7 + $0x640] sm:$0xff]  ;;  %v2820_v63 = vld [vmem:[%s4577_s7 + $0x650] sm:$0xff] }
 0x19a   : > { %3661 = vmatprep.subr.mxu0 %v7302_v13  ;;  %2179 = vmatmul.mubr.f32.gmra.mxu1 %v2861_v62  ;;  %v7312_v62 = vld [vmem:[#allocation64_spill] sm:$0xff] }
 0x19b   : > { %3712 = vmatprep.subr.mxu1 %v7303_v14  ;;  %v1134_v55 = vadd.f32 %v3210_v10, %v6474_v9  ;;  %3662 = vmatpush3.msra.mxu0 %v7304_v6  ;;  %v3262_v0 = vpop.f32.mrf.mxu1  ;;  %v7308_v9 = vld [vmem:[#allocation82_spill] sm:$0xff]  ;;  %v2828_v10 = vld [vmem:[%s4577_s7 + $0x690] sm:$0xff] }
 0x19c   : > { %2248 = vmatprep.mubr.f32.mxu0 %v2810_v53  ;;  %v3211_v56 = vpop.f32.mrf.mxu0  ;;  %3713 = vmatpush3.msra.mxu1 %v7305_v22  ;;  %v3263_v54 = vadd.f32 %v3262_v0, %v3261_v8  ;;  %v7313_v53 = vld [vmem:[#allocation66_spill] sm:$0xff]  ;;  %v7314_v23 = vld [vmem:[#allocation68_spill] sm:$0xff]  ;;  %v2837_v22 = vld [vmem:[%s4577_s7 + $0x6d8] sm:$0xff] }
 0x19d   : > { %2249 = vmatmul.mubr.f32.vlgmr.msra.gmra.mxu0 %v2809_v21  ;;  %3714 = vmatprep.subr.mxu1 %v7306_v5  ;;  %v7315_v8 = vld [vmem:[#allocation70_spill] sm:$0xff]  ;;  %v7317_v0 = vld [vmem:[#allocation24_spill] sm:$0xff] }
 0x19e   : > { %3737 = vmatprep.subr.mxu0 %v7307_v17  ;;  %v3212_v51 = vpop.f32.mrf.mxu0  ;;  %3715 = vmatpush3.msra.mxu1 %v7308_v9  ;;  %v6590_v3 = vadd.f32 %v3263_v54, %v1134_v55  ;;  %v2830_v14 = vld [vmem:[%s4577_s7 + $0x6a0] sm:$0xff] }
 0x19f   : > { %2348 = vmatprep.mubr.f32.mxu1 %v2812_v44  ;;  %v3213_v19 = vadd.f32 %v3212_v51, %v3211_v56  ;;  %3738 = vmatpush3.msra.mxu0 %v7309_v24  ;;  %v3264_v20 = vpop.f32.mrf.mxu1  ;;  %v7316_v6 = vld [vmem:[#allocation22_spill] sm:$0xff]  ;;  %v2829_v44 = vld [vmem:[%s4577_s7 + $0x698] sm:$0xff]  ;;  %v2839_v51 = vld [vmem:[%s4577_s7 + $0x6e8] sm:$0xff] }
 0x1a0   : > { %2349 = vmatmul.mubr.f32.vlgmr.msra.gmra.mxu1 %v2811_v28  ;;  %3739 = vmatprep.subr.mxu0 %v7310_v49  ;;  %v7318_v54 = vld [vmem:[#allocation26_spill] sm:$0xff] }
 0x1a1   : > { %2253 = vmatprep.mubr.f32.mxu0 %v2819_v11  ;;  %v1139_v61 = vadd.f32 %v3213_v19, %v6486_v31  ;;  %3740 = vmatpush3.msra.mxu0 %v7311_v12  ;;  %v3265_v59 = vpop.f32.mrf.mxu1  ;;  %v2827_v31 = vld [vmem:[%s4577_s7 + $0x688] sm:$0xff]  ;;  %v7319_v11 = vld [vmem:[#allocation28_spill] sm:$0xff]  ;;  %v7320_v19 = vld [vmem:[#allocation30_spill] sm:$0xff] }
 0x1a2   : > { %3972 = vmatprep.subr.mxu1 %v7192_v50  ;;  %2254 = vmatmul.mubr.f32.gmra.mxu0 %v2818_v36  ;;  %v3266_v58 = vadd.f32 %v3265_v59, %v3264_v20  ;;  %v7321_v20 = vld [vmem:[#allocation32_spill] sm:$0xff]  ;;  %v2846_v49 = vld [vmem:[%s4577_s7 + $0x720] sm:$0xff] }
 0x1a3   : > { %3741 = vmatprep.subr.mxu0 %v7312_v62  ;;  %2353 = vmatprep.mubr.f32.mxu1 %v2821_v34  ;;  %v7322_v34 = vld [vmem:[#allocation35_spill] sm:$0xff] }
 0x1a4   : > { %3742 = vmatpush3.msra.mxu0 %v7313_v53  ;;  %3973 = vmatpush3.msra.mxu1 %v6268_v27  ;;  %v6606_v13 = vadd.f32 %v3266_v58, %v1139_v61  ;;  %v7323_v62 = vld [vmem:[#allocation39_spill] sm:$0xff] }
 0x1a5   : > { %3743 = vmatprep.subr.mxu0 %v7314_v23  ;;  %2354 = vmatmul.mubr.f32.gmra.mxu1 %v2820_v63  ;;  %v2848_v63 = vld [vmem:[%s4577_s7 + $0x730] sm:$0xff] }
 0x1a6   : > { %3974 = vmatprep.subr.mxu1 %v7192_v50  ;;  %v3299_v21 = vpop.f32.mrf.mxu0  ;;  %2258 = vmatprep.mubr.f32.mxu0 %v2828_v10  ;;  %v7324_v10 = vld [vmem:[#allocation43_spill] sm:$0xff] }
 0x1a7   : > { %3744 = vmatpush3.msra.mxu0 %v7315_v8  ;;  %3975 = vmatpush3.msra.mxu1 %v6278_v29  ;;  %v2836_v29 = vld [vmem:[%s4577_s7 + $0x6d0] sm:$0xff]  ;;  %v2855_v8 = vld [vmem:[%s4577_s7 + $0x768] sm:$0xff] }
 0x1a8   : > { %2259 = vmatmul.mubr.f32.gmra.mxu0 %v2827_v31  ;;  %v3300_v27 = vpop.f32.mrf.mxu0  ;;  %v1408_v55 = vpop.f32.mrf.mxu1  ;;  %3745 = vmatprep.subr.mxu0 %v7316_v6 }
 0x1a9   : > { %3976 = vmatprep.subr.mxu1 %v7192_v50  ;;  %v3301_v56 = vadd.f32 %v3300_v27, %v3299_v21  ;;  %2358 = vmatprep.mubr.f32.mxu1 %v2830_v14  ;;  %v7325_v21 = vld [vmem:[#allocation47_spill] sm:$0xff]  ;;  %v2854_v14 = vld [vmem:[%s4577_s7 + $0x760] sm:$0xff] }
 0x1aa   : > { %3746 = vmatpush3.msra.mxu0 %v7317_v0  ;;  %v3900_v28 = vpop.f32.mrf.mxu1  ;;  %3977 = vmatpush3.msra.mxu1 %v6289_v48 }
 0x1ab   : > { %3747 = vmatprep.subr.mxu0 %v7318_v54  ;;  %v1309_v5 = vadd.f32 %v3301_v56, %v6508_v38  ;;  %2359 = vmatmul.mubr.f32.gmra.mxu1 %v2829_v44  ;;  %v2838_v38 = vld [vmem:[%s4577_s7 + $0x6e0] sm:$0xff]  ;;  %v7327_v44 = vld [vmem:[#allocation55_spill] sm:$0xff]  ;;  %v2857_v56 = vld [vmem:[%s4577_s7 + $0x778] sm:$0xff] }
 0x1ac   : > { %3978 = vmatprep.subr.mxu1 %v7192_v50  ;;  %v3302_v17 = vpop.f32.mrf.mxu0  ;;  %2263 = vmatprep.mubr.f32.mxu0 %v2837_v22  ;;  %v7328_v28 = vld [vmem:[#allocation59_spill] sm:$0xff] }
 0x1ad   : > { %3748 = vmatpush3.msra.mxu0 %v7319_v11  ;;  %v6624_v9 = vadd.f32 %v1408_v55, %v1309_v5  ;;  %3979 = vmatpush3.msra.mxu1 %v6305_v32  ;;  %v2845_v32 = vld [vmem:[%s4577_s7 + $0x718] sm:$0xff]  ;;  %v7329_v5 = vld [vmem:[#allocation63_spill] sm:$0xff] }
 0x1ae   : > { %2264 = vmatmul.mubr.f32.gmra.mxu0 %v2836_v29  ;;  %v3303_v48 = vpop.f32.mrf.mxu0  ;;  %3749 = vmatprep.subr.mxu0 %v7320_v19  ;;  %v2863_v11 = vld [vmem:[%s4577_s7 + $0x7a8] sm:$0x1] }
 0x1af   : > { %3980 = vmatprep.subr.mxu1 %v7192_v50  ;;  %v1442_v24 = vmax.f32 %v6300_v4, %v6624_v9  ;;  %v3304_v36 = vadd.f32 %v3303_v48, %v3302_v17  ;;  %2363 = vmatprep.mubr.f32.mxu1 %v2839_v51  ;;  %v2864_v17 = vld [vmem:[%s4577_s7 + $0x7b0] sm:$0x1] }
 0x1b0   : > { %3750 = vmatpush3.msra.mxu0 %v7321_v20  ;;  %3981 = vmatpush3.msra.mxu1 %v6316_v26 }
 0x1b1   : > { %3751 = vmatprep.subr.mxu0 %v7322_v34  ;;  %v1314_v61 = vadd.f32 %v3304_v36, %v6528_v16  ;;  %2364 = vmatmul.mubr.f32.gmra.mxu1 %v2838_v38  ;;  %v3305_v12 = vpop.f32.mrf.mxu0  ;;  %v2847_v16 = vld [vmem:[%s4577_s7 + $0x728] sm:$0xff]  ;;  %v2866_v36 = vld [vmem:[%s4577_s7 + $0x7c0] sm:$0x1]  ;;  %v7332_v34 = vld [vmem:[#allocation73_spill] sm:$0xff] }
 0x1b2   : > { %3982 = vmatprep.subr.mxu1 %v7192_v50  ;;  %v1413_v59 = vpop.f32.mrf.mxu1  ;;  %2268 = vmatprep.mubr.f32.mxu0 %v2846_v49  ;;  %v7331_v38 = vld [vmem:[#allocation71_spill] sm:$0xff] }
 0x1b3   : > { %3752 = vmatpush3.msra.mxu0 %v7323_v62  ;;  %v6641_v58 = vadd.f32 %v1413_v59, %v1314_v61  ;;  %3983 = vmatpush3.msra.mxu1 %v6332_v2  ;;  %v3306_v26 = vpop.f32.mrf.mxu0  ;;  %v7326_v2 = vld [vmem:[#allocation51_spill] sm:$0xff]  ;;  %v7334_v59 = vld [vmem:[#allocation77_spill] sm:$0xff] }
 0x1b4   : > { %2269 = vmatmul.mubr.f32.gmra.mxu0 %v2845_v32  ;;  %v3903_v53 = vpop.f32.mrf.mxu1  ;;  %3753 = vmatprep.subr.mxu0 %v7324_v10  ;;  %v3307_v31 = vadd.f32 %v3306_v26, %v3305_v12  ;;  %v7333_v12 = vld [vmem:[#allocation75_spill] sm:$0xff]  ;;  %v7336_v10 = vld [vmem:[#allocation81_spill] sm:$0xff] }
 0x1b5   : > { %3984 = vmatprep.subr.mxu1 %v7192_v50  ;;  %v1443_v23 = vmax.f32 %v6327_v46, %v6641_v58  ;;  %2368 = vmatprep.mubr.f32.mxu1 %v2848_v63  ;;  %v7335_v26 = vld [vmem:[#allocation79_spill] sm:$0xff] }
 0x1b6   : > { %3754 = vmatpush3.msra.mxu0 %v7325_v21  ;;  %3985 = vmatpush3.msra.mxu1 %v6343_v52  ;;  %v1319_v27 = vadd.f32 %v3307_v31, %v6544_v57  ;;  %v2856_v57 = vld [vmem:[%s4577_s7 + $0x770] sm:$0xff]  ;;  %v2813_v21 = vld [vmem:[%s4577_s7 + $0x618] sm:$0xff] }
 0x1b7   : > { %3755 = vmatprep.subr.mxu0 %v7326_v2  ;;  %2369 = vmatmul.mubr.f32.gmra.mxu1 %v2847_v16  ;;  %v3308_v55 = vpop.f32.mrf.mxu0 }
 0x1b8   : > { %3986 = vmatprep.subr.mxu1 %v7192_v50  ;;  %v1418_v6 = vpop.f32.mrf.mxu1  ;;  %2273 = vmatprep.mubr.f32.mxu0 %v2855_v8 }
 0x1b9   : > { %3756 = vmatpush3.msra.mxu0 %v7327_v44  ;;  %v6658_v0 = vadd.f32 %v1418_v6, %v1319_v27  ;;  %3987 = vmatpush3.msra.mxu1 %v6357_v25  ;;  %v3309_v52 = vpop.f32.mrf.mxu0  ;;  %v7330_v25 = vld [vmem:[#allocation67_spill] sm:$0xff]  ;;  %v2822_v6 = vld [vmem:[%s4577_s7 + $0x660] sm:$0xff] }
 0x1ba   : > { %2274 = vmatmul.mubr.f32.gmra.mxu0 %v2854_v14  ;;  %v3906_v22 = vpop.f32.mrf.mxu1  ;;  %3757 = vmatprep.subr.mxu0 %v7328_v28  ;;  %v3310_v29 = vadd.f32 %v3309_v52, %v3308_v55  ;;  %v2823_v14 = vld [vmem:[%s4577_s7 + $0x668] sm:$0xff] }
 0x1bb   : > { %3988 = vmatprep.subr.mxu1 %v7192_v50  ;;  %v1444_v54 = vmax.f32 %v6351_v40, %v6658_v0  ;;  %2373 = vmatprep.mubr.f32.mxu1 %v2857_v56 }
 0x1bc   : > { %3758 = vmatpush3.msra.mxu0 %v7329_v5  ;;  %3989 = vmatpush3.msra.mxu1 %v6370_v15  ;;  %v1324_v51 = vadd.f32 %v3310_v29, %v6560_v1  ;;  %v2865_v1 = vld [vmem:[%s4577_s7 + $0x7b8] sm:$0x1] }
 0x1bd   : > { %3759 = vmatprep.subr.mxu0 %v7330_v25  ;;  %2374 = vmatmul.mubr.f32.gmra.mxu1 %v2856_v57  ;;  %v3311_v48 = vpop.f32.mrf.mxu0  ;;  %v2824_v57 = vld [vmem:[%s4577_s7 + $0x670] sm:$0xff]  ;;  %v2841_v29 = vld [vmem:[%s4577_s7 + $0x6f8] sm:$0xff] }
 0x1be   : > { %3990 = vmatprep.subr.mxu1 %v7192_v50  ;;  %v1423_v19 = vpop.f32.mrf.mxu1  ;;  %2278 = vmatprep.mubr.f32.mxu0 %v2864_v17 }
 0x1bf   : > { %3760 = vmatpush3.msra.mxu0 %v7331_v38  ;;  %v6675_v20 = vadd.f32 %v1423_v19, %v1324_v51  ;;  %3991 = vmatpush3.msra.mxu1 %v6384_v30  ;;  %v3312_v15 = vpop.f32.mrf.mxu0  ;;  %v2850_v51 = vld [vmem:[%s4577_s7 + $0x740] sm:$0xff]  ;;  %v2849_v38 = vld [vmem:[%s4577_s7 + $0x738] sm:$0xff] }
 0x1c0   : > { %2279 = vmatmul.mubr.f32.gmra.mxu0 %v2863_v11  ;;  %v3909_v49 = vpop.f32.mrf.mxu1  ;;  %3761 = vmatprep.subr.mxu0 %v7332_v34  ;;  %v3313_v61 = vadd.f32 %v3312_v15, %v3311_v48  ;;  %v2859_v34 = vld [vmem:[%s4577_s7 + $0x788] sm:$0xff] }
 0x1c1   : > { %3992 = vmatprep.subr.mxu1 %v7192_v50  ;;  %v1445_v32 = vmax.f32 %v6378_v37, %v6675_v20  ;;  %2378 = vmatprep.mubr.f32.mxu1 %v2866_v36  ;;  %v2842_v49 = vld [vmem:[%s4577_s7 + $0x700] sm:$0xff] }
 0x1c2   : > { %3762 = vmatpush3.msra.mxu0 %v7333_v12  ;;  %3993 = vmatpush3.msra.mxu1 %v6397_v35  ;;  %v1329_v30 = vadd.f32 %v3313_v61, %v6575_v60  ;;  %v2814_v35 = vld [vmem:[%s4577_s7 + $0x620] sm:$0xff]  ;;  %v7337_v60 = vld [vmem:[#allocation83_spill] sm:$0xff] }
 0x1c3   : > { %3763 = vmatprep.subr.mxu0 %v7334_v59  ;;  %2379 = vmatmul.mubr.f32.gmra.mxu1 %v2865_v1  ;;  %v3314_v62 = vpop.f32.mrf.mxu0  ;;  %v2858_v59 = vld [vmem:[%s4577_s7 + $0x780] sm:$0xff] }
 0x1c4   : > { %3994 = vmatprep.subr.mxu1 %v7192_v50  ;;  %v1428_v63 = vpop.f32.mrf.mxu1  ;;  %3764 = vmatpush3.msra.mxu0 %v7335_v26 }
 0x1c5   : > { %3995 = vmatpush3.msra.mxu1 %v6411_v33  ;;  %v6690_v53 = vadd.f32 %v1428_v63, %v1329_v30  ;;  %3765 = vmatprep.subr.mxu0 %v7336_v10  ;;  %v3315_v16 = vpop.f32.mrf.mxu0  ;;  %v7338_v33 = vld [vmem:[#allocation84_spill] sm:$0xff]  ;;  %v2851_v30 = vld [vmem:[%s4577_s7 + $0x748] sm:$0xff] }
 0x1c6   : > { %3996 = vmatprep.subr.mxu1 %v7192_v50  ;;  %v3912_v31 = vpop.f32.mrf.mxu1  ;;  %3766 = vmatpush3.msra.mxu0 %v7337_v60  ;;  %v3316_v2 = vadd.f32 %v3315_v16, %v3314_v62  ;;  %v2868_v62 = vld [vmem:[%s4577_s7 + $0x7d0] sm:$0x1]  ;;  %v2867_v10 = vld [vmem:[%s4577_s7 + $0x7c8] sm:$0x1] }
 0x1c7   : > { %3997 = vmatpush3.msra.mxu1 %v6424_v43  ;;  %v1446_v8 = vmax.f32 %v6405_v41, %v6690_v53  ;;  %3767 = vmatprep.subr.mxu0 %v7338_v33  ;;  %v2860_v31 = vld [vmem:[%s4577_s7 + $0x790] sm:$0xff] }
 0x1c8   : > { %3998 = vmatprep.subr.mxu1 %v7192_v50  ;;  %3768 = vmatpush3.msra.mxu0 %v6259_v45  ;;  %v1334_v27 = vadd.f32 %v3316_v2, %v6590_v3  ;;  %v2815_v45 = vld [vmem:[%s4577_s7 + $0x628] sm:$0xff]  ;;  %v2832_v3 = vld [vmem:[%s4577_s7 + $0x6b0] sm:$0xff] }
 0x1c9   : > { %2448 = vmatprep.mubr.f32.mxu0 %v2814_v35  ;;  %3999 = vmatpush3.msra.mxu1 %v6436_v39  ;;  %v3317_v43 = vpop.f32.mrf.mxu0 }
 0x1ca   : > { %2449 = vmatmul.mubr.f32.vlgmr.msra.gmra.mxu0 %v2813_v21  ;;  %v1433_v55 = vpop.f32.mrf.mxu1  ;;  %4000 = vmatprep.subr.mxu1 %v7192_v50 }
 0x1cb   : > { %2453 = vmatprep.mubr.f32.mxu0 %v2823_v14  ;;  %v6708_v44 = vadd.f32 %v1433_v55, %v1334_v27  ;;  %4001 = vmatpush3.msra.mxu1 %v6445_v42  ;;  %v3318_v39 = vpop.f32.mrf.mxu0  ;;  %v2831_v42 = vld [vmem:[%s4577_s7 + $0x6a8] sm:$0xff]  ;;  %v2869_v27 = vld [vmem:[%s4577_s7 + $0x7d8] sm:$0x1] }
 0x1cc   : > { %4004 = vmatprep.mubr.msk.f32.mxu1 %vm4190_vm0, %v7192_v50  ;;  %v3915_v56 = vpop.f32.mrf.mxu1  ;;  %4002 = vmatprep.subr.mxu1 %v7192_v50  ;;  %v3319_v22 = vadd.f32 %v3318_v39, %v3317_v43 }
 0x1cd   : > { %v1447_v52 = vmax.f32 %v6430_v7, %v6708_v44  ;;  %4003 = vmatpush3.msra.mxu1 %v6457_v47  ;;  %v2840_v47 = vld [vmem:[%s4577_s7 + $0x6f0] sm:$0xff] }
 0x1ce   : > { %2454 = vmatmul.mubr.f32.gmra.mxu0 %v2822_v6  ;;  %4005 = vmatmul.mubr.f32.vlgmr.msra.gmra.mxu1 %v2815_v45  ;;  %v1339_v28 = vadd.f32 %v3319_v22, %v6606_v13  ;;  %v2833_v13 = vld [vmem:[%s4577_s7 + $0x6b8] sm:$0xff]  ;;  %s4026_s7 = smul.u32 56, %s7340_s13 }
 0x1cf   : > { %2458 = vmatprep.mubr.f32.mxu0 %v2832_v3  ;;  %4007 = vmatprep.mubr.msk.f32.mxu1 %vm4190_vm0, %v7192_v50  ;;  %v1438_v5 = vpop.f32.mrf.mxu1 }
 0x1d0   : > { %v6725_v17 = vadd.f32 %v1438_v5, %v1339_v28  ;;  %s6835_s17 = scalar_lea.vmem %s6872_s3, %s4026_s7 }
 0x1d1   : > { %v3918_v25 = vpop.f32.mrf.mxu1 }
 0x1d2   : > { %2459 = vmatmul.mubr.f32.gmra.mxu0 %v2831_v42  ;;  %4008 = vmatmul.mubr.f32.gmra.mxu1 %v2824_v57  ;;  %v1448_v11 = vmax.f32 %v6463_v18, %v6725_v17 }
 0x1d3   : > { %2463 = vmatprep.mubr.f32.mxu0 %v2841_v29  ;;  %4010 = vmatprep.mubr.msk.f32.mxu1 %vm4190_vm0, %v7192_v50 }
 0x1d4   : > { %v3375_v48 = vpop.f32.mrf.mxu0 }
 0x1d5   : > { %v3428_v19 = vpop.f32.mrf.mxu1 }
 0x1d6   : > { %2464 = vmatmul.mubr.f32.gmra.mxu0 %v2840_v47  ;;  %4011 = vmatmul.mubr.f32.gmra.mxu1 %v2833_v13  ;;  %v3376_v36 = vpop.f32.mrf.mxu0 }
 0x1d7   : > { %2468 = vmatprep.mubr.f32.mxu0 %v2850_v51  ;;  %v3429_v15 = vpop.f32.mrf.mxu1  ;;  %4013 = vmatprep.mubr.msk.f32.mxu1 %vm4190_vm0, %v7192_v50  ;;  %v3377_v1 = vadd.f32 %v3376_v36, %v3375_v48 }
 0x1d8   : > { %v3430_v61 = vadd.f32 %v3429_v15, %v3428_v19 }
 0x1da   : > { %2469 = vmatmul.mubr.f32.gmra.mxu0 %v2849_v38  ;;  %v6739_v12 = vadd.f32 %v3430_v61, %v3377_v1  ;;  %4014 = vmatmul.mubr.f32.gmra.mxu1 %v2842_v49 }
 0x1db   : > { %2473 = vmatprep.mubr.f32.mxu0 %v2859_v34  ;;  %4016 = vmatprep.mubr.msk.f32.mxu1 %vm4190_vm0, %v7192_v50 }
 0x1dc   : > { %v3378_v63 = vpop.f32.mrf.mxu0 }
 0x1dd   : > { %v3431_v26 = vpop.f32.mrf.mxu1 }
 0x1de   : > { %2474 = vmatmul.mubr.f32.gmra.mxu0 %v2858_v59  ;;  %4017 = vmatmul.mubr.f32.gmra.mxu1 %v2851_v30  ;;  %v3379_v35 = vpop.f32.mrf.mxu0 }
 0x1df   : > { %2478 = vmatprep.mubr.f32.mxu0 %v2868_v62  ;;  %v3432_v16 = vpop.f32.mrf.mxu1  ;;  %4019 = vmatprep.mubr.msk.f32.mxu1 %vm4190_vm0, %v7192_v50  ;;  %v3380_v60 = vadd.f32 %v3379_v35, %v3378_v63 }
 0x1e0   : > { %v3433_v21 = vadd.f32 %v3432_v16, %v3431_v26 }
 0x1e2   : > { %2479 = vmatmul.mubr.f32.gmra.mxu0 %v2867_v10  ;;  %v1685_v2 = vadd.f32 %v3433_v21, %v3380_v60  ;;  %4020 = vmatmul.mubr.f32.gmra.mxu1 %v2860_v31  ;;  %v3381_v33 = vpop.f32.mrf.mxu0 }
 0x1e3   : > { %v3434_v14 = vpop.f32.mrf.mxu1  ;;  %4022 = vmatprep.mubr.msk.f32.mxu1 %vm4190_vm0, %v7192_v50 }
 0x1e4   : > { %v3382_v43 = vpop.f32.mrf.mxu0 }
 0x1e5   : > { %v3435_v55 = vpop.f32.mrf.mxu1  ;;  %v3383_v6 = vadd.f32 %v3382_v43, %v3381_v33 }
 0x1e6   : > { %v3436_v45 = vadd.f32 %v3435_v55, %v3434_v14  ;;  %4023 = vmatmul.mubr.f32.gmra.mxu1 %v2869_v27 }
 0x1e8   : > { %v1690_v3 = vadd.f32 %v3436_v45, %v3383_v6  ;;  %v3384_v39 = vpop.f32.mrf.mxu0 }
 0x1e9   : > { %v3437_v56 = vpop.f32.mrf.mxu1 }
 0x1ea   : > { %v3385_v22 = vpop.f32.mrf.mxu0 }
 0x1eb   : > { %v3438_v42 = vpop.f32.mrf.mxu1  ;;  %v3386_v28 = vadd.f32 %v3385_v22, %v3384_v39 }
 0x1ec   : > { %v3439_v57 = vadd.f32 %v3438_v42, %v3437_v56 }
 0x1ee   : > { %v1695_v29 = vadd.f32 %v3439_v57, %v3386_v28  ;;  %v3387_v5 = vpop.f32.mrf.mxu0 }
 0x1ef   : > { %v3440_v25 = vpop.f32.mrf.mxu1 }
 0x1f0   : > { %v3388_v47 = vpop.f32.mrf.mxu0 }
 0x1f1   : > { %v3441_v13 = vpop.f32.mrf.mxu1  ;;  %v3389_v51 = vadd.f32 %v3388_v47, %v3387_v5 }
 0x1f2   : > { %v3442_v50 = vadd.f32 %v3441_v13, %v3440_v25 }
 0x1f4   : > { %v1700_v48 = vadd.f32 %v3442_v50, %v3389_v51  ;;  %v3390_v19 = vpop.f32.mrf.mxu0 }
 0x1f5   : > { %v3443_v38 = vpop.f32.mrf.mxu1 }
 0x1f6   : > { %v3391_v36 = vpop.f32.mrf.mxu0 }
 0x1f7   : > { %v3444_v15 = vpop.f32.mrf.mxu1  ;;  %v3392_v49 = vadd.f32 %v3391_v36, %v3390_v19 }
 0x1f8   : > { %v3445_v34 = vadd.f32 %v3444_v15, %v3443_v38 }
 0x1fa   : > { %v1705_v1 = vadd.f32 %v3445_v34, %v3392_v49  ;;  %v3393_v61 = vpop.f32.mrf.mxu0 }
 0x1fb   : > { %v3446_v59 = vpop.f32.mrf.mxu1 }
 0x1fc   : > { %v3394_v30 = vpop.f32.mrf.mxu0 }
 0x1fd   : > { %v3447_v62 = vpop.f32.mrf.mxu1  ;;  %v3395_v63 = vadd.f32 %v3394_v30, %v3393_v61 }
 0x1fe   : > { %v3448_v26 = vadd.f32 %v3447_v62, %v3446_v59 }
 0x200   : > { %v1710_v10 = vadd.f32 %v3448_v26, %v3395_v63 }
 0x201   : > { %v3481_v35 = vpop.f32.mrf.mxu0 }
 0x203   : > { %v3482_v16 = vpop.f32.mrf.mxu0 }
 0x204   : > { %v3483_v31 = vadd.f32 %v3482_v16, %v3481_v35  ;;  %v3534_v60 = vpop.f32.mrf.mxu1 }
 0x206   : > { %v1780_v21 = vadd.f32 %v3483_v31, %v6739_v12  ;;  %v3535_v33 = vpop.f32.mrf.mxu1 }
 0x207   : > { %v3484_v14 = vpop.f32.mrf.mxu0  ;;  %v3536_v27 = vadd.f32 %v3535_v33, %v3534_v60 }
 0x209   : > { %v3485_v43 = vpop.f32.mrf.mxu0  ;;  %v1880_v55 = vadd.f32 %v3536_v27, %v1780_v21 }
 0x20a   : > { %v3486_v6 = vadd.f32 %v3485_v43, %v3484_v14  ;;  %v3537_v45 = vpop.f32.mrf.mxu1 }
 0x20c   : > { %v1785_v39 = vadd.f32 %v3486_v6, %v1685_v2  ;;  %v3538_v22 = vpop.f32.mrf.mxu1 }
 0x20d   : > { %v3487_v56 = vpop.f32.mrf.mxu0  ;;  %v3539_v42 = vadd.f32 %v3538_v22, %v3537_v45 }
 0x20f   : > { %v3488_v28 = vpop.f32.mrf.mxu0  ;;  %v1885_v5 = vadd.f32 %v3539_v42, %v1785_v39 }
 0x210   : > { %v3489_v57 = vadd.f32 %v3488_v28, %v3487_v56  ;;  %v3540_v25 = vpop.f32.mrf.mxu1 }
 0x212   : > { %v1790_v47 = vadd.f32 %v3489_v57, %v1690_v3  ;;  %v3541_v51 = vpop.f32.mrf.mxu1 }
 0x213   : > { %v3490_v13 = vpop.f32.mrf.mxu0  ;;  %v3542_v50 = vadd.f32 %v3541_v51, %v3540_v25 }
 0x215   : > { %v3491_v12 = vpop.f32.mrf.mxu0  ;;  %v1890_v38 = vadd.f32 %v3542_v50, %v1790_v47 }
 0x216   : > { %v3492_v19 = vadd.f32 %v3491_v12, %v3490_v13  ;;  %v3543_v36 = vpop.f32.mrf.mxu1 }
 0x218   : > { %v1795_v15 = vadd.f32 %v3492_v19, %v1695_v29  ;;  %v3544_v34 = vpop.f32.mrf.mxu1 }
 0x219   : > { %v3493_v49 = vpop.f32.mrf.mxu0  ;;  %v3545_v61 = vadd.f32 %v3544_v34, %v3543_v36 }
 0x21b   : > { %v3494_v2 = vpop.f32.mrf.mxu0  ;;  %v1895_v30 = vadd.f32 %v3545_v61, %v1795_v15 }
 0x21c   : > { %v3495_v59 = vadd.f32 %v3494_v2, %v3493_v49  ;;  %v3546_v62 = vpop.f32.mrf.mxu1 }
 0x21e   : > { %v1800_v63 = vadd.f32 %v3495_v59, %v1700_v48  ;;  %v3547_v35 = vpop.f32.mrf.mxu1 }
 0x21f   : > { %v3496_v26 = vpop.f32.mrf.mxu0  ;;  %v3548_v16 = vadd.f32 %v3547_v35, %v3546_v62 }
 0x221   : > { %v3497_v3 = vpop.f32.mrf.mxu0  ;;  %v1900_v60 = vadd.f32 %v3548_v16, %v1800_v63 }
 0x222   : > { %v3498_v31 = vadd.f32 %v3497_v3, %v3496_v26  ;;  %v3549_v21 = vpop.f32.mrf.mxu1 }
 0x224   : > { %v1805_v33 = vadd.f32 %v3498_v31, %v1705_v1  ;;  %v3550_v27 = vpop.f32.mrf.mxu1 }
 0x225   : > { %v3499_v14 = vpop.f32.mrf.mxu0  ;;  %v3551_v43 = vadd.f32 %v3550_v27, %v3549_v21 }
 0x227   : > { %v3500_v29 = vpop.f32.mrf.mxu0  ;;  %v1905_v45 = vadd.f32 %v3551_v43, %v1805_v33 }
 0x228   : > { %v3501_v6 = vadd.f32 %v3500_v29, %v3499_v14  ;;  %v3552_v39 = vpop.f32.mrf.mxu1 }
 0x22a   : > { %v1810_v56 = vadd.f32 %v3501_v6, %v1710_v10  ;;  %v3553_v22 = vpop.f32.mrf.mxu1 }
 0x22b   : > { %v3554_v42 = vadd.f32 %v3553_v22, %v3552_v39 }
 0x22d   : > { %v1910_v28 = vadd.f32 %v3554_v42, %v1810_v56 }
 0x22f   : > { %v1979_v48 = vpop.f32.mrf.mxu0 }
 0x230   : > { %v1980_v57 = vadd.f32 %v1979_v48, %v1880_v55 }
 0x231   : > { %v3953_v25 = vpop.f32.mrf.mxu0 }
 0x232   : > { %v6757_v47 = vmax.f32 %v1442_v24, %v1980_v57 }
 0x233   : > { %v3610_v51 = vpop.f32.mrf.mxu1 }
 0x235   : > { %v1984_v1 = vpop.f32.mrf.mxu0  ;;  %v3611_v10 = vpop.f32.mrf.mxu1 }
 0x236   : > { %v1985_v13 = vadd.f32 %v1984_v1, %v1885_v5 }
 0x237   : > { %v3956_v50 = vpop.f32.mrf.mxu0 }
 0x238   : > { %v6762_v12 = vmax.f32 %v1443_v23, %v1985_v13  ;;  %v3612_v13 = vadd.f32 %v3611_v10, %v3610_v51 }
 0x23a   : > { %v1989_v19 = vpop.f32.mrf.mxu0 }
 0x23b   : > { %v1990_v36 = vadd.f32 %v1989_v19, %v1890_v38 }
 0x23c   : > { %v3959_v15 = vpop.f32.mrf.mxu0 }
 0x23d   : > { %v6767_v55 = vmax.f32 %v1444_v54, %v1990_v36  ;;  %v3613_v4 = vpop.f32.mrf.mxu1 }
 0x23f   : > { %v3614_v24 = vpop.f32.mrf.mxu1 }
 0x240   : > { %v1994_v9 = vpop.f32.mrf.mxu0 }
 0x241   : > { %v1995_v5 = vadd.f32 %v1994_v9, %v1895_v30 }
 0x242   : > { %v3962_v49 = vpop.f32.mrf.mxu0 }
 0x243   : > { %v6772_v46 = vmax.f32 %v1445_v32, %v1995_v5  ;;  %v6774_v58 = vpop.f32.mrf.mxu1  ;;  %v3615_v5 = vadd.f32 %v3614_v24, %v3613_v4 }
 0x245   : > { %v3617_v38 = vpop.f32.mrf.mxu1 }
 0x246   : > { %v1999_v23 = vpop.f32.mrf.mxu0  ;;  %v3618_v51 = vadd.f32 %v3617_v38, %v6774_v58 }
 0x247   : > { %v2000_v34 = vadd.f32 %v1999_v23, %v1900_v60 }
 0x248   : > { %v3965_v61 = vpop.f32.mrf.mxu0 }
 0x249   : > { %v6779_v40 = vmax.f32 %v1446_v8, %v2000_v34  ;;  %v6781_v0 = vpop.f32.mrf.mxu1 }
 0x24b   : > { %v6783_v2 = vpop.f32.mrf.mxu1 }
 0x24c   : > { %v2004_v54 = vpop.f32.mrf.mxu0 }
 0x24d   : > { %v2005_v59 = vadd.f32 %v2004_v54, %v1905_v45 }
 0x24e   : > { %v3968_v37 = vpop.f32.mrf.mxu0 }
 0x24f   : > { %v6788_v20 = vmax.f32 %v1447_v52, %v2005_v59  ;;  %v6790_v32 = vpop.f32.mrf.mxu1 }
 0x251   : > { %v6792_v62 = vpop.f32.mrf.mxu1 }
 0x252   : > { %v2009_v30 = vpop.f32.mrf.mxu0 }
 0x253   : > { %v2010_v41 = vadd.f32 %v2009_v30, %v1910_v28 }
 0x254   : > { %v3971_v53 = vpop.f32.mrf.mxu0 }
 0x255   : > { %v6797_v8 = vmax.f32 %v1448_v11, %v2010_v41  ;;  %v6799_v63 = vpop.f32.mrf.mxu1 }
 0x257   : > { %v6801_v26 = vpop.f32.mrf.mxu1 }
 0x25a   : > { %v6803_v35 = vpop.f32.mrf.mxu1 }
 0x25c   : > { %v6805_v7 = vpop.f32.mrf.mxu1 }
 0x25d   : > { %v3663_v44 = vpop.f32.mrf.mxu0 }
 0x25f   : > { %v3664_v52 = vpop.f32.mrf.mxu0 }
 0x260   : > { %v3716_v16 = vpop.f32.mrf.mxu1  ;;  %v3665_v25 = vadd.f32 %v3664_v52, %v3663_v44 }
 0x262   : > { %v3717_v3 = vpop.f32.mrf.mxu1  ;;  %v3666_v31 = vpop.f32.mrf.mxu0  ;;  %v2251_v36 = vadd.f32 %v3665_v25, %v3612_v13 }
 0x263   : > { %v3718_v15 = vadd.f32 %v3717_v3, %v3716_v16 }
 0x264   : > { %v3667_v60 = vpop.f32.mrf.mxu0 }
 0x265   : > { %v3719_v21 = vpop.f32.mrf.mxu1  ;;  %v3668_v50 = vadd.f32 %v3667_v60, %v3666_v31  ;;  %v2351_v54 = vadd.f32 %v3718_v15, %v2251_v36  ;;  %v3624_v36 = vadd.f32 %v6792_v62, %v6790_v32 }
 0x267   : > { %v3720_v14 = vpop.f32.mrf.mxu1  ;;  %v2256_v23 = vadd.f32 %v3668_v50, %v3615_v5 }
 0x268   : > { %v3669_v33 = vpop.f32.mrf.mxu0  ;;  %v3721_v34 = vadd.f32 %v3720_v14, %v3719_v21  ;;  %v3621_v21 = vadd.f32 %v6783_v2, %v6781_v0 }
 0x26a   : > { %v3670_v18 = vpop.f32.mrf.mxu0  ;;  %v2356_v44 = vadd.f32 %v3721_v34, %v2256_v23 }
 0x26b   : > { %v3722_v17 = vpop.f32.mrf.mxu1  ;;  %v3671_v59 = vadd.f32 %v3670_v18, %v3669_v33  ;;  %v6826_v33 = vld [vmem:[%s6871_s2] ss:$0 sm:$0xff] }
 0x26d   : > { %v3723_v27 = vpop.f32.mrf.mxu1  ;;  %v2261_v3 = vadd.f32 %v3671_v59, %v3618_v51  ;;  %v3627_v59 = vadd.f32 %v6801_v26, %v6799_v63 }
 0x26e   : > { %v3672_v11 = vpop.f32.mrf.mxu0  ;;  %v3724_v4 = vadd.f32 %v3723_v27, %v3722_v17 }
 0x270   : > { %v3673_v43 = vpop.f32.mrf.mxu0  ;;  %v2361_v25 = vadd.f32 %v3724_v4, %v2261_v3 }
 0x271   : > { %v3725_v29 = vpop.f32.mrf.mxu1  ;;  %v3674_v52 = vadd.f32 %v3673_v43, %v3672_v11 }
 0x273   : > { %v3726_v45 = vpop.f32.mrf.mxu1  ;;  %v2266_v11 = vadd.f32 %v3674_v52, %v3621_v21 }
 0x274   : > { %v3675_v6 = vpop.f32.mrf.mxu0  ;;  %v3727_v43 = vadd.f32 %v3726_v45, %v3725_v29 }
 0x276   : > { %v3676_v39 = vpop.f32.mrf.mxu0 }
 0x277   : > { %v3728_v56 = vpop.f32.mrf.mxu1  ;;  %v3677_v17 = vadd.f32 %v3676_v39, %v3675_v6  ;;  %v2366_v39 = vadd.f32 %v3727_v43, %v2266_v11 }
 0x279   : > { %v3729_v42 = vpop.f32.mrf.mxu1  ;;  %v2271_v5 = vadd.f32 %v3677_v17, %v3624_v36 }
 0x27a   : > { %v3678_v22 = vpop.f32.mrf.mxu0  ;;  %v3730_v34 = vadd.f32 %v3729_v42, %v3728_v56 }
 0x27c   : > { %v3679_v28 = vpop.f32.mrf.mxu0 }
 0x27d   : > { %v6807_v48 = vpop.f32.mrf.mxu1 }
 0x27f   : > { %v6811_v1 = vpop.f32.mrf.mxu1 }
 0x280   : > { %v6809_v57 = vpop.f32.mrf.mxu0  ;;  %v3733_v56 = vadd.f32 %v6811_v1, %v6807_v48 }
 0x282   : > { %v6813_v19 = vpop.f32.mrf.mxu0 }
 0x283   : > { %v6815_v9 = vpop.f32.mrf.mxu1 }
 0x285   : > { %v6817_v37 = vpop.f32.mrf.mxu1 }
 0x28a   : > { %v3769_v49 = vpop.f32.mrf.mxu0 }
 0x28c   : > { %v3770_v61 = vpop.f32.mrf.mxu0 }
 0x28d   : > { %v3771_v30 = vadd.f32 %v3770_v61, %v3769_v49  ;;  %v3680_v49 = vadd.f32 %v3679_v28, %v3678_v22  ;;  %v3683_v22 = vadd.f32 %v6813_v19, %v6809_v57  ;;  %v2371_v28 = vadd.f32 %v3730_v34, %v2271_v5 }
 0x28e   : > { %v3772_v41 = vpop.f32.mrf.mxu0  ;;  %v2550_v53 = vpop.f32.mrf.mxu1 }
 0x28f   : > { %v2451_v10 = vadd.f32 %v3771_v30, %v2351_v54 }
 0x290   : > { %v3773_v16 = vpop.f32.mrf.mxu0  ;;  %v4006_v60 = vpop.f32.mrf.mxu1 }
 0x291   : > { %v2551_v24 = vadd.f32 %v2550_v53, %v2451_v10  ;;  %v3774_v31 = vadd.f32 %v3773_v16, %v3772_v41  ;;  %v2276_v53 = vadd.f32 %v3680_v49, %v3627_v59 }
 0x292   : > { %v3775_v58 = vpop.f32.mrf.mxu0  ;;  %v2555_v18 = vpop.f32.mrf.mxu1 }
 0x293   : > { %v2584_v38 = vmax.f32 %v6757_v47, %v2551_v24  ;;  %v2456_v14 = vadd.f32 %v3774_v31, %v2356_v44  ;;  %v2376_v24 = vadd.f32 %v3733_v56, %v2276_v53  ;;  %v3736_v31 = vadd.f32 %v6817_v37, %v6815_v9 }
 0x294   : > { %v3776_v27 = vpop.f32.mrf.mxu0  ;;  %v4009_v2 = vpop.f32.mrf.mxu1 }
 0x295   : > { %v2598_v13 = vadd.f32 %v6826_v33, %v2584_v38  ;;  %v2556_v50 = vadd.f32 %v2555_v18, %v2456_v14  ;;  %v3777_v0 = vadd.f32 %v3776_v27, %v3775_v58 }
 0x296   : > { %v3778_v47 = vpop.f32.mrf.mxu0  ;;  %v2560_v45 = vpop.f32.mrf.mxu1 }
 0x297   : > { %v2605_v15 = vmax.f32 %v2598_v13, 0.0  ;;  %v2585_v29 = vmax.f32 %v6762_v12, %v2556_v50  ;;  %v2461_v6 = vadd.f32 %v3777_v0, %v2361_v25 }
 0x298   : > { %v3779_v23 = vpop.f32.mrf.mxu0  ;;  %v4012_v54 = vpop.f32.mrf.mxu1 }
 0x299   : > { %2612 = vst [vmem:[%s6835_s17] sm:$0xff] %v2605_v15  ;;  %v2599_v32 = vadd.f32 %v6826_v33, %v2585_v29  ;;  %v2561_v62 = vadd.f32 %v2560_v45, %v2461_v6  ;;  %v3780_v61 = vadd.f32 %v3779_v23, %v3778_v47 }
 0x29a   : > { %v3781_v30 = vpop.f32.mrf.mxu0  ;;  %v2565_v10 = vpop.f32.mrf.mxu1 }
 0x29b   : > { %v2606_v41 = vmax.f32 %v2599_v32, 0.0  ;;  %v2586_v12 = vmax.f32 %v6767_v55, %v2561_v62  ;;  %v2466_v51 = vadd.f32 %v3780_v61, %v2366_v39  ;;  %v3630_v55 = vadd.f32 %v6805_v7, %v6803_v35 }
 0x29c   : > { %v3782_v42 = vpop.f32.mrf.mxu0  ;;  %v4015_v52 = vpop.f32.mrf.mxu1 }
 0x29d   : > { %2613 = vst [vmem:[%s6835_s17 + $0x8] sm:$0xff] %v2606_v41  ;;  %v2600_v44 = vadd.f32 %v6826_v33, %v2586_v12  ;;  %v2566_v63 = vadd.f32 %v2565_v10, %v2466_v51  ;;  %v3783_v26 = vadd.f32 %v3782_v42, %v3781_v30  ;;  %v2281_v57 = vadd.f32 %v3683_v22, %v3630_v55 }
 0x29e   : > { %v3784_v16 = vpop.f32.mrf.mxu0  ;;  %v2570_v1 = vpop.f32.mrf.mxu1 }
 0x29f   : > { %v2607_v3 = vmax.f32 %v2600_v44, 0.0  ;;  %v2587_v4 = vmax.f32 %v6772_v46, %v2566_v63  ;;  %v2471_v48 = vadd.f32 %v3783_v26, %v2371_v28  ;;  %v2381_v43 = vadd.f32 %v3736_v31, %v2281_v57 }
 0x2a0   : > { %v3785_v19 = vpop.f32.mrf.mxu0  ;;  %v4018_v38 = vpop.f32.mrf.mxu1 }
 0x2a1   : > { %2614 = vst [vmem:[%s6835_s17 + $0x10] sm:$0xff] %v2607_v3  ;;  %v2601_v60 = vadd.f32 %v6826_v33, %v2587_v4  ;;  %v2571_v21 = vadd.f32 %v2570_v1, %v2471_v48  ;;  %v3786_v58 = vadd.f32 %v3785_v19, %v3784_v16 }
 0x2a2   : > { %v3787_v35 = vpop.f32.mrf.mxu0  ;;  %v2575_v18 = vpop.f32.mrf.mxu1 }
 0x2a3   : > { %v2608_v7 = vmax.f32 %v2601_v60, 0.0  ;;  %v2588_v46 = vmax.f32 %v6779_v40, %v2571_v21  ;;  %v2476_v14 = vadd.f32 %v3786_v58, %v2376_v24 }
 0x2a4   : > { %v3788_v11 = vpop.f32.mrf.mxu0  ;;  %v4021_v27 = vpop.f32.mrf.mxu1 }
 0x2a5   : > { %2615 = vst [vmem:[%s6835_s17 + $0x18] sm:$0xff] %v2608_v7  ;;  %v2602_v17 = vadd.f32 %v6826_v33, %v2588_v46  ;;  %v2576_v9 = vadd.f32 %v2575_v18, %v2476_v14  ;;  %v3789_v37 = vadd.f32 %v3788_v11, %v3787_v35 }
 0x2a6   : > { %v2580_v0 = vpop.f32.mrf.mxu1 }
 0x2a7   : > { %v2609_v25 = vmax.f32 %v2602_v17, 0.0  ;;  %v2589_v13 = vmax.f32 %v6788_v20, %v2576_v9  ;;  %v2481_v50 = vadd.f32 %v3789_v37, %v2381_v43 }
 0x2a8   : > { %v4024_v36 = vpop.f32.mrf.mxu1 }
 0x2a9   : > { %2616 = vst [vmem:[%s6835_s17 + $0x20] sm:$0xff] %v2609_v25  ;;  %v2603_v40 = vadd.f32 %v6826_v33, %v2589_v13  ;;  %v2581_v2 = vadd.f32 %v2580_v0, %v2481_v50 }
 0x2ab   : > { %v2610_v47 = vmax.f32 %v2603_v40, 0.0  ;;  %v2590_v15 = vmax.f32 %v6797_v8, %v2581_v2 }
 0x2ad   : > { %2617 = vst [vmem:[%s6835_s17 + $0x28] sm:$0xff] %v2610_v47  ;;  %v2604_v29 = vadd.f32 %v6826_v33, %v2590_v15 }
 0x2af   : > { %v2611_v6 = vmax.f32 %v2604_v29, 0.0 }
 0x2b1   : > { %2618 = vst [vmem:[%s6835_s17 + $0x30] sm:$0x1] %v2611_v6 }
 0x2b2 PF: > { %s13_s12 = sadd.s32 1, %s4187_s12  }
 0x2b3   : > { %p10_p4 = scmp.ge.s32.totalorder %s13_s12, 4  }
 0x2b5   :  { %12 = sbr.rel (!%p10_p4) target bundleno = 1 (0x1), region = 65 }

// kernel: simple_cnn_forward.5
= control target key start
LH: loop header
LB: loop body
LE: loop exit
PB: predicated region body
PF: predicated region fallthrough
CT: control target
= control target key end

     0   :  { %v3942_v27 = vmov 1983009808   ;;  %v842_v29 = vlaneseq  ;;  %s6484_s0 = inlined_call_operand.vmem [shape: f32[2,6272], index: 0, kind: input, shape index: {}]   ;;  %s6485_s1 = inlined_call_operand.vmem [shape: f32[6272,128], index: 1, kind: input, shape index: {}]   ;;  %s6486_s2 = inlined_call_operand.vmem [shape: f32[1,128], index: 2, kind: input, shape index: {}]   ;;  %s6487_s3 = inlined_call_operand.vmem [shape: f32[128,128], index: 3, kind: input, shape index: {}]   ;;  %s6488_s4 = inlined_call_operand.vmem [shape: f32[1,128], index: 4, kind: input, shape index: {}]   ;;  %s6489_s5 = inlined_call_operand.hbm [shape: f32[2,128], index: 5, kind: output, shape index: {}]  }
   0x1   :  { %v65_v0 = vld [vmem:[%s6485_s1 + $0xf8] sm:$0xff]  ;;  %v64_v2 = vld [vmem:[%s6485_s1 + $0xf0] sm:$0xff]  ;;  %v63_v6 = vld [vmem:[%s6485_s1 + $0xe8] sm:$0xff]  ;;  %v840_v28 = vunpack.c.l.s4 %v3942_v27 }
   0x2   :  { %v49_v1 = vld [vmem:[%s6485_s1 + $0x78] sm:$0xff]  ;;  %2960 = vmatprep.subr.mxu0 %v65_v0  ;;  %v48_v4 = vld [vmem:[%s6485_s1 + $0x70] sm:$0xff]  ;;  %v47_v8 = vld [vmem:[%s6485_s1 + $0x68] sm:$0xff]  ;;  %v843_v39 = vshrl.u32 %v842_v29, 7 }
   0x3   :  { %v97_v3 = vld [vmem:[%s6485_s1 + $0x1f8] sm:$0xff]  ;;  %2961 = vmatpush3.msra.mxu0 %v49_v1  ;;  %v96_v7 = vld [vmem:[%s6485_s1 + $0x1f0] sm:$0xff]  ;;  %v95_v10 = vld [vmem:[%s6485_s1 + $0x1e8] sm:$0xff]  ;;  %v841_v38 = vunpack.c.0.s8 %v840_v28 }
   0x4   :  { %v81_v5 = vld [vmem:[%s6485_s1 + $0x178] sm:$0xff]  ;;  %2995 = vmatprep.subr.mxu1 %v97_v3  ;;  %2962 = vmatprep.subr.mxu0 %v64_v2  ;;  %v80_v9 = vld [vmem:[%s6485_s1 + $0x170] sm:$0xff]  ;;  %v62_v11 = vld [vmem:[%s6485_s1 + $0xe0] sm:$0xff] }
   0x5   :  { %2996 = vmatpush3.msra.mxu1 %v81_v5  ;;  %2963 = vmatpush3.msra.mxu0 %v48_v4  ;;  %v79_v12 = vld [vmem:[%s6485_s1 + $0x168] sm:$0xff]  ;;  %v46_v13 = vld [vmem:[%s6485_s1 + $0x60] sm:$0xff]  ;;  %v61_v15 = vld [vmem:[%s6485_s1 + $0xd8] sm:$0xff]  ;;  %v4105_v48 = vsub.s32 %v841_v38, %v843_v39 }
   0x6   :  { %2997 = vmatprep.subr.mxu1 %v96_v7  ;;  %2964 = vmatprep.subr.mxu0 %v63_v6  ;;  %v94_v14 = vld [vmem:[%s6485_s1 + $0x1e0] sm:$0xff]  ;;  %v45_v17 = vld [vmem:[%s6485_s1 + $0x58] sm:$0xff]  ;;  %v60_v19 = vld [vmem:[%s6485_s1 + $0xd0] sm:$0xff] }
   0x7   :  { %2998 = vmatpush3.msra.mxu1 %v80_v9  ;;  %2965 = vmatpush3.msra.mxu0 %v47_v8  ;;  %v78_v16 = vld [vmem:[%s6485_s1 + $0x160] sm:$0xff]  ;;  %v93_v18 = vld [vmem:[%s6485_s1 + $0x1d8] sm:$0xff]  ;;  %v44_v21 = vld [vmem:[%s6485_s1 + $0x50] sm:$0xff] }
   0x8   :  { %2999 = vmatprep.subr.mxu1 %v95_v10  ;;  %2966 = vmatprep.subr.mxu0 %v62_v11  ;;  %v77_v20 = vld [vmem:[%s6485_s1 + $0x158] sm:$0xff]  ;;  %v92_v22 = vld [vmem:[%s6485_s1 + $0x1d0] sm:$0xff]  ;;  %v59_v23 = vld [vmem:[%s6485_s1 + $0xc8] sm:$0xff] }
   0x9   :  { %3000 = vmatpush3.msra.mxu1 %v79_v12  ;;  %2967 = vmatpush3.msra.mxu0 %v46_v13  ;;  %v76_v24 = vld [vmem:[%s6485_s1 + $0x150] sm:$0xff]  ;;  %v43_v25 = vld [vmem:[%s6485_s1 + $0x48] sm:$0xff]  ;;  %v58_v30 = vld [vmem:[%s6485_s1 + $0xc0] sm:$0xff] }
   0xa   :  { %3001 = vmatprep.subr.mxu1 %v94_v14  ;;  %2968 = vmatprep.subr.mxu0 %v61_v15  ;;  %v91_v26 = vld [vmem:[%s6485_s1 + $0x1c8] sm:$0xff]  ;;  %v42_v32 = vld [vmem:[%s6485_s1 + $0x40] sm:$0xff]  ;;  %v57_v34 = vld [vmem:[%s6485_s1 + $0xb8] sm:$0xff] }
   0xb   :  { %3002 = vmatpush3.msra.mxu1 %v78_v16  ;;  %2969 = vmatpush3.msra.mxu0 %v45_v17  ;;  %v75_v31 = vld [vmem:[%s6485_s1 + $0x148] sm:$0xff]  ;;  %v90_v33 = vld [vmem:[%s6485_s1 + $0x1c0] sm:$0xff]  ;;  %v41_v36 = vld [vmem:[%s6485_s1 + $0x38] sm:$0xff] }
   0xc   :  { %3003 = vmatprep.subr.mxu1 %v93_v18  ;;  %2970 = vmatprep.subr.mxu0 %v60_v19  ;;  %v74_v35 = vld [vmem:[%s6485_s1 + $0x140] sm:$0xff]  ;;  %v89_v37 = vld [vmem:[%s6485_s1 + $0x1b8] sm:$0xff]  ;;  %v56_v40 = vld [vmem:[%s6485_s1 + $0xb0] sm:$0xff] }
   0xd   :  { %3004 = vmatpush3.msra.mxu1 %v77_v20  ;;  %2971 = vmatpush3.msra.mxu0 %v44_v21  ;;  %v73_v41 = vld [vmem:[%s6485_s1 + $0x138] sm:$0xff]  ;;  %v40_v42 = vld [vmem:[%s6485_s1 + $0x30] sm:$0xff]  ;;  %v55_v44 = vld [vmem:[%s6485_s1 + $0xa8] sm:$0xff] }
   0xe   :  { %3005 = vmatprep.subr.mxu1 %v92_v22  ;;  %2972 = vmatprep.subr.mxu0 %v59_v23  ;;  %v88_v43 = vld [vmem:[%s6485_s1 + $0x1b0] sm:$0xff]  ;;  %v39_v46 = vld [vmem:[%s6485_s1 + $0x28] sm:$0xff]  ;;  %v54_v49 = vld [vmem:[%s6485_s1 + $0xa0] sm:$0xff] }
   0xf   :  { %3006 = vmatpush3.msra.mxu1 %v76_v24  ;;  %2973 = vmatpush3.msra.mxu0 %v43_v25  ;;  %v72_v45 = vld [vmem:[%s6485_s1 + $0x130] sm:$0xff]  ;;  %v87_v47 = vld [vmem:[%s6485_s1 + $0x1a8] sm:$0xff]  ;;  %v21_v51 = vld [vmem:[%s6484_s0] sm:$0xff] }
  0x10   :  { %3007 = vmatprep.subr.mxu1 %v91_v26  ;;  %2974 = vmatprep.subr.mxu0 %v58_v30  ;;  %v71_v50 = vld [vmem:[%s6485_s1 + $0x128] sm:$0xff]  ;;  %v38_v52 = vld [vmem:[%s6485_s1 + $0x20] sm:$0xff]  ;;  %v53_v54 = vld [vmem:[%s6485_s1 + $0x98] sm:$0xff]  ;;  %v845_v58 = vrot.slane %v21_v51, %v4105_v48  ;;  %v838_v59 = vcombine.high %v21_v51, %v21_v51 }
  0x11   :  { %3008 = vmatpush3.msra.mxu1 %v75_v31  ;;  %2975 = vmatpush3.msra.mxu0 %v42_v32  ;;  %v86_v53 = vld [vmem:[%s6485_s1 + $0x1a0] sm:$0xff]  ;;  %v37_v56 = vld [vmem:[%s6485_s1 + $0x18] sm:$0xff]  ;;  %v52_v60 = vld [vmem:[%s6485_s1 + $0x90] sm:$0xff] }
  0x12   :  { %3009 = vmatprep.subr.mxu1 %v90_v33  ;;  %2976 = vmatprep.subr.mxu0 %v57_v34  ;;  %v70_v55 = vld [vmem:[%s6485_s1 + $0x120] sm:$0xff]  ;;  %v85_v57 = vld [vmem:[%s6485_s1 + $0x198] sm:$0xff]  ;;  %v36_v62 = vld [vmem:[%s6485_s1 + $0x10] sm:$0xff]  ;;  %v853_v4 = vcombine.high %v845_v58, %v845_v58  ;;  %v852_v5 = vrot.slane %v838_v59, %v4105_v48 }
  0x13   :  { %3010 = vmatpush3.msra.mxu1 %v74_v35  ;;  %2977 = vmatpush3.msra.mxu0 %v41_v36  ;;  %v69_v61 = vld [vmem:[%s6485_s1 + $0x118] sm:$0xff]  ;;  %v84_v63 = vld [vmem:[%s6485_s1 + $0x190] sm:$0xff]  ;;  %v51_v0 = vld [vmem:[%s6485_s1 + $0x88] sm:$0xff] }
  0x14   :  { %3011 = vmatprep.subr.mxu1 %v89_v37  ;;  %2978 = vmatprep.subr.mxu0 %v56_v40  ;;  %v68_v1 = vld [vmem:[%s6485_s1 + $0x110] sm:$0xff]  ;;  %v35_v2 = vld [vmem:[%s6485_s1 + $0x8] sm:$0xff]  ;;  %v50_v6 = vld [vmem:[%s6485_s1 + $0x80] sm:$0xff]  ;;  %v854_v12 = vcombine.high %v852_v5, %v852_v5 }
  0x15   :  { %3012 = vmatpush3.msra.mxu1 %v73_v41  ;;  %2979 = vmatpush3.msra.mxu0 %v40_v42  ;;  %v83_v3 = vld [vmem:[%s6485_s1 + $0x188] sm:$0xff]  ;;  %v34_v7 = vld [vmem:[%s6485_s1] sm:$0xff]  ;;  %v129_v10 = vld [vmem:[%s6485_s1 + $0x2f8] sm:$0xff] }
  0x16   :  { %3013 = vmatprep.subr.mxu1 %v88_v43  ;;  %2980 = vmatprep.subr.mxu0 %v55_v44  ;;  %v67_v8 = vld [vmem:[%s6485_s1 + $0x108] sm:$0xff]  ;;  %v82_v9 = vld [vmem:[%s6485_s1 + $0x180] sm:$0xff]  ;;  %v113_v13 = vld [vmem:[%s6485_s1 + $0x278] sm:$0xff] }
  0x17   :  { %3014 = vmatpush3.msra.mxu1 %v72_v45  ;;  %2981 = vmatpush3.msra.mxu0 %v39_v46  ;;  %v66_v11 = vld [vmem:[%s6485_s1 + $0x100] sm:$0xff]  ;;  %v128_v14 = vld [vmem:[%s6485_s1 + $0x2f0] sm:$0xff]  ;;  %v161_v15 = vld [vmem:[%s6485_s1 + $0x3f8] sm:$0xff] }
  0x18   :  { %3015 = vmatprep.subr.mxu1 %v87_v47  ;;  %2982 = vmatprep.subr.mxu0 %v54_v49  ;;  %v112_v16 = vld [vmem:[%s6485_s1 + $0x270] sm:$0xff]  ;;  %v145_v17 = vld [vmem:[%s6485_s1 + $0x378] sm:$0xff]  ;;  %v127_v18 = vld [vmem:[%s6485_s1 + $0x2e8] sm:$0xff] }
  0x19   :  { %3016 = vmatpush3.msra.mxu1 %v71_v50  ;;  %2983 = vmatpush3.msra.mxu0 %v38_v52  ;;  %v160_v19 = vld [vmem:[%s6485_s1 + $0x3f0] sm:$0xff]  ;;  %v111_v20 = vld [vmem:[%s6485_s1 + $0x268] sm:$0xff]  ;;  %v126_v22 = vld [vmem:[%s6485_s1 + $0x2e0] sm:$0xff] }
  0x1a   :  { %3017 = vmatprep.subr.mxu1 %v86_v53  ;;  %2984 = vmatprep.subr.mxu0 %v53_v54  ;;  %v144_v21 = vld [vmem:[%s6485_s1 + $0x370] sm:$0xff]  ;;  %v159_v23 = vld [vmem:[%s6485_s1 + $0x3e8] sm:$0xff]  ;;  %v110_v24 = vld [vmem:[%s6485_s1 + $0x260] sm:$0xff] }
  0x1b   :  { %3018 = vmatpush3.msra.mxu1 %v70_v55  ;;  %2985 = vmatpush3.msra.mxu0 %v37_v56  ;;  %v143_v25 = vld [vmem:[%s6485_s1 + $0x368] sm:$0xff]  ;;  %v125_v26 = vld [vmem:[%s6485_s1 + $0x2d8] sm:$0xff]  ;;  %v158_v27 = vld [vmem:[%s6485_s1 + $0x3e0] sm:$0xff] }
  0x1c   :  { %3019 = vmatprep.subr.mxu1 %v85_v57  ;;  %2986 = vmatprep.subr.mxu0 %v52_v60  ;;  %v109_v28 = vld [vmem:[%s6485_s1 + $0x258] sm:$0xff]  ;;  %v142_v29 = vld [vmem:[%s6485_s1 + $0x360] sm:$0xff]  ;;  %v124_v30 = vld [vmem:[%s6485_s1 + $0x2d0] sm:$0xff] }
  0x1d   :  { %3020 = vmatpush3.msra.mxu1 %v69_v61  ;;  %2987 = vmatpush3.msra.mxu0 %v36_v62  ;;  %v157_v31 = vld [vmem:[%s6485_s1 + $0x3d8] sm:$0xff]  ;;  %v108_v32 = vld [vmem:[%s6485_s1 + $0x250] sm:$0xff]  ;;  %v123_v34 = vld [vmem:[%s6485_s1 + $0x2c8] sm:$0xff] }
  0x1e   :  { %3021 = vmatprep.subr.mxu1 %v84_v63  ;;  %2988 = vmatprep.subr.mxu0 %v51_v0  ;;  %v141_v33 = vld [vmem:[%s6485_s1 + $0x358] sm:$0xff]  ;;  %v156_v35 = vld [vmem:[%s6485_s1 + $0x3d0] sm:$0xff]  ;;  %v107_v36 = vld [vmem:[%s6485_s1 + $0x248] sm:$0xff] }
  0x1f   :  { %3022 = vmatpush3.msra.mxu1 %v68_v1  ;;  %2989 = vmatpush3.msra.mxu0 %v35_v2  ;;  %v140_v37 = vld [vmem:[%s6485_s1 + $0x350] sm:$0xff]  ;;  %v122_v38 = vld [vmem:[%s6485_s1 + $0x2c0] sm:$0xff]  ;;  %v155_v39 = vld [vmem:[%s6485_s1 + $0x3c8] sm:$0xff] }
  0x20   :  { %3023 = vmatprep.subr.mxu1 %v83_v3  ;;  %2990 = vmatprep.subr.mxu0 %v50_v6  ;;  %v106_v40 = vld [vmem:[%s6485_s1 + $0x240] sm:$0xff]  ;;  %v139_v41 = vld [vmem:[%s6485_s1 + $0x348] sm:$0xff]  ;;  %v121_v42 = vld [vmem:[%s6485_s1 + $0x2b8] sm:$0xff] }
  0x21   :  { %1162 = vmatprep.mubr.f32.mxu0 %v853_v4  ;;  %2991 = vmatpush3.msra.mxu0 %v34_v7  ;;  %v154_v43 = vld [vmem:[%s6485_s1 + $0x3c0] sm:$0xff]  ;;  %v105_v44 = vld [vmem:[%s6485_s1 + $0x238] sm:$0xff]  ;;  %v120_v46 = vld [vmem:[%s6485_s1 + $0x2b0] sm:$0xff] }
  0x22   :  { %3024 = vmatpush3.msra.mxu1 %v67_v8  ;;  %1163 = vmatmul.mubr.f32.vlgmr.msra.gmra.mxu0 %v845_v58  ;;  %v138_v45 = vld [vmem:[%s6485_s1 + $0x340] sm:$0xff]  ;;  %v153_v47 = vld [vmem:[%s6485_s1 + $0x3b8] sm:$0xff]  ;;  %v104_v49 = vld [vmem:[%s6485_s1 + $0x230] sm:$0xff] }
  0x23   :  { %3025 = vmatprep.subr.mxu1 %v82_v9  ;;  %3030 = vmatprep.subr.mxu0 %v129_v10  ;;  %v137_v50 = vld [vmem:[%s6485_s1 + $0x338] sm:$0xff]  ;;  %v119_v51 = vld [vmem:[%s6485_s1 + $0x2a8] sm:$0xff]  ;;  %v152_v52 = vld [vmem:[%s6485_s1 + $0x3b0] sm:$0xff] }
  0x24   :  { %3026 = vmatpush3.msra.mxu1 %v66_v11  ;;  %1232 = vmatprep.mubr.f32.mxu1 %v854_v12  ;;  %v103_v53 = vld [vmem:[%s6485_s1 + $0x228] sm:$0xff]  ;;  %v136_v54 = vld [vmem:[%s6485_s1 + $0x330] sm:$0xff]  ;;  %v118_v55 = vld [vmem:[%s6485_s1 + $0x2a0] sm:$0xff] }
  0x25   :  { %3031 = vmatpush3.msra.mxu0 %v113_v13  ;;  %1233 = vmatmul.mubr.f32.vlgmr.msra.gmra.mxu1 %v852_v5  ;;  %v151_v56 = vld [vmem:[%s6485_s1 + $0x3a8] sm:$0xff]  ;;  %v102_v57 = vld [vmem:[%s6485_s1 + $0x220] sm:$0xff]  ;;  %v117_v60 = vld [vmem:[%s6485_s1 + $0x298] sm:$0xff] }
  0x26   :  { %3032 = vmatprep.subr.mxu0 %v128_v14  ;;  %3065 = vmatprep.subr.mxu1 %v161_v15  ;;  %v22_v58 = vld [vmem:[%s6484_s0 + $0x8] sm:$0xff]  ;;  %v150_v61 = vld [vmem:[%s6485_s1 + $0x3a0] sm:$0xff]  ;;  %v101_v62 = vld [vmem:[%s6485_s1 + $0x218] sm:$0xff] }
  0x27   :  { %3033 = vmatpush3.msra.mxu0 %v112_v16  ;;  %3066 = vmatpush3.msra.mxu1 %v145_v17  ;;  %v135_v59 = vld [vmem:[%s6485_s1 + $0x328] sm:$0xff]  ;;  %v134_v63 = vld [vmem:[%s6485_s1 + $0x320] sm:$0xff]  ;;  %v116_v0 = vld [vmem:[%s6485_s1 + $0x290] sm:$0xff]  ;;  %v855_v1 = vcombine.high %v22_v58, %v22_v58  ;;  %v862_v4 = vrot.slane %v22_v58, %v4105_v48 }
  0x28   :  { %3034 = vmatprep.subr.mxu0 %v127_v18  ;;  %3067 = vmatprep.subr.mxu1 %v160_v19  ;;  %v149_v2 = vld [vmem:[%s6485_s1 + $0x398] sm:$0xff]  ;;  %v100_v3 = vld [vmem:[%s6485_s1 + $0x210] sm:$0xff]  ;;  %v115_v6 = vld [vmem:[%s6485_s1 + $0x288] sm:$0xff] }
  0x29   :  { %3035 = vmatpush3.msra.mxu0 %v111_v20  ;;  %3068 = vmatpush3.msra.mxu1 %v144_v21  ;;  %v133_v5 = vld [vmem:[%s6485_s1 + $0x318] sm:$0xff]  ;;  %v148_v7 = vld [vmem:[%s6485_s1 + $0x390] sm:$0xff]  ;;  %v99_v8 = vld [vmem:[%s6485_s1 + $0x208] sm:$0xff]  ;;  %v869_v11 = vrot.slane %v855_v1, %v4105_v48  ;;  %v870_v14 = vcombine.high %v862_v4, %v862_v4 }
  0x2a   :  { %3036 = vmatprep.subr.mxu0 %v126_v22  ;;  %3069 = vmatprep.subr.mxu1 %v159_v23  ;;  %v132_v9 = vld [vmem:[%s6485_s1 + $0x310] sm:$0xff]  ;;  %v114_v10 = vld [vmem:[%s6485_s1 + $0x280] sm:$0xff]  ;;  %v147_v12 = vld [vmem:[%s6485_s1 + $0x388] sm:$0xff] }
  0x2b   :  { %3037 = vmatpush3.msra.mxu0 %v110_v24  ;;  %3070 = vmatpush3.msra.mxu1 %v143_v25  ;;  %v98_v13 = vld [vmem:[%s6485_s1 + $0x200] sm:$0xff]  ;;  %v131_v15 = vld [vmem:[%s6485_s1 + $0x308] sm:$0xff]  ;;  %v193_v17 = vld [vmem:[%s6485_s1 + $0x4f8] sm:$0xff]  ;;  %v871_v19 = vcombine.high %v869_v11, %v869_v11 }
  0x2c   :  { %3038 = vmatprep.subr.mxu0 %v125_v26  ;;  %3071 = vmatprep.subr.mxu1 %v158_v27  ;;  %v146_v16 = vld [vmem:[%s6485_s1 + $0x380] sm:$0xff]  ;;  %v177_v20 = vld [vmem:[%s6485_s1 + $0x478] sm:$0xff]  ;;  %v192_v21 = vld [vmem:[%s6485_s1 + $0x4f0] sm:$0xff] }
  0x2d   :  { %3039 = vmatpush3.msra.mxu0 %v109_v28  ;;  %3072 = vmatpush3.msra.mxu1 %v142_v29  ;;  %v130_v18 = vld [vmem:[%s6485_s1 + $0x300] sm:$0xff]  ;;  %v225_v22 = vld [vmem:[%s6485_s1 + $0x5f8] sm:$0xff]  ;;  %v176_v23 = vld [vmem:[%s6485_s1 + $0x470] sm:$0xff] }
  0x2e   :  { %3040 = vmatprep.subr.mxu0 %v124_v30  ;;  %3073 = vmatprep.subr.mxu1 %v157_v31  ;;  %v209_v24 = vld [vmem:[%s6485_s1 + $0x578] sm:$0xff]  ;;  %v191_v25 = vld [vmem:[%s6485_s1 + $0x4e8] sm:$0xff]  ;;  %v224_v26 = vld [vmem:[%s6485_s1 + $0x5f0] sm:$0xff] }
  0x2f   :  { %3041 = vmatpush3.msra.mxu0 %v108_v32  ;;  %3074 = vmatpush3.msra.mxu1 %v141_v33  ;;  %v175_v27 = vld [vmem:[%s6485_s1 + $0x468] sm:$0xff]  ;;  %v208_v28 = vld [vmem:[%s6485_s1 + $0x570] sm:$0xff]  ;;  %v190_v29 = vld [vmem:[%s6485_s1 + $0x4e0] sm:$0xff] }
  0x30   :  { %3042 = vmatprep.subr.mxu0 %v123_v34  ;;  %3075 = vmatprep.subr.mxu1 %v156_v35  ;;  %v223_v30 = vld [vmem:[%s6485_s1 + $0x5e8] sm:$0xff]  ;;  %v174_v31 = vld [vmem:[%s6485_s1 + $0x460] sm:$0xff]  ;;  %v189_v33 = vld [vmem:[%s6485_s1 + $0x4d8] sm:$0xff] }
  0x31   :  { %3043 = vmatpush3.msra.mxu0 %v107_v36  ;;  %3076 = vmatpush3.msra.mxu1 %v140_v37  ;;  %v207_v32 = vld [vmem:[%s6485_s1 + $0x568] sm:$0xff]  ;;  %v222_v34 = vld [vmem:[%s6485_s1 + $0x5e0] sm:$0xff]  ;;  %v173_v35 = vld [vmem:[%s6485_s1 + $0x458] sm:$0xff] }
  0x32   :  { %3044 = vmatprep.subr.mxu0 %v122_v38  ;;  %3077 = vmatprep.subr.mxu1 %v155_v39  ;;  %v206_v36 = vld [vmem:[%s6485_s1 + $0x560] sm:$0xff]  ;;  %v188_v37 = vld [vmem:[%s6485_s1 + $0x4d0] sm:$0xff]  ;;  %v221_v38 = vld [vmem:[%s6485_s1 + $0x5d8] sm:$0xff] }
  0x33   :  { %3045 = vmatpush3.msra.mxu0 %v106_v40  ;;  %3078 = vmatpush3.msra.mxu1 %v139_v41  ;;  %v172_v39 = vld [vmem:[%s6485_s1 + $0x450] sm:$0xff]  ;;  %v205_v40 = vld [vmem:[%s6485_s1 + $0x558] sm:$0xff]  ;;  %v187_v41 = vld [vmem:[%s6485_s1 + $0x4c8] sm:$0xff] }
  0x34   :  { %3046 = vmatprep.subr.mxu0 %v121_v42  ;;  %3079 = vmatprep.subr.mxu1 %v154_v43  ;;  %v220_v42 = vld [vmem:[%s6485_s1 + $0x5d0] sm:$0xff]  ;;  %v171_v43 = vld [vmem:[%s6485_s1 + $0x448] sm:$0xff] }
  0x35   :  { %3047 = vmatpush3.msra.mxu0 %v105_v44  ;;  %3080 = vmatpush3.msra.mxu1 %v138_v45  ;;  %v204_v44 = vld [vmem:[%s6485_s1 + $0x550] sm:$0xff]  ;;  %v186_v45 = vld [vmem:[%s6485_s1 + $0x4c0] sm:$0xff]  ;;  %v183_v58 = vld [vmem:[%s6485_s1 + $0x4a8] sm:$0xff] }
  0x36   :  { %3048 = vmatprep.subr.mxu0 %v120_v46  ;;  %3081 = vmatprep.subr.mxu1 %v153_v47  ;;  %v219_v46 = vld [vmem:[%s6485_s1 + $0x5c8] sm:$0xff]  ;;  %v170_v47 = vld [vmem:[%s6485_s1 + $0x440] sm:$0xff]  ;;  %v23_v1 = vld [vmem:[%s6484_s0 + $0x10] sm:$0xff] }
  0x37   :  { %3049 = vmatpush3.msra.mxu0 %v104_v49  ;;  %3082 = vmatpush3.msra.mxu1 %v137_v50  ;;  %v203_v49 = vld [vmem:[%s6485_s1 + $0x548] sm:$0xff]  ;;  %v185_v50 = vld [vmem:[%s6485_s1 + $0x4b8] sm:$0xff] }
  0x38   :  { %3050 = vmatprep.subr.mxu0 %v119_v51  ;;  %3083 = vmatprep.subr.mxu1 %v152_v52  ;;  %v218_v51 = vld [vmem:[%s6485_s1 + $0x5c0] sm:$0xff]  ;;  %v169_v52 = vld [vmem:[%s6485_s1 + $0x438] sm:$0xff] }
  0x39   :  { %3051 = vmatpush3.msra.mxu0 %v103_v53  ;;  %3084 = vmatpush3.msra.mxu1 %v136_v54  ;;  %v202_v53 = vld [vmem:[%s6485_s1 + $0x540] sm:$0xff]  ;;  %v184_v54 = vld [vmem:[%s6485_s1 + $0x4b0] sm:$0xff] }
  0x3a   :  { %3052 = vmatprep.subr.mxu0 %v118_v55  ;;  %3085 = vmatprep.subr.mxu1 %v151_v56  ;;  %v217_v55 = vld [vmem:[%s6485_s1 + $0x5b8] sm:$0xff]  ;;  %v168_v56 = vld [vmem:[%s6485_s1 + $0x430] sm:$0xff] }
  0x3b   :  { %3053 = vmatpush3.msra.mxu0 %v102_v57  ;;  %3086 = vmatpush3.msra.mxu1 %v135_v59  ;;  %v201_v57 = vld [vmem:[%s6485_s1 + $0x538] sm:$0xff]  ;;  %v216_v59 = vld [vmem:[%s6485_s1 + $0x5b0] sm:$0xff] }
  0x3c   :  { %3054 = vmatprep.subr.mxu0 %v117_v60  ;;  %3087 = vmatprep.subr.mxu1 %v150_v61  ;;  %v167_v60 = vld [vmem:[%s6485_s1 + $0x428] sm:$0xff]  ;;  %v200_v61 = vld [vmem:[%s6485_s1 + $0x530] sm:$0xff] }
  0x3d   :  { %3055 = vmatpush3.msra.mxu0 %v101_v62  ;;  %3088 = vmatpush3.msra.mxu1 %v134_v63  ;;  %v182_v62 = vld [vmem:[%s6485_s1 + $0x4a0] sm:$0xff]  ;;  %v215_v63 = vld [vmem:[%s6485_s1 + $0x5a8] sm:$0xff] }
  0x3e   :  { %3056 = vmatprep.subr.mxu0 %v116_v0  ;;  %3089 = vmatprep.subr.mxu1 %v149_v2  ;;  %v166_v0 = vld [vmem:[%s6485_s1 + $0x420] sm:$0xff]  ;;  %v199_v2 = vld [vmem:[%s6485_s1 + $0x528] sm:$0xff] }
  0x3f   :  { %3057 = vmatpush3.msra.mxu0 %v100_v3  ;;  %3090 = vmatpush3.msra.mxu1 %v133_v5  ;;  %v181_v3 = vld [vmem:[%s6485_s1 + $0x498] sm:$0xff] }
  0x40   :  { %3058 = vmatprep.subr.mxu0 %v115_v6  ;;  %3091 = vmatprep.subr.mxu1 %v148_v7  ;;  %v165_v5 = vld [vmem:[%s6485_s1 + $0x418] sm:$0xff]  ;;  %v198_v6 = vld [vmem:[%s6485_s1 + $0x520] sm:$0xff]  ;;  %v180_v7 = vld [vmem:[%s6485_s1 + $0x490] sm:$0xff] }
  0x41   :  { %3059 = vmatpush3.msra.mxu0 %v99_v8  ;;  %3092 = vmatpush3.msra.mxu1 %v132_v9  ;;  %v872_v8 = vcombine.high %v23_v1, %v23_v1  ;;  %v213_v9 = vld [vmem:[%s6485_s1 + $0x598] sm:$0xff] }
  0x42   :  { %3060 = vmatprep.subr.mxu0 %v114_v10  ;;  %3093 = vmatprep.subr.mxu1 %v147_v12  ;;  %v164_v10 = vld [vmem:[%s6485_s1 + $0x410] sm:$0xff]  ;;  %v197_v12 = vld [vmem:[%s6485_s1 + $0x518] sm:$0xff] }
  0x43   :  { %3061 = vmatpush3.msra.mxu0 %v98_v13  ;;  %1302 = vmatprep.mubr.f32.mxu0 %v870_v14  ;;  %v179_v13 = vld [vmem:[%s6485_s1 + $0x488] sm:$0xff]  ;;  %v212_v14 = vld [vmem:[%s6485_s1 + $0x590] sm:$0xff] }
  0x44   :  { %3094 = vmatpush3.msra.mxu1 %v131_v15  ;;  %1303 = vmatmul.mubr.f32.vlgmr.msra.gmra.mxu0 %v862_v4  ;;  %v214_v4 = vld [vmem:[%s6485_s1 + $0x5a0] sm:$0xff]  ;;  %v163_v15 = vld [vmem:[%s6485_s1 + $0x408] sm:$0xff] }
  0x45   :  { %3095 = vmatprep.subr.mxu1 %v146_v16  ;;  %3100 = vmatprep.subr.mxu0 %v193_v17  ;;  %v196_v16 = vld [vmem:[%s6485_s1 + $0x510] sm:$0xff]  ;;  %v178_v17 = vld [vmem:[%s6485_s1 + $0x480] sm:$0xff] }
  0x46   :  { %3096 = vmatpush3.msra.mxu1 %v130_v18  ;;  %1372 = vmatprep.mubr.f32.mxu1 %v871_v19  ;;  %v886_v18 = vrot.slane %v872_v8, %v4105_v48  ;;  %v211_v19 = vld [vmem:[%s6485_s1 + $0x588] sm:$0xff]  ;;  %v24_v8 = vld [vmem:[%s6484_s0 + $0x18] sm:$0xff] }
  0x47   :  { %3101 = vmatpush3.msra.mxu0 %v177_v20  ;;  %1373 = vmatmul.mubr.f32.vlgmr.msra.gmra.mxu1 %v869_v11  ;;  %v879_v11 = vrot.slane %v23_v1, %v4105_v48  ;;  %v162_v20 = vld [vmem:[%s6485_s1 + $0x400] sm:$0xff]  ;;  %v247_v1 = vld [vmem:[%s6485_s1 + $0x6a8] sm:$0xff] }
  0x48   :  { %3102 = vmatprep.subr.mxu0 %v192_v21  ;;  %3135 = vmatprep.subr.mxu1 %v225_v22  ;;  %v195_v22 = vld [vmem:[%s6485_s1 + $0x508] sm:$0xff] }
  0x49   :  { %3103 = vmatpush3.msra.mxu0 %v176_v23  ;;  %3136 = vmatpush3.msra.mxu1 %v209_v24  ;;  %v887_v21 = vcombine.high %v879_v11, %v879_v11  ;;  %v210_v23 = vld [vmem:[%s6485_s1 + $0x580] sm:$0xff]  ;;  %v257_v24 = vld [vmem:[%s6485_s1 + $0x6f8] sm:$0xff] }
  0x4a   :  { %3104 = vmatprep.subr.mxu0 %v191_v25  ;;  %3137 = vmatprep.subr.mxu1 %v224_v26  ;;  %v194_v25 = vld [vmem:[%s6485_s1 + $0x500] sm:$0xff]  ;;  %v888_v26 = vcombine.high %v886_v18, %v886_v18 }
  0x4b   :  { %3105 = vmatpush3.msra.mxu0 %v175_v27  ;;  %3138 = vmatpush3.msra.mxu1 %v208_v28  ;;  %v241_v27 = vld [vmem:[%s6485_s1 + $0x678] sm:$0xff]  ;;  %v256_v28 = vld [vmem:[%s6485_s1 + $0x6f0] sm:$0xff] }
  0x4c   :  { %3106 = vmatprep.subr.mxu0 %v190_v29  ;;  %3139 = vmatprep.subr.mxu1 %v223_v30  ;;  %v289_v29 = vld [vmem:[%s6485_s1 + $0x7f8] sm:$0xff]  ;;  %v240_v30 = vld [vmem:[%s6485_s1 + $0x670] sm:$0xff] }
  0x4d   :  { %3107 = vmatpush3.msra.mxu0 %v174_v31  ;;  %3140 = vmatpush3.msra.mxu1 %v207_v32  ;;  %v273_v31 = vld [vmem:[%s6485_s1 + $0x778] sm:$0xff]  ;;  %v255_v32 = vld [vmem:[%s6485_s1 + $0x6e8] sm:$0xff] }
  0x4e   :  { %3108 = vmatprep.subr.mxu0 %v189_v33  ;;  %3141 = vmatprep.subr.mxu1 %v222_v34  ;;  %v288_v33 = vld [vmem:[%s6485_s1 + $0x7f0] sm:$0xff]  ;;  %v239_v34 = vld [vmem:[%s6485_s1 + $0x668] sm:$0xff] }
  0x4f   :  { %3109 = vmatpush3.msra.mxu0 %v173_v35  ;;  %3142 = vmatpush3.msra.mxu1 %v206_v36  ;;  %v272_v35 = vld [vmem:[%s6485_s1 + $0x770] sm:$0xff]  ;;  %v254_v36 = vld [vmem:[%s6485_s1 + $0x6e0] sm:$0xff] }
  0x50   :  { %3110 = vmatprep.subr.mxu0 %v188_v37  ;;  %3143 = vmatprep.subr.mxu1 %v221_v38  ;;  %v287_v37 = vld [vmem:[%s6485_s1 + $0x7e8] sm:$0xff]  ;;  %v238_v38 = vld [vmem:[%s6485_s1 + $0x660] sm:$0xff] }
  0x51   :  { %3111 = vmatpush3.msra.mxu0 %v172_v39  ;;  %3144 = vmatpush3.msra.mxu1 %v205_v40  ;;  %v271_v39 = vld [vmem:[%s6485_s1 + $0x768] sm:$0xff]  ;;  %v253_v40 = vld [vmem:[%s6485_s1 + $0x6d8] sm:$0xff] }
  0x52   :  { %3112 = vmatprep.subr.mxu0 %v187_v41  ;;  %3145 = vmatprep.subr.mxu1 %v220_v42  ;;  %v286_v41 = vld [vmem:[%s6485_s1 + $0x7e0] sm:$0xff]  ;;  %v237_v42 = vld [vmem:[%s6485_s1 + $0x658] sm:$0xff] }
  0x53   :  { %3113 = vmatpush3.msra.mxu0 %v171_v43  ;;  %3146 = vmatpush3.msra.mxu1 %v204_v44  ;;  %v270_v43 = vld [vmem:[%s6485_s1 + $0x760] sm:$0xff]  ;;  %v252_v44 = vld [vmem:[%s6485_s1 + $0x6d0] sm:$0xff] }
  0x54   :  { %3114 = vmatprep.subr.mxu0 %v186_v45  ;;  %3147 = vmatprep.subr.mxu1 %v219_v46  ;;  %v285_v45 = vld [vmem:[%s6485_s1 + $0x7d8] sm:$0xff]  ;;  %v236_v46 = vld [vmem:[%s6485_s1 + $0x650] sm:$0xff] }
  0x55   :  { %3115 = vmatpush3.msra.mxu0 %v170_v47  ;;  %3148 = vmatpush3.msra.mxu1 %v203_v49  ;;  %v269_v47 = vld [vmem:[%s6485_s1 + $0x758] sm:$0xff]  ;;  %v251_v49 = vld [vmem:[%s6485_s1 + $0x6c8] sm:$0xff] }
  0x56   :  { %3116 = vmatprep.subr.mxu0 %v185_v50  ;;  %3149 = vmatprep.subr.mxu1 %v218_v51  ;;  %v284_v50 = vld [vmem:[%s6485_s1 + $0x7d0] sm:$0xff]  ;;  %v235_v51 = vld [vmem:[%s6485_s1 + $0x648] sm:$0xff] }
  0x57   :  { %3117 = vmatpush3.msra.mxu0 %v169_v52  ;;  %3150 = vmatpush3.msra.mxu1 %v202_v53  ;;  %v268_v52 = vld [vmem:[%s6485_s1 + $0x750] sm:$0xff]  ;;  %v250_v53 = vld [vmem:[%s6485_s1 + $0x6c0] sm:$0xff] }
  0x58   :  { %3118 = vmatprep.subr.mxu0 %v184_v54  ;;  %3151 = vmatprep.subr.mxu1 %v217_v55  ;;  %v283_v54 = vld [vmem:[%s6485_s1 + $0x7c8] sm:$0xff]  ;;  %v234_v55 = vld [vmem:[%s6485_s1 + $0x640] sm:$0xff] }
  0x59   :  { %3119 = vmatpush3.msra.mxu0 %v168_v56  ;;  %3152 = vmatpush3.msra.mxu1 %v201_v57  ;;  %v267_v56 = vld [vmem:[%s6485_s1 + $0x748] sm:$0xff]  ;;  %v249_v57 = vld [vmem:[%s6485_s1 + $0x6b8] sm:$0xff] }
  0x5a   :  { %3120 = vmatprep.subr.mxu0 %v183_v58  ;;  %3153 = vmatprep.subr.mxu1 %v216_v59  ;;  %v282_v58 = vld [vmem:[%s6485_s1 + $0x7c0] sm:$0xff]  ;;  %v233_v59 = vld [vmem:[%s6485_s1 + $0x638] sm:$0xff] }
  0x5b   :  { %3121 = vmatpush3.msra.mxu0 %v167_v60  ;;  %3154 = vmatpush3.msra.mxu1 %v200_v61  ;;  %v266_v60 = vld [vmem:[%s6485_s1 + $0x740] sm:$0xff]  ;;  %v248_v61 = vld [vmem:[%s6485_s1 + $0x6b0] sm:$0xff] }
  0x5c   :  { %3122 = vmatprep.subr.mxu0 %v182_v62  ;;  %3155 = vmatprep.subr.mxu1 %v215_v63  ;;  %v281_v62 = vld [vmem:[%s6485_s1 + $0x7b8] sm:$0xff]  ;;  %v232_v63 = vld [vmem:[%s6485_s1 + $0x630] sm:$0xff] }
  0x5d   :  { %3123 = vmatpush3.msra.mxu0 %v166_v0  ;;  %3156 = vmatpush3.msra.mxu1 %v199_v2  ;;  %v265_v0 = vld [vmem:[%s6485_s1 + $0x738] sm:$0xff]  ;;  %v280_v2 = vld [vmem:[%s6485_s1 + $0x7b0] sm:$0xff] }
  0x5e   :  { %3124 = vmatprep.subr.mxu0 %v181_v3  ;;  %3157 = vmatprep.subr.mxu1 %v214_v4  ;;  %v231_v3 = vld [vmem:[%s6485_s1 + $0x628] sm:$0xff]  ;;  %v264_v4 = vld [vmem:[%s6485_s1 + $0x730] sm:$0xff] }
  0x5f   :  { %3125 = vmatpush3.msra.mxu0 %v165_v5  ;;  %3158 = vmatpush3.msra.mxu1 %v198_v6  ;;  %v246_v5 = vld [vmem:[%s6485_s1 + $0x6a0] sm:$0xff]  ;;  %v279_v6 = vld [vmem:[%s6485_s1 + $0x7a8] sm:$0xff] }
  0x60   :  { %3126 = vmatprep.subr.mxu0 %v180_v7  ;;  %3159 = vmatprep.subr.mxu1 %v213_v9  ;;  %v230_v7 = vld [vmem:[%s6485_s1 + $0x620] sm:$0xff]  ;;  %v263_v9 = vld [vmem:[%s6485_s1 + $0x728] sm:$0xff] }
  0x61   :  { %3127 = vmatpush3.msra.mxu0 %v164_v10  ;;  %3160 = vmatpush3.msra.mxu1 %v197_v12  ;;  %v245_v10 = vld [vmem:[%s6485_s1 + $0x698] sm:$0xff] }
  0x62   :  { %3128 = vmatprep.subr.mxu0 %v179_v13  ;;  %3161 = vmatprep.subr.mxu1 %v212_v14  ;;  %v229_v12 = vld [vmem:[%s6485_s1 + $0x618] sm:$0xff]  ;;  %v262_v13 = vld [vmem:[%s6485_s1 + $0x720] sm:$0xff]  ;;  %v244_v14 = vld [vmem:[%s6485_s1 + $0x690] sm:$0xff] }
  0x63   :  { %3129 = vmatpush3.msra.mxu0 %v163_v15  ;;  %3162 = vmatpush3.msra.mxu1 %v196_v16  ;;  %v889_v15 = vcombine.high %v24_v8, %v24_v8  ;;  %v277_v16 = vld [vmem:[%s6485_s1 + $0x798] sm:$0xff] }
  0x64   :  { %3130 = vmatprep.subr.mxu0 %v178_v17  ;;  %3163 = vmatprep.subr.mxu1 %v211_v19  ;;  %v228_v17 = vld [vmem:[%s6485_s1 + $0x610] sm:$0xff]  ;;  %v261_v19 = vld [vmem:[%s6485_s1 + $0x718] sm:$0xff] }
  0x65   :  { %3131 = vmatpush3.msra.mxu0 %v162_v20  ;;  %1442 = vmatprep.mubr.f32.mxu0 %v887_v21  ;;  %v243_v20 = vld [vmem:[%s6485_s1 + $0x688] sm:$0xff]  ;;  %v276_v21 = vld [vmem:[%s6485_s1 + $0x790] sm:$0xff] }
  0x66   :  { %3164 = vmatpush3.msra.mxu1 %v195_v22  ;;  %1443 = vmatmul.mubr.f32.vlgmr.msra.gmra.mxu0 %v879_v11  ;;  %v278_v11 = vld [vmem:[%s6485_s1 + $0x7a0] sm:$0xff]  ;;  %v227_v22 = vld [vmem:[%s6485_s1 + $0x608] sm:$0xff] }
  0x67   :  { %3165 = vmatprep.subr.mxu1 %v210_v23  ;;  %3170 = vmatprep.subr.mxu0 %v257_v24  ;;  %v260_v23 = vld [vmem:[%s6485_s1 + $0x710] sm:$0xff]  ;;  %v242_v24 = vld [vmem:[%s6485_s1 + $0x680] sm:$0xff] }
  0x68   :  { %3166 = vmatpush3.msra.mxu1 %v194_v25  ;;  %1512 = vmatprep.mubr.f32.mxu1 %v888_v26  ;;  %v903_v25 = vrot.slane %v889_v15, %v4105_v48  ;;  %v275_v26 = vld [vmem:[%s6485_s1 + $0x788] sm:$0xff]  ;;  %v25_v15 = vld [vmem:[%s6484_s0 + $0x20] sm:$0xff] }
  0x69   :  { %3171 = vmatpush3.msra.mxu0 %v241_v27  ;;  %1513 = vmatmul.mubr.f32.vlgmr.msra.gmra.mxu1 %v886_v18  ;;  %v896_v18 = vrot.slane %v24_v8, %v4105_v48  ;;  %v226_v27 = vld [vmem:[%s6485_s1 + $0x600] sm:$0xff]  ;;  %v311_v8 = vld [vmem:[%s6485_s1 + $0x8a8] sm:$0xff] }
  0x6a   :  { %3172 = vmatprep.subr.mxu0 %v256_v28  ;;  %3205 = vmatprep.subr.mxu1 %v289_v29  ;;  %v259_v29 = vld [vmem:[%s6485_s1 + $0x708] sm:$0xff] }
  0x6b   :  { %3173 = vmatpush3.msra.mxu0 %v240_v30  ;;  %3206 = vmatpush3.msra.mxu1 %v273_v31  ;;  %v904_v28 = vcombine.high %v896_v18, %v896_v18  ;;  %v274_v30 = vld [vmem:[%s6485_s1 + $0x780] sm:$0xff]  ;;  %v321_v31 = vld [vmem:[%s6485_s1 + $0x8f8] sm:$0xff] }
  0x6c   :  { %3174 = vmatprep.subr.mxu0 %v255_v32  ;;  %3207 = vmatprep.subr.mxu1 %v288_v33  ;;  %v258_v32 = vld [vmem:[%s6485_s1 + $0x700] sm:$0xff]  ;;  %v905_v33 = vcombine.high %v903_v25, %v903_v25 }
  0x6d   :  { %3175 = vmatpush3.msra.mxu0 %v239_v34  ;;  %3208 = vmatpush3.msra.mxu1 %v272_v35  ;;  %v305_v34 = vld [vmem:[%s6485_s1 + $0x878] sm:$0xff]  ;;  %v320_v35 = vld [vmem:[%s6485_s1 + $0x8f0] sm:$0xff] }
  0x6e   :  { %3176 = vmatprep.subr.mxu0 %v254_v36  ;;  %3209 = vmatprep.subr.mxu1 %v287_v37  ;;  %v353_v36 = vld [vmem:[%s6485_s1 + $0x9f8] sm:$0xff]  ;;  %v304_v37 = vld [vmem:[%s6485_s1 + $0x870] sm:$0xff] }
  0x6f   :  { %3177 = vmatpush3.msra.mxu0 %v238_v38  ;;  %3210 = vmatpush3.msra.mxu1 %v271_v39  ;;  %v337_v38 = vld [vmem:[%s6485_s1 + $0x978] sm:$0xff]  ;;  %v319_v39 = vld [vmem:[%s6485_s1 + $0x8e8] sm:$0xff] }
  0x70   :  { %3178 = vmatprep.subr.mxu0 %v253_v40  ;;  %3211 = vmatprep.subr.mxu1 %v286_v41  ;;  %v352_v40 = vld [vmem:[%s6485_s1 + $0x9f0] sm:$0xff]  ;;  %v303_v41 = vld [vmem:[%s6485_s1 + $0x868] sm:$0xff] }
  0x71   :  { %3179 = vmatpush3.msra.mxu0 %v237_v42  ;;  %3212 = vmatpush3.msra.mxu1 %v270_v43  ;;  %v336_v42 = vld [vmem:[%s6485_s1 + $0x970] sm:$0xff]  ;;  %v318_v43 = vld [vmem:[%s6485_s1 + $0x8e0] sm:$0xff] }
  0x72   :  { %3180 = vmatprep.subr.mxu0 %v252_v44  ;;  %3213 = vmatprep.subr.mxu1 %v285_v45  ;;  %v351_v44 = vld [vmem:[%s6485_s1 + $0x9e8] sm:$0xff]  ;;  %v302_v45 = vld [vmem:[%s6485_s1 + $0x860] sm:$0xff] }
  0x73   :  { %3181 = vmatpush3.msra.mxu0 %v236_v46  ;;  %3214 = vmatpush3.msra.mxu1 %v269_v47  ;;  %v335_v46 = vld [vmem:[%s6485_s1 + $0x968] sm:$0xff]  ;;  %v317_v47 = vld [vmem:[%s6485_s1 + $0x8d8] sm:$0xff] }
  0x74   :  { %3182 = vmatprep.subr.mxu0 %v251_v49  ;;  %3215 = vmatprep.subr.mxu1 %v284_v50  ;;  %v350_v49 = vld [vmem:[%s6485_s1 + $0x9e0] sm:$0xff]  ;;  %v301_v50 = vld [vmem:[%s6485_s1 + $0x858] sm:$0xff] }
  0x75   :  { %3183 = vmatpush3.msra.mxu0 %v235_v51  ;;  %3216 = vmatpush3.msra.mxu1 %v268_v52  ;;  %v334_v51 = vld [vmem:[%s6485_s1 + $0x960] sm:$0xff]  ;;  %v316_v52 = vld [vmem:[%s6485_s1 + $0x8d0] sm:$0xff] }
  0x76   :  { %3184 = vmatprep.subr.mxu0 %v250_v53  ;;  %3217 = vmatprep.subr.mxu1 %v283_v54  ;;  %v349_v53 = vld [vmem:[%s6485_s1 + $0x9d8] sm:$0xff]  ;;  %v300_v54 = vld [vmem:[%s6485_s1 + $0x850] sm:$0xff] }
  0x77   :  { %3185 = vmatpush3.msra.mxu0 %v234_v55  ;;  %3218 = vmatpush3.msra.mxu1 %v267_v56  ;;  %v333_v55 = vld [vmem:[%s6485_s1 + $0x958] sm:$0xff]  ;;  %v315_v56 = vld [vmem:[%s6485_s1 + $0x8c8] sm:$0xff] }
  0x78   :  { %3186 = vmatprep.subr.mxu0 %v249_v57  ;;  %3219 = vmatprep.subr.mxu1 %v282_v58  ;;  %v348_v57 = vld [vmem:[%s6485_s1 + $0x9d0] sm:$0xff]  ;;  %v299_v58 = vld [vmem:[%s6485_s1 + $0x848] sm:$0xff] }
  0x79   :  { %3187 = vmatpush3.msra.mxu0 %v233_v59  ;;  %3220 = vmatpush3.msra.mxu1 %v266_v60  ;;  %v332_v59 = vld [vmem:[%s6485_s1 + $0x950] sm:$0xff]  ;;  %v314_v60 = vld [vmem:[%s6485_s1 + $0x8c0] sm:$0xff] }
  0x7a   :  { %3188 = vmatprep.subr.mxu0 %v248_v61  ;;  %3221 = vmatprep.subr.mxu1 %v281_v62  ;;  %v347_v61 = vld [vmem:[%s6485_s1 + $0x9c8] sm:$0xff]  ;;  %v298_v62 = vld [vmem:[%s6485_s1 + $0x840] sm:$0xff] }
  0x7b   :  { %3189 = vmatpush3.msra.mxu0 %v232_v63  ;;  %3222 = vmatpush3.msra.mxu1 %v265_v0  ;;  %v331_v63 = vld [vmem:[%s6485_s1 + $0x948] sm:$0xff]  ;;  %v313_v0 = vld [vmem:[%s6485_s1 + $0x8b8] sm:$0xff] }
  0x7c   :  { %3190 = vmatprep.subr.mxu0 %v247_v1  ;;  %3223 = vmatprep.subr.mxu1 %v280_v2  ;;  %v346_v1 = vld [vmem:[%s6485_s1 + $0x9c0] sm:$0xff]  ;;  %v297_v2 = vld [vmem:[%s6485_s1 + $0x838] sm:$0xff] }
  0x7d   :  { %3191 = vmatpush3.msra.mxu0 %v231_v3  ;;  %3224 = vmatpush3.msra.mxu1 %v264_v4  ;;  %v330_v3 = vld [vmem:[%s6485_s1 + $0x940] sm:$0xff]  ;;  %v312_v4 = vld [vmem:[%s6485_s1 + $0x8b0] sm:$0xff] }
  0x7e   :  { %3192 = vmatprep.subr.mxu0 %v246_v5  ;;  %3225 = vmatprep.subr.mxu1 %v279_v6  ;;  %v345_v5 = vld [vmem:[%s6485_s1 + $0x9b8] sm:$0xff]  ;;  %v296_v6 = vld [vmem:[%s6485_s1 + $0x830] sm:$0xff] }
  0x7f   :  { %3193 = vmatpush3.msra.mxu0 %v230_v7  ;;  %3226 = vmatpush3.msra.mxu1 %v263_v9  ;;  %v329_v7 = vld [vmem:[%s6485_s1 + $0x938] sm:$0xff]  ;;  %v344_v9 = vld [vmem:[%s6485_s1 + $0x9b0] sm:$0xff] }
  0x80   :  { %3194 = vmatprep.subr.mxu0 %v245_v10  ;;  %3227 = vmatprep.subr.mxu1 %v278_v11  ;;  %v295_v10 = vld [vmem:[%s6485_s1 + $0x828] sm:$0xff]  ;;  %v328_v11 = vld [vmem:[%s6485_s1 + $0x930] sm:$0xff] }
  0x81   :  { %3195 = vmatpush3.msra.mxu0 %v229_v12  ;;  %3228 = vmatpush3.msra.mxu1 %v262_v13  ;;  %v310_v12 = vld [vmem:[%s6485_s1 + $0x8a0] sm:$0xff]  ;;  %v343_v13 = vld [vmem:[%s6485_s1 + $0x9a8] sm:$0xff] }
  0x82   :  { %3196 = vmatprep.subr.mxu0 %v244_v14  ;;  %3229 = vmatprep.subr.mxu1 %v277_v16  ;;  %v294_v14 = vld [vmem:[%s6485_s1 + $0x820] sm:$0xff]  ;;  %v327_v16 = vld [vmem:[%s6485_s1 + $0x928] sm:$0xff] }
  0x83   :  { %3197 = vmatpush3.msra.mxu0 %v228_v17  ;;  %3230 = vmatpush3.msra.mxu1 %v261_v19  ;;  %v309_v17 = vld [vmem:[%s6485_s1 + $0x898] sm:$0xff] }
  0x84   :  { %3198 = vmatprep.subr.mxu0 %v243_v20  ;;  %3231 = vmatprep.subr.mxu1 %v276_v21  ;;  %v293_v19 = vld [vmem:[%s6485_s1 + $0x818] sm:$0xff]  ;;  %v326_v20 = vld [vmem:[%s6485_s1 + $0x920] sm:$0xff]  ;;  %v308_v21 = vld [vmem:[%s6485_s1 + $0x890] sm:$0xff] }
  0x85   :  { %3199 = vmatpush3.msra.mxu0 %v227_v22  ;;  %3232 = vmatpush3.msra.mxu1 %v260_v23  ;;  %v906_v22 = vcombine.high %v25_v15, %v25_v15  ;;  %v341_v23 = vld [vmem:[%s6485_s1 + $0x998] sm:$0xff] }
  0x86   :  { %3200 = vmatprep.subr.mxu0 %v242_v24  ;;  %3233 = vmatprep.subr.mxu1 %v275_v26  ;;  %v292_v24 = vld [vmem:[%s6485_s1 + $0x810] sm:$0xff]  ;;  %v325_v26 = vld [vmem:[%s6485_s1 + $0x918] sm:$0xff] }
  0x87   :  { %3201 = vmatpush3.msra.mxu0 %v226_v27  ;;  %1582 = vmatprep.mubr.f32.mxu0 %v904_v28  ;;  %v307_v27 = vld [vmem:[%s6485_s1 + $0x888] sm:$0xff]  ;;  %v340_v28 = vld [vmem:[%s6485_s1 + $0x990] sm:$0xff] }
  0x88   :  { %3234 = vmatpush3.msra.mxu1 %v259_v29  ;;  %1583 = vmatmul.mubr.f32.vlgmr.msra.gmra.mxu0 %v896_v18  ;;  %v342_v18 = vld [vmem:[%s6485_s1 + $0x9a0] sm:$0xff]  ;;  %v291_v29 = vld [vmem:[%s6485_s1 + $0x808] sm:$0xff] }
  0x89   :  { %3235 = vmatprep.subr.mxu1 %v274_v30  ;;  %3240 = vmatprep.subr.mxu0 %v321_v31  ;;  %v324_v30 = vld [vmem:[%s6485_s1 + $0x910] sm:$0xff]  ;;  %v306_v31 = vld [vmem:[%s6485_s1 + $0x880] sm:$0xff] }
  0x8a   :  { %3236 = vmatpush3.msra.mxu1 %v258_v32  ;;  %1652 = vmatprep.mubr.f32.mxu1 %v905_v33  ;;  %v920_v32 = vrot.slane %v906_v22, %v4105_v48  ;;  %v339_v33 = vld [vmem:[%s6485_s1 + $0x988] sm:$0xff] }
  0x8b   :  { %3241 = vmatpush3.msra.mxu0 %v305_v34  ;;  %1653 = vmatmul.mubr.f32.vlgmr.msra.gmra.mxu1 %v903_v25  ;;  %v913_v25 = vrot.slane %v25_v15, %v4105_v48  ;;  %v290_v34 = vld [vmem:[%s6485_s1 + $0x800] sm:$0xff]  ;;  %v375_v15 = vld [vmem:[%s6485_s1 + $0xaa8] sm:$0xff] }
  0x8c   :  { %3242 = vmatprep.subr.mxu0 %v320_v35  ;;  %3275 = vmatprep.subr.mxu1 %v353_v36  ;;  %v323_v36 = vld [vmem:[%s6485_s1 + $0x908] sm:$0xff] }
  0x8d   :  { %3243 = vmatpush3.msra.mxu0 %v304_v37  ;;  %3276 = vmatpush3.msra.mxu1 %v337_v38  ;;  %v921_v35 = vcombine.high %v913_v25, %v913_v25  ;;  %v338_v37 = vld [vmem:[%s6485_s1 + $0x980] sm:$0xff]  ;;  %v385_v38 = vld [vmem:[%s6485_s1 + $0xaf8] sm:$0xff]  ;;  %v26_v22 = vld [vmem:[%s6484_s0 + $0x28] sm:$0xff] }
  0x8e   :  { %3244 = vmatprep.subr.mxu0 %v319_v39  ;;  %3277 = vmatprep.subr.mxu1 %v352_v40  ;;  %v322_v39 = vld [vmem:[%s6485_s1 + $0x900] sm:$0xff]  ;;  %v922_v40 = vcombine.high %v920_v32, %v920_v32 }
  0x8f   :  { %3245 = vmatpush3.msra.mxu0 %v303_v41  ;;  %3278 = vmatpush3.msra.mxu1 %v336_v42  ;;  %v369_v41 = vld [vmem:[%s6485_s1 + $0xa78] sm:$0xff]  ;;  %v384_v42 = vld [vmem:[%s6485_s1 + $0xaf0] sm:$0xff] }
  0x90   :  { %3246 = vmatprep.subr.mxu0 %v318_v43  ;;  %3279 = vmatprep.subr.mxu1 %v351_v44  ;;  %v417_v43 = vld [vmem:[%s6485_s1 + $0xbf8] sm:$0xff]  ;;  %v368_v44 = vld [vmem:[%s6485_s1 + $0xa70] sm:$0xff] }
  0x91   :  { %3247 = vmatpush3.msra.mxu0 %v302_v45  ;;  %3280 = vmatpush3.msra.mxu1 %v335_v46  ;;  %v401_v45 = vld [vmem:[%s6485_s1 + $0xb78] sm:$0xff]  ;;  %v383_v46 = vld [vmem:[%s6485_s1 + $0xae8] sm:$0xff] }
  0x92   :  { %3248 = vmatprep.subr.mxu0 %v317_v47  ;;  %3281 = vmatprep.subr.mxu1 %v350_v49  ;;  %v416_v47 = vld [vmem:[%s6485_s1 + $0xbf0] sm:$0xff]  ;;  %v367_v49 = vld [vmem:[%s6485_s1 + $0xa68] sm:$0xff] }
  0x93   :  { %3249 = vmatpush3.msra.mxu0 %v301_v50  ;;  %3282 = vmatpush3.msra.mxu1 %v334_v51  ;;  %v400_v50 = vld [vmem:[%s6485_s1 + $0xb70] sm:$0xff]  ;;  %v382_v51 = vld [vmem:[%s6485_s1 + $0xae0] sm:$0xff] }
  0x94   :  { %3250 = vmatprep.subr.mxu0 %v316_v52  ;;  %3283 = vmatprep.subr.mxu1 %v349_v53  ;;  %v415_v52 = vld [vmem:[%s6485_s1 + $0xbe8] sm:$0xff]  ;;  %v366_v53 = vld [vmem:[%s6485_s1 + $0xa60] sm:$0xff] }
  0x95   :  { %3251 = vmatpush3.msra.mxu0 %v300_v54  ;;  %3284 = vmatpush3.msra.mxu1 %v333_v55  ;;  %v399_v54 = vld [vmem:[%s6485_s1 + $0xb68] sm:$0xff]  ;;  %v381_v55 = vld [vmem:[%s6485_s1 + $0xad8] sm:$0xff] }
  0x96   :  { %3252 = vmatprep.subr.mxu0 %v315_v56  ;;  %3285 = vmatprep.subr.mxu1 %v348_v57  ;;  %v414_v56 = vld [vmem:[%s6485_s1 + $0xbe0] sm:$0xff]  ;;  %v365_v57 = vld [vmem:[%s6485_s1 + $0xa58] sm:$0xff] }
  0x97   :  { %3253 = vmatpush3.msra.mxu0 %v299_v58  ;;  %3286 = vmatpush3.msra.mxu1 %v332_v59  ;;  %v398_v58 = vld [vmem:[%s6485_s1 + $0xb60] sm:$0xff]  ;;  %v380_v59 = vld [vmem:[%s6485_s1 + $0xad0] sm:$0xff] }
  0x98   :  { %3254 = vmatprep.subr.mxu0 %v314_v60  ;;  %3287 = vmatprep.subr.mxu1 %v347_v61  ;;  %v413_v60 = vld [vmem:[%s6485_s1 + $0xbd8] sm:$0xff]  ;;  %v364_v61 = vld [vmem:[%s6485_s1 + $0xa50] sm:$0xff] }
  0x99   :  { %3255 = vmatpush3.msra.mxu0 %v298_v62  ;;  %3288 = vmatpush3.msra.mxu1 %v331_v63  ;;  %v397_v62 = vld [vmem:[%s6485_s1 + $0xb58] sm:$0xff]  ;;  %v379_v63 = vld [vmem:[%s6485_s1 + $0xac8] sm:$0xff] }
  0x9a   :  { %3256 = vmatprep.subr.mxu0 %v313_v0  ;;  %3289 = vmatprep.subr.mxu1 %v346_v1  ;;  %v412_v0 = vld [vmem:[%s6485_s1 + $0xbd0] sm:$0xff]  ;;  %v363_v1 = vld [vmem:[%s6485_s1 + $0xa48] sm:$0xff] }
  0x9b   :  { %3257 = vmatpush3.msra.mxu0 %v297_v2  ;;  %3290 = vmatpush3.msra.mxu1 %v330_v3  ;;  %v396_v2 = vld [vmem:[%s6485_s1 + $0xb50] sm:$0xff]  ;;  %v378_v3 = vld [vmem:[%s6485_s1 + $0xac0] sm:$0xff] }
  0x9c   :  { %3258 = vmatprep.subr.mxu0 %v312_v4  ;;  %3291 = vmatprep.subr.mxu1 %v345_v5  ;;  %v411_v4 = vld [vmem:[%s6485_s1 + $0xbc8] sm:$0xff]  ;;  %v362_v5 = vld [vmem:[%s6485_s1 + $0xa40] sm:$0xff] }
  0x9d   :  { %3259 = vmatpush3.msra.mxu0 %v296_v6  ;;  %3292 = vmatpush3.msra.mxu1 %v329_v7  ;;  %v395_v6 = vld [vmem:[%s6485_s1 + $0xb48] sm:$0xff]  ;;  %v377_v7 = vld [vmem:[%s6485_s1 + $0xab8] sm:$0xff] }
  0x9e   :  { %3260 = vmatprep.subr.mxu0 %v311_v8  ;;  %3293 = vmatprep.subr.mxu1 %v344_v9  ;;  %v410_v8 = vld [vmem:[%s6485_s1 + $0xbc0] sm:$0xff]  ;;  %v361_v9 = vld [vmem:[%s6485_s1 + $0xa38] sm:$0xff] }
  0x9f   :  { %3261 = vmatpush3.msra.mxu0 %v295_v10  ;;  %3294 = vmatpush3.msra.mxu1 %v328_v11  ;;  %v394_v10 = vld [vmem:[%s6485_s1 + $0xb40] sm:$0xff]  ;;  %v376_v11 = vld [vmem:[%s6485_s1 + $0xab0] sm:$0xff] }
  0xa0   :  { %3262 = vmatprep.subr.mxu0 %v310_v12  ;;  %3295 = vmatprep.subr.mxu1 %v343_v13  ;;  %v409_v12 = vld [vmem:[%s6485_s1 + $0xbb8] sm:$0xff]  ;;  %v360_v13 = vld [vmem:[%s6485_s1 + $0xa30] sm:$0xff] }
  0xa1   :  { %3263 = vmatpush3.msra.mxu0 %v294_v14  ;;  %3296 = vmatpush3.msra.mxu1 %v327_v16  ;;  %v393_v14 = vld [vmem:[%s6485_s1 + $0xb38] sm:$0xff]  ;;  %v408_v16 = vld [vmem:[%s6485_s1 + $0xbb0] sm:$0xff] }
  0xa2   :  { %3264 = vmatprep.subr.mxu0 %v309_v17  ;;  %3297 = vmatprep.subr.mxu1 %v342_v18  ;;  %v359_v17 = vld [vmem:[%s6485_s1 + $0xa28] sm:$0xff]  ;;  %v392_v18 = vld [vmem:[%s6485_s1 + $0xb30] sm:$0xff] }
  0xa3   :  { %3265 = vmatpush3.msra.mxu0 %v293_v19  ;;  %3298 = vmatpush3.msra.mxu1 %v326_v20  ;;  %v374_v19 = vld [vmem:[%s6485_s1 + $0xaa0] sm:$0xff]  ;;  %v407_v20 = vld [vmem:[%s6485_s1 + $0xba8] sm:$0xff] }
  0xa4   :  { %3266 = vmatprep.subr.mxu0 %v308_v21  ;;  %3299 = vmatprep.subr.mxu1 %v341_v23  ;;  %v358_v21 = vld [vmem:[%s6485_s1 + $0xa20] sm:$0xff]  ;;  %v391_v23 = vld [vmem:[%s6485_s1 + $0xb28] sm:$0xff] }
  0xa5   :  { %3267 = vmatpush3.msra.mxu0 %v292_v24  ;;  %3300 = vmatpush3.msra.mxu1 %v325_v26  ;;  %v373_v24 = vld [vmem:[%s6485_s1 + $0xa98] sm:$0xff] }
  0xa6   :  { %3268 = vmatprep.subr.mxu0 %v307_v27  ;;  %3301 = vmatprep.subr.mxu1 %v340_v28  ;;  %v357_v26 = vld [vmem:[%s6485_s1 + $0xa18] sm:$0xff]  ;;  %v390_v27 = vld [vmem:[%s6485_s1 + $0xb20] sm:$0xff]  ;;  %v372_v28 = vld [vmem:[%s6485_s1 + $0xa90] sm:$0xff] }
  0xa7   :  { %3269 = vmatpush3.msra.mxu0 %v291_v29  ;;  %3302 = vmatpush3.msra.mxu1 %v324_v30  ;;  %v923_v29 = vcombine.high %v26_v22, %v26_v22  ;;  %v405_v30 = vld [vmem:[%s6485_s1 + $0xb98] sm:$0xff] }
  0xa8   :  { %3270 = vmatprep.subr.mxu0 %v306_v31  ;;  %3303 = vmatprep.subr.mxu1 %v339_v33  ;;  %v356_v31 = vld [vmem:[%s6485_s1 + $0xa10] sm:$0xff]  ;;  %v389_v33 = vld [vmem:[%s6485_s1 + $0xb18] sm:$0xff] }
  0xa9   :  { %3271 = vmatpush3.msra.mxu0 %v290_v34  ;;  %1722 = vmatprep.mubr.f32.mxu0 %v921_v35  ;;  %v371_v34 = vld [vmem:[%s6485_s1 + $0xa88] sm:$0xff]  ;;  %v404_v35 = vld [vmem:[%s6485_s1 + $0xb90] sm:$0xff] }
  0xaa   :  { %3304 = vmatpush3.msra.mxu1 %v323_v36  ;;  %1723 = vmatmul.mubr.f32.vlgmr.msra.gmra.mxu0 %v913_v25  ;;  %v406_v25 = vld [vmem:[%s6485_s1 + $0xba0] sm:$0xff]  ;;  %v355_v36 = vld [vmem:[%s6485_s1 + $0xa08] sm:$0xff] }
  0xab   :  { %3305 = vmatprep.subr.mxu1 %v338_v37  ;;  %3310 = vmatprep.subr.mxu0 %v385_v38  ;;  %v388_v37 = vld [vmem:[%s6485_s1 + $0xb10] sm:$0xff]  ;;  %v370_v38 = vld [vmem:[%s6485_s1 + $0xa80] sm:$0xff] }
  0xac   :  { %3306 = vmatpush3.msra.mxu1 %v322_v39  ;;  %1792 = vmatprep.mubr.f32.mxu1 %v922_v40  ;;  %v937_v39 = vrot.slane %v923_v29, %v4105_v48  ;;  %v403_v40 = vld [vmem:[%s6485_s1 + $0xb88] sm:$0xff]  ;;  %v27_v29 = vld [vmem:[%s6484_s0 + $0x30] sm:$0xff] }
  0xad   :  { %3311 = vmatpush3.msra.mxu0 %v369_v41  ;;  %1793 = vmatmul.mubr.f32.vlgmr.msra.gmra.mxu1 %v920_v32  ;;  %v930_v32 = vrot.slane %v26_v22, %v4105_v48  ;;  %v354_v41 = vld [vmem:[%s6485_s1 + $0xa00] sm:$0xff]  ;;  %v439_v22 = vld [vmem:[%s6485_s1 + $0xca8] sm:$0xff] }
  0xae   :  { %3312 = vmatprep.subr.mxu0 %v384_v42  ;;  %3345 = vmatprep.subr.mxu1 %v417_v43  ;;  %v387_v43 = vld [vmem:[%s6485_s1 + $0xb08] sm:$0xff] }
  0xaf   :  { %3313 = vmatpush3.msra.mxu0 %v368_v44  ;;  %3346 = vmatpush3.msra.mxu1 %v401_v45  ;;  %v938_v42 = vcombine.high %v930_v32, %v930_v32  ;;  %v402_v44 = vld [vmem:[%s6485_s1 + $0xb80] sm:$0xff]  ;;  %v449_v45 = vld [vmem:[%s6485_s1 + $0xcf8] sm:$0xff] }
  0xb0   :  { %3314 = vmatprep.subr.mxu0 %v383_v46  ;;  %3347 = vmatprep.subr.mxu1 %v416_v47  ;;  %v386_v46 = vld [vmem:[%s6485_s1 + $0xb00] sm:$0xff]  ;;  %v939_v47 = vcombine.high %v937_v39, %v937_v39 }
  0xb1   :  { %3315 = vmatpush3.msra.mxu0 %v367_v49  ;;  %3348 = vmatpush3.msra.mxu1 %v400_v50  ;;  %v433_v49 = vld [vmem:[%s6485_s1 + $0xc78] sm:$0xff]  ;;  %v448_v50 = vld [vmem:[%s6485_s1 + $0xcf0] sm:$0xff] }
  0xb2   :  { %3316 = vmatprep.subr.mxu0 %v382_v51  ;;  %3349 = vmatprep.subr.mxu1 %v415_v52  ;;  %v481_v51 = vld [vmem:[%s6485_s1 + $0xdf8] sm:$0xff]  ;;  %v432_v52 = vld [vmem:[%s6485_s1 + $0xc70] sm:$0xff] }
  0xb3   :  { %3317 = vmatpush3.msra.mxu0 %v366_v53  ;;  %3350 = vmatpush3.msra.mxu1 %v399_v54  ;;  %v465_v53 = vld [vmem:[%s6485_s1 + $0xd78] sm:$0xff]  ;;  %v447_v54 = vld [vmem:[%s6485_s1 + $0xce8] sm:$0xff] }
  0xb4   :  { %3318 = vmatprep.subr.mxu0 %v381_v55  ;;  %3351 = vmatprep.subr.mxu1 %v414_v56  ;;  %v480_v55 = vld [vmem:[%s6485_s1 + $0xdf0] sm:$0xff]  ;;  %v431_v56 = vld [vmem:[%s6485_s1 + $0xc68] sm:$0xff] }
  0xb5   :  { %3319 = vmatpush3.msra.mxu0 %v365_v57  ;;  %3352 = vmatpush3.msra.mxu1 %v398_v58  ;;  %v464_v57 = vld [vmem:[%s6485_s1 + $0xd70] sm:$0xff]  ;;  %v446_v58 = vld [vmem:[%s6485_s1 + $0xce0] sm:$0xff] }
  0xb6   :  { %3320 = vmatprep.subr.mxu0 %v380_v59  ;;  %3353 = vmatprep.subr.mxu1 %v413_v60  ;;  %v479_v59 = vld [vmem:[%s6485_s1 + $0xde8] sm:$0xff]  ;;  %v430_v60 = vld [vmem:[%s6485_s1 + $0xc60] sm:$0xff] }
  0xb7   :  { %3321 = vmatpush3.msra.mxu0 %v364_v61  ;;  %3354 = vmatpush3.msra.mxu1 %v397_v62  ;;  %v463_v61 = vld [vmem:[%s6485_s1 + $0xd68] sm:$0xff]  ;;  %v445_v62 = vld [vmem:[%s6485_s1 + $0xcd8] sm:$0xff] }
  0xb8   :  { %3322 = vmatprep.subr.mxu0 %v379_v63  ;;  %3355 = vmatprep.subr.mxu1 %v412_v0  ;;  %v478_v63 = vld [vmem:[%s6485_s1 + $0xde0] sm:$0xff]  ;;  %v429_v0 = vld [vmem:[%s6485_s1 + $0xc58] sm:$0xff] }
  0xb9   :  { %3323 = vmatpush3.msra.mxu0 %v363_v1  ;;  %3356 = vmatpush3.msra.mxu1 %v396_v2  ;;  %v462_v1 = vld [vmem:[%s6485_s1 + $0xd60] sm:$0xff]  ;;  %v444_v2 = vld [vmem:[%s6485_s1 + $0xcd0] sm:$0xff] }
  0xba   :  { %3324 = vmatprep.subr.mxu0 %v378_v3  ;;  %3357 = vmatprep.subr.mxu1 %v411_v4  ;;  %v477_v3 = vld [vmem:[%s6485_s1 + $0xdd8] sm:$0xff]  ;;  %v428_v4 = vld [vmem:[%s6485_s1 + $0xc50] sm:$0xff] }
  0xbb   :  { %3325 = vmatpush3.msra.mxu0 %v362_v5  ;;  %3358 = vmatpush3.msra.mxu1 %v395_v6  ;;  %v461_v5 = vld [vmem:[%s6485_s1 + $0xd58] sm:$0xff]  ;;  %v443_v6 = vld [vmem:[%s6485_s1 + $0xcc8] sm:$0xff] }
  0xbc   :  { %3326 = vmatprep.subr.mxu0 %v377_v7  ;;  %3359 = vmatprep.subr.mxu1 %v410_v8  ;;  %v476_v7 = vld [vmem:[%s6485_s1 + $0xdd0] sm:$0xff]  ;;  %v427_v8 = vld [vmem:[%s6485_s1 + $0xc48] sm:$0xff] }
  0xbd   :  { %3327 = vmatpush3.msra.mxu0 %v361_v9  ;;  %3360 = vmatpush3.msra.mxu1 %v394_v10  ;;  %v460_v9 = vld [vmem:[%s6485_s1 + $0xd50] sm:$0xff]  ;;  %v442_v10 = vld [vmem:[%s6485_s1 + $0xcc0] sm:$0xff] }
  0xbe   :  { %3328 = vmatprep.subr.mxu0 %v376_v11  ;;  %3361 = vmatprep.subr.mxu1 %v409_v12  ;;  %v475_v11 = vld [vmem:[%s6485_s1 + $0xdc8] sm:$0xff]  ;;  %v426_v12 = vld [vmem:[%s6485_s1 + $0xc40] sm:$0xff] }
  0xbf   :  { %3329 = vmatpush3.msra.mxu0 %v360_v13  ;;  %3362 = vmatpush3.msra.mxu1 %v393_v14  ;;  %v459_v13 = vld [vmem:[%s6485_s1 + $0xd48] sm:$0xff]  ;;  %v441_v14 = vld [vmem:[%s6485_s1 + $0xcb8] sm:$0xff] }
  0xc0   :  { %3330 = vmatprep.subr.mxu0 %v375_v15  ;;  %3363 = vmatprep.subr.mxu1 %v408_v16  ;;  %v474_v15 = vld [vmem:[%s6485_s1 + $0xdc0] sm:$0xff]  ;;  %v425_v16 = vld [vmem:[%s6485_s1 + $0xc38] sm:$0xff] }
  0xc1   :  { %3331 = vmatpush3.msra.mxu0 %v359_v17  ;;  %3364 = vmatpush3.msra.mxu1 %v392_v18  ;;  %v458_v17 = vld [vmem:[%s6485_s1 + $0xd40] sm:$0xff]  ;;  %v440_v18 = vld [vmem:[%s6485_s1 + $0xcb0] sm:$0xff] }
  0xc2   :  { %3332 = vmatprep.subr.mxu0 %v374_v19  ;;  %3365 = vmatprep.subr.mxu1 %v407_v20  ;;  %v473_v19 = vld [vmem:[%s6485_s1 + $0xdb8] sm:$0xff]  ;;  %v424_v20 = vld [vmem:[%s6485_s1 + $0xc30] sm:$0xff] }
  0xc3   :  { %3333 = vmatpush3.msra.mxu0 %v358_v21  ;;  %3366 = vmatpush3.msra.mxu1 %v391_v23  ;;  %v457_v21 = vld [vmem:[%s6485_s1 + $0xd38] sm:$0xff]  ;;  %v472_v23 = vld [vmem:[%s6485_s1 + $0xdb0] sm:$0xff] }
  0xc4   :  { %3334 = vmatprep.subr.mxu0 %v373_v24  ;;  %3367 = vmatprep.subr.mxu1 %v406_v25  ;;  %v423_v24 = vld [vmem:[%s6485_s1 + $0xc28] sm:$0xff]  ;;  %v456_v25 = vld [vmem:[%s6485_s1 + $0xd30] sm:$0xff] }
  0xc5   :  { %3335 = vmatpush3.msra.mxu0 %v357_v26  ;;  %3368 = vmatpush3.msra.mxu1 %v390_v27  ;;  %v438_v26 = vld [vmem:[%s6485_s1 + $0xca0] sm:$0xff]  ;;  %v471_v27 = vld [vmem:[%s6485_s1 + $0xda8] sm:$0xff] }
  0xc6   :  { %3336 = vmatprep.subr.mxu0 %v372_v28  ;;  %3369 = vmatprep.subr.mxu1 %v405_v30  ;;  %v422_v28 = vld [vmem:[%s6485_s1 + $0xc20] sm:$0xff]  ;;  %v455_v30 = vld [vmem:[%s6485_s1 + $0xd28] sm:$0xff] }
  0xc7   :  { %3337 = vmatpush3.msra.mxu0 %v356_v31  ;;  %3370 = vmatpush3.msra.mxu1 %v389_v33  ;;  %v437_v31 = vld [vmem:[%s6485_s1 + $0xc98] sm:$0xff] }
  0xc8   :  { %3338 = vmatprep.subr.mxu0 %v371_v34  ;;  %3371 = vmatprep.subr.mxu1 %v404_v35 }
  0xc9   :  { %3339 = vmatpush3.msra.mxu0 %v355_v36  ;;  %3372 = vmatpush3.msra.mxu1 %v388_v37 }
  0xca   :  { %3340 = vmatprep.subr.mxu0 %v370_v38  ;;  %3373 = vmatprep.subr.mxu1 %v403_v40 }
  0xcb   :  { %3341 = vmatpush3.msra.mxu0 %v354_v41  ;;  %1862 = vmatprep.mubr.f32.mxu0 %v938_v42 }
  0xcc   :  { %3374 = vmatpush3.msra.mxu1 %v387_v43  ;;  %1863 = vmatmul.mubr.f32.vlgmr.msra.gmra.mxu0 %v930_v32 }
  0xcd   :  { %3375 = vmatprep.subr.mxu1 %v402_v44  ;;  %3380 = vmatprep.subr.mxu0 %v449_v45 }
  0xce   :  { %3376 = vmatpush3.msra.mxu1 %v386_v46  ;;  %1932 = vmatprep.mubr.f32.mxu1 %v939_v47 }
  0xcf   :  { %3381 = vmatpush3.msra.mxu0 %v433_v49  ;;  %1933 = vmatmul.mubr.f32.vlgmr.msra.gmra.mxu1 %v937_v39 }
  0xd0   :  { %3382 = vmatprep.subr.mxu0 %v448_v50  ;;  %3415 = vmatprep.subr.mxu1 %v481_v51 }
  0xd1   :  { %3383 = vmatpush3.msra.mxu0 %v432_v52  ;;  %3416 = vmatpush3.msra.mxu1 %v465_v53 }
  0xd2   :  { %3384 = vmatprep.subr.mxu0 %v447_v54  ;;  %3417 = vmatprep.subr.mxu1 %v480_v55 }
  0xd3   :  { %3385 = vmatpush3.msra.mxu0 %v431_v56  ;;  %3418 = vmatpush3.msra.mxu1 %v464_v57 }
  0xd4   :  { %3386 = vmatprep.subr.mxu0 %v446_v58  ;;  %3419 = vmatprep.subr.mxu1 %v479_v59 }
  0xd5   :  { %3387 = vmatpush3.msra.mxu0 %v430_v60  ;;  %3420 = vmatpush3.msra.mxu1 %v463_v61 }
  0xd6   :  { %3388 = vmatprep.subr.mxu0 %v445_v62  ;;  %3421 = vmatprep.subr.mxu1 %v478_v63 }
  0xd7   :  { %3389 = vmatpush3.msra.mxu0 %v429_v0  ;;  %3422 = vmatpush3.msra.mxu1 %v462_v1 }
  0xd8   :  { %3390 = vmatprep.subr.mxu0 %v444_v2  ;;  %3423 = vmatprep.subr.mxu1 %v477_v3 }
  0xd9   :  { %3391 = vmatpush3.msra.mxu0 %v428_v4  ;;  %3424 = vmatpush3.msra.mxu1 %v461_v5 }
  0xda   :  { %3392 = vmatprep.subr.mxu0 %v443_v6  ;;  %3425 = vmatprep.subr.mxu1 %v476_v7 }
  0xdb   :  { %3393 = vmatpush3.msra.mxu0 %v427_v8  ;;  %3426 = vmatpush3.msra.mxu1 %v460_v9 }
  0xdc   :  { %3394 = vmatprep.subr.mxu0 %v442_v10  ;;  %3427 = vmatprep.subr.mxu1 %v475_v11 }
  0xdd   :  { %3395 = vmatpush3.msra.mxu0 %v426_v12  ;;  %3428 = vmatpush3.msra.mxu1 %v459_v13 }
  0xde   :  { %3396 = vmatprep.subr.mxu0 %v441_v14  ;;  %3429 = vmatprep.subr.mxu1 %v474_v15 }
  0xdf   :  { %3397 = vmatpush3.msra.mxu0 %v425_v16  ;;  %3430 = vmatpush3.msra.mxu1 %v458_v17 }
  0xe0   :  { %3398 = vmatprep.subr.mxu0 %v440_v18  ;;  %3431 = vmatprep.subr.mxu1 %v473_v19 }
  0xe1   :  { %3399 = vmatpush3.msra.mxu0 %v424_v20  ;;  %3432 = vmatpush3.msra.mxu1 %v457_v21 }
  0xe2   :  { %3400 = vmatprep.subr.mxu0 %v439_v22  ;;  %3433 = vmatprep.subr.mxu1 %v472_v23 }
  0xe3   :  { %3401 = vmatpush3.msra.mxu0 %v423_v24 }
  0xe4   :  { %10 = vsyncpa [#allocation3], 0  ;;  %3434 = vmatpush3.msra.mxu1 %v456_v25  ;;  %3402 = vmatprep.subr.mxu0 %v438_v26  ;;  %v470_v32 = vld [vmem:[%s6485_s1 + $0xda0] sm:$0xff]  ;;  %v421_v33 = vld [vmem:[%s6485_s1 + $0xc18] sm:$0xff]  ;;  %v940_v36 = vcombine.high %v27_v29, %v27_v29  ;;  %v947_v39 = vrot.slane %v27_v29, %v4105_v48  ;;  %vm3944_vm0 = vmmov 0   ;;  %s3945_s17 = smov [#allocation2]  }
  0xe5   :  { %3435 = vmatprep.subr.mxu1 %v471_v27  ;;  %3403 = vmatpush3.msra.mxu0 %v422_v28  ;;  %v454_v34 = vld [vmem:[%s6485_s1 + $0xd20] sm:$0xff]  ;;  %v436_v35 = vld [vmem:[%s6485_s1 + $0xc90] sm:$0xff]  ;;  %v469_v37 = vld [vmem:[%s6485_s1 + $0xd98] sm:$0xff]  ;;  %s2949_s18 = sshll.u32 %s3945_s17, 4  ;;  %s2950_s18 = int_to_ptr.vmem [resolvable:$true] %s2949_s18 }
  0xe6   :  { %3436 = vmatpush3.msra.mxu1 %v455_v30  ;;  %3404 = vmatprep.subr.mxu0 %v437_v31  ;;  %v420_v38 = vld [vmem:[%s6485_s1 + $0xc10] sm:$0xff]  ;;  %v453_v40 = vld [vmem:[%s6485_s1 + $0xd18] sm:$0xff]  ;;  %v435_v41 = vld [vmem:[%s6485_s1 + $0xc88] sm:$0xff]  ;;  %v954_v46 = vrot.slane %v940_v36, %v4105_v48  ;;  %v955_v50 = vcombine.high %v947_v39, %v947_v39  ;;  %s3920_s19 = scalar_lea.vmem %s2950_s18, 32  ;;  %p3925_p1 = scmp.lt.s32.totalorder %s2950_s18, %s2950_s18 }
  0xe7   :  { %3437 = vmatprep.subr.mxu1 %v470_v32  ;;  %3405 = vmatpush3.msra.mxu0 %v421_v33  ;;  %v468_v42 = vld [vmem:[%s6485_s1 + $0xd90] sm:$0xff]  ;;  %v419_v43 = vld [vmem:[%s6485_s1 + $0xc08] sm:$0xff]  ;;  %v434_v45 = vld [vmem:[%s6485_s1 + $0xc80] sm:$0xff]  ;;  %p3921_p0 = scmp.ne.s32.totalorder %s2950_s18, %s3920_s19  ;;  %p3926_p2 = scmp.lt.s32.totalorder %s3920_s19, %s3920_s19 }
  0xe8   :  { %3438 = vmatpush3.msra.mxu1 %v454_v34  ;;  %3406 = vmatprep.subr.mxu0 %v436_v35  ;;  %v452_v44 = vld [vmem:[%s6485_s1 + $0xd10] sm:$0xff]  ;;  %v467_v47 = vld [vmem:[%s6485_s1 + $0xd88] sm:$0xff]  ;;  %v418_v49 = vld [vmem:[%s6485_s1 + $0xc00] sm:$0xff]  ;;  %v956_v55 = vcombine.high %v954_v46, %v954_v46 }
  0xe9   :  { %3439 = vmatprep.subr.mxu1 %v469_v37  ;;  %3407 = vmatpush3.msra.mxu0 %v420_v38  ;;  %v451_v51 = vld [vmem:[%s6485_s1 + $0xd08] sm:$0xff]  ;;  %v466_v52 = vld [vmem:[%s6485_s1 + $0xd80] sm:$0xff]  ;;  %v513_v53 = vld [vmem:[%s6485_s1 + $0xef8] sm:$0xff]  ;;  %p3927_p3 = por %p3926_p2, %p3925_p1 }
  0xea   :  { %3440 = vmatpush3.msra.mxu1 %v453_v40  ;;  %3408 = vmatprep.subr.mxu0 %v435_v41  ;;  %v450_v54 = vld [vmem:[%s6485_s1 + $0xd00] sm:$0xff]  ;;  %v497_v56 = vld [vmem:[%s6485_s1 + $0xe78] sm:$0xff]  ;;  %v512_v57 = vld [vmem:[%s6485_s1 + $0xef0] sm:$0xff] }
  0xeb   :  { %3441 = vmatprep.subr.mxu1 %v468_v42  ;;  %3409 = vmatpush3.msra.mxu0 %v419_v43  ;;  %v545_v58 = vld [vmem:[%s6485_s1 + $0xff8] sm:$0xff]  ;;  %v496_v59 = vld [vmem:[%s6485_s1 + $0xe70] sm:$0xff]  ;;  %v511_v61 = vld [vmem:[%s6485_s1 + $0xee8] sm:$0xff]  ;;  %p3928_p4 = pnand %p3927_p3, %p3921_p0 }
  0xec   :  { %3442 = vmatpush3.msra.mxu1 %v452_v44  ;;  %3410 = vmatprep.subr.mxu0 %v434_v45  ;;  %v529_v60 = vld [vmem:[%s6485_s1 + $0xf78] sm:$0xff]  ;;  %v544_v62 = vld [vmem:[%s6485_s1 + $0xff0] sm:$0xff]  ;;  %v495_v63 = vld [vmem:[%s6485_s1 + $0xe68] sm:$0xff] }
  0xed   :  { %3443 = vmatprep.subr.mxu1 %v467_v47  ;;  %3411 = vmatpush3.msra.mxu0 %v418_v49  ;;  %v528_v0 = vld [vmem:[%s6485_s1 + $0xf70] sm:$0xff]  ;;  %v510_v1 = vld [vmem:[%s6485_s1 + $0xee0] sm:$0xff]  ;;  %v543_v2 = vld [vmem:[%s6485_s1 + $0xfe8] sm:$0xff] }
  0xee   :  { %2002 = vmatprep.mubr.f32.mxu0 %v955_v50  ;;  %3444 = vmatpush3.msra.mxu1 %v451_v51  ;;  %v494_v3 = vld [vmem:[%s6485_s1 + $0xe60] sm:$0xff]  ;;  %v527_v4 = vld [vmem:[%s6485_s1 + $0xf68] sm:$0xff]  ;;  %v509_v5 = vld [vmem:[%s6485_s1 + $0xed8] sm:$0xff] }
  0xef   :  { %2003 = vmatmul.mubr.f32.vlgmr.msra.gmra.mxu0 %v947_v39  ;;  %3445 = vmatprep.subr.mxu1 %v466_v52  ;;  %v542_v6 = vld [vmem:[%s6485_s1 + $0xfe0] sm:$0xff]  ;;  %v493_v7 = vld [vmem:[%s6485_s1 + $0xe58] sm:$0xff]  ;;  %v508_v9 = vld [vmem:[%s6485_s1 + $0xed0] sm:$0xff] }
  0xf0   :  { %3450 = vmatprep.subr.mxu0 %v513_v53  ;;  %3446 = vmatpush3.msra.mxu1 %v450_v54  ;;  %v526_v8 = vld [vmem:[%s6485_s1 + $0xf60] sm:$0xff]  ;;  %v541_v10 = vld [vmem:[%s6485_s1 + $0xfd8] sm:$0xff]  ;;  %v492_v11 = vld [vmem:[%s6485_s1 + $0xe50] sm:$0xff] }
  0xf1   :  { %2072 = vmatprep.mubr.f32.mxu1 %v956_v55  ;;  %3451 = vmatpush3.msra.mxu0 %v497_v56  ;;  %v525_v12 = vld [vmem:[%s6485_s1 + $0xf58] sm:$0xff]  ;;  %v507_v13 = vld [vmem:[%s6485_s1 + $0xec8] sm:$0xff]  ;;  %v540_v14 = vld [vmem:[%s6485_s1 + $0xfd0] sm:$0xff] }
  0xf2   :  { %2073 = vmatmul.mubr.f32.vlgmr.msra.gmra.mxu1 %v954_v46  ;;  %3452 = vmatprep.subr.mxu0 %v512_v57  ;;  %v491_v15 = vld [vmem:[%s6485_s1 + $0xe48] sm:$0xff]  ;;  %v524_v16 = vld [vmem:[%s6485_s1 + $0xf50] sm:$0xff]  ;;  %v506_v17 = vld [vmem:[%s6485_s1 + $0xec0] sm:$0xff] }
  0xf3   :  { %3485 = vmatprep.subr.mxu1 %v545_v58  ;;  %3453 = vmatpush3.msra.mxu0 %v496_v59  ;;  %v539_v18 = vld [vmem:[%s6485_s1 + $0xfc8] sm:$0xff]  ;;  %v490_v19 = vld [vmem:[%s6485_s1 + $0xe40] sm:$0xff]  ;;  %v505_v21 = vld [vmem:[%s6485_s1 + $0xeb8] sm:$0xff] }
  0xf4   :  { %3486 = vmatpush3.msra.mxu1 %v529_v60  ;;  %3454 = vmatprep.subr.mxu0 %v511_v61  ;;  %v523_v20 = vld [vmem:[%s6485_s1 + $0xf48] sm:$0xff]  ;;  %v538_v22 = vld [vmem:[%s6485_s1 + $0xfc0] sm:$0xff]  ;;  %v489_v23 = vld [vmem:[%s6485_s1 + $0xe38] sm:$0xff] }
  0xf5   :  { %3487 = vmatprep.subr.mxu1 %v544_v62  ;;  %3455 = vmatpush3.msra.mxu0 %v495_v63  ;;  %v522_v24 = vld [vmem:[%s6485_s1 + $0xf40] sm:$0xff]  ;;  %v504_v25 = vld [vmem:[%s6485_s1 + $0xeb0] sm:$0xff]  ;;  %v537_v26 = vld [vmem:[%s6485_s1 + $0xfb8] sm:$0xff] }
  0xf6   :  { %3488 = vmatpush3.msra.mxu1 %v528_v0  ;;  %3456 = vmatprep.subr.mxu0 %v510_v1  ;;  %v488_v27 = vld [vmem:[%s6485_s1 + $0xe30] sm:$0xff]  ;;  %v521_v28 = vld [vmem:[%s6485_s1 + $0xf38] sm:$0xff]  ;;  %v503_v29 = vld [vmem:[%s6485_s1 + $0xea8] sm:$0xff] }
  0xf7   :  { %3489 = vmatprep.subr.mxu1 %v543_v2  ;;  %3457 = vmatpush3.msra.mxu0 %v494_v3  ;;  %v536_v30 = vld [vmem:[%s6485_s1 + $0xfb0] sm:$0xff]  ;;  %v487_v31 = vld [vmem:[%s6485_s1 + $0xe28] sm:$0xff]  ;;  %v502_v33 = vld [vmem:[%s6485_s1 + $0xea0] sm:$0xff] }
  0xf8   :  { %3490 = vmatpush3.msra.mxu1 %v527_v4  ;;  %3458 = vmatprep.subr.mxu0 %v509_v5  ;;  %v520_v32 = vld [vmem:[%s6485_s1 + $0xf30] sm:$0xff]  ;;  %v535_v34 = vld [vmem:[%s6485_s1 + $0xfa8] sm:$0xff]  ;;  %v486_v35 = vld [vmem:[%s6485_s1 + $0xe20] sm:$0xff] }
  0xf9   :  { %3491 = vmatprep.subr.mxu1 %v542_v6  ;;  %3459 = vmatpush3.msra.mxu0 %v493_v7  ;;  %v28_v36 = vld [vmem:[%s6484_s0 + $0x38] sm:$0xff]  ;;  %v519_v37 = vld [vmem:[%s6485_s1 + $0xf28] sm:$0xff]  ;;  %v534_v39 = vld [vmem:[%s6485_s1 + $0xfa0] sm:$0xff] }
  0xfa   :  { %3492 = vmatpush3.msra.mxu1 %v526_v8  ;;  %3460 = vmatprep.subr.mxu0 %v508_v9  ;;  %v501_v38 = vld [vmem:[%s6485_s1 + $0xe98] sm:$0xff]  ;;  %v518_v41 = vld [vmem:[%s6485_s1 + $0xf20] sm:$0xff]  ;;  %v500_v42 = vld [vmem:[%s6485_s1 + $0xe90] sm:$0xff]  ;;  %v957_v43 = vcombine.high %v28_v36, %v28_v36  ;;  %v964_v46 = vrot.slane %v28_v36, %v4105_v48 }
  0xfb   :  { %3493 = vmatprep.subr.mxu1 %v541_v10  ;;  %3461 = vmatpush3.msra.mxu0 %v492_v11  ;;  %v485_v40 = vld [vmem:[%s6485_s1 + $0xe18] sm:$0xff]  ;;  %v484_v45 = vld [vmem:[%s6485_s1 + $0xe10] sm:$0xff]  ;;  %v499_v49 = vld [vmem:[%s6485_s1 + $0xe88] sm:$0xff] }
  0xfc   :  { %3494 = vmatpush3.msra.mxu1 %v525_v12  ;;  %3462 = vmatprep.subr.mxu0 %v507_v13  ;;  %v533_v44 = vld [vmem:[%s6485_s1 + $0xf98] sm:$0xff]  ;;  %v532_v50 = vld [vmem:[%s6485_s1 + $0xf90] sm:$0xff]  ;;  %v483_v51 = vld [vmem:[%s6485_s1 + $0xe08] sm:$0xff]  ;;  %v971_v54 = vrot.slane %v957_v43, %v4105_v48  ;;  %v972_v57 = vcombine.high %v964_v46, %v964_v46 }
  0xfd   :  { %3495 = vmatprep.subr.mxu1 %v540_v14  ;;  %3463 = vmatpush3.msra.mxu0 %v491_v15  ;;  %v517_v47 = vld [vmem:[%s6485_s1 + $0xf18] sm:$0xff]  ;;  %v516_v52 = vld [vmem:[%s6485_s1 + $0xf10] sm:$0xff]  ;;  %v498_v53 = vld [vmem:[%s6485_s1 + $0xe80] sm:$0xff] }
  0xfe   :  { %3496 = vmatpush3.msra.mxu1 %v524_v16  ;;  %3464 = vmatprep.subr.mxu0 %v506_v17  ;;  %v531_v55 = vld [vmem:[%s6485_s1 + $0xf88] sm:$0xff]  ;;  %v482_v56 = vld [vmem:[%s6485_s1 + $0xe00] sm:$0xff]  ;;  %v577_v60 = vld [vmem:[%s6485_s1 + $0x10f8] sm:$0xff]  ;;  %v973_v62 = vcombine.high %v971_v54, %v971_v54 }
  0xff   :  { %3497 = vmatprep.subr.mxu1 %v539_v18  ;;  %3465 = vmatpush3.msra.mxu0 %v490_v19  ;;  %v515_v58 = vld [vmem:[%s6485_s1 + $0xf08] sm:$0xff]  ;;  %v530_v59 = vld [vmem:[%s6485_s1 + $0xf80] sm:$0xff]  ;;  %v561_v63 = vld [vmem:[%s6485_s1 + $0x1078] sm:$0xff] }
 0x100   :  { %3498 = vmatpush3.msra.mxu1 %v523_v20  ;;  %3466 = vmatprep.subr.mxu0 %v505_v21  ;;  %v514_v61 = vld [vmem:[%s6485_s1 + $0xf00] sm:$0xff]  ;;  %v576_v0 = vld [vmem:[%s6485_s1 + $0x10f0] sm:$0xff]  ;;  %v609_v1 = vld [vmem:[%s6485_s1 + $0x11f8] sm:$0xff] }
 0x101   :  { %3499 = vmatprep.subr.mxu1 %v538_v22  ;;  %3467 = vmatpush3.msra.mxu0 %v489_v23  ;;  %v560_v2 = vld [vmem:[%s6485_s1 + $0x1070] sm:$0xff]  ;;  %v593_v3 = vld [vmem:[%s6485_s1 + $0x1178] sm:$0xff]  ;;  %v575_v4 = vld [vmem:[%s6485_s1 + $0x10e8] sm:$0xff] }
 0x102   :  { %3500 = vmatpush3.msra.mxu1 %v522_v24  ;;  %3468 = vmatprep.subr.mxu0 %v504_v25  ;;  %v608_v5 = vld [vmem:[%s6485_s1 + $0x11f0] sm:$0xff]  ;;  %v559_v6 = vld [vmem:[%s6485_s1 + $0x1068] sm:$0xff]  ;;  %v574_v8 = vld [vmem:[%s6485_s1 + $0x10e0] sm:$0xff] }
 0x103   :  { %3501 = vmatprep.subr.mxu1 %v537_v26  ;;  %3469 = vmatpush3.msra.mxu0 %v488_v27  ;;  %v592_v7 = vld [vmem:[%s6485_s1 + $0x1170] sm:$0xff]  ;;  %v607_v9 = vld [vmem:[%s6485_s1 + $0x11e8] sm:$0xff]  ;;  %v558_v10 = vld [vmem:[%s6485_s1 + $0x1060] sm:$0xff] }
 0x104   :  { %3502 = vmatpush3.msra.mxu1 %v521_v28  ;;  %3470 = vmatprep.subr.mxu0 %v503_v29  ;;  %v591_v11 = vld [vmem:[%s6485_s1 + $0x1168] sm:$0xff]  ;;  %v573_v12 = vld [vmem:[%s6485_s1 + $0x10d8] sm:$0xff]  ;;  %v606_v13 = vld [vmem:[%s6485_s1 + $0x11e0] sm:$0xff] }
 0x105   :  { %3503 = vmatprep.subr.mxu1 %v536_v30  ;;  %3471 = vmatpush3.msra.mxu0 %v487_v31  ;;  %v557_v14 = vld [vmem:[%s6485_s1 + $0x1058] sm:$0xff]  ;;  %v590_v15 = vld [vmem:[%s6485_s1 + $0x1160] sm:$0xff]  ;;  %v572_v16 = vld [vmem:[%s6485_s1 + $0x10d0] sm:$0xff] }
 0x106   :  { %3504 = vmatpush3.msra.mxu1 %v520_v32  ;;  %3472 = vmatprep.subr.mxu0 %v502_v33  ;;  %v605_v17 = vld [vmem:[%s6485_s1 + $0x11d8] sm:$0xff]  ;;  %v556_v18 = vld [vmem:[%s6485_s1 + $0x1050] sm:$0xff]  ;;  %v571_v20 = vld [vmem:[%s6485_s1 + $0x10c8] sm:$0xff] }
 0x107   :  { %3505 = vmatprep.subr.mxu1 %v535_v34  ;;  %3473 = vmatpush3.msra.mxu0 %v486_v35  ;;  %v589_v19 = vld [vmem:[%s6485_s1 + $0x1158] sm:$0xff]  ;;  %v604_v21 = vld [vmem:[%s6485_s1 + $0x11d0] sm:$0xff]  ;;  %v555_v22 = vld [vmem:[%s6485_s1 + $0x1048] sm:$0xff] }
 0x108   :  { %3506 = vmatpush3.msra.mxu1 %v519_v37  ;;  %3474 = vmatprep.subr.mxu0 %v501_v38  ;;  %v588_v23 = vld [vmem:[%s6485_s1 + $0x1150] sm:$0xff]  ;;  %v570_v24 = vld [vmem:[%s6485_s1 + $0x10c0] sm:$0xff]  ;;  %v603_v25 = vld [vmem:[%s6485_s1 + $0x11c8] sm:$0xff] }
 0x109   :  { %3507 = vmatprep.subr.mxu1 %v534_v39  ;;  %3475 = vmatpush3.msra.mxu0 %v485_v40  ;;  %v554_v26 = vld [vmem:[%s6485_s1 + $0x1040] sm:$0xff]  ;;  %v587_v27 = vld [vmem:[%s6485_s1 + $0x1148] sm:$0xff]  ;;  %v569_v28 = vld [vmem:[%s6485_s1 + $0x10b8] sm:$0xff] }
 0x10a   :  { %3508 = vmatpush3.msra.mxu1 %v518_v41  ;;  %3476 = vmatprep.subr.mxu0 %v500_v42  ;;  %v602_v29 = vld [vmem:[%s6485_s1 + $0x11c0] sm:$0xff]  ;;  %v553_v30 = vld [vmem:[%s6485_s1 + $0x1038] sm:$0xff]  ;;  %v568_v32 = vld [vmem:[%s6485_s1 + $0x10b0] sm:$0xff] }
 0x10b   :  { %3509 = vmatprep.subr.mxu1 %v533_v44  ;;  %3477 = vmatpush3.msra.mxu0 %v484_v45  ;;  %v586_v31 = vld [vmem:[%s6485_s1 + $0x1140] sm:$0xff]  ;;  %v601_v33 = vld [vmem:[%s6485_s1 + $0x11b8] sm:$0xff]  ;;  %v552_v34 = vld [vmem:[%s6485_s1 + $0x1030] sm:$0xff] }
 0x10c   :  { %3510 = vmatpush3.msra.mxu1 %v517_v47  ;;  %3478 = vmatprep.subr.mxu0 %v499_v49  ;;  %v585_v35 = vld [vmem:[%s6485_s1 + $0x1138] sm:$0xff]  ;;  %v567_v36 = vld [vmem:[%s6485_s1 + $0x10a8] sm:$0xff]  ;;  %v600_v37 = vld [vmem:[%s6485_s1 + $0x11b0] sm:$0xff] }
 0x10d   :  { %3511 = vmatprep.subr.mxu1 %v532_v50  ;;  %3479 = vmatpush3.msra.mxu0 %v483_v51  ;;  %v551_v38 = vld [vmem:[%s6485_s1 + $0x1028] sm:$0xff]  ;;  %v584_v39 = vld [vmem:[%s6485_s1 + $0x1130] sm:$0xff]  ;;  %v566_v40 = vld [vmem:[%s6485_s1 + $0x10a0] sm:$0xff] }
 0x10e   :  { %3512 = vmatpush3.msra.mxu1 %v516_v52  ;;  %3480 = vmatprep.subr.mxu0 %v498_v53  ;;  %v599_v41 = vld [vmem:[%s6485_s1 + $0x11a8] sm:$0xff]  ;;  %v550_v42 = vld [vmem:[%s6485_s1 + $0x1020] sm:$0xff]  ;;  %v565_v45 = vld [vmem:[%s6485_s1 + $0x1098] sm:$0xff] }
 0x10f   :  { %3513 = vmatprep.subr.mxu1 %v531_v55  ;;  %3481 = vmatpush3.msra.mxu0 %v482_v56  ;;  %v29_v43 = vld [vmem:[%s6484_s0 + $0x40] sm:$0xff]  ;;  %v583_v44 = vld [vmem:[%s6485_s1 + $0x1128] sm:$0xff]  ;;  %v549_v47 = vld [vmem:[%s6485_s1 + $0x1018] sm:$0xff] }
 0x110   :  { %2142 = vmatprep.mubr.f32.mxu0 %v972_v57  ;;  %3514 = vmatpush3.msra.mxu1 %v515_v58  ;;  %v582_v49 = vld [vmem:[%s6485_s1 + $0x1120] sm:$0xff]  ;;  %v564_v50 = vld [vmem:[%s6485_s1 + $0x1090] sm:$0xff]  ;;  %v974_v51 = vcombine.high %v29_v43, %v29_v43  ;;  %v597_v52 = vld [vmem:[%s6485_s1 + $0x1198] sm:$0xff] }
 0x111   :  { %2143 = vmatmul.mubr.f32.vlgmr.msra.gmra.mxu0 %v964_v46  ;;  %3515 = vmatprep.subr.mxu1 %v530_v59  ;;  %v598_v46 = vld [vmem:[%s6485_s1 + $0x11a0] sm:$0xff]  ;;  %v548_v53 = vld [vmem:[%s6485_s1 + $0x1010] sm:$0xff]  ;;  %v581_v55 = vld [vmem:[%s6485_s1 + $0x1118] sm:$0xff] }
 0x112   :  { %3520 = vmatprep.subr.mxu0 %v577_v60  ;;  %3516 = vmatpush3.msra.mxu1 %v514_v61  ;;  %v563_v56 = vld [vmem:[%s6485_s1 + $0x1088] sm:$0xff]  ;;  %v596_v57 = vld [vmem:[%s6485_s1 + $0x1190] sm:$0xff]  ;;  %v562_v60 = vld [vmem:[%s6485_s1 + $0x1080] sm:$0xff]  ;;  %v988_v61 = vrot.slane %v974_v51, %v4105_v48 }
 0x113   :  { %2212 = vmatprep.mubr.f32.mxu1 %v973_v62  ;;  %3521 = vmatpush3.msra.mxu0 %v561_v63  ;;  %v547_v58 = vld [vmem:[%s6485_s1 + $0x1008] sm:$0xff]  ;;  %v580_v59 = vld [vmem:[%s6485_s1 + $0x1110] sm:$0xff]  ;;  %v546_v63 = vld [vmem:[%s6485_s1 + $0x1000] sm:$0xff] }
 0x114   :  { %2213 = vmatmul.mubr.f32.vlgmr.msra.gmra.mxu1 %v971_v54  ;;  %3522 = vmatprep.subr.mxu0 %v576_v0  ;;  %v981_v54 = vrot.slane %v29_v43, %v4105_v48  ;;  %v595_v62 = vld [vmem:[%s6485_s1 + $0x1188] sm:$0xff] }
 0x115   :  { %3555 = vmatprep.subr.mxu1 %v609_v1  ;;  %3523 = vmatpush3.msra.mxu0 %v560_v2  ;;  %v579_v1 = vld [vmem:[%s6485_s1 + $0x1108] sm:$0xff]  ;;  %v594_v2 = vld [vmem:[%s6485_s1 + $0x1180] sm:$0xff] }
 0x116   :  { %3556 = vmatpush3.msra.mxu1 %v593_v3  ;;  %3524 = vmatprep.subr.mxu0 %v575_v4  ;;  %v989_v0 = vcombine.high %v981_v54, %v981_v54  ;;  %v641_v3 = vld [vmem:[%s6485_s1 + $0x12f8] sm:$0xff]  ;;  %v578_v4 = vld [vmem:[%s6485_s1 + $0x1100] sm:$0xff]  ;;  %v631_v43 = vld [vmem:[%s6485_s1 + $0x12a8] sm:$0xff] }
 0x117   :  { %3557 = vmatprep.subr.mxu1 %v608_v5  ;;  %3525 = vmatpush3.msra.mxu0 %v559_v6  ;;  %v990_v5 = vcombine.high %v988_v61, %v988_v61  ;;  %v625_v6 = vld [vmem:[%s6485_s1 + $0x1278] sm:$0xff]  ;;  %v30_v51 = vld [vmem:[%s6484_s0 + $0x48] sm:$0xff] }
 0x118   :  { %3558 = vmatpush3.msra.mxu1 %v592_v7  ;;  %3526 = vmatprep.subr.mxu0 %v574_v8  ;;  %v640_v7 = vld [vmem:[%s6485_s1 + $0x12f0] sm:$0xff]  ;;  %v673_v8 = vld [vmem:[%s6485_s1 + $0x13f8] sm:$0xff] }
 0x119   :  { %3559 = vmatprep.subr.mxu1 %v607_v9  ;;  %3527 = vmatpush3.msra.mxu0 %v558_v10  ;;  %v624_v9 = vld [vmem:[%s6485_s1 + $0x1270] sm:$0xff]  ;;  %v657_v10 = vld [vmem:[%s6485_s1 + $0x1378] sm:$0xff] }
 0x11a   :  { %3560 = vmatpush3.msra.mxu1 %v591_v11  ;;  %3528 = vmatprep.subr.mxu0 %v573_v12  ;;  %v639_v11 = vld [vmem:[%s6485_s1 + $0x12e8] sm:$0xff]  ;;  %v672_v12 = vld [vmem:[%s6485_s1 + $0x13f0] sm:$0xff] }
 0x11b   :  { %3561 = vmatprep.subr.mxu1 %v606_v13  ;;  %3529 = vmatpush3.msra.mxu0 %v557_v14  ;;  %v623_v13 = vld [vmem:[%s6485_s1 + $0x1268] sm:$0xff]  ;;  %v656_v14 = vld [vmem:[%s6485_s1 + $0x1370] sm:$0xff] }
 0x11c   :  { %3562 = vmatpush3.msra.mxu1 %v590_v15  ;;  %3530 = vmatprep.subr.mxu0 %v572_v16  ;;  %v638_v15 = vld [vmem:[%s6485_s1 + $0x12e0] sm:$0xff]  ;;  %v671_v16 = vld [vmem:[%s6485_s1 + $0x13e8] sm:$0xff] }
 0x11d   :  { %3563 = vmatprep.subr.mxu1 %v605_v17  ;;  %3531 = vmatpush3.msra.mxu0 %v556_v18  ;;  %v622_v17 = vld [vmem:[%s6485_s1 + $0x1260] sm:$0xff]  ;;  %v655_v18 = vld [vmem:[%s6485_s1 + $0x1368] sm:$0xff] }
 0x11e   :  { %3564 = vmatpush3.msra.mxu1 %v589_v19  ;;  %3532 = vmatprep.subr.mxu0 %v571_v20  ;;  %v637_v19 = vld [vmem:[%s6485_s1 + $0x12d8] sm:$0xff]  ;;  %v670_v20 = vld [vmem:[%s6485_s1 + $0x13e0] sm:$0xff] }
 0x11f   :  { %3565 = vmatprep.subr.mxu1 %v604_v21  ;;  %3533 = vmatpush3.msra.mxu0 %v555_v22  ;;  %v621_v21 = vld [vmem:[%s6485_s1 + $0x1258] sm:$0xff]  ;;  %v654_v22 = vld [vmem:[%s6485_s1 + $0x1360] sm:$0xff] }
 0x120   :  { %3566 = vmatpush3.msra.mxu1 %v588_v23  ;;  %3534 = vmatprep.subr.mxu0 %v570_v24  ;;  %v636_v23 = vld [vmem:[%s6485_s1 + $0x12d0] sm:$0xff]  ;;  %v669_v24 = vld [vmem:[%s6485_s1 + $0x13d8] sm:$0xff] }
 0x121   :  { %3567 = vmatprep.subr.mxu1 %v603_v25  ;;  %3535 = vmatpush3.msra.mxu0 %v554_v26  ;;  %v620_v25 = vld [vmem:[%s6485_s1 + $0x1250] sm:$0xff]  ;;  %v653_v26 = vld [vmem:[%s6485_s1 + $0x1358] sm:$0xff] }
 0x122   :  { %3568 = vmatpush3.msra.mxu1 %v587_v27  ;;  %3536 = vmatprep.subr.mxu0 %v569_v28  ;;  %v635_v27 = vld [vmem:[%s6485_s1 + $0x12c8] sm:$0xff]  ;;  %v668_v28 = vld [vmem:[%s6485_s1 + $0x13d0] sm:$0xff] }
 0x123   :  { %3569 = vmatprep.subr.mxu1 %v602_v29  ;;  %3537 = vmatpush3.msra.mxu0 %v553_v30  ;;  %v619_v29 = vld [vmem:[%s6485_s1 + $0x1248] sm:$0xff]  ;;  %v652_v30 = vld [vmem:[%s6485_s1 + $0x1350] sm:$0xff] }
 0x124   :  { %3570 = vmatpush3.msra.mxu1 %v586_v31  ;;  %3538 = vmatprep.subr.mxu0 %v568_v32  ;;  %v634_v31 = vld [vmem:[%s6485_s1 + $0x12c0] sm:$0xff]  ;;  %v667_v32 = vld [vmem:[%s6485_s1 + $0x13c8] sm:$0xff] }
 0x125   :  { %3571 = vmatprep.subr.mxu1 %v601_v33  ;;  %3539 = vmatpush3.msra.mxu0 %v552_v34  ;;  %v618_v33 = vld [vmem:[%s6485_s1 + $0x1240] sm:$0xff]  ;;  %v651_v34 = vld [vmem:[%s6485_s1 + $0x1348] sm:$0xff] }
 0x126   :  { %3572 = vmatpush3.msra.mxu1 %v585_v35  ;;  %3540 = vmatprep.subr.mxu0 %v567_v36  ;;  %v633_v35 = vld [vmem:[%s6485_s1 + $0x12b8] sm:$0xff]  ;;  %v666_v36 = vld [vmem:[%s6485_s1 + $0x13c0] sm:$0xff] }
 0x127   :  { %3573 = vmatprep.subr.mxu1 %v600_v37  ;;  %3541 = vmatpush3.msra.mxu0 %v551_v38  ;;  %v617_v37 = vld [vmem:[%s6485_s1 + $0x1238] sm:$0xff]  ;;  %v650_v38 = vld [vmem:[%s6485_s1 + $0x1340] sm:$0xff] }
 0x128   :  { %3574 = vmatpush3.msra.mxu1 %v584_v39  ;;  %3542 = vmatprep.subr.mxu0 %v566_v40  ;;  %v632_v39 = vld [vmem:[%s6485_s1 + $0x12b0] sm:$0xff]  ;;  %v665_v40 = vld [vmem:[%s6485_s1 + $0x13b8] sm:$0xff] }
 0x129   :  { %3575 = vmatprep.subr.mxu1 %v599_v41  ;;  %3543 = vmatpush3.msra.mxu0 %v550_v42  ;;  %v616_v41 = vld [vmem:[%s6485_s1 + $0x1230] sm:$0xff]  ;;  %v649_v42 = vld [vmem:[%s6485_s1 + $0x1338] sm:$0xff] }
 0x12a   :  { %3576 = vmatpush3.msra.mxu1 %v583_v44  ;;  %3544 = vmatprep.subr.mxu0 %v565_v45  ;;  %v664_v44 = vld [vmem:[%s6485_s1 + $0x13b0] sm:$0xff]  ;;  %v615_v45 = vld [vmem:[%s6485_s1 + $0x1228] sm:$0xff] }
 0x12b   :  { %3577 = vmatprep.subr.mxu1 %v598_v46  ;;  %3545 = vmatpush3.msra.mxu0 %v549_v47  ;;  %v648_v46 = vld [vmem:[%s6485_s1 + $0x1330] sm:$0xff]  ;;  %v630_v47 = vld [vmem:[%s6485_s1 + $0x12a0] sm:$0xff] }
 0x12c   :  { %3578 = vmatpush3.msra.mxu1 %v582_v49  ;;  %3546 = vmatprep.subr.mxu0 %v564_v50  ;;  %v663_v49 = vld [vmem:[%s6485_s1 + $0x13a8] sm:$0xff]  ;;  %v614_v50 = vld [vmem:[%s6485_s1 + $0x1220] sm:$0xff] }
 0x12d   :  { %3579 = vmatprep.subr.mxu1 %v597_v52  ;;  %3547 = vmatpush3.msra.mxu0 %v548_v53  ;;  %v647_v52 = vld [vmem:[%s6485_s1 + $0x1328] sm:$0xff]  ;;  %v629_v53 = vld [vmem:[%s6485_s1 + $0x1298] sm:$0xff] }
 0x12e   :  { %3580 = vmatpush3.msra.mxu1 %v581_v55  ;;  %3548 = vmatprep.subr.mxu0 %v563_v56  ;;  %v613_v55 = vld [vmem:[%s6485_s1 + $0x1218] sm:$0xff]  ;;  %v646_v56 = vld [vmem:[%s6485_s1 + $0x1320] sm:$0xff] }
 0x12f   :  { %3581 = vmatprep.subr.mxu1 %v596_v57  ;;  %3549 = vmatpush3.msra.mxu0 %v547_v58  ;;  %v628_v57 = vld [vmem:[%s6485_s1 + $0x1290] sm:$0xff]  ;;  %v991_v58 = vcombine.high %v30_v51, %v30_v51 }
 0x130   :  { %3582 = vmatpush3.msra.mxu1 %v580_v59  ;;  %3550 = vmatprep.subr.mxu0 %v562_v60  ;;  %v661_v59 = vld [vmem:[%s6485_s1 + $0x1398] sm:$0xff]  ;;  %v612_v60 = vld [vmem:[%s6485_s1 + $0x1210] sm:$0xff] }
 0x131   :  { %3583 = vmatprep.subr.mxu1 %v595_v62  ;;  %3551 = vmatpush3.msra.mxu0 %v546_v63  ;;  %v645_v62 = vld [vmem:[%s6485_s1 + $0x1318] sm:$0xff]  ;;  %v627_v63 = vld [vmem:[%s6485_s1 + $0x1288] sm:$0xff] }
 0x132   :  { %2282 = vmatprep.mubr.f32.mxu0 %v989_v0  ;;  %3584 = vmatpush3.msra.mxu1 %v579_v1  ;;  %v660_v0 = vld [vmem:[%s6485_s1 + $0x1390] sm:$0xff]  ;;  %v611_v1 = vld [vmem:[%s6485_s1 + $0x1208] sm:$0xff] }
 0x133   :  { %2283 = vmatmul.mubr.f32.vlgmr.msra.gmra.mxu0 %v981_v54  ;;  %3585 = vmatprep.subr.mxu1 %v594_v2  ;;  %v662_v54 = vld [vmem:[%s6485_s1 + $0x13a0] sm:$0xff]  ;;  %v644_v2 = vld [vmem:[%s6485_s1 + $0x1310] sm:$0xff] }
 0x134   :  { %3590 = vmatprep.subr.mxu0 %v641_v3  ;;  %3586 = vmatpush3.msra.mxu1 %v578_v4  ;;  %v626_v3 = vld [vmem:[%s6485_s1 + $0x1280] sm:$0xff]  ;;  %v1005_v4 = vrot.slane %v991_v58, %v4105_v48  ;;  %v31_v58 = vld [vmem:[%s6484_s0 + $0x50] sm:$0xff] }
 0x135   :  { %2352 = vmatprep.mubr.f32.mxu1 %v990_v5  ;;  %3591 = vmatpush3.msra.mxu0 %v625_v6  ;;  %v659_v5 = vld [vmem:[%s6485_s1 + $0x1388] sm:$0xff]  ;;  %v610_v6 = vld [vmem:[%s6485_s1 + $0x1200] sm:$0xff] }
 0x136   :  { %2353 = vmatmul.mubr.f32.vlgmr.msra.gmra.mxu1 %v988_v61  ;;  %3592 = vmatprep.subr.mxu0 %v640_v7  ;;  %v998_v61 = vrot.slane %v30_v51, %v4105_v48  ;;  %v695_v51 = vld [vmem:[%s6485_s1 + $0x14a8] sm:$0xff] }
 0x137   :  { %3625 = vmatprep.subr.mxu1 %v673_v8  ;;  %3593 = vmatpush3.msra.mxu0 %v624_v9  ;;  %v643_v8 = vld [vmem:[%s6485_s1 + $0x1308] sm:$0xff]  ;;  %v658_v9 = vld [vmem:[%s6485_s1 + $0x1380] sm:$0xff] }
 0x138   :  { %3626 = vmatpush3.msra.mxu1 %v657_v10  ;;  %3594 = vmatprep.subr.mxu0 %v639_v11  ;;  %v1006_v7 = vcombine.high %v998_v61, %v998_v61  ;;  %v705_v10 = vld [vmem:[%s6485_s1 + $0x14f8] sm:$0xff]  ;;  %v642_v11 = vld [vmem:[%s6485_s1 + $0x1300] sm:$0xff] }
 0x139   :  { %3627 = vmatprep.subr.mxu1 %v672_v12  ;;  %3595 = vmatpush3.msra.mxu0 %v623_v13  ;;  %v1007_v12 = vcombine.high %v1005_v4, %v1005_v4  ;;  %v689_v13 = vld [vmem:[%s6485_s1 + $0x1478] sm:$0xff] }
 0x13a   :  { %3628 = vmatpush3.msra.mxu1 %v656_v14  ;;  %3596 = vmatprep.subr.mxu0 %v638_v15  ;;  %v704_v14 = vld [vmem:[%s6485_s1 + $0x14f0] sm:$0xff]  ;;  %v737_v15 = vld [vmem:[%s6485_s1 + $0x15f8] sm:$0xff] }
 0x13b   :  { %3629 = vmatprep.subr.mxu1 %v671_v16  ;;  %3597 = vmatpush3.msra.mxu0 %v622_v17  ;;  %v688_v16 = vld [vmem:[%s6485_s1 + $0x1470] sm:$0xff]  ;;  %v721_v17 = vld [vmem:[%s6485_s1 + $0x1578] sm:$0xff] }
 0x13c   :  { %3630 = vmatpush3.msra.mxu1 %v655_v18  ;;  %3598 = vmatprep.subr.mxu0 %v637_v19  ;;  %v703_v18 = vld [vmem:[%s6485_s1 + $0x14e8] sm:$0xff]  ;;  %v736_v19 = vld [vmem:[%s6485_s1 + $0x15f0] sm:$0xff] }
 0x13d   :  { %3631 = vmatprep.subr.mxu1 %v670_v20  ;;  %3599 = vmatpush3.msra.mxu0 %v621_v21  ;;  %v687_v20 = vld [vmem:[%s6485_s1 + $0x1468] sm:$0xff]  ;;  %v720_v21 = vld [vmem:[%s6485_s1 + $0x1570] sm:$0xff] }
 0x13e   :  { %3632 = vmatpush3.msra.mxu1 %v654_v22  ;;  %3600 = vmatprep.subr.mxu0 %v636_v23  ;;  %v702_v22 = vld [vmem:[%s6485_s1 + $0x14e0] sm:$0xff]  ;;  %v735_v23 = vld [vmem:[%s6485_s1 + $0x15e8] sm:$0xff] }
 0x13f   :  { %3633 = vmatprep.subr.mxu1 %v669_v24  ;;  %3601 = vmatpush3.msra.mxu0 %v620_v25  ;;  %v686_v24 = vld [vmem:[%s6485_s1 + $0x1460] sm:$0xff]  ;;  %v719_v25 = vld [vmem:[%s6485_s1 + $0x1568] sm:$0xff] }
 0x140   :  { %3634 = vmatpush3.msra.mxu1 %v653_v26  ;;  %3602 = vmatprep.subr.mxu0 %v635_v27  ;;  %v701_v26 = vld [vmem:[%s6485_s1 + $0x14d8] sm:$0xff]  ;;  %v734_v27 = vld [vmem:[%s6485_s1 + $0x15e0] sm:$0xff] }
 0x141   :  { %3635 = vmatprep.subr.mxu1 %v668_v28  ;;  %3603 = vmatpush3.msra.mxu0 %v619_v29  ;;  %v685_v28 = vld [vmem:[%s6485_s1 + $0x1458] sm:$0xff]  ;;  %v718_v29 = vld [vmem:[%s6485_s1 + $0x1560] sm:$0xff] }
 0x142   :  { %3636 = vmatpush3.msra.mxu1 %v652_v30  ;;  %3604 = vmatprep.subr.mxu0 %v634_v31  ;;  %v700_v30 = vld [vmem:[%s6485_s1 + $0x14d0] sm:$0xff]  ;;  %v733_v31 = vld [vmem:[%s6485_s1 + $0x15d8] sm:$0xff] }
 0x143   :  { %3637 = vmatprep.subr.mxu1 %v667_v32  ;;  %3605 = vmatpush3.msra.mxu0 %v618_v33  ;;  %v684_v32 = vld [vmem:[%s6485_s1 + $0x1450] sm:$0xff]  ;;  %v717_v33 = vld [vmem:[%s6485_s1 + $0x1558] sm:$0xff] }
 0x144   :  { %3638 = vmatpush3.msra.mxu1 %v651_v34  ;;  %3606 = vmatprep.subr.mxu0 %v633_v35  ;;  %v699_v34 = vld [vmem:[%s6485_s1 + $0x14c8] sm:$0xff]  ;;  %v732_v35 = vld [vmem:[%s6485_s1 + $0x15d0] sm:$0xff] }
 0x145   :  { %3639 = vmatprep.subr.mxu1 %v666_v36  ;;  %3607 = vmatpush3.msra.mxu0 %v617_v37  ;;  %v683_v36 = vld [vmem:[%s6485_s1 + $0x1448] sm:$0xff]  ;;  %v716_v37 = vld [vmem:[%s6485_s1 + $0x1550] sm:$0xff] }
 0x146   :  { %3640 = vmatpush3.msra.mxu1 %v650_v38  ;;  %3608 = vmatprep.subr.mxu0 %v632_v39  ;;  %v698_v38 = vld [vmem:[%s6485_s1 + $0x14c0] sm:$0xff]  ;;  %v731_v39 = vld [vmem:[%s6485_s1 + $0x15c8] sm:$0xff] }
 0x147   :  { %3641 = vmatprep.subr.mxu1 %v665_v40  ;;  %3609 = vmatpush3.msra.mxu0 %v616_v41  ;;  %v682_v40 = vld [vmem:[%s6485_s1 + $0x1440] sm:$0xff]  ;;  %v715_v41 = vld [vmem:[%s6485_s1 + $0x1548] sm:$0xff] }
 0x148   :  { %3642 = vmatpush3.msra.mxu1 %v649_v42  ;;  %3610 = vmatprep.subr.mxu0 %v631_v43  ;;  %v697_v42 = vld [vmem:[%s6485_s1 + $0x14b8] sm:$0xff]  ;;  %v730_v43 = vld [vmem:[%s6485_s1 + $0x15c0] sm:$0xff] }
 0x149   :  { %3643 = vmatprep.subr.mxu1 %v664_v44  ;;  %3611 = vmatpush3.msra.mxu0 %v615_v45  ;;  %v681_v44 = vld [vmem:[%s6485_s1 + $0x1438] sm:$0xff]  ;;  %v714_v45 = vld [vmem:[%s6485_s1 + $0x1540] sm:$0xff] }
 0x14a   :  { %3644 = vmatpush3.msra.mxu1 %v648_v46  ;;  %3612 = vmatprep.subr.mxu0 %v630_v47  ;;  %v696_v46 = vld [vmem:[%s6485_s1 + $0x14b0] sm:$0xff]  ;;  %v729_v47 = vld [vmem:[%s6485_s1 + $0x15b8] sm:$0xff] }
 0x14b   :  { %3645 = vmatprep.subr.mxu1 %v663_v49  ;;  %3613 = vmatpush3.msra.mxu0 %v614_v50  ;;  %v680_v49 = vld [vmem:[%s6485_s1 + $0x1430] sm:$0xff]  ;;  %v713_v50 = vld [vmem:[%s6485_s1 + $0x1538] sm:$0xff] }
 0x14c   :  { %3646 = vmatpush3.msra.mxu1 %v647_v52  ;;  %3614 = vmatprep.subr.mxu0 %v629_v53  ;;  %v728_v52 = vld [vmem:[%s6485_s1 + $0x15b0] sm:$0xff]  ;;  %v679_v53 = vld [vmem:[%s6485_s1 + $0x1428] sm:$0xff] }
 0x14d   :  { %3647 = vmatprep.subr.mxu1 %v662_v54  ;;  %3615 = vmatpush3.msra.mxu0 %v613_v55  ;;  %v712_v54 = vld [vmem:[%s6485_s1 + $0x1530] sm:$0xff]  ;;  %v694_v55 = vld [vmem:[%s6485_s1 + $0x14a0] sm:$0xff] }
 0x14e   :  { %3648 = vmatpush3.msra.mxu1 %v646_v56  ;;  %3616 = vmatprep.subr.mxu0 %v628_v57  ;;  %v727_v56 = vld [vmem:[%s6485_s1 + $0x15a8] sm:$0xff]  ;;  %v678_v57 = vld [vmem:[%s6485_s1 + $0x1420] sm:$0xff] }
 0x14f   :  { %3649 = vmatprep.subr.mxu1 %v661_v59  ;;  %3617 = vmatpush3.msra.mxu0 %v612_v60  ;;  %v711_v59 = vld [vmem:[%s6485_s1 + $0x1528] sm:$0xff]  ;;  %v693_v60 = vld [vmem:[%s6485_s1 + $0x1498] sm:$0xff] }
 0x150   :  { %3650 = vmatpush3.msra.mxu1 %v645_v62  ;;  %3618 = vmatprep.subr.mxu0 %v627_v63  ;;  %v677_v62 = vld [vmem:[%s6485_s1 + $0x1418] sm:$0xff]  ;;  %v710_v63 = vld [vmem:[%s6485_s1 + $0x1520] sm:$0xff] }
 0x151   :  { %3651 = vmatprep.subr.mxu1 %v660_v0  ;;  %3619 = vmatpush3.msra.mxu0 %v611_v1  ;;  %v692_v0 = vld [vmem:[%s6485_s1 + $0x1490] sm:$0xff]  ;;  %v1008_v1 = vcombine.high %v31_v58, %v31_v58 }
 0x152   :  { %3652 = vmatpush3.msra.mxu1 %v644_v2  ;;  %3620 = vmatprep.subr.mxu0 %v626_v3  ;;  %v725_v2 = vld [vmem:[%s6485_s1 + $0x1598] sm:$0xff]  ;;  %v676_v3 = vld [vmem:[%s6485_s1 + $0x1410] sm:$0xff] }
 0x153   :  { %3653 = vmatprep.subr.mxu1 %v659_v5  ;;  %3621 = vmatpush3.msra.mxu0 %v610_v6  ;;  %v709_v5 = vld [vmem:[%s6485_s1 + $0x1518] sm:$0xff]  ;;  %v691_v6 = vld [vmem:[%s6485_s1 + $0x1488] sm:$0xff] }
 0x154   :  { %2422 = vmatprep.mubr.f32.mxu0 %v1006_v7  ;;  %3654 = vmatpush3.msra.mxu1 %v643_v8  ;;  %v724_v7 = vld [vmem:[%s6485_s1 + $0x1590] sm:$0xff]  ;;  %v675_v8 = vld [vmem:[%s6485_s1 + $0x1408] sm:$0xff] }
 0x155   :  { %2423 = vmatmul.mubr.f32.vlgmr.msra.gmra.mxu0 %v998_v61  ;;  %3655 = vmatprep.subr.mxu1 %v658_v9  ;;  %v726_v61 = vld [vmem:[%s6485_s1 + $0x15a0] sm:$0xff]  ;;  %v708_v9 = vld [vmem:[%s6485_s1 + $0x1510] sm:$0xff] }
 0x156   :  { %3660 = vmatprep.subr.mxu0 %v705_v10  ;;  %3656 = vmatpush3.msra.mxu1 %v642_v11  ;;  %v690_v10 = vld [vmem:[%s6485_s1 + $0x1480] sm:$0xff]  ;;  %v1022_v11 = vrot.slane %v1008_v1, %v4105_v48  ;;  %v32_v1 = vld [vmem:[%s6484_s0 + $0x58] sm:$0xff] }
 0x157   :  { %2492 = vmatprep.mubr.f32.mxu1 %v1007_v12  ;;  %3661 = vmatpush3.msra.mxu0 %v689_v13  ;;  %v723_v12 = vld [vmem:[%s6485_s1 + $0x1588] sm:$0xff]  ;;  %v674_v13 = vld [vmem:[%s6485_s1 + $0x1400] sm:$0xff] }
 0x158   :  { %2493 = vmatmul.mubr.f32.vlgmr.msra.gmra.mxu1 %v1005_v4  ;;  %3662 = vmatprep.subr.mxu0 %v704_v14  ;;  %v1015_v4 = vrot.slane %v31_v58, %v4105_v48  ;;  %v759_v58 = vld [vmem:[%s6485_s1 + $0x16a8] sm:$0xff] }
 0x159   :  { %3695 = vmatprep.subr.mxu1 %v737_v15  ;;  %3663 = vmatpush3.msra.mxu0 %v688_v16  ;;  %v707_v15 = vld [vmem:[%s6485_s1 + $0x1508] sm:$0xff]  ;;  %v722_v16 = vld [vmem:[%s6485_s1 + $0x1580] sm:$0xff] }
 0x15a   :  { %3696 = vmatpush3.msra.mxu1 %v721_v17  ;;  %3664 = vmatprep.subr.mxu0 %v703_v18  ;;  %v1023_v14 = vcombine.high %v1015_v4, %v1015_v4  ;;  %v769_v17 = vld [vmem:[%s6485_s1 + $0x16f8] sm:$0xff]  ;;  %v706_v18 = vld [vmem:[%s6485_s1 + $0x1500] sm:$0xff] }
 0x15b   :  { %3697 = vmatprep.subr.mxu1 %v736_v19  ;;  %3665 = vmatpush3.msra.mxu0 %v687_v20  ;;  %v1024_v19 = vcombine.high %v1022_v11, %v1022_v11  ;;  %v753_v20 = vld [vmem:[%s6485_s1 + $0x1678] sm:$0xff] }
 0x15c   :  { %3698 = vmatpush3.msra.mxu1 %v720_v21  ;;  %3666 = vmatprep.subr.mxu0 %v702_v22  ;;  %v768_v21 = vld [vmem:[%s6485_s1 + $0x16f0] sm:$0xff]  ;;  %v801_v22 = vld [vmem:[%s6485_s1 + $0x17f8] sm:$0xff] }
 0x15d   :  { %3699 = vmatprep.subr.mxu1 %v735_v23  ;;  %3667 = vmatpush3.msra.mxu0 %v686_v24  ;;  %v752_v23 = vld [vmem:[%s6485_s1 + $0x1670] sm:$0xff]  ;;  %v785_v24 = vld [vmem:[%s6485_s1 + $0x1778] sm:$0xff] }
 0x15e   :  { %3700 = vmatpush3.msra.mxu1 %v719_v25  ;;  %3668 = vmatprep.subr.mxu0 %v701_v26  ;;  %v767_v25 = vld [vmem:[%s6485_s1 + $0x16e8] sm:$0xff]  ;;  %v800_v26 = vld [vmem:[%s6485_s1 + $0x17f0] sm:$0xff] }
 0x15f   :  { %3701 = vmatprep.subr.mxu1 %v734_v27  ;;  %3669 = vmatpush3.msra.mxu0 %v685_v28  ;;  %v751_v27 = vld [vmem:[%s6485_s1 + $0x1668] sm:$0xff]  ;;  %v784_v28 = vld [vmem:[%s6485_s1 + $0x1770] sm:$0xff] }
 0x160   :  { %3702 = vmatpush3.msra.mxu1 %v718_v29  ;;  %3670 = vmatprep.subr.mxu0 %v700_v30  ;;  %v766_v29 = vld [vmem:[%s6485_s1 + $0x16e0] sm:$0xff]  ;;  %v799_v30 = vld [vmem:[%s6485_s1 + $0x17e8] sm:$0xff] }
 0x161   :  { %3703 = vmatprep.subr.mxu1 %v733_v31  ;;  %3671 = vmatpush3.msra.mxu0 %v684_v32  ;;  %v750_v31 = vld [vmem:[%s6485_s1 + $0x1660] sm:$0xff]  ;;  %v783_v32 = vld [vmem:[%s6485_s1 + $0x1768] sm:$0xff] }
 0x162   :  { %3704 = vmatpush3.msra.mxu1 %v717_v33  ;;  %3672 = vmatprep.subr.mxu0 %v699_v34  ;;  %v765_v33 = vld [vmem:[%s6485_s1 + $0x16d8] sm:$0xff]  ;;  %v798_v34 = vld [vmem:[%s6485_s1 + $0x17e0] sm:$0xff] }
 0x163   :  { %3705 = vmatprep.subr.mxu1 %v732_v35  ;;  %3673 = vmatpush3.msra.mxu0 %v683_v36  ;;  %v749_v35 = vld [vmem:[%s6485_s1 + $0x1658] sm:$0xff]  ;;  %v782_v36 = vld [vmem:[%s6485_s1 + $0x1760] sm:$0xff] }
 0x164   :  { %3706 = vmatpush3.msra.mxu1 %v716_v37  ;;  %3674 = vmatprep.subr.mxu0 %v698_v38  ;;  %v764_v37 = vld [vmem:[%s6485_s1 + $0x16d0] sm:$0xff]  ;;  %v797_v38 = vld [vmem:[%s6485_s1 + $0x17d8] sm:$0xff] }
 0x165   :  { %3707 = vmatprep.subr.mxu1 %v731_v39  ;;  %3675 = vmatpush3.msra.mxu0 %v682_v40  ;;  %v748_v39 = vld [vmem:[%s6485_s1 + $0x1650] sm:$0xff]  ;;  %v781_v40 = vld [vmem:[%s6485_s1 + $0x1758] sm:$0xff] }
 0x166   :  { %3708 = vmatpush3.msra.mxu1 %v715_v41  ;;  %3676 = vmatprep.subr.mxu0 %v697_v42  ;;  %v763_v41 = vld [vmem:[%s6485_s1 + $0x16c8] sm:$0xff]  ;;  %v796_v42 = vld [vmem:[%s6485_s1 + $0x17d0] sm:$0xff] }
 0x167   :  { %3709 = vmatprep.subr.mxu1 %v730_v43  ;;  %3677 = vmatpush3.msra.mxu0 %v681_v44  ;;  %v747_v43 = vld [vmem:[%s6485_s1 + $0x1648] sm:$0xff]  ;;  %v780_v44 = vld [vmem:[%s6485_s1 + $0x1750] sm:$0xff] }
 0x168   :  { %3710 = vmatpush3.msra.mxu1 %v714_v45  ;;  %3678 = vmatprep.subr.mxu0 %v696_v46  ;;  %v762_v45 = vld [vmem:[%s6485_s1 + $0x16c0] sm:$0xff]  ;;  %v795_v46 = vld [vmem:[%s6485_s1 + $0x17c8] sm:$0xff] }
 0x169   :  { %3711 = vmatprep.subr.mxu1 %v729_v47  ;;  %3679 = vmatpush3.msra.mxu0 %v680_v49  ;;  %v746_v47 = vld [vmem:[%s6485_s1 + $0x1640] sm:$0xff]  ;;  %v779_v49 = vld [vmem:[%s6485_s1 + $0x1748] sm:$0xff] }
 0x16a   :  { %3712 = vmatpush3.msra.mxu1 %v713_v50  ;;  %3680 = vmatprep.subr.mxu0 %v695_v51  ;;  %v761_v50 = vld [vmem:[%s6485_s1 + $0x16b8] sm:$0xff]  ;;  %v794_v51 = vld [vmem:[%s6485_s1 + $0x17c0] sm:$0xff] }
 0x16b   :  { %3713 = vmatprep.subr.mxu1 %v728_v52  ;;  %3681 = vmatpush3.msra.mxu0 %v679_v53  ;;  %v745_v52 = vld [vmem:[%s6485_s1 + $0x1638] sm:$0xff]  ;;  %v778_v53 = vld [vmem:[%s6485_s1 + $0x1740] sm:$0xff] }
 0x16c   :  { %3714 = vmatpush3.msra.mxu1 %v712_v54  ;;  %3682 = vmatprep.subr.mxu0 %v694_v55  ;;  %v760_v54 = vld [vmem:[%s6485_s1 + $0x16b0] sm:$0xff]  ;;  %v793_v55 = vld [vmem:[%s6485_s1 + $0x17b8] sm:$0xff] }
 0x16d   :  { %3715 = vmatprep.subr.mxu1 %v727_v56  ;;  %3683 = vmatpush3.msra.mxu0 %v678_v57  ;;  %v744_v56 = vld [vmem:[%s6485_s1 + $0x1630] sm:$0xff]  ;;  %v777_v57 = vld [vmem:[%s6485_s1 + $0x1738] sm:$0xff] }
 0x16e   :  { %3716 = vmatpush3.msra.mxu1 %v711_v59  ;;  %3684 = vmatprep.subr.mxu0 %v693_v60  ;;  %v792_v59 = vld [vmem:[%s6485_s1 + $0x17b0] sm:$0xff]  ;;  %v743_v60 = vld [vmem:[%s6485_s1 + $0x1628] sm:$0xff] }
 0x16f   :  { %3717 = vmatprep.subr.mxu1 %v726_v61  ;;  %3685 = vmatpush3.msra.mxu0 %v677_v62  ;;  %v776_v61 = vld [vmem:[%s6485_s1 + $0x1730] sm:$0xff]  ;;  %v758_v62 = vld [vmem:[%s6485_s1 + $0x16a0] sm:$0xff] }
 0x170   :  { %3718 = vmatpush3.msra.mxu1 %v710_v63  ;;  %3686 = vmatprep.subr.mxu0 %v692_v0  ;;  %v791_v63 = vld [vmem:[%s6485_s1 + $0x17a8] sm:$0xff]  ;;  %v742_v0 = vld [vmem:[%s6485_s1 + $0x1620] sm:$0xff] }
 0x171   :  { %3719 = vmatprep.subr.mxu1 %v725_v2  ;;  %3687 = vmatpush3.msra.mxu0 %v676_v3  ;;  %v775_v2 = vld [vmem:[%s6485_s1 + $0x1728] sm:$0xff]  ;;  %v757_v3 = vld [vmem:[%s6485_s1 + $0x1698] sm:$0xff] }
 0x172   :  { %3720 = vmatpush3.msra.mxu1 %v709_v5  ;;  %3688 = vmatprep.subr.mxu0 %v691_v6  ;;  %v741_v5 = vld [vmem:[%s6485_s1 + $0x1618] sm:$0xff]  ;;  %v774_v6 = vld [vmem:[%s6485_s1 + $0x1720] sm:$0xff] }
 0x173   :  { %3721 = vmatprep.subr.mxu1 %v724_v7  ;;  %3689 = vmatpush3.msra.mxu0 %v675_v8  ;;  %v756_v7 = vld [vmem:[%s6485_s1 + $0x1690] sm:$0xff]  ;;  %v1025_v8 = vcombine.high %v32_v1, %v32_v1 }
 0x174   :  { %3722 = vmatpush3.msra.mxu1 %v708_v9  ;;  %3690 = vmatprep.subr.mxu0 %v690_v10  ;;  %v789_v9 = vld [vmem:[%s6485_s1 + $0x1798] sm:$0xff]  ;;  %v740_v10 = vld [vmem:[%s6485_s1 + $0x1610] sm:$0xff] }
 0x175   :  { %3723 = vmatprep.subr.mxu1 %v723_v12  ;;  %3691 = vmatpush3.msra.mxu0 %v674_v13  ;;  %v773_v12 = vld [vmem:[%s6485_s1 + $0x1718] sm:$0xff]  ;;  %v755_v13 = vld [vmem:[%s6485_s1 + $0x1688] sm:$0xff] }
 0x176   :  { %2562 = vmatprep.mubr.f32.mxu0 %v1023_v14  ;;  %3724 = vmatpush3.msra.mxu1 %v707_v15  ;;  %v788_v14 = vld [vmem:[%s6485_s1 + $0x1790] sm:$0xff]  ;;  %v739_v15 = vld [vmem:[%s6485_s1 + $0x1608] sm:$0xff] }
 0x177   :  { %2563 = vmatmul.mubr.f32.vlgmr.msra.gmra.mxu0 %v1015_v4  ;;  %3725 = vmatprep.subr.mxu1 %v722_v16  ;;  %v790_v4 = vld [vmem:[%s6485_s1 + $0x17a0] sm:$0xff]  ;;  %v772_v16 = vld [vmem:[%s6485_s1 + $0x1710] sm:$0xff] }
 0x178   :  { %3730 = vmatprep.subr.mxu0 %v769_v17  ;;  %3726 = vmatpush3.msra.mxu1 %v706_v18  ;;  %v754_v17 = vld [vmem:[%s6485_s1 + $0x1680] sm:$0xff]  ;;  %v1039_v18 = vrot.slane %v1025_v8, %v4105_v48 }
 0x179   :  { %2632 = vmatprep.mubr.f32.mxu1 %v1024_v19  ;;  %3731 = vmatpush3.msra.mxu0 %v753_v20  ;;  %v787_v19 = vld [vmem:[%s6485_s1 + $0x1788] sm:$0xff]  ;;  %v738_v20 = vld [vmem:[%s6485_s1 + $0x1600] sm:$0xff] }
 0x17a   :  { %2633 = vmatmul.mubr.f32.vlgmr.msra.gmra.mxu1 %v1022_v11  ;;  %3732 = vmatprep.subr.mxu0 %v768_v21  ;;  %v1032_v11 = vrot.slane %v32_v1, %v4105_v48  ;;  %v786_v48 = vld [vmem:[%s6485_s1 + $0x1780] sm:$0xff] }
 0x17b   :  { %3765 = vmatprep.subr.mxu1 %v801_v22  ;;  %3733 = vmatpush3.msra.mxu0 %v752_v23  ;;  %v771_v22 = vld [vmem:[%s6485_s1 + $0x1708] sm:$0xff]  ;;  %v770_v23 = vld [vmem:[%s6485_s1 + $0x1700] sm:$0xff] }
 0x17c   :  { %3766 = vmatpush3.msra.mxu1 %v785_v24  ;;  %3734 = vmatprep.subr.mxu0 %v767_v25  ;;  %v1040_v21 = vcombine.high %v1032_v11, %v1032_v11  ;;  %v1041_v24 = vcombine.high %v1039_v18, %v1039_v18  ;;  %v817_v25 = vld [vmem:[%s6485_s1 + $0x1878] sm:$0xff]  ;;  %v2957_v1 = vld [vmem:[%s6486_s2] ss:$0 sm:$0xff] }
 0x17d   :  { %3767 = vmatprep.subr.mxu1 %v800_v26  ;;  %3735 = vmatpush3.msra.mxu0 %v751_v27  ;;  %v3943_v26 = vmov 0.0   ;;  %v816_v27 = vld [vmem:[%s6485_s1 + $0x1870] sm:$0xff] }
 0x17e   :  { %3768 = vmatpush3.msra.mxu1 %v784_v28  ;;  %3736 = vmatprep.subr.mxu0 %v766_v29  ;;  %v815_v28 = vld [vmem:[%s6485_s1 + $0x1868] sm:$0xff]  ;;  %v814_v29 = vld [vmem:[%s6485_s1 + $0x1860] sm:$0xff] }
 0x17f   :  { %3769 = vmatprep.subr.mxu1 %v799_v30  ;;  %3737 = vmatpush3.msra.mxu0 %v750_v31  ;;  %v813_v30 = vld [vmem:[%s6485_s1 + $0x1858] sm:$0xff]  ;;  %v812_v31 = vld [vmem:[%s6485_s1 + $0x1850] sm:$0xff] }
 0x180   :  { %3770 = vmatpush3.msra.mxu1 %v783_v32  ;;  %3738 = vmatprep.subr.mxu0 %v765_v33  ;;  %v811_v32 = vld [vmem:[%s6485_s1 + $0x1848] sm:$0xff]  ;;  %v810_v33 = vld [vmem:[%s6485_s1 + $0x1840] sm:$0xff] }
 0x181   :  { %3771 = vmatprep.subr.mxu1 %v798_v34  ;;  %3739 = vmatpush3.msra.mxu0 %v749_v35  ;;  %v809_v34 = vld [vmem:[%s6485_s1 + $0x1838] sm:$0xff]  ;;  %v808_v35 = vld [vmem:[%s6485_s1 + $0x1830] sm:$0xff] }
 0x182   :  { %3772 = vmatpush3.msra.mxu1 %v782_v36  ;;  %3740 = vmatprep.subr.mxu0 %v764_v37  ;;  %v807_v36 = vld [vmem:[%s6485_s1 + $0x1828] sm:$0xff]  ;;  %v806_v37 = vld [vmem:[%s6485_s1 + $0x1820] sm:$0xff] }
 0x183   :  { %3773 = vmatprep.subr.mxu1 %v797_v38  ;;  %3741 = vmatpush3.msra.mxu0 %v748_v39  ;;  %v805_v38 = vld [vmem:[%s6485_s1 + $0x1818] sm:$0xff]  ;;  %v804_v39 = vld [vmem:[%s6485_s1 + $0x1810] sm:$0xff] }
 0x184   :  { %3774 = vmatpush3.msra.mxu1 %v781_v40  ;;  %3742 = vmatprep.subr.mxu0 %v763_v41  ;;  %v803_v40 = vld [vmem:[%s6485_s1 + $0x1808] sm:$0xff]  ;;  %v802_v41 = vld [vmem:[%s6485_s1 + $0x1800] sm:$0xff] }
 0x185   :  { %3775 = vmatprep.subr.mxu1 %v796_v42  ;;  %3743 = vmatpush3.msra.mxu0 %v747_v43  ;;  %v2958_v42 = vld.sshfl [vmem:[%s6484_s0 + $0x60] sm:$0x3 pattern:$0x76325410]  ;;  %v2864_v43 = vld [vmem:[%s6487_s3 + $0x78] sm:$0xff] }
 0x186   :  { %3776 = vmatpush3.msra.mxu1 %v780_v44  ;;  %3744 = vmatprep.subr.mxu0 %v762_v45  ;;  %v2863_v44 = vld [vmem:[%s6487_s3 + $0x70] sm:$0xff]  ;;  %v2862_v45 = vld [vmem:[%s6487_s3 + $0x68] sm:$0xff] }
 0x187   :  { %3777 = vmatprep.subr.mxu1 %v795_v46  ;;  %3745 = vmatpush3.msra.mxu0 %v746_v47  ;;  %v2861_v46 = vld [vmem:[%s6487_s3 + $0x60] sm:$0xff]  ;;  %v2860_v47 = vld [vmem:[%s6487_s3 + $0x58] sm:$0xff] }
 0x188   :  { %3778 = vmatpush3.msra.mxu1 %v779_v49  ;;  %3746 = vmatprep.subr.mxu0 %v761_v50  ;;  %v2859_v49 = vld [vmem:[%s6487_s3 + $0x50] sm:$0xff]  ;;  %v2858_v50 = vld [vmem:[%s6487_s3 + $0x48] sm:$0xff] }
 0x189   :  { %3779 = vmatprep.subr.mxu1 %v794_v51  ;;  %3747 = vmatpush3.msra.mxu0 %v745_v52  ;;  %v2857_v51 = vld [vmem:[%s6487_s3 + $0x40] sm:$0xff]  ;;  %v2856_v52 = vld [vmem:[%s6487_s3 + $0x38] sm:$0xff] }
 0x18a   :  { %3780 = vmatpush3.msra.mxu1 %v778_v53  ;;  %3748 = vmatprep.subr.mxu0 %v760_v54  ;;  %v2855_v53 = vld [vmem:[%s6487_s3 + $0x30] sm:$0xff]  ;;  %v2854_v54 = vld [vmem:[%s6487_s3 + $0x28] sm:$0xff] }
 0x18b   :  { %3781 = vmatprep.subr.mxu1 %v793_v55  ;;  %3749 = vmatpush3.msra.mxu0 %v744_v56  ;;  %v2853_v55 = vld [vmem:[%s6487_s3 + $0x20] sm:$0xff]  ;;  %v2852_v56 = vld [vmem:[%s6487_s3 + $0x18] sm:$0xff] }
 0x18c   :  { %3782 = vmatpush3.msra.mxu1 %v777_v57  ;;  %3750 = vmatprep.subr.mxu0 %v759_v58  ;;  %v2851_v57 = vld [vmem:[%s6487_s3 + $0x10] sm:$0xff]  ;;  %v2850_v58 = vld [vmem:[%s6487_s3 + $0x8] sm:$0xff] }
 0x18d   :  { %3783 = vmatprep.subr.mxu1 %v792_v59  ;;  %3751 = vmatpush3.msra.mxu0 %v743_v60  ;;  %v2849_v59 = vld [vmem:[%s6487_s3] sm:$0xff]  ;;  %v2992_v60 = vpop.f32.mrf.mxu0 }
 0x18e   :  { %3784 = vmatpush3.msra.mxu1 %v776_v61  ;;  %3752 = vmatprep.subr.mxu0 %v758_v62  ;;  %v3027_v62 = vpop.f32.mrf.mxu1 }
 0x18f   :  { %3785 = vmatprep.subr.mxu1 %v791_v63  ;;  %3753 = vmatpush3.msra.mxu0 %v742_v0  ;;  %v2993_v61 = vpop.f32.mrf.mxu0 }
 0x190   :  { %3786 = vmatpush3.msra.mxu1 %v775_v2  ;;  %3754 = vmatprep.subr.mxu0 %v757_v3  ;;  %v2994_v0 = vadd.f32 %v2993_v61, %v2992_v60  ;;  %v3028_v2 = vpop.f32.mrf.mxu1 }
 0x191   :  { %3787 = vmatprep.subr.mxu1 %v790_v4  ;;  %3755 = vmatpush3.msra.mxu0 %v741_v5  ;;  %v3062_v63 = vpop.f32.mrf.mxu0 }
 0x192   :  { %3788 = vmatpush3.msra.mxu1 %v774_v6  ;;  %3756 = vmatprep.subr.mxu0 %v756_v7  ;;  %v3097_v4 = vpop.f32.mrf.mxu1  ;;  %v1165_v5 = vadd.f32 %v2994_v0, %v2957_v1  ;;  %v3029_v6 = vadd.f32 %v3028_v2, %v3027_v62 }
 0x193   :  { %3789 = vmatprep.subr.mxu1 %v789_v9  ;;  %3757 = vmatpush3.msra.mxu0 %v740_v10  ;;  %v3063_v3 = vpop.f32.mrf.mxu0 }
 0x194   :  { %3790 = vmatpush3.msra.mxu1 %v773_v12  ;;  %3758 = vmatprep.subr.mxu0 %v755_v13  ;;  %v3064_v8 = vadd.f32 %v3063_v3, %v3062_v63  ;;  %v3098_v9 = vpop.f32.mrf.mxu1  ;;  %v1235_v10 = vadd.f32 %v3029_v6, %v1165_v5 }
 0x195   :  { %3791 = vmatprep.subr.mxu1 %v788_v14  ;;  %3759 = vmatpush3.msra.mxu0 %v739_v15  ;;  %v3132_v7 = vpop.f32.mrf.mxu0  ;;  %v3099_v14 = vadd.f32 %v3098_v9, %v3097_v4 }
 0x196   :  { %3792 = vmatpush3.msra.mxu1 %v772_v16  ;;  %3760 = vmatprep.subr.mxu0 %v754_v17  ;;  %v3167_v12 = vpop.f32.mrf.mxu1  ;;  %v1305_v13 = vadd.f32 %v3064_v8, %v1235_v10 }
 0x197   :  { %3793 = vmatprep.subr.mxu1 %v787_v19  ;;  %3761 = vmatpush3.msra.mxu0 %v738_v20 }
 0x198   :  { %2702 = vmatprep.mubr.f32.mxu0 %v1040_v21  ;;  %3794 = vmatpush3.msra.mxu1 %v771_v22  ;;  %v3168_v17 = vpop.f32.mrf.mxu1 }
 0x199   :  { %2703 = vmatmul.mubr.f32.vlgmr.msra.gmra.mxu0 %v1032_v11  ;;  %3795 = vmatprep.subr.mxu1 %v786_v48  ;;  %v3133_v11 = vpop.f32.mrf.mxu0  ;;  %v3169_v22 = vadd.f32 %v3168_v17, %v3167_v12 }
 0x19a   :  { %3834 = vmatprep.subr.mxu0 %v3943_v26  ;;  %3796 = vmatpush3.msra.mxu1 %v770_v23  ;;  %v3134_v16 = vadd.f32 %v3133_v11, %v3132_v7  ;;  %v3237_v20 = vpop.f32.mrf.mxu1 }
 0x19b   :  { %2772 = vmatprep.mubr.f32.mxu1 %v1041_v24  ;;  %3835 = vmatpush3.msra.mxu0 %v817_v25  ;;  %v3202_v15 = vpop.f32.mrf.mxu0 }
 0x19c   :  { %2773 = vmatmul.mubr.f32.vlgmr.msra.gmra.mxu1 %v1039_v18  ;;  %3836 = vmatprep.subr.mxu0 %v3943_v26  ;;  %v1375_v18 = vadd.f32 %v3099_v14, %v1305_v13  ;;  %v3238_v24 = vpop.f32.mrf.mxu1 }
 0x19d   :  { %3837 = vmatpush3.msra.mxu0 %v816_v27  ;;  %3866 = vmatprep.mubr.msk.f32.mxu0 %vm3944_vm0, %v3943_v26  ;;  %v3203_v19 = vpop.f32.mrf.mxu0 }
 0x19e   :  { %3838 = vmatprep.subr.mxu0 %v3943_v26  ;;  %3869 = vmatprep.subr.mxu1 %v3943_v26  ;;  %v1445_v21 = vadd.f32 %v3134_v16, %v1375_v18  ;;  %v3204_v23 = vadd.f32 %v3203_v19, %v3202_v15  ;;  %v3307_v27 = vpop.f32.mrf.mxu1 }
 0x19f   :  { %3839 = vmatpush3.msra.mxu0 %v815_v28  ;;  %3901 = vmatprep.mubr.msk.f32.mxu1 %vm3944_vm0, %v3943_v26  ;;  %v3272_v48 = vpop.f32.mrf.mxu0 }
 0x1a0   :  { %3840 = vmatprep.subr.mxu0 %v3943_v26  ;;  %3870 = vmatpush3.msra.mxu1 %v2864_v43  ;;  %v1515_v25 = vadd.f32 %v3169_v22, %v1445_v21 }
 0x1a1   :  { %3841 = vmatpush3.msra.mxu0 %v814_v29  ;;  %3871 = vmatprep.subr.mxu1 %v3943_v26  ;;  %v3239_v29 = vadd.f32 %v3238_v24, %v3237_v20 }
 0x1a2   :  { %3842 = vmatprep.subr.mxu0 %v3943_v26  ;;  %3872 = vmatpush3.msra.mxu1 %v2863_v44  ;;  %v1585_v28 = vadd.f32 %v3204_v23, %v1515_v25 }
 0x1a3   :  { %3843 = vmatpush3.msra.mxu0 %v813_v30  ;;  %3873 = vmatprep.subr.mxu1 %v3943_v26 }
 0x1a4   :  { %3844 = vmatprep.subr.mxu0 %v3943_v26  ;;  %3874 = vmatpush3.msra.mxu1 %v2862_v45 }
 0x1a5   :  { %3845 = vmatpush3.msra.mxu0 %v812_v31  ;;  %3875 = vmatprep.subr.mxu1 %v3943_v26 }
 0x1a6   :  { %3846 = vmatprep.subr.mxu0 %v3943_v26  ;;  %3876 = vmatpush3.msra.mxu1 %v2861_v46 }
 0x1a7   :  { %3847 = vmatpush3.msra.mxu0 %v811_v32  ;;  %3877 = vmatprep.subr.mxu1 %v3943_v26  ;;  %v3308_v32 = vpop.f32.mrf.mxu1 }
 0x1a8   :  { %3848 = vmatprep.subr.mxu0 %v3943_v26  ;;  %3878 = vmatpush3.msra.mxu1 %v2860_v47 }
 0x1a9   :  { %3849 = vmatpush3.msra.mxu0 %v810_v33  ;;  %3879 = vmatprep.subr.mxu1 %v3943_v26  ;;  %v1655_v33 = vadd.f32 %v3239_v29, %v1585_v28 }
 0x1aa   :  { %3850 = vmatprep.subr.mxu0 %v3943_v26  ;;  %3880 = vmatpush3.msra.mxu1 %v2859_v49 }
 0x1ab   :  { %3851 = vmatpush3.msra.mxu0 %v809_v34  ;;  %3881 = vmatprep.subr.mxu1 %v3943_v26 }
 0x1ac   :  { %3852 = vmatprep.subr.mxu0 %v3943_v26  ;;  %3882 = vmatpush3.msra.mxu1 %v2858_v50 }
 0x1ad   :  { %3853 = vmatpush3.msra.mxu0 %v808_v35  ;;  %3883 = vmatprep.subr.mxu1 %v3943_v26  ;;  %v3377_v35 = vpop.f32.mrf.mxu1 }
 0x1ae   :  { %3854 = vmatprep.subr.mxu0 %v3943_v26  ;;  %3884 = vmatpush3.msra.mxu1 %v2857_v51 }
 0x1af   :  { %3855 = vmatpush3.msra.mxu0 %v807_v36  ;;  %3885 = vmatprep.subr.mxu1 %v3943_v26 }
 0x1b0   :  { %3856 = vmatprep.subr.mxu0 %v3943_v26  ;;  %3886 = vmatpush3.msra.mxu1 %v2856_v52 }
 0x1b1   :  { %3857 = vmatpush3.msra.mxu0 %v806_v37  ;;  %3887 = vmatprep.subr.mxu1 %v3943_v26  ;;  %v3309_v37 = vadd.f32 %v3308_v32, %v3307_v27  ;;  %v2959_v32 = vld [vmem:[%s6488_s4] ss:$0 sm:$0xff] }
 0x1b2   :  { %3858 = vmatprep.subr.mxu0 %v3943_v26  ;;  %3888 = vmatpush3.msra.mxu1 %v2855_v53 }
 0x1b3   :  { %3859 = vmatpush3.msra.mxu0 %v805_v38  ;;  %3889 = vmatprep.subr.mxu1 %v3943_v26 }
 0x1b4   :  { %3860 = vmatprep.subr.mxu0 %v3943_v26  ;;  %3890 = vmatpush3.msra.mxu1 %v2854_v54 }
 0x1b5   :  { %3861 = vmatpush3.msra.mxu0 %v804_v39  ;;  %3891 = vmatprep.subr.mxu1 %v3943_v26 }
 0x1b6   :  { %3862 = vmatprep.subr.mxu0 %v3943_v26  ;;  %3892 = vmatpush3.msra.mxu1 %v2853_v55 }
 0x1b7   :  { %3863 = vmatpush3.msra.mxu0 %v803_v40  ;;  %3893 = vmatprep.subr.mxu1 %v3943_v26  ;;  %v3378_v40 = vpop.f32.mrf.mxu1 }
 0x1b8   :  { %3864 = vmatprep.subr.mxu0 %v3943_v26  ;;  %3894 = vmatpush3.msra.mxu1 %v2852_v56  ;;  %v3379_v45 = vadd.f32 %v3378_v40, %v3377_v35 }
 0x1b9   :  { %3865 = vmatpush3.msra.mxu0 %v802_v41  ;;  %3895 = vmatprep.subr.mxu1 %v3943_v26  ;;  %v3447_v43 = vpop.f32.mrf.mxu1 }
 0x1ba   :  { %3867 = vmatmul.mubr.f32.vlgmr.msra.gmra.mxu0 %v2958_v42  ;;  %3896 = vmatpush3.msra.mxu1 %v2851_v57 }
 0x1bb   :  { %3897 = vmatprep.subr.mxu1 %v3943_v26  ;;  %v3448_v49 = vpop.f32.mrf.mxu1 }
 0x1bc   :  { %3898 = vmatpush3.msra.mxu1 %v2850_v58  ;;  %v3449_v54 = vadd.f32 %v3448_v49, %v3447_v43 }
 0x1bd   :  { %3899 = vmatprep.subr.mxu1 %v3943_v26  ;;  %v3273_v26 = vpop.f32.mrf.mxu0 }
 0x1be   :  { %3900 = vmatpush3.msra.mxu1 %v2849_v59  ;;  %v3274_v31 = vadd.f32 %v3273_v26, %v3272_v48 }
 0x1bf   :  { %v3342_v30 = vpop.f32.mrf.mxu0 }
 0x1c0   :  { %v1725_v36 = vadd.f32 %v3274_v31, %v1655_v33 }
 0x1c1   :  { %v3343_v34 = vpop.f32.mrf.mxu0 }
 0x1c2   :  { %v3344_v39 = vadd.f32 %v3343_v34, %v3342_v30  ;;  %v1795_v41 = vadd.f32 %v3309_v37, %v1725_v36 }
 0x1c3   :  { %v3412_v38 = vpop.f32.mrf.mxu0 }
 0x1c4   :  { %v1865_v44 = vadd.f32 %v3344_v39, %v1795_v41 }
 0x1c5   :  { %v3413_v42 = vpop.f32.mrf.mxu0 }
 0x1c6   :  { %v3414_v47 = vadd.f32 %v3413_v42, %v3412_v38  ;;  %v1935_v50 = vadd.f32 %v3379_v45, %v1865_v44 }
 0x1c8   :  { %v2005_v53 = vadd.f32 %v3414_v47, %v1935_v50 }
 0x1ca   :  { %v2075_v58 = vadd.f32 %v3449_v54, %v2005_v53 }
 0x1d1   :  { %v3482_v46 = vpop.f32.mrf.mxu0 }
 0x1d3   :  { %v3483_v51 = vpop.f32.mrf.mxu0 }
 0x1d4   :  { %v3517_v52 = vpop.f32.mrf.mxu1  ;;  %v3484_v56 = vadd.f32 %v3483_v51, %v3482_v46 }
 0x1d6   :  { %v3518_v57 = vpop.f32.mrf.mxu1  ;;  %v2145_v61 = vadd.f32 %v3484_v56, %v2075_v58 }
 0x1d7   :  { %v3519_v62 = vadd.f32 %v3518_v57, %v3517_v52 }
 0x1d9   :  { %v2215_v2 = vadd.f32 %v3519_v62, %v2145_v61 }
 0x1f3   :  { %v3552_v55 = vpop.f32.mrf.mxu0 }
 0x1f5   :  { %v3553_v59 = vpop.f32.mrf.mxu0 }
 0x1f6   :  { %v3587_v60 = vpop.f32.mrf.mxu1  ;;  %v3554_v0 = vadd.f32 %v3553_v59, %v3552_v55 }
 0x1f8   :  { %v3588_v1 = vpop.f32.mrf.mxu1  ;;  %v2285_v5 = vadd.f32 %v3554_v0, %v2215_v2 }
 0x1f9   :  { %v3589_v6 = vadd.f32 %v3588_v1, %v3587_v60 }
 0x1fb   :  { %v2355_v10 = vadd.f32 %v3589_v6, %v2285_v5 }
 0x215   :  { %v3622_v63 = vpop.f32.mrf.mxu0 }
 0x217   :  { %v3623_v3 = vpop.f32.mrf.mxu0 }
 0x218   :  { %v3657_v4 = vpop.f32.mrf.mxu1  ;;  %v3624_v8 = vadd.f32 %v3623_v3, %v3622_v63 }
 0x21a   :  { %v3658_v9 = vpop.f32.mrf.mxu1  ;;  %v2425_v13 = vadd.f32 %v3624_v8, %v2355_v10 }
 0x21b   :  { %v3659_v14 = vadd.f32 %v3658_v9, %v3657_v4 }
 0x21d   :  { %v2495_v18 = vadd.f32 %v3659_v14, %v2425_v13 }
 0x237   :  { %v3692_v7 = vpop.f32.mrf.mxu0 }
 0x239   :  { %v3693_v11 = vpop.f32.mrf.mxu0 }
 0x23a   :  { %v3727_v12 = vpop.f32.mrf.mxu1  ;;  %v3694_v16 = vadd.f32 %v3693_v11, %v3692_v7 }
 0x23c   :  { %v3728_v17 = vpop.f32.mrf.mxu1  ;;  %v2565_v21 = vadd.f32 %v3694_v16, %v2495_v18 }
 0x23d   :  { %v3729_v22 = vadd.f32 %v3728_v17, %v3727_v12 }
 0x23f   :  { %v2635_v24 = vadd.f32 %v3729_v22, %v2565_v21 }
 0x259   :  { %v3762_v15 = vpop.f32.mrf.mxu0 }
 0x25b   :  { %v3763_v19 = vpop.f32.mrf.mxu0 }
 0x25c   :  { %v3797_v20 = vpop.f32.mrf.mxu1  ;;  %v3764_v48 = vadd.f32 %v3763_v19, %v3762_v15 }
 0x25e   :  { %v3798_v23 = vpop.f32.mrf.mxu1  ;;  %v2705_v25 = vadd.f32 %v3764_v48, %v2635_v24 }
 0x25f   :  { %v3799_v26 = vadd.f32 %v3798_v23, %v3797_v20 }
 0x261   :  { %v2775_v27 = vadd.f32 %v3799_v26, %v2705_v25 }
 0x27a   :  { %v2844_v28 = vpop.f32.mrf.mxu0 }
 0x27b   :  { %v2845_v29 = vadd.f32 %v2844_v28, %v2775_v27 }
 0x27c   :  { %v3868_v30 = vpop.f32.mrf.mxu0 }
 0x27d   :  { %v2848_v31 = vmax.f32 %v2845_v29, 0.0 }
 0x27f   :  { %3902 = vmatmul.mubr.f32.vlgmr.msra.gmra.mxu1 %v2848_v31 }
 0x33f   :  { %v2938_v33 = vpop.f32.mrf.mxu1 }
 0x340   :  { %v2939_v34 = vadd.f32 %v2959_v32, %v2938_v33 }
 0x341   :  { %v3903_v35 = vpop.f32.mrf.mxu1 }
 0x342   :  { %2942 = vst [vmem:[#allocation2] sm:$0x3] %v2939_v34 }
 0x343   :  { %3931 = shalt.err (!%p3928_p4)
}
 0x344   :  { %2952 = dma.vmem_to_hbm [thread:$0]  %s2950_s18, 32, %s6489_s5, [#allocation3]  }
 0x345   :  { %3940 = dma.done.wait [#allocation3], 32  }
 0x346   :  { %3941 = vsyncadd [#allocation3], 4294967264 }
 0x347   :  { %2956 = vsyncpa [#allocation3], 1 }

</bundles_post_ra>
